<compile_context>
chip_gen: v7x
topology: tpu7x:2x2x1
jax: 0.10.0
libtpu: 0.0.40
codegen_flags: <defaults>
</compile_context>

<pallas_src>
import functools
import math

import jax
import jax.numpy as jnp
from jax import lax
from jax.experimental import pallas as pl
from jax.experimental.pallas import tpu as pltpu

MATMUL_DTYPE = jnp.bfloat16           # MXU operand dtype (accumulate in f32)


def _round_up(n, m):
    return ((n + m - 1) // m) * m


def _vmem_limit_bytes(est_bytes):
    """Per-call scoped-VMEM budget: 2x the estimated working set (+8 MiB headroom),
    clamped to [32 MiB, 3/4 of physical VMEM]."""
    try:
        cap = int(getattr(pltpu.get_tpu_info(), "vmem_capacity_bytes", 64 << 20))
    except Exception:
        cap = 64 << 20
    want = 2 * int(est_bytes) + (8 << 20)
    lo = 32 << 20
    hi = max(lo, (cap * 3) // 4)
    return int(min(max(want, lo), hi))


# ======================================================================================
# Pallas kernel 1: fused stack of 3x3 "same" convolutions (+ LeakyReLU), ONE pallas_call.
# Layout: (B, C, HW) channels-major; HW on the lane dimension.
# Each layer: build a bf16 (9*Cin_pad, HW) im2col slab in VMEM scratch from shifted
# slices of a zero-margin f32 staging buffer, then a single bf16 MXU matmul
# W(Cout, 9*Cin_pad) @ slab with f32 accumulation.
# ======================================================================================
def conv3x3_stack(x, layers, H, W, *, split=None):
    """x: (B, Cin0, HW) f32.
    layers: list of (weight (Cout, Cin, 3, 3), bias (Cout,), leaky_alpha or None).
    split: if not None, split the last activation along channels at `split` and return
           (10*tanh(out[:split]), sigmoid(out[split:]))  — the fused
           SecondOrderDeformableAlignment offset post-processing.
    """
    B, Cin0, HW = x.shape
    assert HW == H * W
    assert W + 1 <= 128  # TODO(synk): wider frames need wider zero margins / halo tiling.

    # Pad first-layer input channels to a multiple of 16 so every bf16 slab slice
    # (k * cin_pad row offsets) stays sublane-tile aligned.
    Cin0_pad = _round_up(Cin0, 16)
    if Cin0_pad != Cin0:
        x = jnp.pad(x, ((0, 0), (0, Cin0_pad - Cin0), (0, 0)))

    w_mats, biases, alphas, dims = [], [], [], []
    cin_logical = Cin0
    stage_rows_prev = Cin0_pad        # rows actually staged into pad_ref for layer 0
    for (w, b, a) in layers:
        Cout, Cin, KH, KW = w.shape
        assert KH == 3 and KW == 3 and Cin == cin_logical
        cin_pad = _round_up(Cin, 16)
        if cin_pad != Cin:
            w = jnp.pad(w, ((0, 0), (0, cin_pad - Cin), (0, 0), (0, 0)))
        wm = jnp.transpose(w, (0, 2, 3, 1)).reshape(Cout, 9 * cin_pad)
        w_mats.append(wm.astype(MATMUL_DTYPE))        # bf16 weights: 2x MXU, half HBM
        biases.append(b.reshape(Cout, 1).astype(jnp.float32))
        alphas.append(a)
        dims.append((cin_pad, Cout, stage_rows_prev))
        cin_logical = Cout
        stage_rows_prev = Cout

    n_layers = len(layers)
    n_out = 1 if split is None else 2
    cout_last = dims[-1][1]
    max_cin_pad = max(d[0] for d in dims)
    HWP = HW + 2 * 128                 # 128-wide zero margins handle vertical taps
    taps_dhdw = [(dh, dw) for dh in (-1, 0, 1) for dw in (-1, 0, 1)]

    def kernel(*refs):
        x_ref = refs[0]
        w_refs = [refs[1 + 2 * i] for i in range(n_layers)]
        b_refs = [refs[2 + 2 * i] for i in range(n_layers)]
        out_start = 1 + 2 * n_layers
        out_refs = refs[out_start:out_start + n_out]
        pad_ref = refs[out_start + n_out]        # (max_cin_pad, HW+256) f32 staging
        slab_ref = refs[out_start + n_out + 1]   # (9*max_cin_pad, HW) bf16 im2col slab

        # Two column masks suffice: the zero margins already make every vertically-OOB
        # read zero, so only the horizontal wrap (dw != 0) needs masking.
        col = lax.broadcasted_iota(jnp.int32, (1, HW), 1) % W
        mask_l = col >= 1          # used for dw == -1
        mask_r = col <= W - 2      # used for dw == +1

        # Zero only the two 128-wide margins (center is rewritten every layer).
        pad_ref[:, 0:128] = jnp.zeros((max_cin_pad, 128), jnp.float32)
        pad_ref[:, 128 + HW:HWP] = jnp.zeros((max_cin_pad, 128), jnp.float32)

        h = x_ref[...]                                           # (Cin0_pad, HW) f32
        for li in range(n_layers):
            cin_pad, cout, stage_rows = dims[li]
            # Stage the layer input with zero margins: "same" padding fully in VMEM.
            pad_ref[0:stage_rows, 128:128 + HW] = h
            if cin_pad > stage_rows:
                # Channel-padding rows: make them zero so padded weight columns see 0.
                pad_ref[stage_rows:cin_pad, 128:128 + HW] = jnp.zeros(
                    (cin_pad - stage_rows, HW), jnp.float32)
            for k, (dh, dw) in enumerate(taps_dhdw):
                s = dh * W + dw
                tap = pad_ref[0:cin_pad, 128 + s:128 + s + HW]   # shifted view, f32
                if dw == -1:
                    tap = jnp.where(mask_l, tap, 0.0)
                elif dw == 1:
                    tap = jnp.where(mask_r, tap, 0.0)
                # Elementwise math in f32; convert only at the packed bf16 store.
                slab_ref[k * cin_pad:(k + 1) * cin_pad, :] = tap.astype(MATMUL_DTYPE)
            acc = jnp.dot(w_refs[li][...], slab_ref[0:9 * cin_pad, :],
                          preferred_element_type=jnp.float32)    # single big-K matmul
            acc = acc + b_refs[li][...]
            a = alphas[li]
            if a is not None:
                acc = jnp.where(acc >= 0.0, acc, jnp.float32(a) * acc)   # LeakyReLU
            h = acc

        if split is None:
            out_refs[0][...] = h
        else:
            # Fused SecondOrderDeformableAlignment offset post-processing (f32 math).
            out_refs[0][...] = 10.0 * jnp.tanh(h[0:split, :])
            out_refs[1][...] = jax.nn.sigmoid(h[split:cout_last, :])

    in_specs = [pl.BlockSpec((None, Cin0_pad, HW), lambda bi: (bi, 0, 0))]
    for (cin_pad, cout, _) in dims:
        in_specs.append(pl.BlockSpec((cout, 9 * cin_pad), lambda bi: (0, 0)))
        in_specs.append(pl.BlockSpec((cout, 1), lambda bi: (0, 0)))

    if split is None:
        out_shape = jax.ShapeDtypeStruct((B, cout_last, HW), jnp.float32)
        out_specs = pl.BlockSpec((None, cout_last, HW), lambda bi: (bi, 0, 0))
    else:
        out_shape = (jax.ShapeDtypeStruct((B, split, HW), jnp.float32),
                     jax.ShapeDtypeStruct((B, cout_last - split, HW), jnp.float32))
        out_specs = (pl.BlockSpec((None, split, HW), lambda bi: (bi, 0, 0)),
                     pl.BlockSpec((None, cout_last - split, HW), lambda bi: (bi, 0, 0)))

    # Working-set estimate: scratch + double-buffered input/output blocks + weights.
    est = (max_cin_pad * HWP * 4
           + 9 * max_cin_pad * HW * 2
           + 2 * Cin0_pad * HW * 4
           + 2 * cout_last * HW * 4
           + sum(2 * (co * 9 * ci * 2 + co * 4) for (ci, co, _) in dims))

    # TODO(synk): halo'd row-tile grid axis here for very large H*W (v7x 64 MiB VMEM).
    return pl.pallas_call(
        kernel,
        out_shape=out_shape,
        grid=(B,),
        in_specs=in_specs,
        out_specs=out_specs,
        scratch_shapes=[
            pltpu.VMEM((max_cin_pad, HWP), jnp.float32),
            pltpu.VMEM((9 * max_cin_pad, HW), MATMUL_DTYPE),
        ],
        compiler_params=pltpu.CompilerParams(
            dimension_semantics=("parallel",),
            vmem_limit_bytes=_vmem_limit_bytes(est),
        ),
    )(x, *[z for pair in zip(w_mats, biases) for z in pair])


# ======================================================================================
# Pallas kernel 2: plain (Cout, K) @ (K, N) matmul + bias (+ optional LeakyReLU).
# Used for the deformable-conv contraction (K = 9*Cin) and the fused 1x1 fusion conv.
# Inputs are cast to bf16 at the producer; N padded to a 128 multiple and tiled >=128;
# grid tiles both batch and N ("parallel","parallel" -> keeps 2 TCs busy on v7x).
# ======================================================================================
def matmul_bias_act(x, w, b, *, alpha=None):
    x = x.astype(MATMUL_DTYPE)            # producer-side cast (fuses with the producer)
    B, K, N = x.shape
    Cout = w.shape[0]
    N128 = _round_up(N, 128)
    tile_n = 128
    for t in (512, 384, 256, 128):        # largest tile that divides the padded N
        if N128 % t == 0:
            tile_n = t
            break
    if N128 != N:
        x = jnp.pad(x, ((0, 0), (0, 0), (0, N128 - N)))
    wb = w.astype(MATMUL_DTYPE)
    b2 = b.reshape(Cout, 1).astype(jnp.float32)

    def kernel(x_ref, w_ref, b_ref, o_ref):
        acc = jnp.dot(w_ref[...], x_ref[...], preferred_element_type=jnp.float32)
        acc = acc + b_ref[...]
        if alpha is not None:
            acc = jnp.where(acc >= 0.0, acc, jnp.float32(alpha) * acc)
        o_ref[...] = acc

    est = 2 * (K * tile_n * 2 + Cout * tile_n * 4) + 2 * (Cout * K * 2 + Cout * 4)
    out = pl.pallas_call(
        kernel,
        out_shape=jax.ShapeDtypeStruct((B, Cout, N128), jnp.float32),
        grid=(B, N128 // tile_n),
        in_specs=[
            pl.BlockSpec((None, K, tile_n), lambda bi, ni: (bi, 0, ni)),
            pl.BlockSpec((Cout, K), lambda bi, ni: (0, 0)),
            pl.BlockSpec((Cout, 1), lambda bi, ni: (0, 0)),
        ],
        out_specs=pl.BlockSpec((None, Cout, tile_n), lambda bi, ni: (bi, 0, ni)),
        compiler_params=pltpu.CompilerParams(
            dimension_semantics=("parallel", "parallel"),
            vmem_limit_bytes=_vmem_limit_bytes(est),
        ),
    )(x, wb, b2)
    if N128 != N:
        out = out[:, :, :N]
    return out


# ======================================================================================
# Gather-based bilinear sampling.
# TODO(synk): the per-pixel dynamic gather runs as XLA take_along_axis — there is no
# robust dynamic-gather primitive inside a TPU Pallas kernel; only the index/weight math
# here is glue, all dense compute stays in the Pallas kernels above.
# ======================================================================================
def _bilinear_sample(xg, sx, sy, H, W):
    """xg: (B, G, CPG, HW); sx, sy: (B, G, S) pixel coords.
    Returns (B, G, CPG, S) bilinear samples (f32) with zero padding outside the image
    (== grid_sample(padding_mode='zeros', align_corners=True) / torchvision DCN)."""
    B, G, CPG, HW = xg.shape
    x0 = jnp.floor(sx)
    y0 = jnp.floor(sy)
    wx1 = sx - x0
    wx0 = 1.0 - wx1
    wy1 = sy - y0
    wy0 = 1.0 - wy1

    def corner(cx, cy, wgt):
        valid = (cx >= 0.0) & (cx <= W - 1.0) & (cy >= 0.0) & (cy <= H - 1.0)
        ix = jnp.clip(cx, 0.0, W - 1.0).astype(jnp.int32)
        iy = jnp.clip(cy, 0.0, H - 1.0).astype(jnp.int32)
        idx = iy * W + ix                                       # (B, G, S)
        wv = jnp.where(valid, wgt, 0.0)
        idx_b = jnp.broadcast_to(idx[:, :, None, :], (B, G, CPG, idx.shape[-1]))
        vals = jnp.take_along_axis(xg, idx_b, axis=-1)          # (B, G, CPG, S)
        return vals * wv[:, :, None, :]

    return (corner(x0, y0, wx0 * wy0) + corner(x0 + 1.0, y0, wx1 * wy0) +
            corner(x0, y0 + 1.0, wx0 * wy1) + corner(x0 + 1.0, y0 + 1.0, wx1 * wy1))


def flow_warp(x, flow, H, W):
    """x: (B, C, HW), flow: (B, 2, HW) with channels (dx, dy)."""
    B, C, HW = x.shape
    p = jnp.arange(HW, dtype=jnp.int32)
    px = (p % W).astype(jnp.float32)[None, :]
    py = (p // W).astype(jnp.float32)[None, :]
    sx = (px + flow[:, 0])[:, None, :]
    sy = (py + flow[:, 1])[:, None, :]
    out = _bilinear_sample(x[:, None], sx, sy, H, W)            # (B, 1, C, HW)
    return out.reshape(B, C, HW)


def _dcn_sample_slab(x_cat, offsets, mask, flow1, flow2, H, W, G):
    """Build the sampled-and-masked im2col slab (B, 9*Cin, HW) in bf16 for the modulated
    second-order deformable conv (torchvision layout: offset channel 2*(g*9+k)+{dy,dx},
    mask channel g*9+k).  First G/2 deform groups use flow1, last G/2 use flow2."""
    B, Cin, HW = x_cat.shape
    CPG = Cin // G
    off = offsets.reshape(B, G, 9, 2, HW)
    dy = off[:, :, :, 0, :]
    dx = off[:, :, :, 1, :]
    fy = jnp.concatenate([jnp.broadcast_to(flow1[:, None, 1, :], (B, G // 2, HW)),
                          jnp.broadcast_to(flow2[:, None, 1, :], (B, G // 2, HW))], axis=1)
    fx = jnp.concatenate([jnp.broadcast_to(flow1[:, None, 0, :], (B, G // 2, HW)),
                          jnp.broadcast_to(flow2[:, None, 0, :], (B, G // 2, HW))], axis=1)
    dy = dy + fy[:, :, None, :]
    dx = dx + fx[:, :, None, :]

    p = jnp.arange(HW, dtype=jnp.int32)
    px = (p % W).astype(jnp.float32)
    py = (p // W).astype(jnp.float32)
    kh = jnp.repeat(jnp.arange(3, dtype=jnp.float32), 3)        # tap row offsets
    kw = jnp.tile(jnp.arange(3, dtype=jnp.float32), 3)
    sy = py[None, None, None, :] + (kh - 1.0)[None, None, :, None] + dy    # (B, G, 9, HW)
    sx = px[None, None, None, :] + (kw - 1.0)[None, None, :, None] + dx

    # Gather from a bf16 view (halves gather bytes); weighting/modulation stays f32.
    xg = x_cat.reshape(B, G, CPG, HW).astype(MATMUL_DTYPE)
    samp = _bilinear_sample(xg, sx.reshape(B, G, -1), sy.reshape(B, G, -1), H, W)
    samp = samp.reshape(B, G, CPG, 9, HW) * mask.reshape(B, G, 1, 9, HW)   # modulate
    # reorder rows to (k, g, cpg) == (k, ci) so ONE matmul against W[co, k*Cin+ci] applies
    slab = jnp.transpose(samp, (0, 3, 1, 2, 4)).reshape(B, 9 * Cin, HW)
    return slab.astype(MATMUL_DTYPE)      # bf16 slab: half the HBM round-trip


# ======================================================================================
# SecondOrderDeformableAlignment.forward
# ======================================================================================
def second_order_deform_align(mp, x_cat, cond, flow1, flow2, H, W, G):
    extra = jnp.concatenate([cond, flow1, flow2], axis=1)       # (B, 3C+4, HW)
    n = 9 * G
    # Fused conv_offset tower (4 convs + LeakyReLU 0.1) with 10*tanh / sigmoid epilogue.
    offsets, mask = conv3x3_stack(
        extra,
        [(mp['off0_w'], mp['off0_b'], 0.1),
         (mp['off1_w'], mp['off1_b'], 0.1),
         (mp['off2_w'], mp['off2_b'], 0.1),
         (mp['off3_w'], mp['off3_b'], None)],
        H, W, split=2 * n)
    slab = _dcn_sample_slab(x_cat, offsets, mask, flow1, flow2, H, W, G)   # bf16
    Cout = mp['dcn_w'].shape[0]
    w_mat = jnp.transpose(mp['dcn_w'], (0, 2, 3, 1)).reshape(Cout, -1)     # (C, 9*2C)
    return matmul_bias_act(slab, w_mat, mp['dcn_b'])


# ======================================================================================
# BidirectionalPropagation.forward
#   x: (B, T, C, H, W), flows_*: (B, T-1, 2, H, W) with channels (flow_x, flow_y)
# ======================================================================================
@functools.partial(jax.jit, static_argnames=("deform_groups",))
def bidirectional_propagation(params, x, flows_backward, flows_forward, deform_groups=16):
    B, T, C, H, W = x.shape
    HW = H * W
    G = deform_groups
    assert (2 * C) % G == 0 and C % 8 == 0

    xf = x.reshape(B, T, C, HW)
    fb = flows_backward.reshape(B, T - 1, 2, HW)
    ff = flows_forward.reshape(B, T - 1, 2, HW)

    feats = {'spatial': [xf[:, i] for i in range(T)]}

    for mi, module in enumerate(['backward_', 'forward_']):
        mp = params[module]
        feats[module] = []
        flow_idx = list(range(-1, T - 1))
        mapping_idx = list(range(T)) + list(range(T))[::-1]
        if 'backward' in module:
            frame_idx = list(range(T - 1, -1, -1))
            flows = fb
        else:
            frame_idx = list(range(T))
            flows = ff

        feat_prop = jnp.zeros((B, C, HW), jnp.float32)
        for i, idx in enumerate(frame_idx):
            feat_current = feats['spatial'][mapping_idx[idx]]
            if i > 0:
                flow_n1 = flows[:, flow_idx[i]]                       # (B, 2, HW)
                if i > 1:
                    feat_n2 = feats[module][-2]
                    flow_n2_prev = flows[:, flow_idx[i - 1]]
                    # Both warps use flow_n1 — merge into a single gather over channels.
                    warped = flow_warp(
                        jnp.concatenate([feat_prop, flow_n2_prev], axis=1),
                        flow_n1, H, W)
                    cond_n1 = warped[:, :C]
                    flow_n2 = flow_n1 + warped[:, C:C + 2]
                    cond_n2 = flow_warp(feat_n2, flow_n2, H, W)
                else:
                    cond_n1 = flow_warp(feat_prop, flow_n1, H, W)
                    feat_n2 = jnp.zeros_like(feat_prop)
                    flow_n2 = jnp.zeros_like(flow_n1)
                    cond_n2 = jnp.zeros_like(cond_n1)
                cond = jnp.concatenate([cond_n1, feat_current, cond_n2], axis=1)
                feat_prop_in = jnp.concatenate([feat_prop, feat_n2], axis=1)
                feat_prop = second_order_deform_align(mp, feat_prop_in, cond,
                                                      flow_n1, flow_n2, H, W, G)
            feat = [feat_current]
            for k in feats:
                if k not in ['spatial', module]:
                    feat.append(feats[k][idx])
            feat.append(feat_prop)
            feat = jnp.concatenate(feat, axis=1)
            # Fused backbone: conv3x3 + LeakyReLU(0.1) + conv3x3 in ONE pallas_call.
            h1 = conv3x3_stack(feat, [(mp['bb0_w'], mp['bb0_b'], 0.1),
                                      (mp['bb1_w'], mp['bb1_b'], None)], H, W)
            feat_prop = feat_prop + h1
            feats[module].append(feat_prop)
        if 'backward' in module:
            feats[module].reverse()

    # One fused 1x1 fusion conv over ALL frames (T folded into the grid batch axis).
    align_all = jnp.stack(
        [jnp.concatenate([feats['backward_'][i], feats['forward_'][i]], axis=1)
         for i in range(T)], axis=1)                                   # (B, T, 2C, HW)
    wf = params['fusion_w'].reshape(params['fusion_w'].shape[0], -1)   # (C, 2C) 1x1
    fused = matmul_bias_act(align_all.reshape(B * T, 2 * C, HW), wf, params['fusion_b'])
    out = fused.reshape(B, T, C, HW)
    return out.reshape(B, T, C, H, W) + x


# ======================================================================================
# Deterministic parameter init (shapes from BidirectionalPropagation.__init__; zeroed
# deform bias and zeroed last conv_offset layer are respected).
# ======================================================================================
def init_params(key, C, G=16):
    keys = list(jax.random.split(key, 64))
    it = iter(keys)

    def conv_init(cout, cin, k):
        s = 1.0 / math.sqrt(cin * k * k)
        w = jax.random.uniform(next(it), (cout, cin, k, k), jnp.float32, -s, s)
        b = jax.random.uniform(next(it), (cout,), jnp.float32, -s, s)
        return w, b

    params = {}
    for mi, module in enumerate(['backward_', 'forward_']):
        mp = {}
        s = 1.0 / math.sqrt(2 * C * 3 * 3)
        mp['dcn_w'] = jax.random.uniform(next(it), (C, 2 * C, 3, 3), jnp.float32, -s, s)
        mp['dcn_b'] = jnp.zeros((C,), jnp.float32)                 # init_weights: bias = 0
        mp['off0_w'], mp['off0_b'] = conv_init(C, 3 * C + 4, 3)
        mp['off1_w'], mp['off1_b'] = conv_init(C, C, 3)
        mp['off2_w'], mp['off2_b'] = conv_init(C, C, 3)
        mp['off3_w'] = jnp.zeros((27 * G, C, 3, 3), jnp.float32)   # init_offset: zeros
        mp['off3_b'] = jnp.zeros((27 * G,), jnp.float32)
        mp['bb0_w'], mp['bb0_b'] = conv_init(C, (2 + mi) * C, 3)
        mp['bb1_w'], mp['bb1_b'] = conv_init(C, C, 3)
        params[module] = mp
    params['fusion_w'], params['fusion_b'] = conv_init(C, 2 * C, 1)
    return params


if __name__ == "__main__":
    key = jax.random.PRNGKey(0)
    k1, k2, k3, k4 = jax.random.split(key, 4)
    # channel must be a multiple of 8 so deform_groups=16 divides 2*channel.
    B, T, C, H, W = 2, 4, 8, 16, 16
    x = jax.random.normal(k1, (B, T, C, H, W), jnp.float32)
    flows_backward = 2.0 * jax.random.normal(k2, (B, T - 1, 2, H, W), jnp.float32)
    flows_forward = 2.0 * jax.random.normal(k3, (B, T - 1, 2, H, W), jnp.float32)

    params = init_params(k4, C)
    out = bidirectional_propagation(params, x, flows_backward, flows_forward)
    out = jax.block_until_ready(out)
    assert out.shape == (B, T, C, H, W), out.shape
    assert bool(jnp.all(jnp.isfinite(out)))
    print("KERNEL_OK")
</pallas_src>

<mosaic_0001>
module attributes {stable_mosaic.version = 11 : i64} {
  func.func private @main(%arg0: i32) attributes {dimension_semantics = [#tpu.dimension_semantics<core_parallel>], iteration_bounds = array<i64: 2>, tpu.core_type = #tpu.core_type<sc_scalar_subcore>, window_params = []} {
    return
  }
}

module attributes {stable_mosaic.version = 11 : i64} {
  func.func private @main(%arg0: i32) attributes {dimension_semantics = [#tpu.dimension_semantics<core_parallel>], iteration_bounds = array<i64: 2>, tpu.core_type = #tpu.core_type<sc_scalar_subcore>, window_params = []} {
    return
  }
}

module attributes {stable_mosaic.version = 11 : i64} {
  func.func @kernel(%arg0: i32, %arg1: memref<1x16x256xf32, #tpu.memory_space<vmem>>, %arg2: memref<8x144xbf16, #tpu.memory_space<vmem>>, %arg3: memref<8x1xf32, #tpu.memory_space<vmem>>, %arg4: memref<8x144xbf16, #tpu.memory_space<vmem>>, %arg5: memref<8x1xf32, #tpu.memory_space<vmem>>, %arg6: memref<1x8x256xf32, #tpu.memory_space<vmem>>, %arg7: memref<16x512xf32, #tpu.memory_space<vmem>>, %arg8: memref<144x256xbf16, #tpu.memory_space<vmem>>) attributes {dimension_semantics = [#tpu.dimension_semantics<parallel>], iteration_bounds = array<i64: 2>, scalar_prefetch = 0 : i64, scratch_operands = 2 : i64, tpu.core_type = #tpu.core_type<tc>, window_params = [{transform_indices = @transform_0, window_bounds = array<i64: 1, 16, 256>}, {pipeline_mode = #tpu.pipeline_mode<synchronous>, transform_indices = @transform_1, window_bounds = array<i64: 8, 144>}, {pipeline_mode = #tpu.pipeline_mode<synchronous>, transform_indices = @transform_2, window_bounds = array<i64: 8, 1>}, {pipeline_mode = #tpu.pipeline_mode<synchronous>, transform_indices = @transform_3, window_bounds = array<i64: 8, 144>}, {pipeline_mode = #tpu.pipeline_mode<synchronous>, transform_indices = @transform_4, window_bounds = array<i64: 8, 1>}, {transform_indices = @transform_5, window_bounds = array<i64: 1, 8, 256>}]} {
    %0 = tpu.iota {dimensions = array<i32: 1>} : vector<1x256xi32>
    %c16_i32 = arith.constant 16 : i32
    %c0_i32 = arith.constant 0 : i32
    %1 = arith.cmpi eq, %c16_i32, %c0_i32 : i32
    %c1_i32 = arith.constant 1 : i32
    %2 = arith.select %1, %c1_i32, %c16_i32 : i32
    %3 = vector.broadcast %2 : i32 to vector<1x256xi32>
    %4 = arith.remsi %0, %3 : vector<1x256xi32>
    %c0_i32_0 = arith.constant 0 : i32
    %5 = vector.broadcast %c0_i32_0 : i32 to vector<1x256xi32>
    %6 = arith.cmpi ne, %4, %5 : vector<1x256xi32>
    %c0_i32_1 = arith.constant 0 : i32
    %7 = vector.broadcast %c0_i32_1 : i32 to vector<1x256xi32>
    %8 = arith.cmpi slt, %4, %7 : vector<1x256xi32>
    %c0_i32_2 = arith.constant 0 : i32
    %9 = arith.cmpi slt, %2, %c0_i32_2 : i32
    %10 = vector.broadcast %9 : i1 to vector<1x256xi1>
    %11 = vector.broadcast %10 : vector<1x256xi1> to vector<1x256xi1>
    %12 = arith.xori %8, %11 : vector<1x256xi1>
    %13 = arith.andi %12, %6 : vector<1x256xi1>
    %14 = vector.broadcast %2 : i32 to vector<1x256xi32>
    %15 = arith.addi %4, %14 : vector<1x256xi32>
    %16 = arith.select %13, %15, %4 : vector<1x256xi1>, vector<1x256xi32>
    %c1_i32_3 = arith.constant 1 : i32
    %17 = vector.broadcast %c1_i32_3 : i32 to vector<1x256xi32>
    %18 = arith.cmpi sge, %16, %17 : vector<1x256xi32>
    %c14_i32 = arith.constant 14 : i32
    %19 = vector.broadcast %c14_i32 : i32 to vector<1x256xi32>
    %20 = arith.cmpi sle, %16, %19 : vector<1x256xi32>
    %cst = arith.constant 0.000000e+00 : f32
    %21 = vector.broadcast %cst : f32 to vector<16x128xf32>
    %c0 = arith.constant 0 : index
    %c0_4 = arith.constant 0 : index
    %22 = vector.load %arg7[%c0, %c0_4] : memref<16x512xf32, #tpu.memory_space<vmem>>, vector<16x128xf32>
    tpu.vector_store %arg7[%c0, %c0_4], %21 {strides = array<i32>} : memref<16x512xf32, #tpu.memory_space<vmem>>, vector<16x128xf32>,
    %cst_5 = arith.constant 0.000000e+00 : f32
    %23 = vector.broadcast %cst_5 : f32 to vector<16x128xf32>
    %c0_6 = arith.constant 0 : index
    %c384 = arith.constant 384 : index
    %24 = vector.load %arg7[%c0_6, %c384] : memref<16x512xf32, #tpu.memory_space<vmem>>, vector<16x128xf32>
    tpu.vector_store %arg7[%c0_6, %c384], %23 {strides = array<i32>} : memref<16x512xf32, #tpu.memory_space<vmem>>, vector<16x128xf32>,
    %c0_7 = arith.constant 0 : index
    %c0_8 = arith.constant 0 : index
    %c0_9 = arith.constant 0 : index
    %25 = vector.load %arg1[%c0_7, %c0_8, %c0_9] : memref<1x16x256xf32, #tpu.memory_space<vmem>>, vector<1x16x256xf32>
    %26 = vector.shape_cast %25 : vector<1x16x256xf32> to vector<16x256xf32>
    %c0_10 = arith.constant 0 : index
    %c128 = arith.constant 128 : index
    %27 = vector.load %arg7[%c0_10, %c128] : memref<16x512xf32, #tpu.memory_space<vmem>>, vector<16x256xf32>
    tpu.vector_store %arg7[%c0_10, %c128], %26 {strides = array<i32>} : memref<16x512xf32, #tpu.memory_space<vmem>>, vector<16x256xf32>,
    %c0_11 = arith.constant 0 : index
    %c111 = arith.constant 111 : index
    %28 = vector.load %arg7[%c0_11, %c111] : memref<16x512xf32, #tpu.memory_space<vmem>>, vector<16x256xf32>
    %cst_12 = arith.constant 0.000000e+00 : f32
    %29 = vector.shape_cast %18 : vector<1x256xi1> to vector<1x256xi1>
    %30 = vector.broadcast %29 : vector<1x256xi1> to vector<16x256xi1>
    %31 = vector.broadcast %cst_12 : f32 to vector<16x256xf32>
    %32 = arith.select %30, %28, %31 : vector<16x256xi1>, vector<16x256xf32>
    %33 = arith.truncf %32 : vector<16x256xf32> to vector<16x256xbf16>
    %c0_13 = arith.constant 0 : index
    %c0_14 = arith.constant 0 : index
    %34 = vector.load %arg8[%c0_13, %c0_14] : memref<144x256xbf16, #tpu.memory_space<vmem>>, vector<16x256xbf16>
    tpu.vector_store %arg8[%c0_13, %c0_14], %33 {strides = array<i32>} : memref<144x256xbf16, #tpu.memory_space<vmem>>, vector<16x256xbf16>,
    %c0_15 = arith.constant 0 : index
    %c112 = arith.constant 112 : index
    %35 = vector.load %arg7[%c0_15, %c112] : memref<16x512xf32, #tpu.memory_space<vmem>>, vector<16x256xf32>
    %36 = arith.truncf %35 : vector<16x256xf32> to vector<16x256xbf16>
    %c16 = arith.constant 16 : index
    %c0_16 = arith.constant 0 : index
    %37 = vector.load %arg8[%c16, %c0_16] : memref<144x256xbf16, #tpu.memory_space<vmem>>, vector<16x256xbf16>
    tpu.vector_store %arg8[%c16, %c0_16], %36 {strides = array<i32>} : memref<144x256xbf16, #tpu.memory_space<vmem>>, vector<16x256xbf16>,
    %c0_17 = arith.constant 0 : index
    %c113 = arith.constant 113 : index
    %38 = vector.load %arg7[%c0_17, %c113] : memref<16x512xf32, #tpu.memory_space<vmem>>, vector<16x256xf32>
    %cst_18 = arith.constant 0.000000e+00 : f32
    %39 = vector.shape_cast %20 : vector<1x256xi1> to vector<1x256xi1>
    %40 = vector.broadcast %39 : vector<1x256xi1> to vector<16x256xi1>
    %41 = vector.broadcast %cst_18 : f32 to vector<16x256xf32>
    %42 = arith.select %40, %38, %41 : vector<16x256xi1>, vector<16x256xf32>
    %43 = arith.truncf %42 : vector<16x256xf32> to vector<16x256xbf16>
    %c32 = arith.constant 32 : index
    %c0_19 = arith.constant 0 : index
    %44 = vector.load %arg8[%c32, %c0_19] : memref<144x256xbf16, #tpu.memory_space<vmem>>, vector<16x256xbf16>
    tpu.vector_store %arg8[%c32, %c0_19], %43 {strides = array<i32>} : memref<144x256xbf16, #tpu.memory_space<vmem>>, vector<16x256xbf16>,
    %c0_20 = arith.constant 0 : index
    %c127 = arith.constant 127 : index
    %45 = vector.load %arg7[%c0_20, %c127] : memref<16x512xf32, #tpu.memory_space<vmem>>, vector<16x256xf32>
    %cst_21 = arith.constant 0.000000e+00 : f32
    %46 = vector.shape_cast %18 : vector<1x256xi1> to vector<1x256xi1>
    %47 = vector.broadcast %46 : vector<1x256xi1> to vector<16x256xi1>
    %48 = vector.broadcast %cst_21 : f32 to vector<16x256xf32>
    %49 = arith.select %47, %45, %48 : vector<16x256xi1>, vector<16x256xf32>
    %50 = arith.truncf %49 : vector<16x256xf32> to vector<16x256xbf16>
    %c48 = arith.constant 48 : index
    %c0_22 = arith.constant 0 : index
    %51 = vector.load %arg8[%c48, %c0_22] : memref<144x256xbf16, #tpu.memory_space<vmem>>, vector<16x256xbf16>
    tpu.vector_store %arg8[%c48, %c0_22], %50 {strides = array<i32>} : memref<144x256xbf16, #tpu.memory_space<vmem>>, vector<16x256xbf16>,
    %c0_23 = arith.constant 0 : index
    %c128_24 = arith.constant 128 : index
    %52 = vector.load %arg7[%c0_23, %c128_24] : memref<16x512xf32, #tpu.memory_space<vmem>>, vector<16x256xf32>
    %53 = arith.truncf %52 : vector<16x256xf32> to vector<16x256xbf16>
    %c64 = arith.constant 64 : index
    %c0_25 = arith.constant 0 : index
    %54 = vector.load %arg8[%c64, %c0_25] : memref<144x256xbf16, #tpu.memory_space<vmem>>, vector<16x256xbf16>
    tpu.vector_store %arg8[%c64, %c0_25], %53 {strides = array<i32>} : memref<144x256xbf16, #tpu.memory_space<vmem>>, vector<16x256xbf16>,
    %c0_26 = arith.constant 0 : index
    %c129 = arith.constant 129 : index
    %55 = vector.load %arg7[%c0_26, %c129] : memref<16x512xf32, #tpu.memory_space<vmem>>, vector<16x256xf32>
    %cst_27 = arith.constant 0.000000e+00 : f32
    %56 = vector.shape_cast %20 : vector<1x256xi1> to vector<1x256xi1>
    %57 = vector.broadcast %56 : vector<1x256xi1> to vector<16x256xi1>
    %58 = vector.broadcast %cst_27 : f32 to vector<16x256xf32>
    %59 = arith.select %57, %55, %58 : vector<16x256xi1>, vector<16x256xf32>
    %60 = arith.truncf %59 : vector<16x256xf32> to vector<16x256xbf16>
    %c80 = arith.constant 80 : index
    %c0_28 = arith.constant 0 : index
    %61 = vector.load %arg8[%c80, %c0_28] : memref<144x256xbf16, #tpu.memory_space<vmem>>, vector<16x256xbf16>
    tpu.vector_store %arg8[%c80, %c0_28], %60 {strides = array<i32>} : memref<144x256xbf16, #tpu.memory_space<vmem>>, vector<16x256xbf16>,
    %c0_29 = arith.constant 0 : index
    %c143 = arith.constant 143 : index
    %62 = vector.load %arg7[%c0_29, %c143] : memref<16x512xf32, #tpu.memory_space<vmem>>, vector<16x256xf32>
    %cst_30 = arith.constant 0.000000e+00 : f32
    %63 = vector.shape_cast %18 : vector<1x256xi1> to vector<1x256xi1>
    %64 = vector.broadcast %63 : vector<1x256xi1> to vector<16x256xi1>
    %65 = vector.broadcast %cst_30 : f32 to vector<16x256xf32>
    %66 = arith.select %64, %62, %65 : vector<16x256xi1>, vector<16x256xf32>
    %67 = arith.truncf %66 : vector<16x256xf32> to vector<16x256xbf16>
    %c96 = arith.constant 96 : index
    %c0_31 = arith.constant 0 : index
    %68 = vector.load %arg8[%c96, %c0_31] : memref<144x256xbf16, #tpu.memory_space<vmem>>, vector<16x256xbf16>
    tpu.vector_store %arg8[%c96, %c0_31], %67 {strides = array<i32>} : memref<144x256xbf16, #tpu.memory_space<vmem>>, vector<16x256xbf16>,
    %c0_32 = arith.constant 0 : index
    %c144 = arith.constant 144 : index
    %69 = vector.load %arg7[%c0_32, %c144] : memref<16x512xf32, #tpu.memory_space<vmem>>, vector<16x256xf32>
    %70 = arith.truncf %69 : vector<16x256xf32> to vector<16x256xbf16>
    %c112_33 = arith.constant 112 : index
    %c0_34 = arith.constant 0 : index
    %71 = vector.load %arg8[%c112_33, %c0_34] : memref<144x256xbf16, #tpu.memory_space<vmem>>, vector<16x256xbf16>
    tpu.vector_store %arg8[%c112_33, %c0_34], %70 {strides = array<i32>} : memref<144x256xbf16, #tpu.memory_space<vmem>>, vector<16x256xbf16>,
    %c0_35 = arith.constant 0 : index
    %c145 = arith.constant 145 : index
    %72 = vector.load %arg7[%c0_35, %c145] : memref<16x512xf32, #tpu.memory_space<vmem>>, vector<16x256xf32>
    %cst_36 = arith.constant 0.000000e+00 : f32
    %73 = vector.shape_cast %20 : vector<1x256xi1> to vector<1x256xi1>
    %74 = vector.broadcast %73 : vector<1x256xi1> to vector<16x256xi1>
    %75 = vector.broadcast %cst_36 : f32 to vector<16x256xf32>
    %76 = arith.select %74, %72, %75 : vector<16x256xi1>, vector<16x256xf32>
    %77 = arith.truncf %76 : vector<16x256xf32> to vector<16x256xbf16>
    %c128_37 = arith.constant 128 : index
    %c0_38 = arith.constant 0 : index
    %78 = vector.load %arg8[%c128_37, %c0_38] : memref<144x256xbf16, #tpu.memory_space<vmem>>, vector<16x256xbf16>
    tpu.vector_store %arg8[%c128_37, %c0_38], %77 {strides = array<i32>} : memref<144x256xbf16, #tpu.memory_space<vmem>>, vector<16x256xbf16>,
    %c0_39 = arith.constant 0 : index
    %c0_40 = arith.constant 0 : index
    %79 = vector.load %arg2[%c0_39, %c0_40] : memref<8x144xbf16, #tpu.memory_space<vmem>>, vector<8x144xbf16>
    %c0_41 = arith.constant 0 : index
    %c0_42 = arith.constant 0 : index
    %80 = vector.load %arg8[%c0_41, %c0_42] : memref<144x256xbf16, #tpu.memory_space<vmem>>, vector<144x256xbf16>
    %cst_43 = arith.constant dense<0.000000e+00> : vector<8x256xf32>
    %81 = tpu.matmul %79, %80, %cst_43 {dimension_numbers = #tpu.dot_dimension_numbers<[1], [0], [0], [1], [0, 0, 1, 1], [], []>} : vector<8x144xbf16>, vector<144x256xbf16>, vector<8x256xf32> -> vector<8x256xf32>
    %c0_44 = arith.constant 0 : index
    %c0_45 = arith.constant 0 : index
    %82 = vector.load %arg3[%c0_44, %c0_45] : memref<8x1xf32, #tpu.memory_space<vmem>>, vector<8x1xf32>
    %83 = vector.broadcast %82 : vector<8x1xf32> to vector<8x256xf32>
    %84 = arith.addf %81, %83 : vector<8x256xf32>
    %cst_46 = arith.constant 0.000000e+00 : f32
    %85 = vector.broadcast %cst_46 : f32 to vector<8x256xf32>
    %86 = arith.cmpf oge, %84, %85 : vector<8x256xf32>
    %cst_47 = arith.constant 1.000000e-01 : f32
    %87 = vector.broadcast %cst_47 : f32 to vector<8x256xf32>
    %88 = arith.mulf %87, %84 : vector<8x256xf32>
    %89 = arith.select %86, %84, %88 : vector<8x256xi1>, vector<8x256xf32>
    %c0_48 = arith.constant 0 : index
    %c128_49 = arith.constant 128 : index
    %90 = vector.load %arg7[%c0_48, %c128_49] : memref<16x512xf32, #tpu.memory_space<vmem>>, vector<8x256xf32>
    tpu.vector_store %arg7[%c0_48, %c128_49], %89 {strides = array<i32>} : memref<16x512xf32, #tpu.memory_space<vmem>>, vector<8x256xf32>,
    %cst_50 = arith.constant 0.000000e+00 : f32
    %91 = vector.broadcast %cst_50 : f32 to vector<8x256xf32>
    %c8 = arith.constant 8 : index
    %c128_51 = arith.constant 128 : index
    %92 = vector.load %arg7[%c8, %c128_51] : memref<16x512xf32, #tpu.memory_space<vmem>>, vector<8x256xf32>
    tpu.vector_store %arg7[%c8, %c128_51], %91 {strides = array<i32>} : memref<16x512xf32, #tpu.memory_space<vmem>>, vector<8x256xf32>,
    %c0_52 = arith.constant 0 : index
    %c111_53 = arith.constant 111 : index
    %93 = vector.load %arg7[%c0_52, %c111_53] : memref<16x512xf32, #tpu.memory_space<vmem>>, vector<16x256xf32>
    %cst_54 = arith.constant 0.000000e+00 : f32
    %94 = vector.shape_cast %18 : vector<1x256xi1> to vector<1x256xi1>
    %95 = vector.broadcast %94 : vector<1x256xi1> to vector<16x256xi1>
    %96 = vector.broadcast %cst_54 : f32 to vector<16x256xf32>
    %97 = arith.select %95, %93, %96 : vector<16x256xi1>, vector<16x256xf32>
    %98 = arith.truncf %97 : vector<16x256xf32> to vector<16x256xbf16>
    %c0_55 = arith.constant 0 : index
    %c0_56 = arith.constant 0 : index
    %99 = vector.load %arg8[%c0_55, %c0_56] : memref<144x256xbf16, #tpu.memory_space<vmem>>, vector<16x256xbf16>
    tpu.vector_store %arg8[%c0_55, %c0_56], %98 {strides = array<i32>} : memref<144x256xbf16, #tpu.memory_space<vmem>>, vector<16x256xbf16>,
    %c0_57 = arith.constant 0 : index
    %c112_58 = arith.constant 112 : index
    %100 = vector.load %arg7[%c0_57, %c112_58] : memref<16x512xf32, #tpu.memory_space<vmem>>, vector<16x256xf32>
    %101 = arith.truncf %100 : vector<16x256xf32> to vector<16x256xbf16>
    %c16_59 = arith.constant 16 : index
    %c0_60 = arith.constant 0 : index
    %102 = vector.load %arg8[%c16_59, %c0_60] : memref<144x256xbf16, #tpu.memory_space<vmem>>, vector<16x256xbf16>
    tpu.vector_store %arg8[%c16_59, %c0_60], %101 {strides = array<i32>} : memref<144x256xbf16, #tpu.memory_space<vmem>>, vector<16x256xbf16>,
    %c0_61 = arith.constant 0 : index
    %c113_62 = arith.constant 113 : index
    %103 = vector.load %arg7[%c0_61, %c113_62] : memref<16x512xf32, #tpu.memory_space<vmem>>, vector<16x256xf32>
    %cst_63 = arith.constant 0.000000e+00 : f32
    %104 = vector.shape_cast %20 : vector<1x256xi1> to vector<1x256xi1>
    %105 = vector.broadcast %104 : vector<1x256xi1> to vector<16x256xi1>
    %106 = vector.broadcast %cst_63 : f32 to vector<16x256xf32>
    %107 = arith.select %105, %103, %106 : vector<16x256xi1>, vector<16x256xf32>
    %108 = arith.truncf %107 : vector<16x256xf32> to vector<16x256xbf16>
    %c32_64 = arith.constant 32 : index
    %c0_65 = arith.constant 0 : index
    %109 = vector.load %arg8[%c32_64, %c0_65] : memref<144x256xbf16, #tpu.memory_space<vmem>>, vector<16x256xbf16>
    tpu.vector_store %arg8[%c32_64, %c0_65], %108 {strides = array<i32>} : memref<144x256xbf16, #tpu.memory_space<vmem>>, vector<16x256xbf16>,
    %c0_66 = arith.constant 0 : index
    %c127_67 = arith.constant 127 : index
    %110 = vector.load %arg7[%c0_66, %c127_67] : memref<16x512xf32, #tpu.memory_space<vmem>>, vector<16x256xf32>
    %cst_68 = arith.constant 0.000000e+00 : f32
    %111 = vector.shape_cast %18 : vector<1x256xi1> to vector<1x256xi1>
    %112 = vector.broadcast %111 : vector<1x256xi1> to vector<16x256xi1>
    %113 = vector.broadcast %cst_68 : f32 to vector<16x256xf32>
    %114 = arith.select %112, %110, %113 : vector<16x256xi1>, vector<16x256xf32>
    %115 = arith.truncf %114 : vector<16x256xf32> to vector<16x256xbf16>
    %c48_69 = arith.constant 48 : index
    %c0_70 = arith.constant 0 : index
    %116 = vector.load %arg8[%c48_69, %c0_70] : memref<144x256xbf16, #tpu.memory_space<vmem>>, vector<16x256xbf16>
    tpu.vector_store %arg8[%c48_69, %c0_70], %115 {strides = array<i32>} : memref<144x256xbf16, #tpu.memory_space<vmem>>, vector<16x256xbf16>,
    %c0_71 = arith.constant 0 : index
    %c128_72 = arith.constant 128 : index
    %117 = vector.load %arg7[%c0_71, %c128_72] : memref<16x512xf32, #tpu.memory_space<vmem>>, vector<16x256xf32>
    %118 = arith.truncf %117 : vector<16x256xf32> to vector<16x256xbf16>
    %c64_73 = arith.constant 64 : index
    %c0_74 = arith.constant 0 : index
    %119 = vector.load %arg8[%c64_73, %c0_74] : memref<144x256xbf16, #tpu.memory_space<vmem>>, vector<16x256xbf16>
    tpu.vector_store %arg8[%c64_73, %c0_74], %118 {strides = array<i32>} : memref<144x256xbf16, #tpu.memory_space<vmem>>, vector<16x256xbf16>,
    %c0_75 = arith.constant 0 : index
    %c129_76 = arith.constant 129 : index
    %120 = vector.load %arg7[%c0_75, %c129_76] : memref<16x512xf32, #tpu.memory_space<vmem>>, vector<16x256xf32>
    %cst_77 = arith.constant 0.000000e+00 : f32
    %121 = vector.shape_cast %20 : vector<1x256xi1> to vector<1x256xi1>
    %122 = vector.broadcast %121 : vector<1x256xi1> to vector<16x256xi1>
    %123 = vector.broadcast %cst_77 : f32 to vector<16x256xf32>
    %124 = arith.select %122, %120, %123 : vector<16x256xi1>, vector<16x256xf32>
    %125 = arith.truncf %124 : vector<16x256xf32> to vector<16x256xbf16>
    %c80_78 = arith.constant 80 : index
    %c0_79 = arith.constant 0 : index
    %126 = vector.load %arg8[%c80_78, %c0_79] : memref<144x256xbf16, #tpu.memory_space<vmem>>, vector<16x256xbf16>
    tpu.vector_store %arg8[%c80_78, %c0_79], %125 {strides = array<i32>} : memref<144x256xbf16, #tpu.memory_space<vmem>>, vector<16x256xbf16>,
    %c0_80 = arith.constant 0 : index
    %c143_81 = arith.constant 143 : index
    %127 = vector.load %arg7[%c0_80, %c143_81] : memref<16x512xf32, #tpu.memory_space<vmem>>, vector<16x256xf32>
    %cst_82 = arith.constant 0.000000e+00 : f32
    %128 = vector.shape_cast %18 : vector<1x256xi1> to vector<1x256xi1>
    %129 = vector.broadcast %128 : vector<1x256xi1> to vector<16x256xi1>
    %130 = vector.broadcast %cst_82 : f32 to vector<16x256xf32>
    %131 = arith.select %129, %127, %130 : vector<16x256xi1>, vector<16x256xf32>
    %132 = arith.truncf %131 : vector<16x256xf32> to vector<16x256xbf16>
    %c96_83 = arith.constant 96 : index
    %c0_84 = arith.constant 0 : index
    %133 = vector.load %arg8[%c96_83, %c0_84] : memref<144x256xbf16, #tpu.memory_space<vmem>>, vector<16x256xbf16>
    tpu.vector_store %arg8[%c96_83, %c0_84], %132 {strides = array<i32>} : memref<144x256xbf16, #tpu.memory_space<vmem>>, vector<16x256xbf16>,
    %c0_85 = arith.constant 0 : index
    %c144_86 = arith.constant 144 : index
    %134 = vector.load %arg7[%c0_85, %c144_86] : memref<16x512xf32, #tpu.memory_space<vmem>>, vector<16x256xf32>
    %135 = arith.truncf %134 : vector<16x256xf32> to vector<16x256xbf16>
    %c112_87 = arith.constant 112 : index
    %c0_88 = arith.constant 0 : index
    %136 = vector.load %arg8[%c112_87, %c0_88] : memref<144x256xbf16, #tpu.memory_space<vmem>>, vector<16x256xbf16>
    tpu.vector_store %arg8[%c112_87, %c0_88], %135 {strides = array<i32>} : memref<144x256xbf16, #tpu.memory_space<vmem>>, vector<16x256xbf16>,
    %c0_89 = arith.constant 0 : index
    %c145_90 = arith.constant 145 : index
    %137 = vector.load %arg7[%c0_89, %c145_90] : memref<16x512xf32, #tpu.memory_space<vmem>>, vector<16x256xf32>
    %cst_91 = arith.constant 0.000000e+00 : f32
    %138 = vector.shape_cast %20 : vector<1x256xi1> to vector<1x256xi1>
    %139 = vector.broadcast %138 : vector<1x256xi1> to vector<16x256xi1>
    %140 = vector.broadcast %cst_91 : f32 to vector<16x256xf32>
    %141 = arith.select %139, %137, %140 : vector<16x256xi1>, vector<16x256xf32>
    %142 = arith.truncf %141 : vector<16x256xf32> to vector<16x256xbf16>
    %c128_92 = arith.constant 128 : index
    %c0_93 = arith.constant 0 : index
    %143 = vector.load %arg8[%c128_92, %c0_93] : memref<144x256xbf16, #tpu.memory_space<vmem>>, vector<16x256xbf16>
    tpu.vector_store %arg8[%c128_92, %c0_93], %142 {strides = array<i32>} : memref<144x256xbf16, #tpu.memory_space<vmem>>, vector<16x256xbf16>,
    %c0_94 = arith.constant 0 : index
    %c0_95 = arith.constant 0 : index
    %144 = vector.load %arg4[%c0_94, %c0_95] : memref<8x144xbf16, #tpu.memory_space<vmem>>, vector<8x144xbf16>
    %c0_96 = arith.constant 0 : index
    %c0_97 = arith.constant 0 : index
    %145 = vector.load %arg8[%c0_96, %c0_97] : memref<144x256xbf16, #tpu.memory_space<vmem>>, vector<144x256xbf16>
    %cst_98 = arith.constant dense<0.000000e+00> : vector<8x256xf32>
    %146 = tpu.matmul %144, %145, %cst_98 {dimension_numbers = #tpu.dot_dimension_numbers<[1], [0], [0], [1], [0, 0, 1, 1], [], []>} : vector<8x144xbf16>, vector<144x256xbf16>, vector<8x256xf32> -> vector<8x256xf32>
    %c0_99 = arith.constant 0 : index
    %c0_100 = arith.constant 0 : index
    %147 = vector.load %arg5[%c0_99, %c0_100] : memref<8x1xf32, #tpu.memory_space<vmem>>, vector<8x1xf32>
    %148 = vector.broadcast %147 : vector<8x1xf32> to vector<8x256xf32>
    %149 = arith.addf %146, %148 : vector<8x256xf32>
    %c0_101 = arith.constant 0 : index
    %c0_102 = arith.constant 0 : index
    %c0_103 = arith.constant 0 : index
    %150 = vector.load %arg6[%c0_101, %c0_102, %c0_103] : memref<1x8x256xf32, #tpu.memory_space<vmem>>, vector<1x8x256xf32>
    %151 = vector.shape_cast %150 : vector<1x8x256xf32> to vector<8x256xf32>
    %152 = vector.shape_cast %149 : vector<8x256xf32> to vector<1x8x256xf32>
    tpu.vector_store %arg6[%c0_101, %c0_102, %c0_103], %152 {strides = array<i32>} : memref<1x8x256xf32, #tpu.memory_space<vmem>>, vector<1x8x256xf32>,
    return
  }
  func.func @transform_0(%arg0: i32) -> (i32, i32, i32) {
    %c0_i32 = arith.constant 0 : i32
    %c0_i32_0 = arith.constant 0 : i32
    %c0_i32_1 = arith.constant 0 : i32
    return %arg0, %c0_i32, %c0_i32_0 : i32, i32, i32
  }
  func.func @transform_1(%arg0: i32) -> (i32, i32) {
    %c0_i32 = arith.constant 0 : i32
    %c0_i32_0 = arith.constant 0 : i32
    %c0_i32_1 = arith.constant 0 : i32
    return %c0_i32, %c0_i32_0 : i32, i32
  }
  func.func @transform_2(%arg0: i32) -> (i32, i32) {
    %c0_i32 = arith.constant 0 : i32
    %c0_i32_0 = arith.constant 0 : i32
    %c0_i32_1 = arith.constant 0 : i32
    return %c0_i32, %c0_i32_0 : i32, i32
  }
  func.func @transform_3(%arg0: i32) -> (i32, i32) {
    %c0_i32 = arith.constant 0 : i32
    %c0_i32_0 = arith.constant 0 : i32
    %c0_i32_1 = arith.constant 0 : i32
    return %c0_i32, %c0_i32_0 : i32, i32
  }
  func.func @transform_4(%arg0: i32) -> (i32, i32) {
    %c0_i32 = arith.constant 0 : i32
    %c0_i32_0 = arith.constant 0 : i32
    %c0_i32_1 = arith.constant 0 : i32
    return %c0_i32, %c0_i32_0 : i32, i32
  }
  func.func @transform_5(%arg0: i32) -> (i32, i32, i32) {
    %c0_i32 = arith.constant 0 : i32
    %c0_i32_0 = arith.constant 0 : i32
    %c0_i32_1 = arith.constant 0 : i32
    return %arg0, %c0_i32, %c0_i32_0 : i32, i32, i32
  }
}

module attributes {stable_mosaic.version = 11 : i64} {
  func.func @kernel(%arg0: i32, %arg1: memref<1x32x256xf32, #tpu.memory_space<vmem>>, %arg2: memref<8x288xbf16, #tpu.memory_space<vmem>>, %arg3: memref<8x1xf32, #tpu.memory_space<vmem>>, %arg4: memref<8x144xbf16, #tpu.memory_space<vmem>>, %arg5: memref<8x1xf32, #tpu.memory_space<vmem>>, %arg6: memref<8x144xbf16, #tpu.memory_space<vmem>>, %arg7: memref<8x1xf32, #tpu.memory_space<vmem>>, %arg8: memref<432x144xbf16, #tpu.memory_space<vmem>>, %arg9: memref<432x1xf32, #tpu.memory_space<vmem>>, %arg10: memref<1x288x256xf32, #tpu.memory_space<vmem>>, %arg11: memref<1x144x256xf32, #tpu.memory_space<vmem>>, %arg12: memref<32x512xf32, #tpu.memory_space<vmem>>, %arg13: memref<288x256xbf16, #tpu.memory_space<vmem>>) attributes {dimension_semantics = [#tpu.dimension_semantics<parallel>], iteration_bounds = array<i64: 2>, scalar_prefetch = 0 : i64, scratch_operands = 2 : i64, tpu.core_type = #tpu.core_type<tc>, window_params = [{transform_indices = @transform_0, window_bounds = array<i64: 1, 32, 256>}, {pipeline_mode = #tpu.pipeline_mode<synchronous>, transform_indices = @transform_1, window_bounds = array<i64: 8, 288>}, {pipeline_mode = #tpu.pipeline_mode<synchronous>, transform_indices = @transform_2, window_bounds = array<i64: 8, 1>}, {pipeline_mode = #tpu.pipeline_mode<synchronous>, transform_indices = @transform_3, window_bounds = array<i64: 8, 144>}, {pipeline_mode = #tpu.pipeline_mode<synchronous>, transform_indices = @transform_4, window_bounds = array<i64: 8, 1>}, {pipeline_mode = #tpu.pipeline_mode<synchronous>, transform_indices = @transform_5, window_bounds = array<i64: 8, 144>}, {pipeline_mode = #tpu.pipeline_mode<synchronous>, transform_indices = @transform_6, window_bounds = array<i64: 8, 1>}, {pipeline_mode = #tpu.pipeline_mode<synchronous>, transform_indices = @transform_7, window_bounds = array<i64: 432, 144>}, {pipeline_mode = #tpu.pipeline_mode<synchronous>, transform_indices = @transform_8, window_bounds = array<i64: 432, 1>}, {transform_indices = @transform_9, window_bounds = array<i64: 1, 288, 256>}, {transform_indices = @transform_10, window_bounds = array<i64: 1, 144, 256>}]} {
    %0 = tpu.iota {dimensions = array<i32: 1>} : vector<1x256xi32>
    %c16_i32 = arith.constant 16 : i32
    %c0_i32 = arith.constant 0 : i32
    %1 = arith.cmpi eq, %c16_i32, %c0_i32 : i32
    %c1_i32 = arith.constant 1 : i32
    %2 = arith.select %1, %c1_i32, %c16_i32 : i32
    %3 = vector.broadcast %2 : i32 to vector<1x256xi32>
    %4 = arith.remsi %0, %3 : vector<1x256xi32>
    %c0_i32_0 = arith.constant 0 : i32
    %5 = vector.broadcast %c0_i32_0 : i32 to vector<1x256xi32>
    %6 = arith.cmpi ne, %4, %5 : vector<1x256xi32>
    %c0_i32_1 = arith.constant 0 : i32
    %7 = vector.broadcast %c0_i32_1 : i32 to vector<1x256xi32>
    %8 = arith.cmpi slt, %4, %7 : vector<1x256xi32>
    %c0_i32_2 = arith.constant 0 : i32
    %9 = arith.cmpi slt, %2, %c0_i32_2 : i32
    %10 = vector.broadcast %9 : i1 to vector<1x256xi1>
    %11 = vector.broadcast %10 : vector<1x256xi1> to vector<1x256xi1>
    %12 = arith.xori %8, %11 : vector<1x256xi1>
    %13 = arith.andi %12, %6 : vector<1x256xi1>
    %14 = vector.broadcast %2 : i32 to vector<1x256xi32>
    %15 = arith.addi %4, %14 : vector<1x256xi32>
    %16 = arith.select %13, %15, %4 : vector<1x256xi1>, vector<1x256xi32>
    %c1_i32_3 = arith.constant 1 : i32
    %17 = vector.broadcast %c1_i32_3 : i32 to vector<1x256xi32>
    %18 = arith.cmpi sge, %16, %17 : vector<1x256xi32>
    %c14_i32 = arith.constant 14 : i32
    %19 = vector.broadcast %c14_i32 : i32 to vector<1x256xi32>
    %20 = arith.cmpi sle, %16, %19 : vector<1x256xi32>
    %cst = arith.constant 0.000000e+00 : f32
    %21 = vector.broadcast %cst : f32 to vector<32x128xf32>
    %c0 = arith.constant 0 : index
    %c0_4 = arith.constant 0 : index
    %22 = vector.load %arg12[%c0, %c0_4] : memref<32x512xf32, #tpu.memory_space<vmem>>, vector<32x128xf32>
    tpu.vector_store %arg12[%c0, %c0_4], %21 {strides = array<i32>} : memref<32x512xf32, #tpu.memory_space<vmem>>, vector<32x128xf32>,
    %cst_5 = arith.constant 0.000000e+00 : f32
    %23 = vector.broadcast %cst_5 : f32 to vector<32x128xf32>
    %c0_6 = arith.constant 0 : index
    %c384 = arith.constant 384 : index
    %24 = vector.load %arg12[%c0_6, %c384] : memref<32x512xf32, #tpu.memory_space<vmem>>, vector<32x128xf32>
    tpu.vector_store %arg12[%c0_6, %c384], %23 {strides = array<i32>} : memref<32x512xf32, #tpu.memory_space<vmem>>, vector<32x128xf32>,
    %c0_7 = arith.constant 0 : index
    %c0_8 = arith.constant 0 : index
    %c0_9 = arith.constant 0 : index
    %25 = vector.load %arg1[%c0_7, %c0_8, %c0_9] : memref<1x32x256xf32, #tpu.memory_space<vmem>>, vector<1x32x256xf32>
    %26 = vector.shape_cast %25 : vector<1x32x256xf32> to vector<32x256xf32>
    %c0_10 = arith.constant 0 : index
    %c128 = arith.constant 128 : index
    %27 = vector.load %arg12[%c0_10, %c128] : memref<32x512xf32, #tpu.memory_space<vmem>>, vector<32x256xf32>
    tpu.vector_store %arg12[%c0_10, %c128], %26 {strides = array<i32>} : memref<32x512xf32, #tpu.memory_space<vmem>>, vector<32x256xf32>,
    %c0_11 = arith.constant 0 : index
    %c111 = arith.constant 111 : index
    %28 = vector.load %arg12[%c0_11, %c111] : memref<32x512xf32, #tpu.memory_space<vmem>>, vector<32x256xf32>
    %cst_12 = arith.constant 0.000000e+00 : f32
    %29 = vector.shape_cast %18 : vector<1x256xi1> to vector<1x256xi1>
    %30 = vector.broadcast %29 : vector<1x256xi1> to vector<32x256xi1>
    %31 = vector.broadcast %cst_12 : f32 to vector<32x256xf32>
    %32 = arith.select %30, %28, %31 : vector<32x256xi1>, vector<32x256xf32>
    %33 = arith.truncf %32 : vector<32x256xf32> to vector<32x256xbf16>
    %c0_13 = arith.constant 0 : index
    %c0_14 = arith.constant 0 : index
    %34 = vector.load %arg13[%c0_13, %c0_14] : memref<288x256xbf16, #tpu.memory_space<vmem>>, vector<32x256xbf16>
    tpu.vector_store %arg13[%c0_13, %c0_14], %33 {strides = array<i32>} : memref<288x256xbf16, #tpu.memory_space<vmem>>, vector<32x256xbf16>,
    %c0_15 = arith.constant 0 : index
    %c112 = arith.constant 112 : index
    %35 = vector.load %arg12[%c0_15, %c112] : memref<32x512xf32, #tpu.memory_space<vmem>>, vector<32x256xf32>
    %36 = arith.truncf %35 : vector<32x256xf32> to vector<32x256xbf16>
    %c32 = arith.constant 32 : index
    %c0_16 = arith.constant 0 : index
    %37 = vector.load %arg13[%c32, %c0_16] : memref<288x256xbf16, #tpu.memory_space<vmem>>, vector<32x256xbf16>
    tpu.vector_store %arg13[%c32, %c0_16], %36 {strides = array<i32>} : memref<288x256xbf16, #tpu.memory_space<vmem>>, vector<32x256xbf16>,
    %c0_17 = arith.constant 0 : index
    %c113 = arith.constant 113 : index
    %38 = vector.load %arg12[%c0_17, %c113] : memref<32x512xf32, #tpu.memory_space<vmem>>, vector<32x256xf32>
    %cst_18 = arith.constant 0.000000e+00 : f32
    %39 = vector.shape_cast %20 : vector<1x256xi1> to vector<1x256xi1>
    %40 = vector.broadcast %39 : vector<1x256xi1> to vector<32x256xi1>
    %41 = vector.broadcast %cst_18 : f32 to vector<32x256xf32>
    %42 = arith.select %40, %38, %41 : vector<32x256xi1>, vector<32x256xf32>
    %43 = arith.truncf %42 : vector<32x256xf32> to vector<32x256xbf16>
    %c64 = arith.constant 64 : index
    %c0_19 = arith.constant 0 : index
    %44 = vector.load %arg13[%c64, %c0_19] : memref<288x256xbf16, #tpu.memory_space<vmem>>, vector<32x256xbf16>
    tpu.vector_store %arg13[%c64, %c0_19], %43 {strides = array<i32>} : memref<288x256xbf16, #tpu.memory_space<vmem>>, vector<32x256xbf16>,
    %c0_20 = arith.constant 0 : index
    %c127 = arith.constant 127 : index
    %45 = vector.load %arg12[%c0_20, %c127] : memref<32x512xf32, #tpu.memory_space<vmem>>, vector<32x256xf32>
    %cst_21 = arith.constant 0.000000e+00 : f32
    %46 = vector.shape_cast %18 : vector<1x256xi1> to vector<1x256xi1>
    %47 = vector.broadcast %46 : vector<1x256xi1> to vector<32x256xi1>
    %48 = vector.broadcast %cst_21 : f32 to vector<32x256xf32>
    %49 = arith.select %47, %45, %48 : vector<32x256xi1>, vector<32x256xf32>
    %50 = arith.truncf %49 : vector<32x256xf32> to vector<32x256xbf16>
    %c96 = arith.constant 96 : index
    %c0_22 = arith.constant 0 : index
    %51 = vector.load %arg13[%c96, %c0_22] : memref<288x256xbf16, #tpu.memory_space<vmem>>, vector<32x256xbf16>
    tpu.vector_store %arg13[%c96, %c0_22], %50 {strides = array<i32>} : memref<288x256xbf16, #tpu.memory_space<vmem>>, vector<32x256xbf16>,
    %c0_23 = arith.constant 0 : index
    %c128_24 = arith.constant 128 : index
    %52 = vector.load %arg12[%c0_23, %c128_24] : memref<32x512xf32, #tpu.memory_space<vmem>>, vector<32x256xf32>
    %53 = arith.truncf %52 : vector<32x256xf32> to vector<32x256xbf16>
    %c128_25 = arith.constant 128 : index
    %c0_26 = arith.constant 0 : index
    %54 = vector.load %arg13[%c128_25, %c0_26] : memref<288x256xbf16, #tpu.memory_space<vmem>>, vector<32x256xbf16>
    tpu.vector_store %arg13[%c128_25, %c0_26], %53 {strides = array<i32>} : memref<288x256xbf16, #tpu.memory_space<vmem>>, vector<32x256xbf16>,
    %c0_27 = arith.constant 0 : index
    %c129 = arith.constant 129 : index
    %55 = vector.load %arg12[%c0_27, %c129] : memref<32x512xf32, #tpu.memory_space<vmem>>, vector<32x256xf32>
    %cst_28 = arith.constant 0.000000e+00 : f32
    %56 = vector.shape_cast %20 : vector<1x256xi1> to vector<1x256xi1>
    %57 = vector.broadcast %56 : vector<1x256xi1> to vector<32x256xi1>
    %58 = vector.broadcast %cst_28 : f32 to vector<32x256xf32>
    %59 = arith.select %57, %55, %58 : vector<32x256xi1>, vector<32x256xf32>
    %60 = arith.truncf %59 : vector<32x256xf32> to vector<32x256xbf16>
    %c160 = arith.constant 160 : index
    %c0_29 = arith.constant 0 : index
    %61 = vector.load %arg13[%c160, %c0_29] : memref<288x256xbf16, #tpu.memory_space<vmem>>, vector<32x256xbf16>
    tpu.vector_store %arg13[%c160, %c0_29], %60 {strides = array<i32>} : memref<288x256xbf16, #tpu.memory_space<vmem>>, vector<32x256xbf16>,
    %c0_30 = arith.constant 0 : index
    %c143 = arith.constant 143 : index
    %62 = vector.load %arg12[%c0_30, %c143] : memref<32x512xf32, #tpu.memory_space<vmem>>, vector<32x256xf32>
    %cst_31 = arith.constant 0.000000e+00 : f32
    %63 = vector.shape_cast %18 : vector<1x256xi1> to vector<1x256xi1>
    %64 = vector.broadcast %63 : vector<1x256xi1> to vector<32x256xi1>
    %65 = vector.broadcast %cst_31 : f32 to vector<32x256xf32>
    %66 = arith.select %64, %62, %65 : vector<32x256xi1>, vector<32x256xf32>
    %67 = arith.truncf %66 : vector<32x256xf32> to vector<32x256xbf16>
    %c192 = arith.constant 192 : index
    %c0_32 = arith.constant 0 : index
    %68 = vector.load %arg13[%c192, %c0_32] : memref<288x256xbf16, #tpu.memory_space<vmem>>, vector<32x256xbf16>
    tpu.vector_store %arg13[%c192, %c0_32], %67 {strides = array<i32>} : memref<288x256xbf16, #tpu.memory_space<vmem>>, vector<32x256xbf16>,
    %c0_33 = arith.constant 0 : index
    %c144 = arith.constant 144 : index
    %69 = vector.load %arg12[%c0_33, %c144] : memref<32x512xf32, #tpu.memory_space<vmem>>, vector<32x256xf32>
    %70 = arith.truncf %69 : vector<32x256xf32> to vector<32x256xbf16>
    %c224 = arith.constant 224 : index
    %c0_34 = arith.constant 0 : index
    %71 = vector.load %arg13[%c224, %c0_34] : memref<288x256xbf16, #tpu.memory_space<vmem>>, vector<32x256xbf16>
    tpu.vector_store %arg13[%c224, %c0_34], %70 {strides = array<i32>} : memref<288x256xbf16, #tpu.memory_space<vmem>>, vector<32x256xbf16>,
    %c0_35 = arith.constant 0 : index
    %c145 = arith.constant 145 : index
    %72 = vector.load %arg12[%c0_35, %c145] : memref<32x512xf32, #tpu.memory_space<vmem>>, vector<32x256xf32>
    %cst_36 = arith.constant 0.000000e+00 : f32
    %73 = vector.shape_cast %20 : vector<1x256xi1> to vector<1x256xi1>
    %74 = vector.broadcast %73 : vector<1x256xi1> to vector<32x256xi1>
    %75 = vector.broadcast %cst_36 : f32 to vector<32x256xf32>
    %76 = arith.select %74, %72, %75 : vector<32x256xi1>, vector<32x256xf32>
    %77 = arith.truncf %76 : vector<32x256xf32> to vector<32x256xbf16>
    %c256 = arith.constant 256 : index
    %c0_37 = arith.constant 0 : index
    %78 = vector.load %arg13[%c256, %c0_37] : memref<288x256xbf16, #tpu.memory_space<vmem>>, vector<32x256xbf16>
    tpu.vector_store %arg13[%c256, %c0_37], %77 {strides = array<i32>} : memref<288x256xbf16, #tpu.memory_space<vmem>>, vector<32x256xbf16>,
    %c0_38 = arith.constant 0 : index
    %c0_39 = arith.constant 0 : index
    %79 = vector.load %arg2[%c0_38, %c0_39] : memref<8x288xbf16, #tpu.memory_space<vmem>>, vector<8x288xbf16>
    %c0_40 = arith.constant 0 : index
    %c0_41 = arith.constant 0 : index
    %80 = vector.load %arg13[%c0_40, %c0_41] : memref<288x256xbf16, #tpu.memory_space<vmem>>, vector<288x256xbf16>
    %cst_42 = arith.constant dense<0.000000e+00> : vector<8x256xf32>
    %81 = tpu.matmul %79, %80, %cst_42 {dimension_numbers = #tpu.dot_dimension_numbers<[1], [0], [0], [1], [0, 0, 1, 1], [], []>} : vector<8x288xbf16>, vector<288x256xbf16>, vector<8x256xf32> -> vector<8x256xf32>
    %c0_43 = arith.constant 0 : index
    %c0_44 = arith.constant 0 : index
    %82 = vector.load %arg3[%c0_43, %c0_44] : memref<8x1xf32, #tpu.memory_space<vmem>>, vector<8x1xf32>
    %83 = vector.broadcast %82 : vector<8x1xf32> to vector<8x256xf32>
    %84 = arith.addf %81, %83 : vector<8x256xf32>
    %cst_45 = arith.constant 0.000000e+00 : f32
    %85 = vector.broadcast %cst_45 : f32 to vector<8x256xf32>
    %86 = arith.cmpf oge, %84, %85 : vector<8x256xf32>
    %cst_46 = arith.constant 1.000000e-01 : f32
    %87 = vector.broadcast %cst_46 : f32 to vector<8x256xf32>
    %88 = arith.mulf %87, %84 : vector<8x256xf32>
    %89 = arith.select %86, %84, %88 : vector<8x256xi1>, vector<8x256xf32>
    %c0_47 = arith.constant 0 : index
    %c128_48 = arith.constant 128 : index
    %90 = vector.load %arg12[%c0_47, %c128_48] : memref<32x512xf32, #tpu.memory_space<vmem>>, vector<8x256xf32>
    tpu.vector_store %arg12[%c0_47, %c128_48], %89 {strides = array<i32>} : memref<32x512xf32, #tpu.memory_space<vmem>>, vector<8x256xf32>,
    %cst_49 = arith.constant 0.000000e+00 : f32
    %91 = vector.broadcast %cst_49 : f32 to vector<8x256xf32>
    %c8 = arith.constant 8 : index
    %c128_50 = arith.constant 128 : index
    %92 = vector.load %arg12[%c8, %c128_50] : memref<32x512xf32, #tpu.memory_space<vmem>>, vector<8x256xf32>
    tpu.vector_store %arg12[%c8, %c128_50], %91 {strides = array<i32>} : memref<32x512xf32, #tpu.memory_space<vmem>>, vector<8x256xf32>,
    %c0_51 = arith.constant 0 : index
    %c111_52 = arith.constant 111 : index
    %93 = vector.load %arg12[%c0_51, %c111_52] : memref<32x512xf32, #tpu.memory_space<vmem>>, vector<16x256xf32>
    %cst_53 = arith.constant 0.000000e+00 : f32
    %94 = vector.shape_cast %18 : vector<1x256xi1> to vector<1x256xi1>
    %95 = vector.broadcast %94 : vector<1x256xi1> to vector<16x256xi1>
    %96 = vector.broadcast %cst_53 : f32 to vector<16x256xf32>
    %97 = arith.select %95, %93, %96 : vector<16x256xi1>, vector<16x256xf32>
    %98 = arith.truncf %97 : vector<16x256xf32> to vector<16x256xbf16>
    %c0_54 = arith.constant 0 : index
    %c0_55 = arith.constant 0 : index
    %99 = vector.load %arg13[%c0_54, %c0_55] : memref<288x256xbf16, #tpu.memory_space<vmem>>, vector<16x256xbf16>
    tpu.vector_store %arg13[%c0_54, %c0_55], %98 {strides = array<i32>} : memref<288x256xbf16, #tpu.memory_space<vmem>>, vector<16x256xbf16>,
    %c0_56 = arith.constant 0 : index
    %c112_57 = arith.constant 112 : index
    %100 = vector.load %arg12[%c0_56, %c112_57] : memref<32x512xf32, #tpu.memory_space<vmem>>, vector<16x256xf32>
    %101 = arith.truncf %100 : vector<16x256xf32> to vector<16x256xbf16>
    %c16 = arith.constant 16 : index
    %c0_58 = arith.constant 0 : index
    %102 = vector.load %arg13[%c16, %c0_58] : memref<288x256xbf16, #tpu.memory_space<vmem>>, vector<16x256xbf16>
    tpu.vector_store %arg13[%c16, %c0_58], %101 {strides = array<i32>} : memref<288x256xbf16, #tpu.memory_space<vmem>>, vector<16x256xbf16>,
    %c0_59 = arith.constant 0 : index
    %c113_60 = arith.constant 113 : index
    %103 = vector.load %arg12[%c0_59, %c113_60] : memref<32x512xf32, #tpu.memory_space<vmem>>, vector<16x256xf32>
    %cst_61 = arith.constant 0.000000e+00 : f32
    %104 = vector.shape_cast %20 : vector<1x256xi1> to vector<1x256xi1>
    %105 = vector.broadcast %104 : vector<1x256xi1> to vector<16x256xi1>
    %106 = vector.broadcast %cst_61 : f32 to vector<16x256xf32>
    %107 = arith.select %105, %103, %106 : vector<16x256xi1>, vector<16x256xf32>
    %108 = arith.truncf %107 : vector<16x256xf32> to vector<16x256xbf16>
    %c32_62 = arith.constant 32 : index
    %c0_63 = arith.constant 0 : index
    %109 = vector.load %arg13[%c32_62, %c0_63] : memref<288x256xbf16, #tpu.memory_space<vmem>>, vector<16x256xbf16>
    tpu.vector_store %arg13[%c32_62, %c0_63], %108 {strides = array<i32>} : memref<288x256xbf16, #tpu.memory_space<vmem>>, vector<16x256xbf16>,
    %c0_64 = arith.constant 0 : index
    %c127_65 = arith.constant 127 : index
    %110 = vector.load %arg12[%c0_64, %c127_65] : memref<32x512xf32, #tpu.memory_space<vmem>>, vector<16x256xf32>
    %cst_66 = arith.constant 0.000000e+00 : f32
    %111 = vector.shape_cast %18 : vector<1x256xi1> to vector<1x256xi1>
    %112 = vector.broadcast %111 : vector<1x256xi1> to vector<16x256xi1>
    %113 = vector.broadcast %cst_66 : f32 to vector<16x256xf32>
    %114 = arith.select %112, %110, %113 : vector<16x256xi1>, vector<16x256xf32>
    %115 = arith.truncf %114 : vector<16x256xf32> to vector<16x256xbf16>
    %c48 = arith.constant 48 : index
    %c0_67 = arith.constant 0 : index
    %116 = vector.load %arg13[%c48, %c0_67] : memref<288x256xbf16, #tpu.memory_space<vmem>>, vector<16x256xbf16>
    tpu.vector_store %arg13[%c48, %c0_67], %115 {strides = array<i32>} : memref<288x256xbf16, #tpu.memory_space<vmem>>, vector<16x256xbf16>,
    %c0_68 = arith.constant 0 : index
    %c128_69 = arith.constant 128 : index
    %117 = vector.load %arg12[%c0_68, %c128_69] : memref<32x512xf32, #tpu.memory_space<vmem>>, vector<16x256xf32>
    %118 = arith.truncf %117 : vector<16x256xf32> to vector<16x256xbf16>
    %c64_70 = arith.constant 64 : index
    %c0_71 = arith.constant 0 : index
    %119 = vector.load %arg13[%c64_70, %c0_71] : memref<288x256xbf16, #tpu.memory_space<vmem>>, vector<16x256xbf16>
    tpu.vector_store %arg13[%c64_70, %c0_71], %118 {strides = array<i32>} : memref<288x256xbf16, #tpu.memory_space<vmem>>, vector<16x256xbf16>,
    %c0_72 = arith.constant 0 : index
    %c129_73 = arith.constant 129 : index
    %120 = vector.load %arg12[%c0_72, %c129_73] : memref<32x512xf32, #tpu.memory_space<vmem>>, vector<16x256xf32>
    %cst_74 = arith.constant 0.000000e+00 : f32
    %121 = vector.shape_cast %20 : vector<1x256xi1> to vector<1x256xi1>
    %122 = vector.broadcast %121 : vector<1x256xi1> to vector<16x256xi1>
    %123 = vector.broadcast %cst_74 : f32 to vector<16x256xf32>
    %124 = arith.select %122, %120, %123 : vector<16x256xi1>, vector<16x256xf32>
    %125 = arith.truncf %124 : vector<16x256xf32> to vector<16x256xbf16>
    %c80 = arith.constant 80 : index
    %c0_75 = arith.constant 0 : index
    %126 = vector.load %arg13[%c80, %c0_75] : memref<288x256xbf16, #tpu.memory_space<vmem>>, vector<16x256xbf16>
    tpu.vector_store %arg13[%c80, %c0_75], %125 {strides = array<i32>} : memref<288x256xbf16, #tpu.memory_space<vmem>>, vector<16x256xbf16>,
    %c0_76 = arith.constant 0 : index
    %c143_77 = arith.constant 143 : index
    %127 = vector.load %arg12[%c0_76, %c143_77] : memref<32x512xf32, #tpu.memory_space<vmem>>, vector<16x256xf32>
    %cst_78 = arith.constant 0.000000e+00 : f32
    %128 = vector.shape_cast %18 : vector<1x256xi1> to vector<1x256xi1>
    %129 = vector.broadcast %128 : vector<1x256xi1> to vector<16x256xi1>
    %130 = vector.broadcast %cst_78 : f32 to vector<16x256xf32>
    %131 = arith.select %129, %127, %130 : vector<16x256xi1>, vector<16x256xf32>
    %132 = arith.truncf %131 : vector<16x256xf32> to vector<16x256xbf16>
    %c96_79 = arith.constant 96 : index
    %c0_80 = arith.constant 0 : index
    %133 = vector.load %arg13[%c96_79, %c0_80] : memref<288x256xbf16, #tpu.memory_space<vmem>>, vector<16x256xbf16>
    tpu.vector_store %arg13[%c96_79, %c0_80], %132 {strides = array<i32>} : memref<288x256xbf16, #tpu.memory_space<vmem>>, vector<16x256xbf16>,
    %c0_81 = arith.constant 0 : index
    %c144_82 = arith.constant 144 : index
    %134 = vector.load %arg12[%c0_81, %c144_82] : memref<32x512xf32, #tpu.memory_space<vmem>>, vector<16x256xf32>
    %135 = arith.truncf %134 : vector<16x256xf32> to vector<16x256xbf16>
    %c112_83 = arith.constant 112 : index
    %c0_84 = arith.constant 0 : index
    %136 = vector.load %arg13[%c112_83, %c0_84] : memref<288x256xbf16, #tpu.memory_space<vmem>>, vector<16x256xbf16>
    tpu.vector_store %arg13[%c112_83, %c0_84], %135 {strides = array<i32>} : memref<288x256xbf16, #tpu.memory_space<vmem>>, vector<16x256xbf16>,
    %c0_85 = arith.constant 0 : index
    %c145_86 = arith.constant 145 : index
    %137 = vector.load %arg12[%c0_85, %c145_86] : memref<32x512xf32, #tpu.memory_space<vmem>>, vector<16x256xf32>
    %cst_87 = arith.constant 0.000000e+00 : f32
    %138 = vector.shape_cast %20 : vector<1x256xi1> to vector<1x256xi1>
    %139 = vector.broadcast %138 : vector<1x256xi1> to vector<16x256xi1>
    %140 = vector.broadcast %cst_87 : f32 to vector<16x256xf32>
    %141 = arith.select %139, %137, %140 : vector<16x256xi1>, vector<16x256xf32>
    %142 = arith.truncf %141 : vector<16x256xf32> to vector<16x256xbf16>
    %c128_88 = arith.constant 128 : index
    %c0_89 = arith.constant 0 : index
    %143 = vector.load %arg13[%c128_88, %c0_89] : memref<288x256xbf16, #tpu.memory_space<vmem>>, vector<16x256xbf16>
    tpu.vector_store %arg13[%c128_88, %c0_89], %142 {strides = array<i32>} : memref<288x256xbf16, #tpu.memory_space<vmem>>, vector<16x256xbf16>,
    %c0_90 = arith.constant 0 : index
    %c0_91 = arith.constant 0 : index
    %144 = vector.load %arg4[%c0_90, %c0_91] : memref<8x144xbf16, #tpu.memory_space<vmem>>, vector<8x144xbf16>
    %c0_92 = arith.constant 0 : index
    %c0_93 = arith.constant 0 : index
    %145 = vector.load %arg13[%c0_92, %c0_93] : memref<288x256xbf16, #tpu.memory_space<vmem>>, vector<144x256xbf16>
    %cst_94 = arith.constant dense<0.000000e+00> : vector<8x256xf32>
    %146 = tpu.matmul %144, %145, %cst_94 {dimension_numbers = #tpu.dot_dimension_numbers<[1], [0], [0], [1], [0, 0, 1, 1], [], []>} : vector<8x144xbf16>, vector<144x256xbf16>, vector<8x256xf32> -> vector<8x256xf32>
    %c0_95 = arith.constant 0 : index
    %c0_96 = arith.constant 0 : index
    %147 = vector.load %arg5[%c0_95, %c0_96] : memref<8x1xf32, #tpu.memory_space<vmem>>, vector<8x1xf32>
    %148 = vector.broadcast %147 : vector<8x1xf32> to vector<8x256xf32>
    %149 = arith.addf %146, %148 : vector<8x256xf32>
    %cst_97 = arith.constant 0.000000e+00 : f32
    %150 = vector.broadcast %cst_97 : f32 to vector<8x256xf32>
    %151 = arith.cmpf oge, %149, %150 : vector<8x256xf32>
    %cst_98 = arith.constant 1.000000e-01 : f32
    %152 = vector.broadcast %cst_98 : f32 to vector<8x256xf32>
    %153 = arith.mulf %152, %149 : vector<8x256xf32>
    %154 = arith.select %151, %149, %153 : vector<8x256xi1>, vector<8x256xf32>
    %c0_99 = arith.constant 0 : index
    %c128_100 = arith.constant 128 : index
    %155 = vector.load %arg12[%c0_99, %c128_100] : memref<32x512xf32, #tpu.memory_space<vmem>>, vector<8x256xf32>
    tpu.vector_store %arg12[%c0_99, %c128_100], %154 {strides = array<i32>} : memref<32x512xf32, #tpu.memory_space<vmem>>, vector<8x256xf32>,
    %cst_101 = arith.constant 0.000000e+00 : f32
    %156 = vector.broadcast %cst_101 : f32 to vector<8x256xf32>
    %c8_102 = arith.constant 8 : index
    %c128_103 = arith.constant 128 : index
    %157 = vector.load %arg12[%c8_102, %c128_103] : memref<32x512xf32, #tpu.memory_space<vmem>>, vector<8x256xf32>
    tpu.vector_store %arg12[%c8_102, %c128_103], %156 {strides = array<i32>} : memref<32x512xf32, #tpu.memory_space<vmem>>, vector<8x256xf32>,
    %c0_104 = arith.constant 0 : index
    %c111_105 = arith.constant 111 : index
    %158 = vector.load %arg12[%c0_104, %c111_105] : memref<32x512xf32, #tpu.memory_space<vmem>>, vector<16x256xf32>
    %cst_106 = arith.constant 0.000000e+00 : f32
    %159 = vector.shape_cast %18 : vector<1x256xi1> to vector<1x256xi1>
    %160 = vector.broadcast %159 : vector<1x256xi1> to vector<16x256xi1>
    %161 = vector.broadcast %cst_106 : f32 to vector<16x256xf32>
    %162 = arith.select %160, %158, %161 : vector<16x256xi1>, vector<16x256xf32>
    %163 = arith.truncf %162 : vector<16x256xf32> to vector<16x256xbf16>
    %c0_107 = arith.constant 0 : index
    %c0_108 = arith.constant 0 : index
    %164 = vector.load %arg13[%c0_107, %c0_108] : memref<288x256xbf16, #tpu.memory_space<vmem>>, vector<16x256xbf16>
    tpu.vector_store %arg13[%c0_107, %c0_108], %163 {strides = array<i32>} : memref<288x256xbf16, #tpu.memory_space<vmem>>, vector<16x256xbf16>,
    %c0_109 = arith.constant 0 : index
    %c112_110 = arith.constant 112 : index
    %165 = vector.load %arg12[%c0_109, %c112_110] : memref<32x512xf32, #tpu.memory_space<vmem>>, vector<16x256xf32>
    %166 = arith.truncf %165 : vector<16x256xf32> to vector<16x256xbf16>
    %c16_111 = arith.constant 16 : index
    %c0_112 = arith.constant 0 : index
    %167 = vector.load %arg13[%c16_111, %c0_112] : memref<288x256xbf16, #tpu.memory_space<vmem>>, vector<16x256xbf16>
    tpu.vector_store %arg13[%c16_111, %c0_112], %166 {strides = array<i32>} : memref<288x256xbf16, #tpu.memory_space<vmem>>, vector<16x256xbf16>,
    %c0_113 = arith.constant 0 : index
    %c113_114 = arith.constant 113 : index
    %168 = vector.load %arg12[%c0_113, %c113_114] : memref<32x512xf32, #tpu.memory_space<vmem>>, vector<16x256xf32>
    %cst_115 = arith.constant 0.000000e+00 : f32
    %169 = vector.shape_cast %20 : vector<1x256xi1> to vector<1x256xi1>
    %170 = vector.broadcast %169 : vector<1x256xi1> to vector<16x256xi1>
    %171 = vector.broadcast %cst_115 : f32 to vector<16x256xf32>
    %172 = arith.select %170, %168, %171 : vector<16x256xi1>, vector<16x256xf32>
    %173 = arith.truncf %172 : vector<16x256xf32> to vector<16x256xbf16>
    %c32_116 = arith.constant 32 : index
    %c0_117 = arith.constant 0 : index
    %174 = vector.load %arg13[%c32_116, %c0_117] : memref<288x256xbf16, #tpu.memory_space<vmem>>, vector<16x256xbf16>
    tpu.vector_store %arg13[%c32_116, %c0_117], %173 {strides = array<i32>} : memref<288x256xbf16, #tpu.memory_space<vmem>>, vector<16x256xbf16>,
    %c0_118 = arith.constant 0 : index
    %c127_119 = arith.constant 127 : index
    %175 = vector.load %arg12[%c0_118, %c127_119] : memref<32x512xf32, #tpu.memory_space<vmem>>, vector<16x256xf32>
    %cst_120 = arith.constant 0.000000e+00 : f32
    %176 = vector.shape_cast %18 : vector<1x256xi1> to vector<1x256xi1>
    %177 = vector.broadcast %176 : vector<1x256xi1> to vector<16x256xi1>
    %178 = vector.broadcast %cst_120 : f32 to vector<16x256xf32>
    %179 = arith.select %177, %175, %178 : vector<16x256xi1>, vector<16x256xf32>
    %180 = arith.truncf %179 : vector<16x256xf32> to vector<16x256xbf16>
    %c48_121 = arith.constant 48 : index
    %c0_122 = arith.constant 0 : index
    %181 = vector.load %arg13[%c48_121, %c0_122] : memref<288x256xbf16, #tpu.memory_space<vmem>>, vector<16x256xbf16>
    tpu.vector_store %arg13[%c48_121, %c0_122], %180 {strides = array<i32>} : memref<288x256xbf16, #tpu.memory_space<vmem>>, vector<16x256xbf16>,
    %c0_123 = arith.constant 0 : index
    %c128_124 = arith.constant 128 : index
    %182 = vector.load %arg12[%c0_123, %c128_124] : memref<32x512xf32, #tpu.memory_space<vmem>>, vector<16x256xf32>
    %183 = arith.truncf %182 : vector<16x256xf32> to vector<16x256xbf16>
    %c64_125 = arith.constant 64 : index
    %c0_126 = arith.constant 0 : index
    %184 = vector.load %arg13[%c64_125, %c0_126] : memref<288x256xbf16, #tpu.memory_space<vmem>>, vector<16x256xbf16>
    tpu.vector_store %arg13[%c64_125, %c0_126], %183 {strides = array<i32>} : memref<288x256xbf16, #tpu.memory_space<vmem>>, vector<16x256xbf16>,
    %c0_127 = arith.constant 0 : index
    %c129_128 = arith.constant 129 : index
    %185 = vector.load %arg12[%c0_127, %c129_128] : memref<32x512xf32, #tpu.memory_space<vmem>>, vector<16x256xf32>
    %cst_129 = arith.constant 0.000000e+00 : f32
    %186 = vector.shape_cast %20 : vector<1x256xi1> to vector<1x256xi1>
    %187 = vector.broadcast %186 : vector<1x256xi1> to vector<16x256xi1>
    %188 = vector.broadcast %cst_129 : f32 to vector<16x256xf32>
    %189 = arith.select %187, %185, %188 : vector<16x256xi1>, vector<16x256xf32>
    %190 = arith.truncf %189 : vector<16x256xf32> to vector<16x256xbf16>
    %c80_130 = arith.constant 80 : index
    %c0_131 = arith.constant 0 : index
    %191 = vector.load %arg13[%c80_130, %c0_131] : memref<288x256xbf16, #tpu.memory_space<vmem>>, vector<16x256xbf16>
    tpu.vector_store %arg13[%c80_130, %c0_131], %190 {strides = array<i32>} : memref<288x256xbf16, #tpu.memory_space<vmem>>, vector<16x256xbf16>,
    %c0_132 = arith.constant 0 : index
    %c143_133 = arith.constant 143 : index
    %192 = vector.load %arg12[%c0_132, %c143_133] : memref<32x512xf32, #tpu.memory_space<vmem>>, vector<16x256xf32>
    %cst_134 = arith.constant 0.000000e+00 : f32
    %193 = vector.shape_cast %18 : vector<1x256xi1> to vector<1x256xi1>
    %194 = vector.broadcast %193 : vector<1x256xi1> to vector<16x256xi1>
    %195 = vector.broadcast %cst_134 : f32 to vector<16x256xf32>
    %196 = arith.select %194, %192, %195 : vector<16x256xi1>, vector<16x256xf32>
    %197 = arith.truncf %196 : vector<16x256xf32> to vector<16x256xbf16>
    %c96_135 = arith.constant 96 : index
    %c0_136 = arith.constant 0 : index
    %198 = vector.load %arg13[%c96_135, %c0_136] : memref<288x256xbf16, #tpu.memory_space<vmem>>, vector<16x256xbf16>
    tpu.vector_store %arg13[%c96_135, %c0_136], %197 {strides = array<i32>} : memref<288x256xbf16, #tpu.memory_space<vmem>>, vector<16x256xbf16>,
    %c0_137 = arith.constant 0 : index
    %c144_138 = arith.constant 144 : index
    %199 = vector.load %arg12[%c0_137, %c144_138] : memref<32x512xf32, #tpu.memory_space<vmem>>, vector<16x256xf32>
    %200 = arith.truncf %199 : vector<16x256xf32> to vector<16x256xbf16>
    %c112_139 = arith.constant 112 : index
    %c0_140 = arith.constant 0 : index
    %201 = vector.load %arg13[%c112_139, %c0_140] : memref<288x256xbf16, #tpu.memory_space<vmem>>, vector<16x256xbf16>
    tpu.vector_store %arg13[%c112_139, %c0_140], %200 {strides = array<i32>} : memref<288x256xbf16, #tpu.memory_space<vmem>>, vector<16x256xbf16>,
    %c0_141 = arith.constant 0 : index
    %c145_142 = arith.constant 145 : index
    %202 = vector.load %arg12[%c0_141, %c145_142] : memref<32x512xf32, #tpu.memory_space<vmem>>, vector<16x256xf32>
    %cst_143 = arith.constant 0.000000e+00 : f32
    %203 = vector.shape_cast %20 : vector<1x256xi1> to vector<1x256xi1>
    %204 = vector.broadcast %203 : vector<1x256xi1> to vector<16x256xi1>
    %205 = vector.broadcast %cst_143 : f32 to vector<16x256xf32>
    %206 = arith.select %204, %202, %205 : vector<16x256xi1>, vector<16x256xf32>
    %207 = arith.truncf %206 : vector<16x256xf32> to vector<16x256xbf16>
    %c128_144 = arith.constant 128 : index
    %c0_145 = arith.constant 0 : index
    %208 = vector.load %arg13[%c128_144, %c0_145] : memref<288x256xbf16, #tpu.memory_space<vmem>>, vector<16x256xbf16>
    tpu.vector_store %arg13[%c128_144, %c0_145], %207 {strides = array<i32>} : memref<288x256xbf16, #tpu.memory_space<vmem>>, vector<16x256xbf16>,
    %c0_146 = arith.constant 0 : index
    %c0_147 = arith.constant 0 : index
    %209 = vector.load %arg6[%c0_146, %c0_147] : memref<8x144xbf16, #tpu.memory_space<vmem>>, vector<8x144xbf16>
    %c0_148 = arith.constant 0 : index
    %c0_149 = arith.constant 0 : index
    %210 = vector.load %arg13[%c0_148, %c0_149] : memref<288x256xbf16, #tpu.memory_space<vmem>>, vector<144x256xbf16>
    %cst_150 = arith.constant dense<0.000000e+00> : vector<8x256xf32>
    %211 = tpu.matmul %209, %210, %cst_150 {dimension_numbers = #tpu.dot_dimension_numbers<[1], [0], [0], [1], [0, 0, 1, 1], [], []>} : vector<8x144xbf16>, vector<144x256xbf16>, vector<8x256xf32> -> vector<8x256xf32>
    %c0_151 = arith.constant 0 : index
    %c0_152 = arith.constant 0 : index
    %212 = vector.load %arg7[%c0_151, %c0_152] : memref<8x1xf32, #tpu.memory_space<vmem>>, vector<8x1xf32>
    %213 = vector.broadcast %212 : vector<8x1xf32> to vector<8x256xf32>
    %214 = arith.addf %211, %213 : vector<8x256xf32>
    %cst_153 = arith.constant 0.000000e+00 : f32
    %215 = vector.broadcast %cst_153 : f32 to vector<8x256xf32>
    %216 = arith.cmpf oge, %214, %215 : vector<8x256xf32>
    %cst_154 = arith.constant 1.000000e-01 : f32
    %217 = vector.broadcast %cst_154 : f32 to vector<8x256xf32>
    %218 = arith.mulf %217, %214 : vector<8x256xf32>
    %219 = arith.select %216, %214, %218 : vector<8x256xi1>, vector<8x256xf32>
    %c0_155 = arith.constant 0 : index
    %c128_156 = arith.constant 128 : index
    %220 = vector.load %arg12[%c0_155, %c128_156] : memref<32x512xf32, #tpu.memory_space<vmem>>, vector<8x256xf32>
    tpu.vector_store %arg12[%c0_155, %c128_156], %219 {strides = array<i32>} : memref<32x512xf32, #tpu.memory_space<vmem>>, vector<8x256xf32>,
    %cst_157 = arith.constant 0.000000e+00 : f32
    %221 = vector.broadcast %cst_157 : f32 to vector<8x256xf32>
    %c8_158 = arith.constant 8 : index
    %c128_159 = arith.constant 128 : index
    %222 = vector.load %arg12[%c8_158, %c128_159] : memref<32x512xf32, #tpu.memory_space<vmem>>, vector<8x256xf32>
    tpu.vector_store %arg12[%c8_158, %c128_159], %221 {strides = array<i32>} : memref<32x512xf32, #tpu.memory_space<vmem>>, vector<8x256xf32>,
    %c0_160 = arith.constant 0 : index
    %c111_161 = arith.constant 111 : index
    %223 = vector.load %arg12[%c0_160, %c111_161] : memref<32x512xf32, #tpu.memory_space<vmem>>, vector<16x256xf32>
    %cst_162 = arith.constant 0.000000e+00 : f32
    %224 = vector.shape_cast %18 : vector<1x256xi1> to vector<1x256xi1>
    %225 = vector.broadcast %224 : vector<1x256xi1> to vector<16x256xi1>
    %226 = vector.broadcast %cst_162 : f32 to vector<16x256xf32>
    %227 = arith.select %225, %223, %226 : vector<16x256xi1>, vector<16x256xf32>
    %228 = arith.truncf %227 : vector<16x256xf32> to vector<16x256xbf16>
    %c0_163 = arith.constant 0 : index
    %c0_164 = arith.constant 0 : index
    %229 = vector.load %arg13[%c0_163, %c0_164] : memref<288x256xbf16, #tpu.memory_space<vmem>>, vector<16x256xbf16>
    tpu.vector_store %arg13[%c0_163, %c0_164], %228 {strides = array<i32>} : memref<288x256xbf16, #tpu.memory_space<vmem>>, vector<16x256xbf16>,
    %c0_165 = arith.constant 0 : index
    %c112_166 = arith.constant 112 : index
    %230 = vector.load %arg12[%c0_165, %c112_166] : memref<32x512xf32, #tpu.memory_space<vmem>>, vector<16x256xf32>
    %231 = arith.truncf %230 : vector<16x256xf32> to vector<16x256xbf16>
    %c16_167 = arith.constant 16 : index
    %c0_168 = arith.constant 0 : index
    %232 = vector.load %arg13[%c16_167, %c0_168] : memref<288x256xbf16, #tpu.memory_space<vmem>>, vector<16x256xbf16>
    tpu.vector_store %arg13[%c16_167, %c0_168], %231 {strides = array<i32>} : memref<288x256xbf16, #tpu.memory_space<vmem>>, vector<16x256xbf16>,
    %c0_169 = arith.constant 0 : index
    %c113_170 = arith.constant 113 : index
    %233 = vector.load %arg12[%c0_169, %c113_170] : memref<32x512xf32, #tpu.memory_space<vmem>>, vector<16x256xf32>
    %cst_171 = arith.constant 0.000000e+00 : f32
    %234 = vector.shape_cast %20 : vector<1x256xi1> to vector<1x256xi1>
    %235 = vector.broadcast %234 : vector<1x256xi1> to vector<16x256xi1>
    %236 = vector.broadcast %cst_171 : f32 to vector<16x256xf32>
    %237 = arith.select %235, %233, %236 : vector<16x256xi1>, vector<16x256xf32>
    %238 = arith.truncf %237 : vector<16x256xf32> to vector<16x256xbf16>
    %c32_172 = arith.constant 32 : index
    %c0_173 = arith.constant 0 : index
    %239 = vector.load %arg13[%c32_172, %c0_173] : memref<288x256xbf16, #tpu.memory_space<vmem>>, vector<16x256xbf16>
    tpu.vector_store %arg13[%c32_172, %c0_173], %238 {strides = array<i32>} : memref<288x256xbf16, #tpu.memory_space<vmem>>, vector<16x256xbf16>,
    %c0_174 = arith.constant 0 : index
    %c127_175 = arith.constant 127 : index
    %240 = vector.load %arg12[%c0_174, %c127_175] : memref<32x512xf32, #tpu.memory_space<vmem>>, vector<16x256xf32>
    %cst_176 = arith.constant 0.000000e+00 : f32
    %241 = vector.shape_cast %18 : vector<1x256xi1> to vector<1x256xi1>
    %242 = vector.broadcast %241 : vector<1x256xi1> to vector<16x256xi1>
    %243 = vector.broadcast %cst_176 : f32 to vector<16x256xf32>
    %244 = arith.select %242, %240, %243 : vector<16x256xi1>, vector<16x256xf32>
    %245 = arith.truncf %244 : vector<16x256xf32> to vector<16x256xbf16>
    %c48_177 = arith.constant 48 : index
    %c0_178 = arith.constant 0 : index
    %246 = vector.load %arg13[%c48_177, %c0_178] : memref<288x256xbf16, #tpu.memory_space<vmem>>, vector<16x256xbf16>
    tpu.vector_store %arg13[%c48_177, %c0_178], %245 {strides = array<i32>} : memref<288x256xbf16, #tpu.memory_space<vmem>>, vector<16x256xbf16>,
    %c0_179 = arith.constant 0 : index
    %c128_180 = arith.constant 128 : index
    %247 = vector.load %arg12[%c0_179, %c128_180] : memref<32x512xf32, #tpu.memory_space<vmem>>, vector<16x256xf32>
    %248 = arith.truncf %247 : vector<16x256xf32> to vector<16x256xbf16>
    %c64_181 = arith.constant 64 : index
    %c0_182 = arith.constant 0 : index
    %249 = vector.load %arg13[%c64_181, %c0_182] : memref<288x256xbf16, #tpu.memory_space<vmem>>, vector<16x256xbf16>
    tpu.vector_store %arg13[%c64_181, %c0_182], %248 {strides = array<i32>} : memref<288x256xbf16, #tpu.memory_space<vmem>>, vector<16x256xbf16>,
    %c0_183 = arith.constant 0 : index
    %c129_184 = arith.constant 129 : index
    %250 = vector.load %arg12[%c0_183, %c129_184] : memref<32x512xf32, #tpu.memory_space<vmem>>, vector<16x256xf32>
    %cst_185 = arith.constant 0.000000e+00 : f32
    %251 = vector.shape_cast %20 : vector<1x256xi1> to vector<1x256xi1>
    %252 = vector.broadcast %251 : vector<1x256xi1> to vector<16x256xi1>
    %253 = vector.broadcast %cst_185 : f32 to vector<16x256xf32>
    %254 = arith.select %252, %250, %253 : vector<16x256xi1>, vector<16x256xf32>
    %255 = arith.truncf %254 : vector<16x256xf32> to vector<16x256xbf16>
    %c80_186 = arith.constant 80 : index
    %c0_187 = arith.constant 0 : index
    %256 = vector.load %arg13[%c80_186, %c0_187] : memref<288x256xbf16, #tpu.memory_space<vmem>>, vector<16x256xbf16>
    tpu.vector_store %arg13[%c80_186, %c0_187], %255 {strides = array<i32>} : memref<288x256xbf16, #tpu.memory_space<vmem>>, vector<16x256xbf16>,
    %c0_188 = arith.constant 0 : index
    %c143_189 = arith.constant 143 : index
    %257 = vector.load %arg12[%c0_188, %c143_189] : memref<32x512xf32, #tpu.memory_space<vmem>>, vector<16x256xf32>
    %cst_190 = arith.constant 0.000000e+00 : f32
    %258 = vector.shape_cast %18 : vector<1x256xi1> to vector<1x256xi1>
    %259 = vector.broadcast %258 : vector<1x256xi1> to vector<16x256xi1>
    %260 = vector.broadcast %cst_190 : f32 to vector<16x256xf32>
    %261 = arith.select %259, %257, %260 : vector<16x256xi1>, vector<16x256xf32>
    %262 = arith.truncf %261 : vector<16x256xf32> to vector<16x256xbf16>
    %c96_191 = arith.constant 96 : index
    %c0_192 = arith.constant 0 : index
    %263 = vector.load %arg13[%c96_191, %c0_192] : memref<288x256xbf16, #tpu.memory_space<vmem>>, vector<16x256xbf16>
    tpu.vector_store %arg13[%c96_191, %c0_192], %262 {strides = array<i32>} : memref<288x256xbf16, #tpu.memory_space<vmem>>, vector<16x256xbf16>,
    %c0_193 = arith.constant 0 : index
    %c144_194 = arith.constant 144 : index
    %264 = vector.load %arg12[%c0_193, %c144_194] : memref<32x512xf32, #tpu.memory_space<vmem>>, vector<16x256xf32>
    %265 = arith.truncf %264 : vector<16x256xf32> to vector<16x256xbf16>
    %c112_195 = arith.constant 112 : index
    %c0_196 = arith.constant 0 : index
    %266 = vector.load %arg13[%c112_195, %c0_196] : memref<288x256xbf16, #tpu.memory_space<vmem>>, vector<16x256xbf16>
    tpu.vector_store %arg13[%c112_195, %c0_196], %265 {strides = array<i32>} : memref<288x256xbf16, #tpu.memory_space<vmem>>, vector<16x256xbf16>,
    %c0_197 = arith.constant 0 : index
    %c145_198 = arith.constant 145 : index
    %267 = vector.load %arg12[%c0_197, %c145_198] : memref<32x512xf32, #tpu.memory_space<vmem>>, vector<16x256xf32>
    %cst_199 = arith.constant 0.000000e+00 : f32
    %268 = vector.shape_cast %20 : vector<1x256xi1> to vector<1x256xi1>
    %269 = vector.broadcast %268 : vector<1x256xi1> to vector<16x256xi1>
    %270 = vector.broadcast %cst_199 : f32 to vector<16x256xf32>
    %271 = arith.select %269, %267, %270 : vector<16x256xi1>, vector<16x256xf32>
    %272 = arith.truncf %271 : vector<16x256xf32> to vector<16x256xbf16>
    %c128_200 = arith.constant 128 : index
    %c0_201 = arith.constant 0 : index
    %273 = vector.load %arg13[%c128_200, %c0_201] : memref<288x256xbf16, #tpu.memory_space<vmem>>, vector<16x256xbf16>
    tpu.vector_store %arg13[%c128_200, %c0_201], %272 {strides = array<i32>} : memref<288x256xbf16, #tpu.memory_space<vmem>>, vector<16x256xbf16>,
    %c0_202 = arith.constant 0 : index
    %c0_203 = arith.constant 0 : index
    %274 = vector.load %arg8[%c0_202, %c0_203] : memref<432x144xbf16, #tpu.memory_space<vmem>>, vector<432x144xbf16>
    %c0_204 = arith.constant 0 : index
    %c0_205 = arith.constant 0 : index
    %275 = vector.load %arg13[%c0_204, %c0_205] : memref<288x256xbf16, #tpu.memory_space<vmem>>, vector<144x256xbf16>
    %cst_206 = arith.constant dense<0.000000e+00> : vector<432x256xf32>
    %276 = tpu.matmul %274, %275, %cst_206 {dimension_numbers = #tpu.dot_dimension_numbers<[1], [0], [0], [1], [0, 0, 1, 1], [], []>} : vector<432x144xbf16>, vector<144x256xbf16>, vector<432x256xf32> -> vector<432x256xf32>
    %c0_207 = arith.constant 0 : index
    %c0_208 = arith.constant 0 : index
    %277 = vector.load %arg9[%c0_207, %c0_208] : memref<432x1xf32, #tpu.memory_space<vmem>>, vector<432x1xf32>
    %278 = vector.broadcast %277 : vector<432x1xf32> to vector<432x256xf32>
    %279 = arith.addf %276, %278 : vector<432x256xf32>
    %280 = vector.extract_strided_slice %279 {offsets = [0, 0], sizes = [288, 256], strides = [1, 1]} : vector<432x256xf32> to vector<288x256xf32>
    %281 = math.tanh %280 : vector<288x256xf32>
    %cst_209 = arith.constant 1.000000e+01 : f32
    %282 = vector.broadcast %cst_209 : f32 to vector<288x256xf32>
    %283 = arith.mulf %282, %281 : vector<288x256xf32>
    %c0_210 = arith.constant 0 : index
    %c0_211 = arith.constant 0 : index
    %c0_212 = arith.constant 0 : index
    %284 = vector.load %arg10[%c0_210, %c0_211, %c0_212] : memref<1x288x256xf32, #tpu.memory_space<vmem>>, vector<1x288x256xf32>
    %285 = vector.shape_cast %284 : vector<1x288x256xf32> to vector<288x256xf32>
    %286 = vector.shape_cast %283 : vector<288x256xf32> to vector<1x288x256xf32>
    tpu.vector_store %arg10[%c0_210, %c0_211, %c0_212], %286 {strides = array<i32>} : memref<1x288x256xf32, #tpu.memory_space<vmem>>, vector<1x288x256xf32>,
    %287 = vector.extract_strided_slice %279 {offsets = [288, 0], sizes = [144, 256], strides = [1, 1]} : vector<432x256xf32> to vector<144x256xf32>
    %288 = arith.negf %287 : vector<144x256xf32>
    %289 = math.exp %288 : vector<144x256xf32>
    %cst_213 = arith.constant 1.000000e+00 : f32
    %290 = vector.broadcast %cst_213 : f32 to vector<144x256xf32>
    %291 = arith.addf %290, %289 : vector<144x256xf32>
    %292 = arith.divf %290, %291 : vector<144x256xf32>
    %c0_214 = arith.constant 0 : index
    %c0_215 = arith.constant 0 : index
    %c0_216 = arith.constant 0 : index
    %293 = vector.load %arg11[%c0_214, %c0_215, %c0_216] : memref<1x144x256xf32, #tpu.memory_space<vmem>>, vector<1x144x256xf32>
    %294 = vector.shape_cast %293 : vector<1x144x256xf32> to vector<144x256xf32>
    %295 = vector.shape_cast %292 : vector<144x256xf32> to vector<1x144x256xf32>
    tpu.vector_store %arg11[%c0_214, %c0_215, %c0_216], %295 {strides = array<i32>} : memref<1x144x256xf32, #tpu.memory_space<vmem>>, vector<1x144x256xf32>,
    return
  }
  func.func @transform_0(%arg0: i32) -> (i32, i32, i32) {
    %c0_i32 = arith.constant 0 : i32
    %c0_i32_0 = arith.constant 0 : i32
    %c0_i32_1 = arith.constant 0 : i32
    return %arg0, %c0_i32, %c0_i32_0 : i32, i32, i32
  }
  func.func @transform_1(%arg0: i32) -> (i32, i32) {
    %c0_i32 = arith.constant 0 : i32
    %c0_i32_0 = arith.constant 0 : i32
    %c0_i32_1 = arith.constant 0 : i32
    return %c0_i32, %c0_i32_0 : i32, i32
  }
  func.func @transform_2(%arg0: i32) -> (i32, i32) {
    %c0_i32 = arith.constant 0 : i32
    %c0_i32_0 = arith.constant 0 : i32
    %c0_i32_1 = arith.constant 0 : i32
    return %c0_i32, %c0_i32_0 : i32, i32
  }
  func.func @transform_3(%arg0: i32) -> (i32, i32) {
    %c0_i32 = arith.constant 0 : i32
    %c0_i32_0 = arith.constant 0 : i32
    %c0_i32_1 = arith.constant 0 : i32
    return %c0_i32, %c0_i32_0 : i32, i32
  }
  func.func @transform_4(%arg0: i32) -> (i32, i32) {
    %c0_i32 = arith.constant 0 : i32
    %c0_i32_0 = arith.constant 0 : i32
    %c0_i32_1 = arith.constant 0 : i32
    return %c0_i32, %c0_i32_0 : i32, i32
  }
  func.func @transform_5(%arg0: i32) -> (i32, i32) {
    %c0_i32 = arith.constant 0 : i32
    %c0_i32_0 = arith.constant 0 : i32
    %c0_i32_1 = arith.constant 0 : i32
    return %c0_i32, %c0_i32_0 : i32, i32
  }
  func.func @transform_6(%arg0: i32) -> (i32, i32) {
    %c0_i32 = arith.constant 0 : i32
    %c0_i32_0 = arith.constant 0 : i32
    %c0_i32_1 = arith.constant 0 : i32
    return %c0_i32, %c0_i32_0 : i32, i32
  }
  func.func @transform_7(%arg0: i32) -> (i32, i32) {
    %c0_i32 = arith.constant 0 : i32
    %c0_i32_0 = arith.constant 0 : i32
    %c0_i32_1 = arith.constant 0 : i32
    return %c0_i32, %c0_i32_0 : i32, i32
  }
  func.func @transform_8(%arg0: i32) -> (i32, i32) {
    %c0_i32 = arith.constant 0 : i32
    %c0_i32_0 = arith.constant 0 : i32
    %c0_i32_1 = arith.constant 0 : i32
    return %c0_i32, %c0_i32_0 : i32, i32
  }
  func.func @transform_9(%arg0: i32) -> (i32, i32, i32) {
    %c0_i32 = arith.constant 0 : i32
    %c0_i32_0 = arith.constant 0 : i32
    %c0_i32_1 = arith.constant 0 : i32
    return %arg0, %c0_i32, %c0_i32_0 : i32, i32, i32
  }
  func.func @transform_10(%arg0: i32) -> (i32, i32, i32) {
    %c0_i32 = arith.constant 0 : i32
    %c0_i32_0 = arith.constant 0 : i32
    %c0_i32_1 = arith.constant 0 : i32
    return %arg0, %c0_i32, %c0_i32_0 : i32, i32, i32
  }
}

module attributes {stable_mosaic.version = 11 : i64} {
  func.func @kernel(%arg0: i32, %arg1: i32, %arg2: memref<1x144x256xbf16, #tpu.memory_space<vmem>>, %arg3: memref<8x144xbf16, #tpu.memory_space<vmem>>, %arg4: memref<8x1xf32, #tpu.memory_space<vmem>>, %arg5: memref<1x8x256xf32, #tpu.memory_space<vmem>>) attributes {dimension_semantics = [#tpu.dimension_semantics<parallel>, #tpu.dimension_semantics<parallel>], iteration_bounds = array<i64: 2, 1>, scalar_prefetch = 0 : i64, scratch_operands = 0 : i64, tpu.core_type = #tpu.core_type<tc>, window_params = [{transform_indices = @transform_0, window_bounds = array<i64: 1, 144, 256>}, {pipeline_mode = #tpu.pipeline_mode<synchronous>, transform_indices = @transform_1, window_bounds = array<i64: 8, 144>}, {pipeline_mode = #tpu.pipeline_mode<synchronous>, transform_indices = @transform_2, window_bounds = array<i64: 8, 1>}, {transform_indices = @transform_3, window_bounds = array<i64: 1, 8, 256>}]} {
    %c0 = arith.constant 0 : index
    %c0_0 = arith.constant 0 : index
    %0 = vector.load %arg3[%c0, %c0_0] : memref<8x144xbf16, #tpu.memory_space<vmem>>, vector<8x144xbf16>
    %c0_1 = arith.constant 0 : index
    %c0_2 = arith.constant 0 : index
    %c0_3 = arith.constant 0 : index
    %1 = vector.load %arg2[%c0_1, %c0_2, %c0_3] : memref<1x144x256xbf16, #tpu.memory_space<vmem>>, vector<1x144x256xbf16>
    %2 = vector.shape_cast %1 : vector<1x144x256xbf16> to vector<144x256xbf16>
    %cst = arith.constant dense<0.000000e+00> : vector<8x256xf32>
    %3 = tpu.matmul %0, %2, %cst {dimension_numbers = #tpu.dot_dimension_numbers<[1], [0], [0], [1], [0, 0, 1, 1], [], []>} : vector<8x144xbf16>, vector<144x256xbf16>, vector<8x256xf32> -> vector<8x256xf32>
    %c0_4 = arith.constant 0 : index
    %c0_5 = arith.constant 0 : index
    %4 = vector.load %arg4[%c0_4, %c0_5] : memref<8x1xf32, #tpu.memory_space<vmem>>, vector<8x1xf32>
    %5 = vector.broadcast %4 : vector<8x1xf32> to vector<8x256xf32>
    %6 = arith.addf %3, %5 : vector<8x256xf32>
    %c0_6 = arith.constant 0 : index
    %c0_7 = arith.constant 0 : index
    %c0_8 = arith.constant 0 : index
    %7 = vector.load %arg5[%c0_6, %c0_7, %c0_8] : memref<1x8x256xf32, #tpu.memory_space<vmem>>, vector<1x8x256xf32>
    %8 = vector.shape_cast %7 : vector<1x8x256xf32> to vector<8x256xf32>
    %9 = vector.shape_cast %6 : vector<8x256xf32> to vector<1x8x256xf32>
    tpu.vector_store %arg5[%c0_6, %c0_7, %c0_8], %9 {strides = array<i32>} : memref<1x8x256xf32, #tpu.memory_space<vmem>>, vector<1x8x256xf32>,
    return
  }
  func.func @transform_0(%arg0: i32, %arg1: i32) -> (i32, i32, i32) {
    %c0_i32 = arith.constant 0 : i32
    %c0_i32_0 = arith.constant 0 : i32
    return %arg0, %c0_i32, %arg1 : i32, i32, i32
  }
  func.func @transform_1(%arg0: i32, %arg1: i32) -> (i32, i32) {
    %c0_i32 = arith.constant 0 : i32
    %c0_i32_0 = arith.constant 0 : i32
    %c0_i32_1 = arith.constant 0 : i32
    return %c0_i32, %c0_i32_0 : i32, i32
  }
  func.func @transform_2(%arg0: i32, %arg1: i32) -> (i32, i32) {
    %c0_i32 = arith.constant 0 : i32
    %c0_i32_0 = arith.constant 0 : i32
    %c0_i32_1 = arith.constant 0 : i32
    return %c0_i32, %c0_i32_0 : i32, i32
  }
  func.func @transform_3(%arg0: i32, %arg1: i32) -> (i32, i32, i32) {
    %c0_i32 = arith.constant 0 : i32
    %c0_i32_0 = arith.constant 0 : i32
    return %arg0, %c0_i32, %arg1 : i32, i32, i32
  }
}

module attributes {stable_mosaic.version = 11 : i64} {
  func.func @kernel(%arg0: i32, %arg1: memref<1x16x256xf32, #tpu.memory_space<vmem>>, %arg2: memref<8x144xbf16, #tpu.memory_space<vmem>>, %arg3: memref<8x1xf32, #tpu.memory_space<vmem>>, %arg4: memref<8x144xbf16, #tpu.memory_space<vmem>>, %arg5: memref<8x1xf32, #tpu.memory_space<vmem>>, %arg6: memref<1x8x256xf32, #tpu.memory_space<vmem>>, %arg7: memref<16x512xf32, #tpu.memory_space<vmem>>, %arg8: memref<144x256xbf16, #tpu.memory_space<vmem>>) attributes {dimension_semantics = [#tpu.dimension_semantics<parallel>], iteration_bounds = array<i64: 2>, scalar_prefetch = 0 : i64, scratch_operands = 2 : i64, tpu.core_type = #tpu.core_type<tc>, window_params = [{transform_indices = @transform_0, window_bounds = array<i64: 1, 16, 256>}, {pipeline_mode = #tpu.pipeline_mode<synchronous>, transform_indices = @transform_1, window_bounds = array<i64: 8, 144>}, {pipeline_mode = #tpu.pipeline_mode<synchronous>, transform_indices = @transform_2, window_bounds = array<i64: 8, 1>}, {pipeline_mode = #tpu.pipeline_mode<synchronous>, transform_indices = @transform_3, window_bounds = array<i64: 8, 144>}, {pipeline_mode = #tpu.pipeline_mode<synchronous>, transform_indices = @transform_4, window_bounds = array<i64: 8, 1>}, {transform_indices = @transform_5, window_bounds = array<i64: 1, 8, 256>}]} {
    %0 = tpu.iota {dimensions = array<i32: 1>} : vector<1x256xi32>
    %c16_i32 = arith.constant 16 : i32
    %c0_i32 = arith.constant 0 : i32
    %1 = arith.cmpi eq, %c16_i32, %c0_i32 : i32
    %c1_i32 = arith.constant 1 : i32
    %2 = arith.select %1, %c1_i32, %c16_i32 : i32
    %3 = vector.broadcast %2 : i32 to vector<1x256xi32>
    %4 = arith.remsi %0, %3 : vector<1x256xi32>
    %c0_i32_0 = arith.constant 0 : i32
    %5 = vector.broadcast %c0_i32_0 : i32 to vector<1x256xi32>
    %6 = arith.cmpi ne, %4, %5 : vector<1x256xi32>
    %c0_i32_1 = arith.constant 0 : i32
    %7 = vector.broadcast %c0_i32_1 : i32 to vector<1x256xi32>
    %8 = arith.cmpi slt, %4, %7 : vector<1x256xi32>
    %c0_i32_2 = arith.constant 0 : i32
    %9 = arith.cmpi slt, %2, %c0_i32_2 : i32
    %10 = vector.broadcast %9 : i1 to vector<1x256xi1>
    %11 = vector.broadcast %10 : vector<1x256xi1> to vector<1x256xi1>
    %12 = arith.xori %8, %11 : vector<1x256xi1>
    %13 = arith.andi %12, %6 : vector<1x256xi1>
    %14 = vector.broadcast %2 : i32 to vector<1x256xi32>
    %15 = arith.addi %4, %14 : vector<1x256xi32>
    %16 = arith.select %13, %15, %4 : vector<1x256xi1>, vector<1x256xi32>
    %c1_i32_3 = arith.constant 1 : i32
    %17 = vector.broadcast %c1_i32_3 : i32 to vector<1x256xi32>
    %18 = arith.cmpi sge, %16, %17 : vector<1x256xi32>
    %c14_i32 = arith.constant 14 : i32
    %19 = vector.broadcast %c14_i32 : i32 to vector<1x256xi32>
    %20 = arith.cmpi sle, %16, %19 : vector<1x256xi32>
    %cst = arith.constant 0.000000e+00 : f32
    %21 = vector.broadcast %cst : f32 to vector<16x128xf32>
    %c0 = arith.constant 0 : index
    %c0_4 = arith.constant 0 : index
    %22 = vector.load %arg7[%c0, %c0_4] : memref<16x512xf32, #tpu.memory_space<vmem>>, vector<16x128xf32>
    tpu.vector_store %arg7[%c0, %c0_4], %21 {strides = array<i32>} : memref<16x512xf32, #tpu.memory_space<vmem>>, vector<16x128xf32>,
    %cst_5 = arith.constant 0.000000e+00 : f32
    %23 = vector.broadcast %cst_5 : f32 to vector<16x128xf32>
    %c0_6 = arith.constant 0 : index
    %c384 = arith.constant 384 : index
    %24 = vector.load %arg7[%c0_6, %c384] : memref<16x512xf32, #tpu.memory_space<vmem>>, vector<16x128xf32>
    tpu.vector_store %arg7[%c0_6, %c384], %23 {strides = array<i32>} : memref<16x512xf32, #tpu.memory_space<vmem>>, vector<16x128xf32>,
    %c0_7 = arith.constant 0 : index
    %c0_8 = arith.constant 0 : index
    %c0_9 = arith.constant 0 : index
    %25 = vector.load %arg1[%c0_7, %c0_8, %c0_9] : memref<1x16x256xf32, #tpu.memory_space<vmem>>, vector<1x16x256xf32>
    %26 = vector.shape_cast %25 : vector<1x16x256xf32> to vector<16x256xf32>
    %c0_10 = arith.constant 0 : index
    %c128 = arith.constant 128 : index
    %27 = vector.load %arg7[%c0_10, %c128] : memref<16x512xf32, #tpu.memory_space<vmem>>, vector<16x256xf32>
    tpu.vector_store %arg7[%c0_10, %c128], %26 {strides = array<i32>} : memref<16x512xf32, #tpu.memory_space<vmem>>, vector<16x256xf32>,
    %c0_11 = arith.constant 0 : index
    %c111 = arith.constant 111 : index
    %28 = vector.load %arg7[%c0_11, %c111] : memref<16x512xf32, #tpu.memory_space<vmem>>, vector<16x256xf32>
    %cst_12 = arith.constant 0.000000e+00 : f32
    %29 = vector.shape_cast %18 : vector<1x256xi1> to vector<1x256xi1>
    %30 = vector.broadcast %29 : vector<1x256xi1> to vector<16x256xi1>
    %31 = vector.broadcast %cst_12 : f32 to vector<16x256xf32>
    %32 = arith.select %30, %28, %31 : vector<16x256xi1>, vector<16x256xf32>
    %33 = arith.truncf %32 : vector<16x256xf32> to vector<16x256xbf16>
    %c0_13 = arith.constant 0 : index
    %c0_14 = arith.constant 0 : index
    %34 = vector.load %arg8[%c0_13, %c0_14] : memref<144x256xbf16, #tpu.memory_space<vmem>>, vector<16x256xbf16>
    tpu.vector_store %arg8[%c0_13, %c0_14], %33 {strides = array<i32>} : memref<144x256xbf16, #tpu.memory_space<vmem>>, vector<16x256xbf16>,
    %c0_15 = arith.constant 0 : index
    %c112 = arith.constant 112 : index
    %35 = vector.load %arg7[%c0_15, %c112] : memref<16x512xf32, #tpu.memory_space<vmem>>, vector<16x256xf32>
    %36 = arith.truncf %35 : vector<16x256xf32> to vector<16x256xbf16>
    %c16 = arith.constant 16 : index
    %c0_16 = arith.constant 0 : index
    %37 = vector.load %arg8[%c16, %c0_16] : memref<144x256xbf16, #tpu.memory_space<vmem>>, vector<16x256xbf16>
    tpu.vector_store %arg8[%c16, %c0_16], %36 {strides = array<i32>} : memref<144x256xbf16, #tpu.memory_space<vmem>>, vector<16x256xbf16>,
    %c0_17 = arith.constant 0 : index
    %c113 = arith.constant 113 : index
    %38 = vector.load %arg7[%c0_17, %c113] : memref<16x512xf32, #tpu.memory_space<vmem>>, vector<16x256xf32>
    %cst_18 = arith.constant 0.000000e+00 : f32
    %39 = vector.shape_cast %20 : vector<1x256xi1> to vector<1x256xi1>
    %40 = vector.broadcast %39 : vector<1x256xi1> to vector<16x256xi1>
    %41 = vector.broadcast %cst_18 : f32 to vector<16x256xf32>
    %42 = arith.select %40, %38, %41 : vector<16x256xi1>, vector<16x256xf32>
    %43 = arith.truncf %42 : vector<16x256xf32> to vector<16x256xbf16>
    %c32 = arith.constant 32 : index
    %c0_19 = arith.constant 0 : index
    %44 = vector.load %arg8[%c32, %c0_19] : memref<144x256xbf16, #tpu.memory_space<vmem>>, vector<16x256xbf16>
    tpu.vector_store %arg8[%c32, %c0_19], %43 {strides = array<i32>} : memref<144x256xbf16, #tpu.memory_space<vmem>>, vector<16x256xbf16>,
    %c0_20 = arith.constant 0 : index
    %c127 = arith.constant 127 : index
    %45 = vector.load %arg7[%c0_20, %c127] : memref<16x512xf32, #tpu.memory_space<vmem>>, vector<16x256xf32>
    %cst_21 = arith.constant 0.000000e+00 : f32
    %46 = vector.shape_cast %18 : vector<1x256xi1> to vector<1x256xi1>
    %47 = vector.broadcast %46 : vector<1x256xi1> to vector<16x256xi1>
    %48 = vector.broadcast %cst_21 : f32 to vector<16x256xf32>
    %49 = arith.select %47, %45, %48 : vector<16x256xi1>, vector<16x256xf32>
    %50 = arith.truncf %49 : vector<16x256xf32> to vector<16x256xbf16>
    %c48 = arith.constant 48 : index
    %c0_22 = arith.constant 0 : index
    %51 = vector.load %arg8[%c48, %c0_22] : memref<144x256xbf16, #tpu.memory_space<vmem>>, vector<16x256xbf16>
    tpu.vector_store %arg8[%c48, %c0_22], %50 {strides = array<i32>} : memref<144x256xbf16, #tpu.memory_space<vmem>>, vector<16x256xbf16>,
    %c0_23 = arith.constant 0 : index
    %c128_24 = arith.constant 128 : index
    %52 = vector.load %arg7[%c0_23, %c128_24] : memref<16x512xf32, #tpu.memory_space<vmem>>, vector<16x256xf32>
    %53 = arith.truncf %52 : vector<16x256xf32> to vector<16x256xbf16>
    %c64 = arith.constant 64 : index
    %c0_25 = arith.constant 0 : index
    %54 = vector.load %arg8[%c64, %c0_25] : memref<144x256xbf16, #tpu.memory_space<vmem>>, vector<16x256xbf16>
    tpu.vector_store %arg8[%c64, %c0_25], %53 {strides = array<i32>} : memref<144x256xbf16, #tpu.memory_space<vmem>>, vector<16x256xbf16>,
    %c0_26 = arith.constant 0 : index
    %c129 = arith.constant 129 : index
    %55 = vector.load %arg7[%c0_26, %c129] : memref<16x512xf32, #tpu.memory_space<vmem>>, vector<16x256xf32>
    %cst_27 = arith.constant 0.000000e+00 : f32
    %56 = vector.shape_cast %20 : vector<1x256xi1> to vector<1x256xi1>
    %57 = vector.broadcast %56 : vector<1x256xi1> to vector<16x256xi1>
    %58 = vector.broadcast %cst_27 : f32 to vector<16x256xf32>
    %59 = arith.select %57, %55, %58 : vector<16x256xi1>, vector<16x256xf32>
    %60 = arith.truncf %59 : vector<16x256xf32> to vector<16x256xbf16>
    %c80 = arith.constant 80 : index
    %c0_28 = arith.constant 0 : index
    %61 = vector.load %arg8[%c80, %c0_28] : memref<144x256xbf16, #tpu.memory_space<vmem>>, vector<16x256xbf16>
    tpu.vector_store %arg8[%c80, %c0_28], %60 {strides = array<i32>} : memref<144x256xbf16, #tpu.memory_space<vmem>>, vector<16x256xbf16>,
    %c0_29 = arith.constant 0 : index
    %c143 = arith.constant 143 : index
    %62 = vector.load %arg7[%c0_29, %c143] : memref<16x512xf32, #tpu.memory_space<vmem>>, vector<16x256xf32>
    %cst_30 = arith.constant 0.000000e+00 : f32
    %63 = vector.shape_cast %18 : vector<1x256xi1> to vector<1x256xi1>
    %64 = vector.broadcast %63 : vector<1x256xi1> to vector<16x256xi1>
    %65 = vector.broadcast %cst_30 : f32 to vector<16x256xf32>
    %66 = arith.select %64, %62, %65 : vector<16x256xi1>, vector<16x256xf32>
    %67 = arith.truncf %66 : vector<16x256xf32> to vector<16x256xbf16>
    %c96 = arith.constant 96 : index
    %c0_31 = arith.constant 0 : index
    %68 = vector.load %arg8[%c96, %c0_31] : memref<144x256xbf16, #tpu.memory_space<vmem>>, vector<16x256xbf16>
    tpu.vector_store %arg8[%c96, %c0_31], %67 {strides = array<i32>} : memref<144x256xbf16, #tpu.memory_space<vmem>>, vector<16x256xbf16>,
    %c0_32 = arith.constant 0 : index
    %c144 = arith.constant 144 : index
    %69 = vector.load %arg7[%c0_32, %c144] : memref<16x512xf32, #tpu.memory_space<vmem>>, vector<16x256xf32>
    %70 = arith.truncf %69 : vector<16x256xf32> to vector<16x256xbf16>
    %c112_33 = arith.constant 112 : index
    %c0_34 = arith.constant 0 : index
    %71 = vector.load %arg8[%c112_33, %c0_34] : memref<144x256xbf16, #tpu.memory_space<vmem>>, vector<16x256xbf16>
    tpu.vector_store %arg8[%c112_33, %c0_34], %70 {strides = array<i32>} : memref<144x256xbf16, #tpu.memory_space<vmem>>, vector<16x256xbf16>,
    %c0_35 = arith.constant 0 : index
    %c145 = arith.constant 145 : index
    %72 = vector.load %arg7[%c0_35, %c145] : memref<16x512xf32, #tpu.memory_space<vmem>>, vector<16x256xf32>
    %cst_36 = arith.constant 0.000000e+00 : f32
    %73 = vector.shape_cast %20 : vector<1x256xi1> to vector<1x256xi1>
    %74 = vector.broadcast %73 : vector<1x256xi1> to vector<16x256xi1>
    %75 = vector.broadcast %cst_36 : f32 to vector<16x256xf32>
    %76 = arith.select %74, %72, %75 : vector<16x256xi1>, vector<16x256xf32>
    %77 = arith.truncf %76 : vector<16x256xf32> to vector<16x256xbf16>
    %c128_37 = arith.constant 128 : index
    %c0_38 = arith.constant 0 : index
    %78 = vector.load %arg8[%c128_37, %c0_38] : memref<144x256xbf16, #tpu.memory_space<vmem>>, vector<16x256xbf16>
    tpu.vector_store %arg8[%c128_37, %c0_38], %77 {strides = array<i32>} : memref<144x256xbf16, #tpu.memory_space<vmem>>, vector<16x256xbf16>,
    %c0_39 = arith.constant 0 : index
    %c0_40 = arith.constant 0 : index
    %79 = vector.load %arg2[%c0_39, %c0_40] : memref<8x144xbf16, #tpu.memory_space<vmem>>, vector<8x144xbf16>
    %c0_41 = arith.constant 0 : index
    %c0_42 = arith.constant 0 : index
    %80 = vector.load %arg8[%c0_41, %c0_42] : memref<144x256xbf16, #tpu.memory_space<vmem>>, vector<144x256xbf16>
    %cst_43 = arith.constant dense<0.000000e+00> : vector<8x256xf32>
    %81 = tpu.matmul %79, %80, %cst_43 {dimension_numbers = #tpu.dot_dimension_numbers<[1], [0], [0], [1], [0, 0, 1, 1], [], []>} : vector<8x144xbf16>, vector<144x256xbf16>, vector<8x256xf32> -> vector<8x256xf32>
    %c0_44 = arith.constant 0 : index
    %c0_45 = arith.constant 0 : index
    %82 = vector.load %arg3[%c0_44, %c0_45] : memref<8x1xf32, #tpu.memory_space<vmem>>, vector<8x1xf32>
    %83 = vector.broadcast %82 : vector<8x1xf32> to vector<8x256xf32>
    %84 = arith.addf %81, %83 : vector<8x256xf32>
    %cst_46 = arith.constant 0.000000e+00 : f32
    %85 = vector.broadcast %cst_46 : f32 to vector<8x256xf32>
    %86 = arith.cmpf oge, %84, %85 : vector<8x256xf32>
    %cst_47 = arith.constant 1.000000e-01 : f32
    %87 = vector.broadcast %cst_47 : f32 to vector<8x256xf32>
    %88 = arith.mulf %87, %84 : vector<8x256xf32>
    %89 = arith.select %86, %84, %88 : vector<8x256xi1>, vector<8x256xf32>
    %c0_48 = arith.constant 0 : index
    %c128_49 = arith.constant 128 : index
    %90 = vector.load %arg7[%c0_48, %c128_49] : memref<16x512xf32, #tpu.memory_space<vmem>>, vector<8x256xf32>
    tpu.vector_store %arg7[%c0_48, %c128_49], %89 {strides = array<i32>} : memref<16x512xf32, #tpu.memory_space<vmem>>, vector<8x256xf32>,
    %cst_50 = arith.constant 0.000000e+00 : f32
    %91 = vector.broadcast %cst_50 : f32 to vector<8x256xf32>
    %c8 = arith.constant 8 : index
    %c128_51 = arith.constant 128 : index
    %92 = vector.load %arg7[%c8, %c128_51] : memref<16x512xf32, #tpu.memory_space<vmem>>, vector<8x256xf32>
    tpu.vector_store %arg7[%c8, %c128_51], %91 {strides = array<i32>} : memref<16x512xf32, #tpu.memory_space<vmem>>, vector<8x256xf32>,
    %c0_52 = arith.constant 0 : index
    %c111_53 = arith.constant 111 : index
    %93 = vector.load %arg7[%c0_52, %c111_53] : memref<16x512xf32, #tpu.memory_space<vmem>>, vector<16x256xf32>
    %cst_54 = arith.constant 0.000000e+00 : f32
    %94 = vector.shape_cast %18 : vector<1x256xi1> to vector<1x256xi1>
    %95 = vector.broadcast %94 : vector<1x256xi1> to vector<16x256xi1>
    %96 = vector.broadcast %cst_54 : f32 to vector<16x256xf32>
    %97 = arith.select %95, %93, %96 : vector<16x256xi1>, vector<16x256xf32>
    %98 = arith.truncf %97 : vector<16x256xf32> to vector<16x256xbf16>
    %c0_55 = arith.constant 0 : index
    %c0_56 = arith.constant 0 : index
    %99 = vector.load %arg8[%c0_55, %c0_56] : memref<144x256xbf16, #tpu.memory_space<vmem>>, vector<16x256xbf16>
    tpu.vector_store %arg8[%c0_55, %c0_56], %98 {strides = array<i32>} : memref<144x256xbf16, #tpu.memory_space<vmem>>, vector<16x256xbf16>,
    %c0_57 = arith.constant 0 : index
    %c112_58 = arith.constant 112 : index
    %100 = vector.load %arg7[%c0_57, %c112_58] : memref<16x512xf32, #tpu.memory_space<vmem>>, vector<16x256xf32>
    %101 = arith.truncf %100 : vector<16x256xf32> to vector<16x256xbf16>
    %c16_59 = arith.constant 16 : index
    %c0_60 = arith.constant 0 : index
    %102 = vector.load %arg8[%c16_59, %c0_60] : memref<144x256xbf16, #tpu.memory_space<vmem>>, vector<16x256xbf16>
    tpu.vector_store %arg8[%c16_59, %c0_60], %101 {strides = array<i32>} : memref<144x256xbf16, #tpu.memory_space<vmem>>, vector<16x256xbf16>,
    %c0_61 = arith.constant 0 : index
    %c113_62 = arith.constant 113 : index
    %103 = vector.load %arg7[%c0_61, %c113_62] : memref<16x512xf32, #tpu.memory_space<vmem>>, vector<16x256xf32>
    %cst_63 = arith.constant 0.000000e+00 : f32
    %104 = vector.shape_cast %20 : vector<1x256xi1> to vector<1x256xi1>
    %105 = vector.broadcast %104 : vector<1x256xi1> to vector<16x256xi1>
    %106 = vector.broadcast %cst_63 : f32 to vector<16x256xf32>
    %107 = arith.select %105, %103, %106 : vector<16x256xi1>, vector<16x256xf32>
    %108 = arith.truncf %107 : vector<16x256xf32> to vector<16x256xbf16>
    %c32_64 = arith.constant 32 : index
    %c0_65 = arith.constant 0 : index
    %109 = vector.load %arg8[%c32_64, %c0_65] : memref<144x256xbf16, #tpu.memory_space<vmem>>, vector<16x256xbf16>
    tpu.vector_store %arg8[%c32_64, %c0_65], %108 {strides = array<i32>} : memref<144x256xbf16, #tpu.memory_space<vmem>>, vector<16x256xbf16>,
    %c0_66 = arith.constant 0 : index
    %c127_67 = arith.constant 127 : index
    %110 = vector.load %arg7[%c0_66, %c127_67] : memref<16x512xf32, #tpu.memory_space<vmem>>, vector<16x256xf32>
    %cst_68 = arith.constant 0.000000e+00 : f32
    %111 = vector.shape_cast %18 : vector<1x256xi1> to vector<1x256xi1>
    %112 = vector.broadcast %111 : vector<1x256xi1> to vector<16x256xi1>
    %113 = vector.broadcast %cst_68 : f32 to vector<16x256xf32>
    %114 = arith.select %112, %110, %113 : vector<16x256xi1>, vector<16x256xf32>
    %115 = arith.truncf %114 : vector<16x256xf32> to vector<16x256xbf16>
    %c48_69 = arith.constant 48 : index
    %c0_70 = arith.constant 0 : index
    %116 = vector.load %arg8[%c48_69, %c0_70] : memref<144x256xbf16, #tpu.memory_space<vmem>>, vector<16x256xbf16>
    tpu.vector_store %arg8[%c48_69, %c0_70], %115 {strides = array<i32>} : memref<144x256xbf16, #tpu.memory_space<vmem>>, vector<16x256xbf16>,
    %c0_71 = arith.constant 0 : index
    %c128_72 = arith.constant 128 : index
    %117 = vector.load %arg7[%c0_71, %c128_72] : memref<16x512xf32, #tpu.memory_space<vmem>>, vector<16x256xf32>
    %118 = arith.truncf %117 : vector<16x256xf32> to vector<16x256xbf16>
    %c64_73 = arith.constant 64 : index
    %c0_74 = arith.constant 0 : index
    %119 = vector.load %arg8[%c64_73, %c0_74] : memref<144x256xbf16, #tpu.memory_space<vmem>>, vector<16x256xbf16>
    tpu.vector_store %arg8[%c64_73, %c0_74], %118 {strides = array<i32>} : memref<144x256xbf16, #tpu.memory_space<vmem>>, vector<16x256xbf16>,
    %c0_75 = arith.constant 0 : index
    %c129_76 = arith.constant 129 : index
    %120 = vector.load %arg7[%c0_75, %c129_76] : memref<16x512xf32, #tpu.memory_space<vmem>>, vector<16x256xf32>
    %cst_77 = arith.constant 0.000000e+00 : f32
    %121 = vector.shape_cast %20 : vector<1x256xi1> to vector<1x256xi1>
    %122 = vector.broadcast %121 : vector<1x256xi1> to vector<16x256xi1>
    %123 = vector.broadcast %cst_77 : f32 to vector<16x256xf32>
    %124 = arith.select %122, %120, %123 : vector<16x256xi1>, vector<16x256xf32>
    %125 = arith.truncf %124 : vector<16x256xf32> to vector<16x256xbf16>
    %c80_78 = arith.constant 80 : index
    %c0_79 = arith.constant 0 : index
    %126 = vector.load %arg8[%c80_78, %c0_79] : memref<144x256xbf16, #tpu.memory_space<vmem>>, vector<16x256xbf16>
    tpu.vector_store %arg8[%c80_78, %c0_79], %125 {strides = array<i32>} : memref<144x256xbf16, #tpu.memory_space<vmem>>, vector<16x256xbf16>,
    %c0_80 = arith.constant 0 : index
    %c143_81 = arith.constant 143 : index
    %127 = vector.load %arg7[%c0_80, %c143_81] : memref<16x512xf32, #tpu.memory_space<vmem>>, vector<16x256xf32>
    %cst_82 = arith.constant 0.000000e+00 : f32
    %128 = vector.shape_cast %18 : vector<1x256xi1> to vector<1x256xi1>
    %129 = vector.broadcast %128 : vector<1x256xi1> to vector<16x256xi1>
    %130 = vector.broadcast %cst_82 : f32 to vector<16x256xf32>
    %131 = arith.select %129, %127, %130 : vector<16x256xi1>, vector<16x256xf32>
    %132 = arith.truncf %131 : vector<16x256xf32> to vector<16x256xbf16>
    %c96_83 = arith.constant 96 : index
    %c0_84 = arith.constant 0 : index
    %133 = vector.load %arg8[%c96_83, %c0_84] : memref<144x256xbf16, #tpu.memory_space<vmem>>, vector<16x256xbf16>
    tpu.vector_store %arg8[%c96_83, %c0_84], %132 {strides = array<i32>} : memref<144x256xbf16, #tpu.memory_space<vmem>>, vector<16x256xbf16>,
    %c0_85 = arith.constant 0 : index
    %c144_86 = arith.constant 144 : index
    %134 = vector.load %arg7[%c0_85, %c144_86] : memref<16x512xf32, #tpu.memory_space<vmem>>, vector<16x256xf32>
    %135 = arith.truncf %134 : vector<16x256xf32> to vector<16x256xbf16>
    %c112_87 = arith.constant 112 : index
    %c0_88 = arith.constant 0 : index
    %136 = vector.load %arg8[%c112_87, %c0_88] : memref<144x256xbf16, #tpu.memory_space<vmem>>, vector<16x256xbf16>
    tpu.vector_store %arg8[%c112_87, %c0_88], %135 {strides = array<i32>} : memref<144x256xbf16, #tpu.memory_space<vmem>>, vector<16x256xbf16>,
    %c0_89 = arith.constant 0 : index
    %c145_90 = arith.constant 145 : index
    %137 = vector.load %arg7[%c0_89, %c145_90] : memref<16x512xf32, #tpu.memory_space<vmem>>, vector<16x256xf32>
    %cst_91 = arith.constant 0.000000e+00 : f32
    %138 = vector.shape_cast %20 : vector<1x256xi1> to vector<1x256xi1>
    %139 = vector.broadcast %138 : vector<1x256xi1> to vector<16x256xi1>
    %140 = vector.broadcast %cst_91 : f32 to vector<16x256xf32>
    %141 = arith.select %139, %137, %140 : vector<16x256xi1>, vector<16x256xf32>
    %142 = arith.truncf %141 : vector<16x256xf32> to vector<16x256xbf16>
    %c128_92 = arith.constant 128 : index
    %c0_93 = arith.constant 0 : index
    %143 = vector.load %arg8[%c128_92, %c0_93] : memref<144x256xbf16, #tpu.memory_space<vmem>>, vector<16x256xbf16>
    tpu.vector_store %arg8[%c128_92, %c0_93], %142 {strides = array<i32>} : memref<144x256xbf16, #tpu.memory_space<vmem>>, vector<16x256xbf16>,
    %c0_94 = arith.constant 0 : index
    %c0_95 = arith.constant 0 : index
    %144 = vector.load %arg4[%c0_94, %c0_95] : memref<8x144xbf16, #tpu.memory_space<vmem>>, vector<8x144xbf16>
    %c0_96 = arith.constant 0 : index
    %c0_97 = arith.constant 0 : index
    %145 = vector.load %arg8[%c0_96, %c0_97] : memref<144x256xbf16, #tpu.memory_space<vmem>>, vector<144x256xbf16>
    %cst_98 = arith.constant dense<0.000000e+00> : vector<8x256xf32>
    %146 = tpu.matmul %144, %145, %cst_98 {dimension_numbers = #tpu.dot_dimension_numbers<[1], [0], [0], [1], [0, 0, 1, 1], [], []>} : vector<8x144xbf16>, vector<144x256xbf16>, vector<8x256xf32> -> vector<8x256xf32>
    %c0_99 = arith.constant 0 : index
    %c0_100 = arith.constant 0 : index
    %147 = vector.load %arg5[%c0_99, %c0_100] : memref<8x1xf32, #tpu.memory_space<vmem>>, vector<8x1xf32>
    %148 = vector.broadcast %147 : vector<8x1xf32> to vector<8x256xf32>
    %149 = arith.addf %146, %148 : vector<8x256xf32>
    %c0_101 = arith.constant 0 : index
    %c0_102 = arith.constant 0 : index
    %c0_103 = arith.constant 0 : index
    %150 = vector.load %arg6[%c0_101, %c0_102, %c0_103] : memref<1x8x256xf32, #tpu.memory_space<vmem>>, vector<1x8x256xf32>
    %151 = vector.shape_cast %150 : vector<1x8x256xf32> to vector<8x256xf32>
    %152 = vector.shape_cast %149 : vector<8x256xf32> to vector<1x8x256xf32>
    tpu.vector_store %arg6[%c0_101, %c0_102, %c0_103], %152 {strides = array<i32>} : memref<1x8x256xf32, #tpu.memory_space<vmem>>, vector<1x8x256xf32>,
    return
  }
  func.func @transform_0(%arg0: i32) -> (i32, i32, i32) {
    %c0_i32 = arith.constant 0 : i32
    %c0_i32_0 = arith.constant 0 : i32
    %c0_i32_1 = arith.constant 0 : i32
    return %arg0, %c0_i32, %c0_i32_0 : i32, i32, i32
  }
  func.func @transform_1(%arg0: i32) -> (i32, i32) {
    %c0_i32 = arith.constant 0 : i32
    %c0_i32_0 = arith.constant 0 : i32
    %c0_i32_1 = arith.constant 0 : i32
    return %c0_i32, %c0_i32_0 : i32, i32
  }
  func.func @transform_2(%arg0: i32) -> (i32, i32) {
    %c0_i32 = arith.constant 0 : i32
    %c0_i32_0 = arith.constant 0 : i32
    %c0_i32_1 = arith.constant 0 : i32
    return %c0_i32, %c0_i32_0 : i32, i32
  }
  func.func @transform_3(%arg0: i32) -> (i32, i32) {
    %c0_i32 = arith.constant 0 : i32
    %c0_i32_0 = arith.constant 0 : i32
    %c0_i32_1 = arith.constant 0 : i32
    return %c0_i32, %c0_i32_0 : i32, i32
  }
  func.func @transform_4(%arg0: i32) -> (i32, i32) {
    %c0_i32 = arith.constant 0 : i32
    %c0_i32_0 = arith.constant 0 : i32
    %c0_i32_1 = arith.constant 0 : i32
    return %c0_i32, %c0_i32_0 : i32, i32
  }
  func.func @transform_5(%arg0: i32) -> (i32, i32, i32) {
    %c0_i32 = arith.constant 0 : i32
    %c0_i32_0 = arith.constant 0 : i32
    %c0_i32_1 = arith.constant 0 : i32
    return %arg0, %c0_i32, %c0_i32_0 : i32, i32, i32
  }
}

module attributes {stable_mosaic.version = 11 : i64} {
  func.func @kernel(%arg0: i32, %arg1: memref<1x32x256xf32, #tpu.memory_space<vmem>>, %arg2: memref<8x288xbf16, #tpu.memory_space<vmem>>, %arg3: memref<8x1xf32, #tpu.memory_space<vmem>>, %arg4: memref<8x144xbf16, #tpu.memory_space<vmem>>, %arg5: memref<8x1xf32, #tpu.memory_space<vmem>>, %arg6: memref<1x8x256xf32, #tpu.memory_space<vmem>>, %arg7: memref<32x512xf32, #tpu.memory_space<vmem>>, %arg8: memref<288x256xbf16, #tpu.memory_space<vmem>>) attributes {dimension_semantics = [#tpu.dimension_semantics<parallel>], iteration_bounds = array<i64: 2>, scalar_prefetch = 0 : i64, scratch_operands = 2 : i64, tpu.core_type = #tpu.core_type<tc>, window_params = [{transform_indices = @transform_0, window_bounds = array<i64: 1, 32, 256>}, {pipeline_mode = #tpu.pipeline_mode<synchronous>, transform_indices = @transform_1, window_bounds = array<i64: 8, 288>}, {pipeline_mode = #tpu.pipeline_mode<synchronous>, transform_indices = @transform_2, window_bounds = array<i64: 8, 1>}, {pipeline_mode = #tpu.pipeline_mode<synchronous>, transform_indices = @transform_3, window_bounds = array<i64: 8, 144>}, {pipeline_mode = #tpu.pipeline_mode<synchronous>, transform_indices = @transform_4, window_bounds = array<i64: 8, 1>}, {transform_indices = @transform_5, window_bounds = array<i64: 1, 8, 256>}]} {
    %0 = tpu.iota {dimensions = array<i32: 1>} : vector<1x256xi32>
    %c16_i32 = arith.constant 16 : i32
    %c0_i32 = arith.constant 0 : i32
    %1 = arith.cmpi eq, %c16_i32, %c0_i32 : i32
    %c1_i32 = arith.constant 1 : i32
    %2 = arith.select %1, %c1_i32, %c16_i32 : i32
    %3 = vector.broadcast %2 : i32 to vector<1x256xi32>
    %4 = arith.remsi %0, %3 : vector<1x256xi32>
    %c0_i32_0 = arith.constant 0 : i32
    %5 = vector.broadcast %c0_i32_0 : i32 to vector<1x256xi32>
    %6 = arith.cmpi ne, %4, %5 : vector<1x256xi32>
    %c0_i32_1 = arith.constant 0 : i32
    %7 = vector.broadcast %c0_i32_1 : i32 to vector<1x256xi32>
    %8 = arith.cmpi slt, %4, %7 : vector<1x256xi32>
    %c0_i32_2 = arith.constant 0 : i32
    %9 = arith.cmpi slt, %2, %c0_i32_2 : i32
    %10 = vector.broadcast %9 : i1 to vector<1x256xi1>
    %11 = vector.broadcast %10 : vector<1x256xi1> to vector<1x256xi1>
    %12 = arith.xori %8, %11 : vector<1x256xi1>
    %13 = arith.andi %12, %6 : vector<1x256xi1>
    %14 = vector.broadcast %2 : i32 to vector<1x256xi32>
    %15 = arith.addi %4, %14 : vector<1x256xi32>
    %16 = arith.select %13, %15, %4 : vector<1x256xi1>, vector<1x256xi32>
    %c1_i32_3 = arith.constant 1 : i32
    %17 = vector.broadcast %c1_i32_3 : i32 to vector<1x256xi32>
    %18 = arith.cmpi sge, %16, %17 : vector<1x256xi32>
    %c14_i32 = arith.constant 14 : i32
    %19 = vector.broadcast %c14_i32 : i32 to vector<1x256xi32>
    %20 = arith.cmpi sle, %16, %19 : vector<1x256xi32>
    %cst = arith.constant 0.000000e+00 : f32
    %21 = vector.broadcast %cst : f32 to vector<32x128xf32>
    %c0 = arith.constant 0 : index
    %c0_4 = arith.constant 0 : index
    %22 = vector.load %arg7[%c0, %c0_4] : memref<32x512xf32, #tpu.memory_space<vmem>>, vector<32x128xf32>
    tpu.vector_store %arg7[%c0, %c0_4], %21 {strides = array<i32>} : memref<32x512xf32, #tpu.memory_space<vmem>>, vector<32x128xf32>,
    %cst_5 = arith.constant 0.000000e+00 : f32
    %23 = vector.broadcast %cst_5 : f32 to vector<32x128xf32>
    %c0_6 = arith.constant 0 : index
    %c384 = arith.constant 384 : index
    %24 = vector.load %arg7[%c0_6, %c384] : memref<32x512xf32, #tpu.memory_space<vmem>>, vector<32x128xf32>
    tpu.vector_store %arg7[%c0_6, %c384], %23 {strides = array<i32>} : memref<32x512xf32, #tpu.memory_space<vmem>>, vector<32x128xf32>,
    %c0_7 = arith.constant 0 : index
    %c0_8 = arith.constant 0 : index
    %c0_9 = arith.constant 0 : index
    %25 = vector.load %arg1[%c0_7, %c0_8, %c0_9] : memref<1x32x256xf32, #tpu.memory_space<vmem>>, vector<1x32x256xf32>
    %26 = vector.shape_cast %25 : vector<1x32x256xf32> to vector<32x256xf32>
    %c0_10 = arith.constant 0 : index
    %c128 = arith.constant 128 : index
    %27 = vector.load %arg7[%c0_10, %c128] : memref<32x512xf32, #tpu.memory_space<vmem>>, vector<32x256xf32>
    tpu.vector_store %arg7[%c0_10, %c128], %26 {strides = array<i32>} : memref<32x512xf32, #tpu.memory_space<vmem>>, vector<32x256xf32>,
    %c0_11 = arith.constant 0 : index
    %c111 = arith.constant 111 : index
    %28 = vector.load %arg7[%c0_11, %c111] : memref<32x512xf32, #tpu.memory_space<vmem>>, vector<32x256xf32>
    %cst_12 = arith.constant 0.000000e+00 : f32
    %29 = vector.shape_cast %18 : vector<1x256xi1> to vector<1x256xi1>
    %30 = vector.broadcast %29 : vector<1x256xi1> to vector<32x256xi1>
    %31 = vector.broadcast %cst_12 : f32 to vector<32x256xf32>
    %32 = arith.select %30, %28, %31 : vector<32x256xi1>, vector<32x256xf32>
    %33 = arith.truncf %32 : vector<32x256xf32> to vector<32x256xbf16>
    %c0_13 = arith.constant 0 : index
    %c0_14 = arith.constant 0 : index
    %34 = vector.load %arg8[%c0_13, %c0_14] : memref<288x256xbf16, #tpu.memory_space<vmem>>, vector<32x256xbf16>
    tpu.vector_store %arg8[%c0_13, %c0_14], %33 {strides = array<i32>} : memref<288x256xbf16, #tpu.memory_space<vmem>>, vector<32x256xbf16>,
    %c0_15 = arith.constant 0 : index
    %c112 = arith.constant 112 : index
    %35 = vector.load %arg7[%c0_15, %c112] : memref<32x512xf32, #tpu.memory_space<vmem>>, vector<32x256xf32>
    %36 = arith.truncf %35 : vector<32x256xf32> to vector<32x256xbf16>
    %c32 = arith.constant 32 : index
    %c0_16 = arith.constant 0 : index
    %37 = vector.load %arg8[%c32, %c0_16] : memref<288x256xbf16, #tpu.memory_space<vmem>>, vector<32x256xbf16>
    tpu.vector_store %arg8[%c32, %c0_16], %36 {strides = array<i32>} : memref<288x256xbf16, #tpu.memory_space<vmem>>, vector<32x256xbf16>,
    %c0_17 = arith.constant 0 : index
    %c113 = arith.constant 113 : index
    %38 = vector.load %arg7[%c0_17, %c113] : memref<32x512xf32, #tpu.memory_space<vmem>>, vector<32x256xf32>
    %cst_18 = arith.constant 0.000000e+00 : f32
    %39 = vector.shape_cast %20 : vector<1x256xi1> to vector<1x256xi1>
    %40 = vector.broadcast %39 : vector<1x256xi1> to vector<32x256xi1>
    %41 = vector.broadcast %cst_18 : f32 to vector<32x256xf32>
    %42 = arith.select %40, %38, %41 : vector<32x256xi1>, vector<32x256xf32>
    %43 = arith.truncf %42 : vector<32x256xf32> to vector<32x256xbf16>
    %c64 = arith.constant 64 : index
    %c0_19 = arith.constant 0 : index
    %44 = vector.load %arg8[%c64, %c0_19] : memref<288x256xbf16, #tpu.memory_space<vmem>>, vector<32x256xbf16>
    tpu.vector_store %arg8[%c64, %c0_19], %43 {strides = array<i32>} : memref<288x256xbf16, #tpu.memory_space<vmem>>, vector<32x256xbf16>,
    %c0_20 = arith.constant 0 : index
    %c127 = arith.constant 127 : index
    %45 = vector.load %arg7[%c0_20, %c127] : memref<32x512xf32, #tpu.memory_space<vmem>>, vector<32x256xf32>
    %cst_21 = arith.constant 0.000000e+00 : f32
    %46 = vector.shape_cast %18 : vector<1x256xi1> to vector<1x256xi1>
    %47 = vector.broadcast %46 : vector<1x256xi1> to vector<32x256xi1>
    %48 = vector.broadcast %cst_21 : f32 to vector<32x256xf32>
    %49 = arith.select %47, %45, %48 : vector<32x256xi1>, vector<32x256xf32>
    %50 = arith.truncf %49 : vector<32x256xf32> to vector<32x256xbf16>
    %c96 = arith.constant 96 : index
    %c0_22 = arith.constant 0 : index
    %51 = vector.load %arg8[%c96, %c0_22] : memref<288x256xbf16, #tpu.memory_space<vmem>>, vector<32x256xbf16>
    tpu.vector_store %arg8[%c96, %c0_22], %50 {strides = array<i32>} : memref<288x256xbf16, #tpu.memory_space<vmem>>, vector<32x256xbf16>,
    %c0_23 = arith.constant 0 : index
    %c128_24 = arith.constant 128 : index
    %52 = vector.load %arg7[%c0_23, %c128_24] : memref<32x512xf32, #tpu.memory_space<vmem>>, vector<32x256xf32>
    %53 = arith.truncf %52 : vector<32x256xf32> to vector<32x256xbf16>
    %c128_25 = arith.constant 128 : index
    %c0_26 = arith.constant 0 : index
    %54 = vector.load %arg8[%c128_25, %c0_26] : memref<288x256xbf16, #tpu.memory_space<vmem>>, vector<32x256xbf16>
    tpu.vector_store %arg8[%c128_25, %c0_26], %53 {strides = array<i32>} : memref<288x256xbf16, #tpu.memory_space<vmem>>, vector<32x256xbf16>,
    %c0_27 = arith.constant 0 : index
    %c129 = arith.constant 129 : index
    %55 = vector.load %arg7[%c0_27, %c129] : memref<32x512xf32, #tpu.memory_space<vmem>>, vector<32x256xf32>
    %cst_28 = arith.constant 0.000000e+00 : f32
    %56 = vector.shape_cast %20 : vector<1x256xi1> to vector<1x256xi1>
    %57 = vector.broadcast %56 : vector<1x256xi1> to vector<32x256xi1>
    %58 = vector.broadcast %cst_28 : f32 to vector<32x256xf32>
    %59 = arith.select %57, %55, %58 : vector<32x256xi1>, vector<32x256xf32>
    %60 = arith.truncf %59 : vector<32x256xf32> to vector<32x256xbf16>
    %c160 = arith.constant 160 : index
    %c0_29 = arith.constant 0 : index
    %61 = vector.load %arg8[%c160, %c0_29] : memref<288x256xbf16, #tpu.memory_space<vmem>>, vector<32x256xbf16>
    tpu.vector_store %arg8[%c160, %c0_29], %60 {strides = array<i32>} : memref<288x256xbf16, #tpu.memory_space<vmem>>, vector<32x256xbf16>,
    %c0_30 = arith.constant 0 : index
    %c143 = arith.constant 143 : index
    %62 = vector.load %arg7[%c0_30, %c143] : memref<32x512xf32, #tpu.memory_space<vmem>>, vector<32x256xf32>
    %cst_31 = arith.constant 0.000000e+00 : f32
    %63 = vector.shape_cast %18 : vector<1x256xi1> to vector<1x256xi1>
    %64 = vector.broadcast %63 : vector<1x256xi1> to vector<32x256xi1>
    %65 = vector.broadcast %cst_31 : f32 to vector<32x256xf32>
    %66 = arith.select %64, %62, %65 : vector<32x256xi1>, vector<32x256xf32>
    %67 = arith.truncf %66 : vector<32x256xf32> to vector<32x256xbf16>
    %c192 = arith.constant 192 : index
    %c0_32 = arith.constant 0 : index
    %68 = vector.load %arg8[%c192, %c0_32] : memref<288x256xbf16, #tpu.memory_space<vmem>>, vector<32x256xbf16>
    tpu.vector_store %arg8[%c192, %c0_32], %67 {strides = array<i32>} : memref<288x256xbf16, #tpu.memory_space<vmem>>, vector<32x256xbf16>,
    %c0_33 = arith.constant 0 : index
    %c144 = arith.constant 144 : index
    %69 = vector.load %arg7[%c0_33, %c144] : memref<32x512xf32, #tpu.memory_space<vmem>>, vector<32x256xf32>
    %70 = arith.truncf %69 : vector<32x256xf32> to vector<32x256xbf16>
    %c224 = arith.constant 224 : index
    %c0_34 = arith.constant 0 : index
    %71 = vector.load %arg8[%c224, %c0_34] : memref<288x256xbf16, #tpu.memory_space<vmem>>, vector<32x256xbf16>
    tpu.vector_store %arg8[%c224, %c0_34], %70 {strides = array<i32>} : memref<288x256xbf16, #tpu.memory_space<vmem>>, vector<32x256xbf16>,
    %c0_35 = arith.constant 0 : index
    %c145 = arith.constant 145 : index
    %72 = vector.load %arg7[%c0_35, %c145] : memref<32x512xf32, #tpu.memory_space<vmem>>, vector<32x256xf32>
    %cst_36 = arith.constant 0.000000e+00 : f32
    %73 = vector.shape_cast %20 : vector<1x256xi1> to vector<1x256xi1>
    %74 = vector.broadcast %73 : vector<1x256xi1> to vector<32x256xi1>
    %75 = vector.broadcast %cst_36 : f32 to vector<32x256xf32>
    %76 = arith.select %74, %72, %75 : vector<32x256xi1>, vector<32x256xf32>
    %77 = arith.truncf %76 : vector<32x256xf32> to vector<32x256xbf16>
    %c256 = arith.constant 256 : index
    %c0_37 = arith.constant 0 : index
    %78 = vector.load %arg8[%c256, %c0_37] : memref<288x256xbf16, #tpu.memory_space<vmem>>, vector<32x256xbf16>
    tpu.vector_store %arg8[%c256, %c0_37], %77 {strides = array<i32>} : memref<288x256xbf16, #tpu.memory_space<vmem>>, vector<32x256xbf16>,
    %c0_38 = arith.constant 0 : index
    %c0_39 = arith.constant 0 : index
    %79 = vector.load %arg2[%c0_38, %c0_39] : memref<8x288xbf16, #tpu.memory_space<vmem>>, vector<8x288xbf16>
    %c0_40 = arith.constant 0 : index
    %c0_41 = arith.constant 0 : index
    %80 = vector.load %arg8[%c0_40, %c0_41] : memref<288x256xbf16, #tpu.memory_space<vmem>>, vector<288x256xbf16>
    %cst_42 = arith.constant dense<0.000000e+00> : vector<8x256xf32>
    %81 = tpu.matmul %79, %80, %cst_42 {dimension_numbers = #tpu.dot_dimension_numbers<[1], [0], [0], [1], [0, 0, 1, 1], [], []>} : vector<8x288xbf16>, vector<288x256xbf16>, vector<8x256xf32> -> vector<8x256xf32>
    %c0_43 = arith.constant 0 : index
    %c0_44 = arith.constant 0 : index
    %82 = vector.load %arg3[%c0_43, %c0_44] : memref<8x1xf32, #tpu.memory_space<vmem>>, vector<8x1xf32>
    %83 = vector.broadcast %82 : vector<8x1xf32> to vector<8x256xf32>
    %84 = arith.addf %81, %83 : vector<8x256xf32>
    %cst_45 = arith.constant 0.000000e+00 : f32
    %85 = vector.broadcast %cst_45 : f32 to vector<8x256xf32>
    %86 = arith.cmpf oge, %84, %85 : vector<8x256xf32>
    %cst_46 = arith.constant 1.000000e-01 : f32
    %87 = vector.broadcast %cst_46 : f32 to vector<8x256xf32>
    %88 = arith.mulf %87, %84 : vector<8x256xf32>
    %89 = arith.select %86, %84, %88 : vector<8x256xi1>, vector<8x256xf32>
    %c0_47 = arith.constant 0 : index
    %c128_48 = arith.constant 128 : index
    %90 = vector.load %arg7[%c0_47, %c128_48] : memref<32x512xf32, #tpu.memory_space<vmem>>, vector<8x256xf32>
    tpu.vector_store %arg7[%c0_47, %c128_48], %89 {strides = array<i32>} : memref<32x512xf32, #tpu.memory_space<vmem>>, vector<8x256xf32>,
    %cst_49 = arith.constant 0.000000e+00 : f32
    %91 = vector.broadcast %cst_49 : f32 to vector<8x256xf32>
    %c8 = arith.constant 8 : index
    %c128_50 = arith.constant 128 : index
    %92 = vector.load %arg7[%c8, %c128_50] : memref<32x512xf32, #tpu.memory_space<vmem>>, vector<8x256xf32>
    tpu.vector_store %arg7[%c8, %c128_50], %91 {strides = array<i32>} : memref<32x512xf32, #tpu.memory_space<vmem>>, vector<8x256xf32>,
    %c0_51 = arith.constant 0 : index
    %c111_52 = arith.constant 111 : index
    %93 = vector.load %arg7[%c0_51, %c111_52] : memref<32x512xf32, #tpu.memory_space<vmem>>, vector<16x256xf32>
    %cst_53 = arith.constant 0.000000e+00 : f32
    %94 = vector.shape_cast %18 : vector<1x256xi1> to vector<1x256xi1>
    %95 = vector.broadcast %94 : vector<1x256xi1> to vector<16x256xi1>
    %96 = vector.broadcast %cst_53 : f32 to vector<16x256xf32>
    %97 = arith.select %95, %93, %96 : vector<16x256xi1>, vector<16x256xf32>
    %98 = arith.truncf %97 : vector<16x256xf32> to vector<16x256xbf16>
    %c0_54 = arith.constant 0 : index
    %c0_55 = arith.constant 0 : index
    %99 = vector.load %arg8[%c0_54, %c0_55] : memref<288x256xbf16, #tpu.memory_space<vmem>>, vector<16x256xbf16>
    tpu.vector_store %arg8[%c0_54, %c0_55], %98 {strides = array<i32>} : memref<288x256xbf16, #tpu.memory_space<vmem>>, vector<16x256xbf16>,
    %c0_56 = arith.constant 0 : index
    %c112_57 = arith.constant 112 : index
    %100 = vector.load %arg7[%c0_56, %c112_57] : memref<32x512xf32, #tpu.memory_space<vmem>>, vector<16x256xf32>
    %101 = arith.truncf %100 : vector<16x256xf32> to vector<16x256xbf16>
    %c16 = arith.constant 16 : index
    %c0_58 = arith.constant 0 : index
    %102 = vector.load %arg8[%c16, %c0_58] : memref<288x256xbf16, #tpu.memory_space<vmem>>, vector<16x256xbf16>
    tpu.vector_store %arg8[%c16, %c0_58], %101 {strides = array<i32>} : memref<288x256xbf16, #tpu.memory_space<vmem>>, vector<16x256xbf16>,
    %c0_59 = arith.constant 0 : index
    %c113_60 = arith.constant 113 : index
    %103 = vector.load %arg7[%c0_59, %c113_60] : memref<32x512xf32, #tpu.memory_space<vmem>>, vector<16x256xf32>
    %cst_61 = arith.constant 0.000000e+00 : f32
    %104 = vector.shape_cast %20 : vector<1x256xi1> to vector<1x256xi1>
    %105 = vector.broadcast %104 : vector<1x256xi1> to vector<16x256xi1>
    %106 = vector.broadcast %cst_61 : f32 to vector<16x256xf32>
    %107 = arith.select %105, %103, %106 : vector<16x256xi1>, vector<16x256xf32>
    %108 = arith.truncf %107 : vector<16x256xf32> to vector<16x256xbf16>
    %c32_62 = arith.constant 32 : index
    %c0_63 = arith.constant 0 : index
    %109 = vector.load %arg8[%c32_62, %c0_63] : memref<288x256xbf16, #tpu.memory_space<vmem>>, vector<16x256xbf16>
    tpu.vector_store %arg8[%c32_62, %c0_63], %108 {strides = array<i32>} : memref<288x256xbf16, #tpu.memory_space<vmem>>, vector<16x256xbf16>,
    %c0_64 = arith.constant 0 : index
    %c127_65 = arith.constant 127 : index
    %110 = vector.load %arg7[%c0_64, %c127_65] : memref<32x512xf32, #tpu.memory_space<vmem>>, vector<16x256xf32>
    %cst_66 = arith.constant 0.000000e+00 : f32
    %111 = vector.shape_cast %18 : vector<1x256xi1> to vector<1x256xi1>
    %112 = vector.broadcast %111 : vector<1x256xi1> to vector<16x256xi1>
    %113 = vector.broadcast %cst_66 : f32 to vector<16x256xf32>
    %114 = arith.select %112, %110, %113 : vector<16x256xi1>, vector<16x256xf32>
    %115 = arith.truncf %114 : vector<16x256xf32> to vector<16x256xbf16>
    %c48 = arith.constant 48 : index
    %c0_67 = arith.constant 0 : index
    %116 = vector.load %arg8[%c48, %c0_67] : memref<288x256xbf16, #tpu.memory_space<vmem>>, vector<16x256xbf16>
    tpu.vector_store %arg8[%c48, %c0_67], %115 {strides = array<i32>} : memref<288x256xbf16, #tpu.memory_space<vmem>>, vector<16x256xbf16>,
    %c0_68 = arith.constant 0 : index
    %c128_69 = arith.constant 128 : index
    %117 = vector.load %arg7[%c0_68, %c128_69] : memref<32x512xf32, #tpu.memory_space<vmem>>, vector<16x256xf32>
    %118 = arith.truncf %117 : vector<16x256xf32> to vector<16x256xbf16>
    %c64_70 = arith.constant 64 : index
    %c0_71 = arith.constant 0 : index
    %119 = vector.load %arg8[%c64_70, %c0_71] : memref<288x256xbf16, #tpu.memory_space<vmem>>, vector<16x256xbf16>
    tpu.vector_store %arg8[%c64_70, %c0_71], %118 {strides = array<i32>} : memref<288x256xbf16, #tpu.memory_space<vmem>>, vector<16x256xbf16>,
    %c0_72 = arith.constant 0 : index
    %c129_73 = arith.constant 129 : index
    %120 = vector.load %arg7[%c0_72, %c129_73] : memref<32x512xf32, #tpu.memory_space<vmem>>, vector<16x256xf32>
    %cst_74 = arith.constant 0.000000e+00 : f32
    %121 = vector.shape_cast %20 : vector<1x256xi1> to vector<1x256xi1>
    %122 = vector.broadcast %121 : vector<1x256xi1> to vector<16x256xi1>
    %123 = vector.broadcast %cst_74 : f32 to vector<16x256xf32>
    %124 = arith.select %122, %120, %123 : vector<16x256xi1>, vector<16x256xf32>
    %125 = arith.truncf %124 : vector<16x256xf32> to vector<16x256xbf16>
    %c80 = arith.constant 80 : index
    %c0_75 = arith.constant 0 : index
    %126 = vector.load %arg8[%c80, %c0_75] : memref<288x256xbf16, #tpu.memory_space<vmem>>, vector<16x256xbf16>
    tpu.vector_store %arg8[%c80, %c0_75], %125 {strides = array<i32>} : memref<288x256xbf16, #tpu.memory_space<vmem>>, vector<16x256xbf16>,
    %c0_76 = arith.constant 0 : index
    %c143_77 = arith.constant 143 : index
    %127 = vector.load %arg7[%c0_76, %c143_77] : memref<32x512xf32, #tpu.memory_space<vmem>>, vector<16x256xf32>
    %cst_78 = arith.constant 0.000000e+00 : f32
    %128 = vector.shape_cast %18 : vector<1x256xi1> to vector<1x256xi1>
    %129 = vector.broadcast %128 : vector<1x256xi1> to vector<16x256xi1>
    %130 = vector.broadcast %cst_78 : f32 to vector<16x256xf32>
    %131 = arith.select %129, %127, %130 : vector<16x256xi1>, vector<16x256xf32>
    %132 = arith.truncf %131 : vector<16x256xf32> to vector<16x256xbf16>
    %c96_79 = arith.constant 96 : index
    %c0_80 = arith.constant 0 : index
    %133 = vector.load %arg8[%c96_79, %c0_80] : memref<288x256xbf16, #tpu.memory_space<vmem>>, vector<16x256xbf16>
    tpu.vector_store %arg8[%c96_79, %c0_80], %132 {strides = array<i32>} : memref<288x256xbf16, #tpu.memory_space<vmem>>, vector<16x256xbf16>,
    %c0_81 = arith.constant 0 : index
    %c144_82 = arith.constant 144 : index
    %134 = vector.load %arg7[%c0_81, %c144_82] : memref<32x512xf32, #tpu.memory_space<vmem>>, vector<16x256xf32>
    %135 = arith.truncf %134 : vector<16x256xf32> to vector<16x256xbf16>
    %c112_83 = arith.constant 112 : index
    %c0_84 = arith.constant 0 : index
    %136 = vector.load %arg8[%c112_83, %c0_84] : memref<288x256xbf16, #tpu.memory_space<vmem>>, vector<16x256xbf16>
    tpu.vector_store %arg8[%c112_83, %c0_84], %135 {strides = array<i32>} : memref<288x256xbf16, #tpu.memory_space<vmem>>, vector<16x256xbf16>,
    %c0_85 = arith.constant 0 : index
    %c145_86 = arith.constant 145 : index
    %137 = vector.load %arg7[%c0_85, %c145_86] : memref<32x512xf32, #tpu.memory_space<vmem>>, vector<16x256xf32>
    %cst_87 = arith.constant 0.000000e+00 : f32
    %138 = vector.shape_cast %20 : vector<1x256xi1> to vector<1x256xi1>
    %139 = vector.broadcast %138 : vector<1x256xi1> to vector<16x256xi1>
    %140 = vector.broadcast %cst_87 : f32 to vector<16x256xf32>
    %141 = arith.select %139, %137, %140 : vector<16x256xi1>, vector<16x256xf32>
    %142 = arith.truncf %141 : vector<16x256xf32> to vector<16x256xbf16>
    %c128_88 = arith.constant 128 : index
    %c0_89 = arith.constant 0 : index
    %143 = vector.load %arg8[%c128_88, %c0_89] : memref<288x256xbf16, #tpu.memory_space<vmem>>, vector<16x256xbf16>
    tpu.vector_store %arg8[%c128_88, %c0_89], %142 {strides = array<i32>} : memref<288x256xbf16, #tpu.memory_space<vmem>>, vector<16x256xbf16>,
    %c0_90 = arith.constant 0 : index
    %c0_91 = arith.constant 0 : index
    %144 = vector.load %arg4[%c0_90, %c0_91] : memref<8x144xbf16, #tpu.memory_space<vmem>>, vector<8x144xbf16>
    %c0_92 = arith.constant 0 : index
    %c0_93 = arith.constant 0 : index
    %145 = vector.load %arg8[%c0_92, %c0_93] : memref<288x256xbf16, #tpu.memory_space<vmem>>, vector<144x256xbf16>
    %cst_94 = arith.constant dense<0.000000e+00> : vector<8x256xf32>
    %146 = tpu.matmul %144, %145, %cst_94 {dimension_numbers = #tpu.dot_dimension_numbers<[1], [0], [0], [1], [0, 0, 1, 1], [], []>} : vector<8x144xbf16>, vector<144x256xbf16>, vector<8x256xf32> -> vector<8x256xf32>
    %c0_95 = arith.constant 0 : index
    %c0_96 = arith.constant 0 : index
    %147 = vector.load %arg5[%c0_95, %c0_96] : memref<8x1xf32, #tpu.memory_space<vmem>>, vector<8x1xf32>
    %148 = vector.broadcast %147 : vector<8x1xf32> to vector<8x256xf32>
    %149 = arith.addf %146, %148 : vector<8x256xf32>
    %c0_97 = arith.constant 0 : index
    %c0_98 = arith.constant 0 : index
    %c0_99 = arith.constant 0 : index
    %150 = vector.load %arg6[%c0_97, %c0_98, %c0_99] : memref<1x8x256xf32, #tpu.memory_space<vmem>>, vector<1x8x256xf32>
    %151 = vector.shape_cast %150 : vector<1x8x256xf32> to vector<8x256xf32>
    %152 = vector.shape_cast %149 : vector<8x256xf32> to vector<1x8x256xf32>
    tpu.vector_store %arg6[%c0_97, %c0_98, %c0_99], %152 {strides = array<i32>} : memref<1x8x256xf32, #tpu.memory_space<vmem>>, vector<1x8x256xf32>,
    return
  }
  func.func @transform_0(%arg0: i32) -> (i32, i32, i32) {
    %c0_i32 = arith.constant 0 : i32
    %c0_i32_0 = arith.constant 0 : i32
    %c0_i32_1 = arith.constant 0 : i32
    return %arg0, %c0_i32, %c0_i32_0 : i32, i32, i32
  }
  func.func @transform_1(%arg0: i32) -> (i32, i32) {
    %c0_i32 = arith.constant 0 : i32
    %c0_i32_0 = arith.constant 0 : i32
    %c0_i32_1 = arith.constant 0 : i32
    return %c0_i32, %c0_i32_0 : i32, i32
  }
  func.func @transform_2(%arg0: i32) -> (i32, i32) {
    %c0_i32 = arith.constant 0 : i32
    %c0_i32_0 = arith.constant 0 : i32
    %c0_i32_1 = arith.constant 0 : i32
    return %c0_i32, %c0_i32_0 : i32, i32
  }
  func.func @transform_3(%arg0: i32) -> (i32, i32) {
    %c0_i32 = arith.constant 0 : i32
    %c0_i32_0 = arith.constant 0 : i32
    %c0_i32_1 = arith.constant 0 : i32
    return %c0_i32, %c0_i32_0 : i32, i32
  }
  func.func @transform_4(%arg0: i32) -> (i32, i32) {
    %c0_i32 = arith.constant 0 : i32
    %c0_i32_0 = arith.constant 0 : i32
    %c0_i32_1 = arith.constant 0 : i32
    return %c0_i32, %c0_i32_0 : i32, i32
  }
  func.func @transform_5(%arg0: i32) -> (i32, i32, i32) {
    %c0_i32 = arith.constant 0 : i32
    %c0_i32_0 = arith.constant 0 : i32
    %c0_i32_1 = arith.constant 0 : i32
    return %arg0, %c0_i32, %c0_i32_0 : i32, i32, i32
  }
}

module attributes {stable_mosaic.version = 11 : i64} {
  func.func @kernel(%arg0: i32, %arg1: i32, %arg2: memref<1x16x256xbf16, #tpu.memory_space<vmem>>, %arg3: memref<8x16xbf16, #tpu.memory_space<vmem>>, %arg4: memref<8x1xf32, #tpu.memory_space<vmem>>, %arg5: memref<1x8x256xf32, #tpu.memory_space<vmem>>) attributes {dimension_semantics = [#tpu.dimension_semantics<parallel>, #tpu.dimension_semantics<parallel>], iteration_bounds = array<i64: 8, 1>, scalar_prefetch = 0 : i64, scratch_operands = 0 : i64, tpu.core_type = #tpu.core_type<tc>, window_params = [{transform_indices = @transform_0, window_bounds = array<i64: 1, 16, 256>}, {pipeline_mode = #tpu.pipeline_mode<synchronous>, transform_indices = @transform_1, window_bounds = array<i64: 8, 16>}, {pipeline_mode = #tpu.pipeline_mode<synchronous>, transform_indices = @transform_2, window_bounds = array<i64: 8, 1>}, {transform_indices = @transform_3, window_bounds = array<i64: 1, 8, 256>}]} {
    %c0 = arith.constant 0 : index
    %c0_0 = arith.constant 0 : index
    %0 = vector.load %arg3[%c0, %c0_0] : memref<8x16xbf16, #tpu.memory_space<vmem>>, vector<8x16xbf16>
    %c0_1 = arith.constant 0 : index
    %c0_2 = arith.constant 0 : index
    %c0_3 = arith.constant 0 : index
    %1 = vector.load %arg2[%c0_1, %c0_2, %c0_3] : memref<1x16x256xbf16, #tpu.memory_space<vmem>>, vector<1x16x256xbf16>
    %2 = vector.shape_cast %1 : vector<1x16x256xbf16> to vector<16x256xbf16>
    %cst = arith.constant dense<0.000000e+00> : vector<8x256xf32>
    %3 = tpu.matmul %0, %2, %cst {dimension_numbers = #tpu.dot_dimension_numbers<[1], [0], [0], [1], [0, 0, 1, 1], [], []>} : vector<8x16xbf16>, vector<16x256xbf16>, vector<8x256xf32> -> vector<8x256xf32>
    %c0_4 = arith.constant 0 : index
    %c0_5 = arith.constant 0 : index
    %4 = vector.load %arg4[%c0_4, %c0_5] : memref<8x1xf32, #tpu.memory_space<vmem>>, vector<8x1xf32>
    %5 = vector.broadcast %4 : vector<8x1xf32> to vector<8x256xf32>
    %6 = arith.addf %3, %5 : vector<8x256xf32>
    %c0_6 = arith.constant 0 : index
    %c0_7 = arith.constant 0 : index
    %c0_8 = arith.constant 0 : index
    %7 = vector.load %arg5[%c0_6, %c0_7, %c0_8] : memref<1x8x256xf32, #tpu.memory_space<vmem>>, vector<1x8x256xf32>
    %8 = vector.shape_cast %7 : vector<1x8x256xf32> to vector<8x256xf32>
    %9 = vector.shape_cast %6 : vector<8x256xf32> to vector<1x8x256xf32>
    tpu.vector_store %arg5[%c0_6, %c0_7, %c0_8], %9 {strides = array<i32>} : memref<1x8x256xf32, #tpu.memory_space<vmem>>, vector<1x8x256xf32>,
    return
  }
  func.func @transform_0(%arg0: i32, %arg1: i32) -> (i32, i32, i32) {
    %c0_i32 = arith.constant 0 : i32
    %c0_i32_0 = arith.constant 0 : i32
    return %arg0, %c0_i32, %arg1 : i32, i32, i32
  }
  func.func @transform_1(%arg0: i32, %arg1: i32) -> (i32, i32) {
    %c0_i32 = arith.constant 0 : i32
    %c0_i32_0 = arith.constant 0 : i32
    %c0_i32_1 = arith.constant 0 : i32
    return %c0_i32, %c0_i32_0 : i32, i32
  }
  func.func @transform_2(%arg0: i32, %arg1: i32) -> (i32, i32) {
    %c0_i32 = arith.constant 0 : i32
    %c0_i32_0 = arith.constant 0 : i32
    %c0_i32_1 = arith.constant 0 : i32
    return %c0_i32, %c0_i32_0 : i32, i32
  }
  func.func @transform_3(%arg0: i32, %arg1: i32) -> (i32, i32, i32) {
    %c0_i32 = arith.constant 0 : i32
    %c0_i32_0 = arith.constant 0 : i32
    return %arg0, %c0_i32, %arg1 : i32, i32, i32
  }
}

</mosaic_0001>

<bundles_post_ra>
// kernel: bidirectional_propagation.21
= control target key start
LH: loop header
LB: loop body
LE: loop exit
PB: predicated region body
PF: predicated region fallthrough
CT: control target
= control target key end

     0   :  { %10 = vsyncpa [#allocation5], 0  ;;  %s1881_s0 = inlined_call_operand.vmem [shape: f32[2,16,256], index: 0, kind: input, shape index: {}]   ;;  %s1882_s1 = inlined_call_operand.vmem [shape: bf16[8,144], index: 1, kind: input, shape index: {}]   ;;  %s1883_s2 = inlined_call_operand.vmem [shape: f32[8,1], index: 2, kind: input, shape index: {}]   ;;  %s1884_s3 = inlined_call_operand.vmem [shape: bf16[8,144], index: 3, kind: input, shape index: {}]   ;;  %s1885_s4 = inlined_call_operand.vmem [shape: f32[8,1], index: 4, kind: input, shape index: {}]   ;;  %s1886_s5 = inlined_call_operand.hbm [shape: f32[2,8,256], index: 5, kind: output, shape index: {}]  }
   0x1   :  { %12 = vsyncpa [#allocation5 + $0x1], 0  ;;  %s1545_s18 = smov 0   ;;  %s1547_s19 = smov 0  }
   0x2   :  { %s1549_s20 = smov 0   ;;  %s1551_s21 = smov 0  }
   0x3 LB: > { %s1566_s22 = sadd.s32 4294967295, %s1501_s21   ;;  %s1112_s23 = sadd.s32 4294967294, %s1501_s21   ;;  %s1501_s21 = sphi %s1551_s21, %s1900_s21   ;;  %s1497_s20 = sphi %s1549_s20, %s1899_s20   ;;  %s1493_s19 = sphi %s1547_s19, %s1898_s19   ;;  %s1489_s18 = sphi %s1545_s18, %s1897_s18  }
   0x4   : > { %s1570_s24 = sadd.s32 1, %s1501_s21   ;;  %s135_s25 = sadd.s32 1, %s1497_s20 }
   0x5   : > { %s132_s26 = ssub.s32 %s1501_s21, %s1570_s24  ;;  %p145_p0 = scmp.ne.s32.totalorder %s1497_s20, %s1493_s19 }
   0x6   : > { %p133_p1 = scmp.eq.s32.totalorder %s132_s26, 0  ;;  %p146_p2 = scmp.eq.s32.totalorder %s1566_s22, 1 }
   0x7   : > { %p151_p3 = scmp.ne.s32.totalorder %s1493_s19, %s1489_s18  ;;  %p152_p4 = scmp.eq.s32.totalorder %s1112_s23, 1 }
   0x8   : > { %s1581_s27 = scalar_select %p133_p1, %s1497_s20, %s135_s25  }
   0x9   : > { %p1583_p5 = por %p146_p2, %p145_p0  ;;  %p1587_p6 = por %p152_p4, %p151_p3 }
   0xa   : > { %p1115_p7 = scmp.ge.s32.totalorder %s1501_s21, 1  ;;  %p190_p8 = scmp.lt.s32.totalorder %s1501_s21, 3 }
   0xc   : > { %p191_p9 = pnand %p1115_p7, %p190_p8 }
   0xd   : > { %p218_p10 = scmp.lt.s32.totalorder (!%p191_p9), %s1566_s22, 1  ;;  %v1503_v0 = vmov (!%p191_p9), 0.0   ;;  %s1504_s6 = smov (!%p191_p9), 17   ;;  %v1505_v5 = vmov (!%p191_p9), 0.0|0.0   ;;  %v1636_v13 = vld [vmem:[%s1882_s1] sm:$0xff] (!%p191_p9)  ;;  %vm330_vm0 = vcmask (!%p191_p9), 130048   ;;  %v224_v17 = vlaneseq (!%p191_p9) }
   0xe   : > { %194 = sbr.rel (%p191_p9) target bundleno = 804 (0x324), region = 40  ;;  %1255 = vrot.lane.b32.xlu1 (!%p191_p9), %v1503_v0, %s1504_s6  ;;  %s1506_s11 = smov (!%p191_p9), 16   ;;  %v1120_v14 = vcombine.high (!%p191_p9), %v1636_v13, %v1636_v13  ;;  %v1513_v15 = vmov (!%p191_p9), 0   ;;  %v598_v16 = vld [vmem:[%s1883_s2] sm:$0xff] (!%p191_p9)  ;;  %vm295_vm2 = vcmask (!%p191_p9), 138240   ;;  %vm365_vm6 = vcmask (!%p191_p9), 121856  }
   0xf   : > { %s1507_s12 = smov (!%p191_p9), 15   ;;  %s1508_s13 = smov (!%p191_p9), 1   ;;  %1344 = vset.pattern.permute.xlu0 (!%p191_p9), %v1513_v15  ;;  %v225_v18 = vand.u32 (!%p191_p9), 127, %v224_v17  ;;  %vm406_vm10 = vcmask (!%p191_p9), 7168   ;;  %vm455_vm12 = vcmask (!%p191_p9), 1039360   ;;  %vm496_vm13 = vcmask (!%p191_p9), 924672  }
  0x10   : > { %s1509_s14 = smov (!%p191_p9), 127   ;;  %s1510_s15 = smov (!%p191_p9), 113   ;;  %1121 = vmatprep.mubr.msk.bf16.mxu0 (!%p191_p9), %vm330_vm0, %v1120_v14  ;;  %vm531_vm14 = vcmask (!%p191_p9), 916480   ;;  %vm562_vm15 = vcmask (!%p191_p9), 908288  }
  0x11   : > { %s1511_s16 = smov (!%p191_p9), 112   ;;  %s1512_s17 = smov (!%p191_p9), 111   ;;  %v226_v20 = vadd.s32 (!%p191_p9), 128, %v225_v18  ;;  %v231_v24 = vand.u32 (!%p191_p9), 15, %v225_v18 }
  0x12   : > { %324 = vrot.lane.b32.xlu1 (!%p191_p9), %v1505_v5, %s1506_s11  ;;  %s1514_s25 = smov (!%p191_p9), [#allocation4]  }
  0x13   : > { %v238_v23 = vand.u32 (!%p191_p9), 15, %v226_v20  ;;  %vm251_vm3 = vcmp.ge.s32.totalorder (!%p191_p9), %v231_v24, 1  ;;  %vm253_vm9 = vcmp.le.s32.totalorder (!%p191_p9), %v231_v24, 14  ;;  %s1443_s26 = sshll.u32 (!%p191_p9), %s1514_s25, 4  ;;  %s1444_s26 = int_to_ptr.vmem [resolvable:$false] %s1443_s26 }
  0x14   : > { %vm1662_vm5 = vmpackc.low (!%p191_p9), %vm251_vm3, %vm251_vm3 }
  0x15   : > { %s219_s30 = scalar_select %p218_p10, %s1566_s22, 1  ;;  %vm252_vm1 = vcmp.ge.s32.totalorder %v238_v23, 1  ;;  %vm254_vm7 = vcmp.le.s32.totalorder %v238_v23, 14  ;;  %vm1682_vm11 = vmpackc.low %vm253_vm9, %vm253_vm9 }
  0x16   : > { %vm1656_vm4 = vmpackc.low %vm252_vm1, %vm252_vm1 }
  0x17   : > { %s1130_s7 = sshll.u32 %s219_s30, 5  ;;  %vm1674_vm8 = vmpackc.low %vm254_vm7, %vm254_vm7  ;;  %s1445_s30 = scalar_lea.vmem %s1444_s26, 512 }
  0x18   : > { %s222_s10 = scalar_lea.vmem %s1881_s0, %s1130_s7 }
  0x19   : > { %v259_v1 = vld [vmem:[%s222_s10] sm:$0xff]  ;;  %v260_v2 = vld [vmem:[%s222_s10 + $0x8] sm:$0xff]  ;;  %v261_v3 = vld [vmem:[%s222_s10 + $0x10] sm:$0xff] }
  0x1a   : > { %v1259_v4 = vpack.i.bf16 %v260_v2, %v259_v1  ;;  %v262_v6 = vld [vmem:[%s222_s10 + $0x18] sm:$0xff]  ;;  %v1602_v7 = vpack.c.bf16 %v261_v3, %v259_v1  ;;  %v1314_v11 = vpack.i.bf16 %v1503_v0, %v260_v2  ;;  %v1324_v12 = vpack.i.bf16 %v261_v3, %v259_v1  ;;  %s215_s10 = sand.u32 1, %s1493_s19  }
  0x1b   : > { %v1264_v8 = vpack.i.bf16 %v262_v6, %v261_v3  ;;  %v1608_v9 = vpack.c.bf16 %v262_v6, %v260_v2  ;;  %v1304_v10 = vpack.i.bf16 %v1503_v0, %v262_v6 }
  0x1c   : > { %1260 = vrot.lane.b32.xlu0 %v1259_v4, %s1504_s6  ;;  %326 = vrot.lane.b32.xlu1 %v1602_v7, %s1506_s11 }
  0x20   : > { %1265 = vrot.lane.b32.xlu0 %v1264_v8, %s1504_s6  ;;  %1275 = vrot.lane.b32.xlu1 %v1264_v8, %s1507_s12 }
  0x24   : > { %328 = vrot.lane.b32.xlu0 %v1608_v9, %s1506_s11  ;;  %1285 = vrot.lane.b32.xlu1 %v1259_v4, %s1508_s13 }
  0x28   : > { %1270 = vrot.lane.b32.xlu0 %v1259_v4, %s1507_s12  ;;  %1295 = vrot.lane.b32.xlu1 %v1503_v0, %s1508_s13 }
  0x2c   : > { %1280 = vrot.lane.b32.xlu0 %v1503_v0, %s1507_s12  ;;  %1305 = vrot.lane.b32.xlu1 %v1304_v10, %s1509_s14 }
  0x30   : > { %1290 = vrot.lane.b32.xlu0 %v1264_v8, %s1508_s13  ;;  %1315 = vrot.lane.b32.xlu1 %v1314_v11, %s1510_s15 }
  0x34   : > { %1300 = vrot.lane.b32.xlu0 %v1314_v11, %s1509_s14  ;;  %1325 = vrot.lane.b32.xlu1 %v1324_v12, %s1510_s15 }
  0x38   : > { %1310 = vrot.lane.b32.xlu0 %v1324_v12, %s1509_s14  ;;  %529 = vrot.lane.b32.xlu1 %v1505_v5, %s1511_s16 }
  0x3c   : > { %1320 = vrot.lane.b32.xlu0 %v1304_v10, %s1510_s15  ;;  %1330 = vrot.lane.b32.xlu1 %v1314_v11, %s1512_s17 }
  0x40   : > { %527 = vrot.lane.b32.xlu0 %v1608_v9, %s1511_s16  ;;  %1340 = vrot.lane.b32.xlu1 %v1324_v12, %s1512_s17 }
  0x44   : > { %525 = vrot.lane.b32.xlu0 %v1602_v7, %s1511_s16  ;;  %1346 = vrot.lane.b32.xlu1 %v1503_v0, %s1504_s6 }
  0x48   : > { %1335 = vrot.lane.b32.xlu0 %v1304_v10, %s1512_s17  ;;  %717 = vrot.lane.b32.xlu1 %v1505_v5, %s1506_s11 }
  0x4c   : > { %601 = vperm.xlu0 %1344, %v598_v16   ;;  %1356 = vrot.lane.b32.xlu1 %v1503_v0, %s1507_s12 }
  0x50   : > { %1351 = vrot.lane.b32.xlu0 %v1503_v0, %s1504_s6 }
  0x54   : > { %1361 = vrot.lane.b32.xlu0 %v1503_v0, %s1507_s12 }
  0x80   : > { %v1256_v19 = vpop.permute.xlu1 %1255 }
  0x81   : > { %v1257_v26 = vunpack.i.l.bf16 %v1256_v19  ;;  %v1258_v30 = vunpack.i.h.bf16 %v1256_v19 }
  0x84   : > { %v325_v21 = vpop.permute.xlu1 %324 }
  0x8e   : > { %v1261_v22 = vpop.permute.xlu0 %1260  ;;  %v327_v25 = vpop.permute.xlu1 %326 }
  0x8f   : > { %v1263_v27 = vunpack.i.h.bf16 %v1261_v22  ;;  %v1262_v28 = vunpack.i.l.bf16 %v1261_v22  ;;  %v331_v51 = vsel %vm330_vm0, %v325_v21, %v327_v25 }
  0x91   : > { %v297_v34 = vsel %vm295_vm2, %v1262_v28, %v1263_v27  ;;  %v296_v37 = vsel %vm295_vm2, %v1257_v26, %v1262_v28 }
  0x92   : > { %v1266_v29 = vpop.permute.xlu0 %1265  ;;  %v1276_v33 = vpop.permute.xlu1 %1275 }
  0x93   : > { %v1268_v31 = vunpack.i.h.bf16 %v1266_v29  ;;  %v1267_v32 = vunpack.i.l.bf16 %v1266_v29  ;;  %v1278_v43 = vunpack.i.h.bf16 %v1276_v33  ;;  %v1277_v44 = vunpack.i.l.bf16 %v1276_v33 }
  0x95   : > { %v299_v35 = vsel %vm295_vm2, %v1267_v32, %v1268_v31  ;;  %v298_v38 = vsel %vm295_vm2, %v1258_v30, %v1267_v32  ;;  %v369_v48 = vsel %vm365_vm6, %v1277_v44, %v1278_v43 }
  0x96   : > { %v329_v39 = vpop.permute.xlu0 %328  ;;  %v1133_v40 = vpack.c.bf16 %v299_v35, %v297_v34  ;;  %v1136_v42 = vpack.c.bf16 %v298_v38, %v296_v37  ;;  %v1286_v45 = vpop.permute.xlu1 %1285 }
  0x97   : > { %v332_v46 = vsel %vm330_vm0, %v327_v25, %v329_v39  ;;  %v1288_v59 = vunpack.i.h.bf16 %v1286_v45  ;;  %v1287_v60 = vunpack.i.l.bf16 %v1286_v45 }
  0x98   : > { %1134 = vmatprep.subr.msk.bf16.mxu0 %vm1656_vm4, %v1133_v40 }
  0x99   : > { %1137 = vmatpush1.bf16.msk.msra.mxu0 %vm1662_vm5, %v1136_v42  ;;  %v408_v11 = vsel %vm406_vm10, %v1287_v60, %v1288_v59 }
  0x9a   : > { %v1271_v47 = vpop.permute.xlu0 %1270  ;;  %616 = vmatprep.subr.bf16.mxu0 %v332_v46  ;;  %v1296_v52 = vpop.permute.xlu1 %1295 }
  0x9b   : > { %v1273_v49 = vunpack.i.h.bf16 %v1271_v47  ;;  %v1272_v50 = vunpack.i.l.bf16 %v1271_v47  ;;  %v1297_v61 = vunpack.i.l.bf16 %v1296_v52  ;;  %v1298_v2 = vunpack.i.h.bf16 %v1296_v52 }
  0x9d   : > { %v367_v53 = vsel %vm365_vm6, %v1272_v50, %v1273_v49  ;;  %617 = vmatpush1.bf16.msra.mxu0 %v331_v51  ;;  %v407_v12 = vsel %vm406_vm10, %v1297_v61, %v1287_v60 }
  0x9e   : > { %v1139_v55 = vpack.c.bf16 %v369_v48, %v367_v53  ;;  %v1281_v56 = vpop.permute.xlu0 %1280  ;;  %v1306_v62 = vpop.permute.xlu1 %1305 }
  0x9f   : > { %v1283_v57 = vunpack.i.h.bf16 %v1281_v56  ;;  %v1282_v58 = vunpack.i.l.bf16 %v1281_v56  ;;  %v1308_v17 = vunpack.i.h.bf16 %v1306_v62  ;;  %v1307_v18 = vunpack.i.l.bf16 %v1306_v62 }
  0xa0   : > { %1140 = vmatprep.subr.msk.bf16.mxu0 %vm1674_vm8, %v1139_v55 }
  0xa1   : > { %v366_v63 = vsel %vm365_vm6, %v1282_v58, %v1272_v50  ;;  %v368_v1 = vsel %vm365_vm6, %v1283_v57, %v1277_v44  ;;  %v459_v25 = vsel %vm455_vm12, %v1307_v18, %v1308_v17 }
  0xa2   : > { %v1142_v4 = vpack.c.bf16 %v368_v1, %v366_v63  ;;  %v1291_v6 = vpop.permute.xlu0 %1290  ;;  %v1316_v14 = vpop.permute.xlu1 %1315 }
  0xa3   : > { %v1293_v8 = vunpack.i.h.bf16 %v1291_v6  ;;  %v1292_v10 = vunpack.i.l.bf16 %v1291_v6  ;;  %v1318_v31 = vunpack.i.h.bf16 %v1316_v14  ;;  %v1317_v32 = vunpack.i.l.bf16 %v1316_v14 }
  0xa4   : > { %1143 = vmatpush1.bf16.msk.msra.mxu0 %vm1682_vm11, %v1142_v4 }
  0xa5   : > { %v409_v15 = vsel %vm406_vm10, %v1298_v2, %v1292_v10  ;;  %v410_v16 = vsel %vm406_vm10, %v1292_v10, %v1293_v8  ;;  %v498_v44 = vsel %vm496_vm13, %v1317_v32, %v1318_v31  ;;  %v1119_v8 = vcombine.low %v1636_v13, %v1636_v13 }
  0xa6   : > { %v1145_v19 = vpack.c.bf16 %v410_v16, %v408_v11  ;;  %v1148_v20 = vpack.c.bf16 %v409_v15, %v407_v12  ;;  %v1301_v21 = vpop.permute.xlu0 %1300  ;;  %v1326_v24 = vpop.permute.xlu1 %1325 }
  0xa7   : > { %v1303_v22 = vunpack.i.h.bf16 %v1301_v21  ;;  %v1302_v23 = vunpack.i.l.bf16 %v1301_v21  ;;  %v1328_v37 = vunpack.i.h.bf16 %v1326_v24  ;;  %v1327_v38 = vunpack.i.l.bf16 %v1326_v24 }
  0xa8   : > { %1146 = vmatprep.subr.msk.bf16.mxu0 %vm1656_vm4, %v1145_v19 }
  0xa9   : > { %v457_v26 = vsel %vm455_vm12, %v1302_v23, %v1303_v22  ;;  %1149 = vmatpush1.bf16.msk.msra.mxu0 %vm1662_vm5, %v1148_v20  ;;  %v497_v45 = vsel %vm496_vm13, %v1327_v38, %v1317_v32 }
  0xaa   : > { %v1311_v27 = vpop.permute.xlu0 %1310  ;;  %622 = vmatprep.subr.bf16.mxu0 %v1608_v9  ;;  %v1151_v30 = vpack.c.bf16 %v459_v25, %v457_v26  ;;  %v530_v33 = vpop.permute.xlu1 %529  ;;  %v1766_v26 = vld [vmem:[%s1884_s3] sm:$0xff] }
  0xab   : > { %v1313_v28 = vunpack.i.h.bf16 %v1311_v27  ;;  %v1312_v29 = vunpack.i.l.bf16 %v1311_v27  ;;  %v1123_v27 = vcombine.high %v1766_v26, %v1766_v26 }
  0xad   : > { %v456_v34 = vsel %vm455_vm12, %v1312_v29, %v1302_v23  ;;  %v458_v35 = vsel %vm455_vm12, %v1313_v28, %v1307_v18  ;;  %623 = vmatpush1.bf16.msra.mxu0 %v1602_v7  ;;  %1124 = vmatprep.mubr.msk.bf16.mxu1 %vm330_vm0, %v1123_v27  ;;  %v980_v28 = vld [vmem:[%s1885_s4] sm:$0xff] }
  0xae   : > { %v1154_v39 = vpack.c.bf16 %v458_v35, %v456_v34  ;;  %v1321_v40 = vpop.permute.xlu0 %1320  ;;  %1152 = vmatprep.subr.msk.bf16.mxu0 %vm1674_vm8, %v1151_v30  ;;  %v1331_v43 = vpop.permute.xlu1 %1330 }
  0xaf   : > { %v1323_v9 = vunpack.i.h.bf16 %v1321_v40  ;;  %v1322_v42 = vunpack.i.l.bf16 %v1321_v40  ;;  %v1333_v55 = vunpack.i.h.bf16 %v1331_v43  ;;  %v1332_v56 = vunpack.i.l.bf16 %v1331_v43 }
  0xb1   : > { %v499_v46 = vsel %vm496_vm13, %v1328_v37, %v1322_v42  ;;  %v500_v47 = vsel %vm496_vm13, %v1322_v42, %v1323_v9  ;;  %1155 = vmatpush1.bf16.msk.msra.mxu0 %vm1682_vm11, %v1154_v39  ;;  %v564_v62 = vsel %vm562_vm15, %v1332_v56, %v1333_v55 }
  0xb2   : > { %v1157_v7 = vpack.c.bf16 %v500_v47, %v498_v44  ;;  %v1160_v48 = vpack.c.bf16 %v499_v46, %v497_v45  ;;  %v528_v49 = vpop.permute.xlu0 %527  ;;  %v1341_v52 = vpop.permute.xlu1 %1340 }
  0xb3   : > { %v533_v50 = vsel %vm531_vm14, %v528_v49, %v530_v33  ;;  %v1343_v57 = vunpack.i.h.bf16 %v1341_v52  ;;  %v1342_v58 = vunpack.i.l.bf16 %v1341_v52 }
  0xb4   : > { %1158 = vmatprep.subr.msk.bf16.mxu0 %vm1656_vm4, %v1157_v7 }
  0xb5   : > { %1161 = vmatpush1.bf16.msk.msra.mxu0 %vm1662_vm5, %v1160_v48  ;;  %v563_v63 = vsel %vm562_vm15, %v1342_v58, %v1332_v56 }
  0xb6   : > { %v526_v51 = vpop.permute.xlu0 %525  ;;  %628 = vmatprep.subr.bf16.mxu0 %v533_v50 }
  0xb7   : > { %v532_v53 = vsel %vm531_vm14, %v526_v51, %v528_v49 }
  0xb9   : > { %629 = vmatpush1.bf16.msra.mxu0 %v532_v53 }
  0xba   : > { %v1336_v59 = vpop.permute.xlu0 %1335 }
  0xbb   : > { %v1338_v60 = vunpack.i.h.bf16 %v1336_v59  ;;  %v1337_v61 = vunpack.i.l.bf16 %v1336_v59 }
  0xbd   : > { %v565_v1 = vsel %vm562_vm15, %v1343_v57, %v1337_v61  ;;  %v566_v2 = vsel %vm562_vm15, %v1337_v61, %v1338_v60 }
  0xbe   : > { %v1163_v4 = vpack.c.bf16 %v566_v2, %v564_v62  ;;  %v1166_v6 = vpack.c.bf16 %v565_v1, %v563_v63 }
  0xc0   : > { %1164 = vmatprep.subr.msk.bf16.mxu0 %vm1674_vm8, %v1163_v4 }
  0xc1   : > { %1167 = vmatpush1.bf16.msk.msra.mxu0 %vm1682_vm11, %v1166_v6 }
  0xc4   : > { %647 = vmatmul.mubr.bf16.vlgmr.msra.gmra.mrb[0].mxu0 %v1119_v8 }
  0xcb   : > { %v602_v10 = vpop.permute.xlu0 %601 }
  0xcf   : > { %v1352_v30 = vpop.permute.xlu0 %1351 }
  0xd0   : > { %v1354_v33 = vunpack.i.h.bf16 %v1352_v30 }
  0xd3   : > { %v1362_v31 = vpop.permute.xlu0 %1361 }
  0xd4   : > { %v1363_v52 = vunpack.i.l.bf16 %v1362_v31  ;;  %v1364_v55 = vunpack.i.h.bf16 %v1362_v31 }
 0x197   : > { %v648_v11 = vpop.f32.mrb[0].mxu0 }
 0x198   : > { %v649_v12 = vadd.f32 %v648_v11, %v602_v10  ;;  %v650_v14 = vpop.f32.mrb[1].mxu0 }
 0x199   : > { %v651_v15 = vadd.f32 %v650_v14, %v602_v10  ;;  %v652_v16 = vpop.f32.mrb[2].mxu0 }
 0x19a   : > { %vm655_vm1 = vcmp.ge.f32.partialorder %v649_v12, 0.0  ;;  %v657_v17 = vmul.f32 0.1, %v649_v12  ;;  %v653_v18 = vpop.f32.mrb[3].mxu0 }
 0x19b   : > { %vm656_vm3 = vcmp.ge.f32.partialorder %v651_v15, 0.0  ;;  %v658_v13 = vmul.f32 0.1, %v651_v15 }
 0x19c   : > { %v659_v19 = vsel %vm655_vm1, %v649_v12, %v657_v17 }
 0x19d   : > { %v660_v20 = vsel %vm656_vm3, %v651_v15, %v658_v13  ;;  %v1739_v23 = vpack.c.bf16 %v1503_v0, %v659_v19  ;;  %v1400_v25 = vpack.i.bf16 %v1503_v0, %v659_v19 }
 0x19e   : > { %v1370_v21 = vpack.i.bf16 %v660_v20, %v659_v19  ;;  %v1733_v22 = vpack.c.bf16 %v1503_v0, %v660_v20  ;;  %v1390_v24 = vpack.i.bf16 %v1503_v0, %v660_v20 }
 0x1a0   : > { %1371 = vrot.lane.b32.xlu0 %v1370_v21, %s1507_s12  ;;  %1366 = vrot.lane.b32.xlu1 %v1370_v21, %s1504_s6  ;;  %s1131_s12 = sshll.u32 %s1566_s22, 8  ;;  %s1039_s22 = scalar_lea.sflag [#allocation5], %s215_s10 }
 0x1a4   : > { %721 = vrot.lane.b32.xlu0 %v1733_v22, %s1506_s11  ;;  %1376 = vrot.lane.b32.xlu1 %v1370_v21, %s1508_s13 }
 0x1a8   : > { %1381 = vrot.lane.b32.xlu0 %v1503_v0, %s1508_s13  ;;  %719 = vrot.lane.b32.xlu1 %v1739_v23, %s1506_s11  ;;  %s1116_s11 = sshll.u32 %s215_s10, 4 }
 0x1ac   : > { %1391 = vrot.lane.b32.xlu0 %v1390_v24, %s1509_s14  ;;  %1386 = vrot.lane.b32.xlu1 %v1503_v0, %s1508_s13  ;;  %s217_s13 = scalar_lea.vmem [#allocation4], %s1116_s11 }
 0x1b0   : > { %1401 = vrot.lane.b32.xlu0 %v1400_v25, %s1509_s14  ;;  %1396 = vrot.lane.b32.xlu1 %v1503_v0, %s1509_s14  ;;  %s1053_s14 = sshll.u32 %s217_s13, 4  ;;  %s1841_s14 = int_to_ptr.vmem [resolvable:$true] %s1053_s14 }
 0x1b1   : > { %s1439_s23 = scalar_lea.vmem %s1841_s14, 256  ;;  %p1446_p0 = scmp.lt.s32.totalorder %s1841_s14, %s1444_s26 }
 0x1b2   : > { %p1440_p11 = scmp.ne.s32.totalorder %s1841_s14, %s1439_s23  ;;  %p1447_p1 = scmp.lt.s32.totalorder %s1445_s30, %s1439_s23 }
 0x1b4   : > { %1411 = vrot.lane.b32.xlu0 %v1503_v0, %s1510_s15  ;;  %1406 = vrot.lane.b32.xlu1 %v1390_v24, %s1510_s15  ;;  %p1441_p12 = pnand %p1440_p11, %p1583_p5  ;;  %p1448_p2 = por %p1447_p1, %p1446_p0 }
 0x1b6   : > { %p1442_p13 = pneg %p1441_p12 }
 0x1b8   : > { %909 = vrot.lane.b32.xlu0 %v1739_v23, %s1511_s16  ;;  %1416 = vrot.lane.b32.xlu1 %v1400_v25, %s1510_s15  ;;  %p1449_p3 = pnand %p1448_p2, %p1442_p13 }
 0x1bc   : > { %911 = vrot.lane.b32.xlu0 %v1733_v22, %s1511_s16  ;;  %913 = vrot.lane.b32.xlu1 %v1505_v5, %s1511_s16  ;;  %v1347_v5 = vpop.permute.xlu1 %1346 }
 0x1bd   : > { %v1349_v34 = vunpack.i.h.bf16 %v1347_v5  ;;  %v1348_v35 = vunpack.i.l.bf16 %v1347_v5 }
 0x1bf   : > { %v692_v9 = vsel %vm295_vm2, %v1348_v35, %v1349_v34  ;;  %v691_v42 = vsel %vm295_vm2, %v1354_v33, %v1348_v35 }
 0x1c0   : > { %1426 = vrot.lane.b32.xlu0 %v1503_v0, %s1512_s17  ;;  %1421 = vrot.lane.b32.xlu1 %v1390_v24, %s1512_s17  ;;  %v718_v29 = vpop.permute.xlu1 %717  ;;  %v1353_v0 = vunpack.i.l.bf16 %v1352_v30 }
 0x1c4   : > { %983 = vperm.xlu0 %1344, %v980_v28   ;;  %1431 = vrot.lane.b32.xlu1 %v1400_v25, %s1512_s17  ;;  %v1357_v32 = vpop.permute.xlu1 %1356  ;;  %s1839_s17 = scalar_lea.hbm %s1886_s5, %s1131_s12 }
 0x1c5   : > { %v1359_v47 = vunpack.i.h.bf16 %v1357_v32  ;;  %v1358_v7 = vunpack.i.l.bf16 %v1357_v32 }
 0x1c7   : > { %v756_v56 = vsel %vm365_vm6, %v1358_v7, %v1359_v47  ;;  %v755_v8 = vsel %vm365_vm6, %v1364_v55, %v1358_v7 }
 0x212   : > { %v1372_v37 = vpop.permute.xlu0 %1371  ;;  %v1367_v38 = vpop.permute.xlu1 %1366 }
 0x213   : > { %v1369_v39 = vunpack.i.h.bf16 %v1367_v38  ;;  %v1368_v40 = vunpack.i.l.bf16 %v1367_v38  ;;  %v1374_v43 = vunpack.i.h.bf16 %v1372_v37  ;;  %v1373_v44 = vunpack.i.l.bf16 %v1372_v37 }
 0x215   : > { %v690_v45 = vsel %vm295_vm2, %v1368_v40, %v1369_v39  ;;  %v689_v46 = vsel %vm295_vm2, %v1353_v0, %v1368_v40  ;;  %v754_v53 = vsel %vm365_vm6, %v1373_v44, %v1374_v43  ;;  %v753_v2 = vsel %vm365_vm6, %v1363_v52, %v1373_v44 }
 0x216   : > { %v722_v48 = vpop.permute.xlu0 %721  ;;  %v1377_v49 = vpop.permute.xlu1 %1376  ;;  %v1169_v50 = vpack.c.bf16 %v692_v9, %v690_v45  ;;  %v1172_v51 = vpack.c.bf16 %v691_v42, %v689_v46  ;;  %v1175_v4 = vpack.c.bf16 %v756_v56, %v754_v53  ;;  %v1178_v12 = vpack.c.bf16 %v755_v8, %v753_v2 }
 0x217   : > { %v1379_v57 = vunpack.i.h.bf16 %v1377_v49  ;;  %v1378_v58 = vunpack.i.l.bf16 %v1377_v49 }
 0x218   : > { %1170 = vmatprep.subr.msk.bf16.mxu1 %vm1656_vm4, %v1169_v50 }
 0x219   : > { %1173 = vmatpush1.bf16.msk.msra.mxu1 %vm1662_vm5, %v1172_v51  ;;  %v794_v14 = vsel %vm406_vm10, %v1378_v58, %v1379_v57 }
 0x21a   : > { %v1382_v59 = vpop.permute.xlu0 %1381  ;;  %v720_v60 = vpop.permute.xlu1 %719 }
 0x21b   : > { %v1384_v61 = vunpack.i.h.bf16 %v1382_v59  ;;  %v1383_v62 = vunpack.i.l.bf16 %v1382_v59  ;;  %v724_v63 = vsel %vm330_vm0, %v720_v60, %v722_v48  ;;  %v723_v1 = vsel %vm330_vm0, %v718_v29, %v720_v60 }
 0x21c   : > { %997 = vmatprep.subr.bf16.mxu1 %v724_v63 }
 0x21d   : > { %v796_v6 = vsel %vm406_vm10, %v1383_v62, %v1384_v61  ;;  %998 = vmatpush1.bf16.msra.mxu1 %v723_v1 }
 0x21e   : > { %v1392_v10 = vpop.permute.xlu0 %1391  ;;  %1176 = vmatprep.subr.msk.bf16.mxu1 %vm1674_vm8, %v1175_v4  ;;  %v1387_v11 = vpop.permute.xlu1 %1386  ;;  %v1181_v17 = vpack.c.bf16 %v796_v6, %v794_v14  ;;  %v1122_v6 = vcombine.low %v1766_v26, %v1766_v26 }
 0x21f   : > { %v1389_v15 = vunpack.i.h.bf16 %v1387_v11  ;;  %v1388_v16 = vunpack.i.l.bf16 %v1387_v11  ;;  %v1394_v19 = vunpack.i.h.bf16 %v1392_v10  ;;  %v1393_v20 = vunpack.i.l.bf16 %v1392_v10 }
 0x221   : > { %v795_v18 = vsel %vm406_vm10, %v1389_v15, %v1383_v62  ;;  %v793_v13 = vsel %vm406_vm10, %v1388_v16, %v1378_v58  ;;  %1179 = vmatpush1.bf16.msk.msra.mxu1 %vm1682_vm11, %v1178_v12  ;;  %v842_v31 = vsel %vm455_vm12, %v1393_v20, %v1394_v19 }
 0x222   : > { %v1184_v21 = vpack.c.bf16 %v795_v18, %v793_v13  ;;  %v1402_v24 = vpop.permute.xlu0 %1401  ;;  %1182 = vmatprep.subr.msk.bf16.mxu1 %vm1656_vm4, %v1181_v17  ;;  %v1397_v25 = vpop.permute.xlu1 %1396 }
 0x223   : > { %v1399_v27 = vunpack.i.h.bf16 %v1397_v25  ;;  %v1398_v28 = vunpack.i.l.bf16 %v1397_v25  ;;  %v1404_v5 = vunpack.i.h.bf16 %v1402_v24  ;;  %v1403_v29 = vunpack.i.l.bf16 %v1402_v24 }
 0x225   : > { %v844_v30 = vsel %vm455_vm12, %v1398_v28, %v1399_v27  ;;  %1185 = vmatpush1.bf16.msk.msra.mxu1 %vm1662_vm5, %v1184_v21  ;;  %v841_v0 = vsel %vm455_vm12, %v1403_v29, %v1393_v20  ;;  %v843_v39 = vsel %vm455_vm12, %v1404_v5, %v1398_v28 }
 0x226   : > { %v1412_v32 = vpop.permute.xlu0 %1411  ;;  %v1407_v33 = vpop.permute.xlu1 %1406  ;;  %1003 = vmatprep.subr.bf16.mxu1 %v1733_v22  ;;  %v1187_v40 = vpack.c.bf16 %v844_v30, %v842_v31  ;;  %v1190_v22 = vpack.c.bf16 %v843_v39, %v841_v0 }
 0x227   : > { %v1414_v34 = vunpack.i.h.bf16 %v1412_v32  ;;  %v1413_v35 = vunpack.i.l.bf16 %v1412_v32  ;;  %v1409_v37 = vunpack.i.h.bf16 %v1407_v33  ;;  %v1408_v38 = vunpack.i.l.bf16 %v1407_v33 }
 0x229   : > { %v884_v9 = vsel %vm496_vm13, %v1413_v35, %v1414_v34  ;;  %v882_v42 = vsel %vm496_vm13, %v1408_v38, %v1409_v37  ;;  %1004 = vmatpush1.bf16.msra.mxu1 %v1739_v23 }
 0x22a   : > { %v910_v43 = vpop.permute.xlu0 %909  ;;  %v1417_v44 = vpop.permute.xlu1 %1416  ;;  %1188 = vmatprep.subr.msk.bf16.mxu1 %vm1674_vm8, %v1187_v40  ;;  %v1193_v47 = vpack.c.bf16 %v884_v9, %v882_v42 }
 0x22b   : > { %v1419_v45 = vunpack.i.h.bf16 %v1417_v44  ;;  %v1418_v46 = vunpack.i.l.bf16 %v1417_v44 }
 0x22d   : > { %v883_v7 = vsel %vm496_vm13, %v1419_v45, %v1413_v35  ;;  %v881_v48 = vsel %vm496_vm13, %v1418_v46, %v1408_v38  ;;  %1191 = vmatpush1.bf16.msk.msra.mxu1 %vm1682_vm11, %v1190_v22 }
 0x22e   : > { %v1196_v49 = vpack.c.bf16 %v883_v7, %v881_v48  ;;  %v912_v50 = vpop.permute.xlu0 %911  ;;  %v914_v51 = vpop.permute.xlu1 %913  ;;  %1194 = vmatprep.subr.msk.bf16.mxu1 %vm1656_vm4, %v1193_v47 }
 0x22f   : > { %v916_v23 = vsel %vm531_vm14, %v912_v50, %v914_v51  ;;  %v915_v59 = vsel %vm531_vm14, %v910_v43, %v912_v50 }
 0x231   : > { %1197 = vmatpush1.bf16.msk.msra.mxu1 %vm1662_vm5, %v1196_v49 }
 0x232   : > { %v1427_v52 = vpop.permute.xlu0 %1426  ;;  %v1422_v53 = vpop.permute.xlu1 %1421  ;;  %1009 = vmatprep.subr.bf16.mxu1 %v916_v23 }
 0x233   : > { %v1429_v55 = vunpack.i.h.bf16 %v1427_v52  ;;  %v1428_v56 = vunpack.i.l.bf16 %v1427_v52  ;;  %v1424_v57 = vunpack.i.h.bf16 %v1422_v53  ;;  %v1423_v58 = vunpack.i.l.bf16 %v1422_v53 }
 0x235   : > { %v948_v60 = vsel %vm562_vm15, %v1428_v56, %v1429_v55  ;;  %v946_v36 = vsel %vm562_vm15, %v1423_v58, %v1424_v57  ;;  %1010 = vmatpush1.bf16.msra.mxu1 %v915_v59 }
 0x236   : > { %v1199_v41 = vpack.c.bf16 %v948_v60, %v946_v36  ;;  %v1432_v61 = vpop.permute.xlu1 %1431 }
 0x237   : > { %v1434_v62 = vunpack.i.h.bf16 %v1432_v61  ;;  %v1433_v63 = vunpack.i.l.bf16 %v1432_v61 }
 0x238   : > { %1200 = vmatprep.subr.msk.bf16.mxu1 %vm1674_vm8, %v1199_v41 }
 0x239   : > { %v947_v1 = vsel %vm562_vm15, %v1434_v62, %v1428_v56  ;;  %v945_v2 = vsel %vm562_vm15, %v1433_v63, %v1423_v58 }
 0x23a   : > { %v1202_v4 = vpack.c.bf16 %v947_v1, %v945_v2 }
 0x23c   : > { %1203 = vmatpush1.bf16.msk.msra.mxu1 %vm1682_vm11, %v1202_v4 }
 0x23f   : > { %1028 = vmatmul.mubr.bf16.vlgmr.msra.gmra.mrb[0].mxu1 %v1122_v6 }
 0x243   : > { %v984_v54 = vpop.permute.xlu0 %983 }
 0x312   : > { %v1029_v8 = vpop.f32.mrb[0].mxu1 }
 0x313   : > { %v1030_v10 = vadd.f32 %v1029_v8, %v984_v54  ;;  %v1031_v11 = vpop.f32.mrb[1].mxu1 }
 0x314   : > { %v1032_v12 = vadd.f32 %v1031_v11, %v984_v54  ;;  %v1033_v14 = vpop.f32.mrb[2].mxu1 }
 0x315   : > { %1036 = vst [vmem:[%s217_s13] sm:$0xff] %v1030_v10  ;;  %v1034_v3 = vpop.f32.mrb[3].mxu1 }
 0x316   : > { %1037 = vst [vmem:[%s217_s13 + $0x8] sm:$0xff] %v1032_v12 }
 0x317   : > { %1452 = shalt.err (!%p1449_p3)
}
 0x318   : > { %s1453_s6 = scalar_lea.hbm %s1839_s17, 256  ;;  %s1457_s9 = scalar_lea.hbm %s1886_s5, 512 }
 0x319   : > { %p1454_p4 = scmp.ne.s32.totalorder %s1839_s17, %s1453_s6  ;;  %p1458_p9 = scmp.lt.u32.totalorder %s1839_s17, %s1886_s5 }
 0x31a   : > { %p1459_p10 = scmp.lt.u32.totalorder %s1457_s9, %s1453_s6  ;;  %p1461_p12 = scmp.lt.u32.totalorder %s1453_s6, %s1839_s17 }
 0x31b   : > { %p1455_p7 = pnand %p1454_p4, %p1583_p5 }
 0x31c   : > { %p1460_p11 = por %p1459_p10, %p1458_p9 }
 0x31d   : > { %p1456_p8 = pneg %p1455_p7 }
 0x31e   : > { %p1462_p13 = por %p1461_p12, %p1460_p11 }
 0x320   : > { %p1463_p0 = pnand %p1462_p13, %p1456_p8 }
 0x322   : > { %1466 = shalt.err (!%p1463_p0)
}
 0x323   : > { %1204 = dma.vmem_to_hbm [thread:$0]  (%p1583_p5), %s1841_s14, 256, %s1839_s17, %s1039_s22  }
 0x324 PF: > { %p1210_p1 = scmp.ge.s32.totalorder %s1501_s21, 2  ;;  %s1065_s12 = sand.u32 1, %s1489_s18  }
 0x325   : > { %s1066_s13 = scalar_lea.sflag [#allocation5], %s1065_s12 }
 0x326   : > { %p1207_p2 = pnand %p1210_p1, %p1587_p6 }
 0x328   : > { %1484 = dma.done.wait (!%p1207_p2), %s1066_s13, 256  }
 0x329   : > { %1486 = vsyncadd (!%p1207_p2), %s1066_s13, 4294967040  ;;  %p15_p3 = scmp.ge.s32.totalorder %s1570_s24, 4   ;;  %s1897_s18 = smov %s1493_s19 }
 0x32a   : > { %s1898_s19 = smov %s1497_s20  ;;  %s1899_s20 = smov %s1581_s27 }
 0x32b   : > { %s1900_s21 = smov %s1570_s24  ;;  %17 = sbr.rel (!%p15_p3) target bundleno = 3 (0x3), region = 75 }
 0x332   :  { %1071 = vsyncpa [#allocation5], 1 }
 0x333   :  { %1073 = vsyncpa [#allocation5 + $0x1], 1 }

// kernel: bidirectional_propagation.22
= control target key start
LH: loop header
LB: loop body
LE: loop exit
PB: predicated region body
PF: predicated region fallthrough
CT: control target
= control target key end

     0   :  { %16 = vsyncpa [#allocation5], 0  ;;  %s6680_s0 = inlined_call_operand.vmem [shape: f32[2,32,256], index: 0, kind: input, shape index: {}]   ;;  %s6681_s1 = inlined_call_operand.vmem [shape: bf16[8,288], index: 1, kind: input, shape index: {}]   ;;  %s6682_s2 = inlined_call_operand.vmem [shape: f32[8,1], index: 2, kind: input, shape index: {}]   ;;  %s6683_s3 = inlined_call_operand.vmem [shape: bf16[8,144], index: 3, kind: input, shape index: {}]   ;;  %s6684_s4 = inlined_call_operand.vmem [shape: f32[8,1], index: 4, kind: input, shape index: {}]   ;;  %s6685_s5 = inlined_call_operand.vmem [shape: bf16[8,144], index: 5, kind: input, shape index: {}]   ;;  %s6686_s6 = inlined_call_operand.vmem [shape: f32[8,1], index: 6, kind: input, shape index: {}]   ;;  %s6687_s7 = inlined_call_operand.vmem [shape: bf16[432,144], index: 7, kind: input, shape index: {}]   ;;  %s6688_s8 = inlined_call_operand.vmem [shape: f32[432,1], index: 8, kind: input, shape index: {}]   ;;  %s6689_s9 = inlined_call_operand.vmem [shape: f32[2,288,256], index: 9, kind: output, shape index: {0}]   ;;  %s6690_s10 = inlined_call_operand.hbm [shape: f32[2,144,256], index: 10, kind: output, shape index: {1}]  }
   0x1   :  { %18 = vsyncpa [#allocation5 + $0x1], 0  ;;  %s5200_s13 = smov 0   ;;  %s5202_s14 = smov 0  }
   0x2   :  { %s5204_s15 = smov 0   ;;  %s5206_s16 = smov 0  }
   0x3 LB: > { %s5221_s17 = sadd.s32 4294967295, %s5130_s16   ;;  %s3844_s18 = sadd.s32 4294967294, %s5130_s16   ;;  %s5130_s16 = sphi %s5206_s16, %s6718_s16   ;;  %s5126_s15 = sphi %s5204_s15, %s6717_s15   ;;  %s5122_s14 = sphi %s5202_s14, %s6716_s14   ;;  %s5118_s13 = sphi %s5200_s13, %s6715_s13  }
   0x4   : > { %s5225_s19 = sadd.s32 1, %s5130_s16   ;;  %s251_s20 = sadd.s32 1, %s5126_s15 }
   0x5   : > { %s248_s21 = ssub.s32 %s5130_s16, %s5225_s19  ;;  %p261_p0 = scmp.ne.s32.totalorder %s5126_s15, %s5122_s14 }
   0x6   : > { %p249_p1 = scmp.eq.s32.totalorder %s248_s21, 0  ;;  %p262_p2 = scmp.eq.s32.totalorder %s5221_s17, 1 }
   0x7   : > { %p267_p3 = scmp.ne.s32.totalorder %s5122_s14, %s5118_s13  ;;  %p268_p4 = scmp.eq.s32.totalorder %s3844_s18, 1 }
   0x8   : > { %s5236_s22 = scalar_select %p249_p1, %s5126_s15, %s251_s20  }
   0x9   : > { %p5238_p5 = por %p262_p2, %p261_p0  ;;  %p5242_p6 = por %p268_p4, %p267_p3 }
   0xa   : > { %p3847_p7 = scmp.ge.s32.totalorder %s5130_s16, 1  ;;  %p318_p8 = scmp.lt.s32.totalorder %s5130_s16, 3 }
   0xc   : > { %p319_p9 = pnand %p3847_p7, %p318_p8 }
   0xd   : > { %p361_p10 = scmp.lt.s32.totalorder (!%p319_p9), %s5221_s17, 1  ;;  %v5132_v0 = vmov (!%p319_p9), 0.0   ;;  %s5133_s26 = smov (!%p319_p9), 17   ;;  %v5135_v18 = vmov (!%p319_p9), 0.0|0.0   ;;  %v5323_v24 = vld [vmem:[%s6681_s1] sm:$0xff] (!%p319_p9)  ;;  %v5142_v26 = vmov (!%p319_p9), 0   ;;  %v372_v28 = vlaneseq (!%p319_p9) }
   0xe   : > { %322 = sbr.rel (%p319_p9) target bundleno = 1775 (0x6ef), region = 56  ;;  %4241 = vrot.lane.b32.xlu1 (!%p319_p9), %v5132_v0, %s5133_s26  ;;  %s6699_s11 = smov (!%p319_p9), 16   ;;  %v3852_v25 = vcombine.high (!%p319_p9), %v5323_v24, %v5323_v24  ;;  %4420 = vset.pattern.permute.xlu0 (!%p319_p9), %v5142_v26  ;;  %v1073_v27 = vld [vmem:[%s6682_s2] sm:$0xff] (!%p319_p9)  ;;  %vm479_vm0 = vcmask (!%p319_p9), 138240   ;;  %vm548_vm5 = vcmask (!%p319_p9), 130048   ;;  %vm613_vm6 = vcmask (!%p319_p9), 121856  }
   0xf   : > { %s6697_s12 = smov (!%p319_p9), 15   ;;  %s6695_s18 = smov (!%p319_p9), 1   ;;  %4601 = vset.pattern.permute.xlu1 (!%p319_p9), %v5142_v26  ;;  %v5350_v29 = vand.u32 (!%p319_p9), 127, %v372_v28  ;;  %vm694_vm11 = vcmask (!%p319_p9), 7168   ;;  %vm791_vm12 = vcmask (!%p319_p9), 1039360   ;;  %vm872_vm13 = vcmask (!%p319_p9), 924672  }
  0x10   : > { %s6693_s20 = smov (!%p319_p9), 127   ;;  %s6691_s21 = smov (!%p319_p9), 113   ;;  %1125 = vmatprep.mubr.bf16.mxu0 (!%p319_p9), %v3852_v25  ;;  %vm941_vm14 = vcmask (!%p319_p9), 916480   ;;  %vm1002_vm15 = vcmask (!%p319_p9), 908288   ;;  %v4707_v28 = vld [vmem:[%s6687_s7 + $0xf4] ss:$8 sps:$4 sm:$0xff] (!%p319_p9)  }
  0x11   : > { %v374_v31 = vadd.s32 (!%p319_p9), 128, %v5350_v29  ;;  %v379_v35 = vand.u32 (!%p319_p9), 15, %v5350_v29  ;;  %s358_s29 = sand.u32 (!%p319_p9), 1, %s5122_s14  }
  0x13   : > { %v386_v33 = vand.u32 (!%p319_p9), 15, %v374_v31  ;;  %vm399_vm2 = vcmp.ge.s32.totalorder (!%p319_p9), %v379_v35, 1  ;;  %vm401_vm9 = vcmp.le.s32.totalorder (!%p319_p9), %v379_v35, 14 }
  0x14   : > { %vm5364_vm4 = vmpackc.low (!%p319_p9), %vm399_vm2, %vm399_vm2 }
  0x15   : > { %s5250_s25 = scalar_select %p361_p10, %s5221_s17, 1  ;;  %vm400_vm1 = vcmp.ge.s32.totalorder %v386_v33, 1  ;;  %vm402_vm7 = vcmp.le.s32.totalorder %v386_v33, 14  ;;  %vm5396_vm10 = vmpackc.low %vm401_vm9, %vm401_vm9 }
  0x16   : > { %vm5359_vm3 = vmpackc.low %vm400_vm1, %vm400_vm1  ;;  %vm1089_vm1 = vcmask 261120  }
  0x17   : > { %s3981_s27 = sshll.u32 %s5250_s25, 6  ;;  %vm5386_vm8 = vmpackc.low %vm402_vm7, %vm402_vm7 }
  0x18   : > { %s365_s30 = scalar_lea.vmem %s6680_s0, %s3981_s27  ;;  %s5140_s27 = smov 112  }
  0x19   : > { %v411_v1 = vld [vmem:[%s365_s30] sm:$0xff]  ;;  %v412_v2 = vld [vmem:[%s365_s30 + $0x8] sm:$0xff]  ;;  %v413_v6 = vld [vmem:[%s365_s30 + $0x10] sm:$0xff] }
  0x1a   : > { %v415_v3 = vld [vmem:[%s365_s30 + $0x20] sm:$0xff]  ;;  %v4245_v4 = vpack.i.bf16 %v412_v2, %v411_v1  ;;  %v416_v5 = vld [vmem:[%s365_s30 + $0x28] sm:$0xff]  ;;  %v414_v7 = vld [vmem:[%s365_s30 + $0x18] sm:$0xff]  ;;  %v4400_v14 = vpack.i.bf16 %v413_v6, %v411_v1  ;;  %v5266_v16 = vpack.c.bf16 %v413_v6, %v411_v1  ;;  %v4330_v21 = vpack.i.bf16 %v5132_v0, %v412_v2 }
  0x1b   : > { %v4255_v8 = vpack.i.bf16 %v416_v5, %v415_v3  ;;  %v417_v9 = vld [vmem:[%s365_s30 + $0x30] sm:$0xff]  ;;  %v418_v10 = vld [vmem:[%s365_s30 + $0x38] sm:$0xff]  ;;  %v4250_v11 = vpack.i.bf16 %v414_v7, %v413_v6  ;;  %v5263_v13 = vpack.c.bf16 %v414_v7, %v412_v2  ;;  %v4335_v20 = vpack.i.bf16 %v5132_v0, %v414_v7  ;;  %s5141_s30 = smov 111  }
  0x1c   : > { %4246 = vrot.lane.b32.xlu0 %v4245_v4, %s5133_s26  ;;  %v4260_v12 = vpack.i.bf16 %v418_v10, %v417_v9  ;;  %v4415_v15 = vpack.i.bf16 %v417_v9, %v415_v3  ;;  %v5270_v17 = vpack.c.bf16 %v417_v9, %v415_v3  ;;  %v5278_v19 = vpack.c.bf16 %v418_v10, %v416_v5 }
  0x1d   : > { %4256 = vrot.lane.b32.xlu1 %v4255_v8, %s5133_s26  ;;  %v4345_v22 = vpack.i.bf16 %v5132_v0, %v416_v5  ;;  %v4350_v23 = vpack.i.bf16 %v5132_v0, %v418_v10 }
  0x20   : > { %4251 = vrot.lane.b32.xlu0 %v4250_v11, %s5133_s26 }
  0x21   : > { %4266 = vrot.lane.b32.xlu1 %v5132_v0, %s5133_s26 }
  0x24   : > { %4261 = vrot.lane.b32.xlu0 %v4260_v12, %s5133_s26 }
  0x25   : > { %540 = vrot.lane.b32.xlu1 %v5263_v13, %s6699_s11 }
  0x28   : > { %538 = vrot.lane.b32.xlu0 %v5266_v16, %s6699_s11 }
  0x29   : > { %544 = vrot.lane.b32.xlu1 %v5270_v17, %s6699_s11 }
  0x2c   : > { %536 = vrot.lane.b32.xlu0 %v5135_v18, %s6699_s11 }
  0x2d   : > { %542 = vrot.lane.b32.xlu1 %v5135_v18, %s6699_s11 }
  0x30   : > { %546 = vrot.lane.b32.xlu0 %v5278_v19, %s6699_s11 }
  0x31   : > { %4276 = vrot.lane.b32.xlu1 %v4250_v11, %s6697_s12 }
  0x34   : > { %4271 = vrot.lane.b32.xlu0 %v4245_v4, %s6697_s12 }
  0x35   : > { %4286 = vrot.lane.b32.xlu1 %v4255_v8, %s6697_s12 }
  0x38   : > { %4281 = vrot.lane.b32.xlu0 %v5132_v0, %s6697_s12 }
  0x39   : > { %4296 = vrot.lane.b32.xlu1 %v5132_v0, %s6697_s12 }
  0x3c   : > { %4291 = vrot.lane.b32.xlu0 %v4260_v12, %s6697_s12 }
  0x3d   : > { %4306 = vrot.lane.b32.xlu1 %v4250_v11, %s6695_s18 }
  0x40   : > { %4301 = vrot.lane.b32.xlu0 %v4245_v4, %s6695_s18 }
  0x41   : > { %4316 = vrot.lane.b32.xlu1 %v4255_v8, %s6695_s18 }
  0x44   : > { %4311 = vrot.lane.b32.xlu0 %v5132_v0, %s6695_s18 }
  0x45   : > { %4326 = vrot.lane.b32.xlu1 %v5132_v0, %s6695_s18 }
  0x48   : > { %4321 = vrot.lane.b32.xlu0 %v4260_v12, %s6695_s18 }
  0x49   : > { %4336 = vrot.lane.b32.xlu1 %v4335_v20, %s6693_s20 }
  0x4c   : > { %4331 = vrot.lane.b32.xlu0 %v4330_v21, %s6693_s20 }
  0x4d   : > { %4346 = vrot.lane.b32.xlu1 %v4345_v22, %s6693_s20 }
  0x50   : > { %4341 = vrot.lane.b32.xlu0 %v4400_v14, %s6693_s20 }
  0x51   : > { %4356 = vrot.lane.b32.xlu1 %v4415_v15, %s6693_s20 }
  0x54   : > { %4351 = vrot.lane.b32.xlu0 %v4350_v23, %s6693_s20 }
  0x55   : > { %4366 = vrot.lane.b32.xlu1 %v4335_v20, %s6691_s21 }
  0x58   : > { %4361 = vrot.lane.b32.xlu0 %v4330_v21, %s6691_s21 }
  0x59   : > { %4376 = vrot.lane.b32.xlu1 %v4345_v22, %s6691_s21 }
  0x5c   : > { %4371 = vrot.lane.b32.xlu0 %v4400_v14, %s6691_s21 }
  0x5d   : > { %4386 = vrot.lane.b32.xlu1 %v4415_v15, %s6691_s21 }
  0x60   : > { %4381 = vrot.lane.b32.xlu0 %v4350_v23, %s6691_s21 }
  0x61   : > { %933 = vrot.lane.b32.xlu1 %v5135_v18, %s5140_s27 }
  0x64   : > { %931 = vrot.lane.b32.xlu0 %v5263_v13, %s5140_s27 }
  0x65   : > { %937 = vrot.lane.b32.xlu1 %v5278_v19, %s5140_s27 }
  0x68   : > { %929 = vrot.lane.b32.xlu0 %v5266_v16, %s5140_s27 }
  0x69   : > { %935 = vrot.lane.b32.xlu1 %v5270_v17, %s5140_s27 }
  0x6c   : > { %939 = vrot.lane.b32.xlu0 %v5135_v18, %s5140_s27 }
  0x6d   : > { %4396 = vrot.lane.b32.xlu1 %v4335_v20, %s5141_s30 }
  0x70   : > { %4391 = vrot.lane.b32.xlu0 %v4330_v21, %s5141_s30 }
  0x71   : > { %4406 = vrot.lane.b32.xlu1 %v4345_v22, %s5141_s30 }
  0x74   : > { %4401 = vrot.lane.b32.xlu0 %v4400_v14, %s5141_s30 }
  0x75   : > { %4416 = vrot.lane.b32.xlu1 %v4415_v15, %s5141_s30 }
  0x78   : > { %4411 = vrot.lane.b32.xlu0 %v4350_v23, %s5141_s30 }
  0x79   : > { %4422 = vrot.lane.b32.xlu1 %v5132_v0, %s5133_s26 }
  0x7c   : > { %1076 = vperm.xlu0 %4420, %v1073_v27  }
  0x7d   : > { %1237 = vrot.lane.b32.xlu1 %v5135_v18, %s6699_s11 }
  0x80   : > { %v4242_v30 = vpop.permute.xlu1 %4241  ;;  %4427 = vrot.lane.b32.xlu0 %v5132_v0, %s5133_s26 }
  0x81   : > { %v4243_v36 = vunpack.i.l.bf16 %v4242_v30  ;;  %v4244_v40 = vunpack.i.h.bf16 %v4242_v30  ;;  %4432 = vrot.lane.b32.xlu1 %v5132_v0, %s6697_s12 }
  0x84   : > { %4437 = vrot.lane.b32.xlu0 %v5132_v0, %s6697_s12 }
  0x8e   : > { %v4247_v32 = vpop.permute.xlu0 %4246 }
  0x8f   : > { %v4257_v34 = vpop.permute.xlu1 %4256  ;;  %v4249_v37 = vunpack.i.h.bf16 %v4247_v32  ;;  %v4248_v38 = vunpack.i.l.bf16 %v4247_v32 }
  0x90   : > { %v4259_v44 = vunpack.i.h.bf16 %v4257_v34  ;;  %v4258_v45 = vunpack.i.l.bf16 %v4257_v34 }
  0x91   : > { %v481_v46 = vsel %vm479_vm0, %v4248_v38, %v4249_v37  ;;  %v480_v47 = vsel %vm479_vm0, %v4243_v36, %v4248_v38 }
  0x92   : > { %v4252_v39 = vpop.permute.xlu0 %4251  ;;  %v485_v60 = vsel %vm479_vm0, %v4258_v45, %v4259_v44 }
  0x93   : > { %v4254_v41 = vunpack.i.h.bf16 %v4252_v39  ;;  %v4253_v42 = vunpack.i.l.bf16 %v4252_v39  ;;  %v4267_v43 = vpop.permute.xlu1 %4266 }
  0x94   : > { %v4269_v48 = vunpack.i.h.bf16 %v4267_v43  ;;  %v4268_v49 = vunpack.i.l.bf16 %v4267_v43 }
  0x95   : > { %v483_v50 = vsel %vm479_vm0, %v4253_v42, %v4254_v41  ;;  %v482_v52 = vsel %vm479_vm0, %v4244_v40, %v4253_v42  ;;  %v4710_v42 = vld [vmem:[%s6687_s7 + $0xf0] ss:$8 sps:$4 sm:$0xff]  }
  0x96   : > { %v4262_v53 = vpop.permute.xlu0 %4261  ;;  %v3983_v54 = vpack.c.bf16 %v483_v50, %v481_v46  ;;  %v3986_v56 = vpack.c.bf16 %v482_v52, %v480_v47  ;;  %v484_v61 = vsel %vm479_vm0, %v4268_v49, %v4258_v45 }
  0x97   : > { %v4264_v57 = vunpack.i.h.bf16 %v4262_v53  ;;  %v4263_v58 = vunpack.i.l.bf16 %v4262_v53  ;;  %v541_v59 = vpop.permute.xlu1 %540 }
  0x98   : > { %3984 = vmatprep.subr.msk.bf16.mxu0 %vm5359_vm3, %v3983_v54 }
  0x99   : > { %v486_v62 = vsel %vm479_vm0, %v4269_v48, %v4263_v58  ;;  %v487_v63 = vsel %vm479_vm0, %v4263_v58, %v4264_v57  ;;  %3987 = vmatpush1.bf16.msk.msra.mxu0 %vm5364_vm4, %v3986_v56 }
  0x9a   : > { %v539_v1 = vpop.permute.xlu0 %538  ;;  %v3989_v2 = vpack.c.bf16 %v487_v63, %v485_v60  ;;  %v3992_v3 = vpack.c.bf16 %v486_v62, %v484_v61 }
  0x9b   : > { %v545_v4 = vpop.permute.xlu1 %544  ;;  %v550_v5 = vsel %vm548_vm5, %v539_v1, %v541_v59 }
  0x9c   : > { %3990 = vmatprep.subr.msk.bf16.mxu0 %vm5359_vm3, %v3989_v2 }
  0x9d   : > { %3993 = vmatpush1.bf16.msk.msra.mxu0 %vm5364_vm4, %v3992_v3 }
  0x9e   : > { %1097 = vmatprep.subr.bf16.mxu0 %v550_v5  ;;  %v537_v6 = vpop.permute.xlu0 %536 }
  0x9f   : > { %v543_v7 = vpop.permute.xlu1 %542  ;;  %v549_v8 = vsel %vm548_vm5, %v537_v6, %v539_v1 }
  0xa0   : > { %v551_v15 = vsel %vm548_vm5, %v543_v7, %v545_v4 }
  0xa1   : > { %1098 = vmatpush1.bf16.msra.mxu0 %v549_v8 }
  0xa2   : > { %v547_v9 = vpop.permute.xlu0 %546 }
  0xa3   : > { %v4277_v10 = vpop.permute.xlu1 %4276  ;;  %v552_v11 = vsel %vm548_vm5, %v545_v4, %v547_v9 }
  0xa4   : > { %v4279_v12 = vunpack.i.h.bf16 %v4277_v10  ;;  %v4278_v14 = vunpack.i.l.bf16 %v4277_v10  ;;  %1099 = vmatprep.subr.bf16.mxu0 %v552_v11 }
  0xa5   : > { %1100 = vmatpush1.bf16.msra.mxu0 %v551_v15 }
  0xa6   : > { %v4272_v20 = vpop.permute.xlu0 %4271  ;;  %v617_v21 = vsel %vm613_vm6, %v4278_v14, %v4279_v12 }
  0xa7   : > { %v4274_v22 = vunpack.i.h.bf16 %v4272_v20  ;;  %v4273_v23 = vunpack.i.l.bf16 %v4272_v20  ;;  %v4287_v25 = vpop.permute.xlu1 %4286 }
  0xa8   : > { %v4289_v33 = vunpack.i.h.bf16 %v4287_v25  ;;  %v4288_v37 = vunpack.i.l.bf16 %v4287_v25 }
  0xa9   : > { %v615_v27 = vsel %vm613_vm6, %v4273_v23, %v4274_v22 }
  0xaa   : > { %v4282_v30 = vpop.permute.xlu0 %4281  ;;  %v3995_v31 = vpack.c.bf16 %v617_v21, %v615_v27  ;;  %v619_v48 = vsel %vm613_vm6, %v4288_v37, %v4289_v33 }
  0xab   : > { %v4284_v32 = vunpack.i.h.bf16 %v4282_v30  ;;  %v4283_v34 = vunpack.i.l.bf16 %v4282_v30  ;;  %v4297_v36 = vpop.permute.xlu1 %4296 }
  0xac   : > { %3996 = vmatprep.subr.msk.bf16.mxu0 %vm5386_vm8, %v3995_v31  ;;  %v4299_v40 = vunpack.i.h.bf16 %v4297_v36  ;;  %v4298_v41 = vunpack.i.l.bf16 %v4297_v36 }
  0xad   : > { %v616_v38 = vsel %vm613_vm6, %v4284_v32, %v4278_v14  ;;  %v614_v39 = vsel %vm613_vm6, %v4283_v34, %v4273_v23 }
  0xae   : > { %v4292_v29 = vpop.permute.xlu0 %4291  ;;  %v3998_v35 = vpack.c.bf16 %v616_v38, %v614_v39  ;;  %v618_v49 = vsel %vm613_vm6, %v4298_v41, %v4288_v37 }
  0xaf   : > { %v4294_v43 = vunpack.i.h.bf16 %v4292_v29  ;;  %v4293_v44 = vunpack.i.l.bf16 %v4292_v29  ;;  %v4307_v45 = vpop.permute.xlu1 %4306 }
  0xb0   : > { %v4309_v46 = vunpack.i.h.bf16 %v4307_v45  ;;  %v4308_v47 = vunpack.i.l.bf16 %v4307_v45  ;;  %3999 = vmatpush1.bf16.msk.msra.mxu0 %vm5396_vm10, %v3998_v35 }
  0xb1   : > { %v620_v50 = vsel %vm613_vm6, %v4299_v40, %v4293_v44  ;;  %v621_v52 = vsel %vm613_vm6, %v4293_v44, %v4294_v43 }
  0xb2   : > { %v4302_v53 = vpop.permute.xlu0 %4301  ;;  %v4001_v54 = vpack.c.bf16 %v621_v52, %v619_v48  ;;  %v4004_v56 = vpack.c.bf16 %v620_v50, %v618_v49  ;;  %v698_v57 = vsel %vm694_vm11, %v4308_v47, %v4309_v46 }
  0xb3   : > { %v4304_v58 = vunpack.i.h.bf16 %v4302_v53  ;;  %v4303_v59 = vunpack.i.l.bf16 %v4302_v53  ;;  %v4317_v60 = vpop.permute.xlu1 %4316 }
  0xb4   : > { %4002 = vmatprep.subr.msk.bf16.mxu0 %vm5386_vm8, %v4001_v54  ;;  %v4319_v4 = vunpack.i.h.bf16 %v4317_v60  ;;  %v4318_v5 = vunpack.i.l.bf16 %v4317_v60 }
  0xb5   : > { %v696_v61 = vsel %vm694_vm11, %v4303_v59, %v4304_v58  ;;  %4005 = vmatpush1.bf16.msk.msra.mxu0 %vm5396_vm10, %v4004_v56 }
  0xb6   : > { %v4312_v62 = vpop.permute.xlu0 %4311  ;;  %v4007_v63 = vpack.c.bf16 %v698_v57, %v696_v61  ;;  %v700_v20 = vsel %vm694_vm11, %v4318_v5, %v4319_v4 }
  0xb7   : > { %v4314_v1 = vunpack.i.h.bf16 %v4312_v62  ;;  %v4313_v2 = vunpack.i.l.bf16 %v4312_v62  ;;  %v4327_v3 = vpop.permute.xlu1 %4326 }
  0xb8   : > { %4008 = vmatprep.subr.msk.bf16.mxu0 %vm5359_vm3, %v4007_v63  ;;  %v4329_v8 = vunpack.i.h.bf16 %v4327_v3  ;;  %v4328_v9 = vunpack.i.l.bf16 %v4327_v3 }
  0xb9   : > { %v697_v6 = vsel %vm694_vm11, %v4314_v1, %v4308_v47  ;;  %v695_v7 = vsel %vm694_vm11, %v4313_v2, %v4303_v59 }
  0xba   : > { %v4322_v10 = vpop.permute.xlu0 %4321  ;;  %v4010_v11 = vpack.c.bf16 %v697_v6, %v695_v7  ;;  %v699_v21 = vsel %vm694_vm11, %v4328_v9, %v4318_v5 }
  0xbb   : > { %v4324_v12 = vunpack.i.h.bf16 %v4322_v10  ;;  %v4323_v14 = vunpack.i.l.bf16 %v4322_v10  ;;  %v4337_v15 = vpop.permute.xlu1 %4336 }
  0xbc   : > { %4011 = vmatpush1.bf16.msk.msra.mxu0 %vm5364_vm4, %v4010_v11  ;;  %v4339_v32 = vunpack.i.h.bf16 %v4337_v15  ;;  %v4338_v34 = vunpack.i.l.bf16 %v4337_v15 }
  0xbd   : > { %v701_v22 = vsel %vm694_vm11, %v4329_v8, %v4323_v14  ;;  %v702_v23 = vsel %vm694_vm11, %v4323_v14, %v4324_v12 }
  0xbe   : > { %v4332_v25 = vpop.permute.xlu0 %4331  ;;  %v4013_v27 = vpack.c.bf16 %v702_v23, %v700_v20  ;;  %v4016_v30 = vpack.c.bf16 %v701_v22, %v699_v21  ;;  %v795_v41 = vsel %vm791_vm12, %v4338_v34, %v4339_v32 }
  0xbf   : > { %v4347_v31 = vpop.permute.xlu1 %4346  ;;  %v4334_v36 = vunpack.i.h.bf16 %v4332_v25  ;;  %v4333_v33 = vunpack.i.l.bf16 %v4332_v25 }
  0xc0   : > { %4014 = vmatprep.subr.msk.bf16.mxu0 %vm5359_vm3, %v4013_v27  ;;  %v4349_v43 = vunpack.i.h.bf16 %v4347_v31  ;;  %v4348_v44 = vunpack.i.l.bf16 %v4347_v31 }
  0xc1   : > { %4017 = vmatpush1.bf16.msk.msra.mxu0 %vm5364_vm4, %v4016_v30  ;;  %v793_v29 = vsel %vm791_vm12, %v4333_v33, %v4334_v36 }
  0xc2   : > { %v4342_v37 = vpop.permute.xlu0 %4341  ;;  %1109 = vmatprep.subr.bf16.mxu0 %v5263_v13  ;;  %v4019_v50 = vpack.c.bf16 %v795_v41, %v793_v29  ;;  %v797_v56 = vsel %vm791_vm12, %v4348_v44, %v4349_v43 }
  0xc3   : > { %v4357_v38 = vpop.permute.xlu1 %4356  ;;  %v4344_v39 = vunpack.i.h.bf16 %v4342_v37  ;;  %v4343_v40 = vunpack.i.l.bf16 %v4342_v37 }
  0xc4   : > { %v4359_v49 = vunpack.i.h.bf16 %v4357_v38 }
  0xc5   : > { %1110 = vmatpush1.bf16.msra.mxu0 %v5266_v16  ;;  %v794_v48 = vsel %vm791_vm12, %v4344_v39, %v4338_v34  ;;  %v792_v13 = vsel %vm791_vm12, %v4343_v40, %v4333_v33  ;;  %v4358_v16 = vunpack.i.l.bf16 %v4357_v38 }
  0xc6   : > { %v4352_v35 = vpop.permute.xlu0 %4351  ;;  %1111 = vmatprep.subr.bf16.mxu0 %v5278_v19  ;;  %v4022_v60 = vpack.c.bf16 %v794_v48, %v792_v13 }
  0xc7   : > { %v4354_v45 = vunpack.i.h.bf16 %v4352_v35  ;;  %v4353_v46 = vunpack.i.l.bf16 %v4352_v35  ;;  %v4367_v47 = vpop.permute.xlu1 %4366 }
  0xc8   : > { %v4369_v53 = vunpack.i.h.bf16 %v4367_v47  ;;  %v4368_v54 = vunpack.i.l.bf16 %v4367_v47 }
  0xc9   : > { %v799_v52 = vsel %vm791_vm12, %v4353_v46, %v4354_v45  ;;  %1112 = vmatpush1.bf16.msra.mxu0 %v5270_v17  ;;  %v798_v61 = vsel %vm791_vm12, %v4359_v49, %v4353_v46  ;;  %v796_v17 = vsel %vm791_vm12, %v4358_v16, %v4348_v44  ;;  %v3851_v46 = vcombine.low %v5323_v24, %v5323_v24 }
  0xca   : > { %v4362_v19 = vpop.permute.xlu0 %4361  ;;  %4020 = vmatprep.subr.msk.bf16.mxu0 %vm5386_vm8, %v4019_v50  ;;  %v4025_v62 = vpack.c.bf16 %v799_v52, %v797_v56  ;;  %v876_v63 = vsel %vm872_vm13, %v4368_v54, %v4369_v53  ;;  %v4028_v6 = vpack.c.bf16 %v798_v61, %v796_v17 }
  0xcb   : > { %v4364_v57 = vunpack.i.h.bf16 %v4362_v19  ;;  %v4363_v58 = vunpack.i.l.bf16 %v4362_v19  ;;  %v4377_v59 = vpop.permute.xlu1 %4376 }
  0xcc   : > { %v4379_v7 = vunpack.i.h.bf16 %v4377_v59  ;;  %v4378_v8 = vunpack.i.l.bf16 %v4377_v59 }
  0xcd   : > { %v874_v1 = vsel %vm872_vm13, %v4363_v58, %v4364_v57  ;;  %4023 = vmatpush1.bf16.msk.msra.mxu0 %vm5396_vm10, %v4022_v60 }
  0xce   : > { %v4372_v2 = vpop.permute.xlu0 %4371  ;;  %4026 = vmatprep.subr.msk.bf16.mxu0 %vm5386_vm8, %v4025_v62  ;;  %v4031_v9 = vpack.c.bf16 %v876_v63, %v874_v1  ;;  %v878_v25 = vsel %vm872_vm13, %v4378_v8, %v4379_v7  ;;  %v4694_v7 = vld [vmem:[%s6681_s1 + $0x8] ss:$0 sps:$4 sm:$0xff]  }
  0xcf   : > { %v4374_v3 = vunpack.i.h.bf16 %v4372_v2  ;;  %v4373_v4 = vunpack.i.l.bf16 %v4372_v2  ;;  %v4387_v5 = vpop.permute.xlu1 %4386 }
  0xd0   : > { %v4389_v12 = vunpack.i.h.bf16 %v4387_v5  ;;  %v4388_v14 = vunpack.i.l.bf16 %v4387_v5 }
  0xd1   : > { %v875_v10 = vsel %vm872_vm13, %v4374_v3, %v4368_v54  ;;  %v873_v11 = vsel %vm872_vm13, %v4373_v4, %v4363_v58  ;;  %4029 = vmatpush1.bf16.msk.msra.mxu0 %vm5396_vm10, %v4028_v6 }
  0xd2   : > { %v4382_v15 = vpop.permute.xlu0 %4381  ;;  %4032 = vmatprep.subr.msk.bf16.mxu0 %vm5359_vm3, %v4031_v9  ;;  %v4034_v20 = vpack.c.bf16 %v875_v10, %v873_v11  ;;  %v877_v27 = vsel %vm872_vm13, %v4388_v14, %v4378_v8 }
  0xd3   : > { %v4384_v21 = vunpack.i.h.bf16 %v4382_v15  ;;  %v4383_v22 = vunpack.i.l.bf16 %v4382_v15  ;;  %v934_v23 = vpop.permute.xlu1 %933 }
  0xd5   : > { %v879_v30 = vsel %vm872_vm13, %v4389_v12, %v4383_v22  ;;  %v880_v31 = vsel %vm872_vm13, %v4383_v22, %v4384_v21  ;;  %4035 = vmatpush1.bf16.msk.msra.mxu0 %vm5364_vm4, %v4034_v20 }
  0xd6   : > { %v932_v32 = vpop.permute.xlu0 %931  ;;  %v4037_v34 = vpack.c.bf16 %v880_v31, %v878_v25  ;;  %v4040_v36 = vpack.c.bf16 %v879_v30, %v877_v27 }
  0xd7   : > { %v938_v33 = vpop.permute.xlu1 %937  ;;  %v943_v37 = vsel %vm941_vm14, %v932_v32, %v934_v23 }
  0xd8   : > { %4038 = vmatprep.subr.msk.bf16.mxu0 %vm5359_vm3, %v4037_v34  ;;  %v5530_v34 = vld [vmem:[%s6683_s3] sm:$0xff] }
  0xd9   : > { %4041 = vmatpush1.bf16.msk.msra.mxu0 %vm5364_vm4, %v4040_v36  ;;  %v3856_v36 = vcombine.high %v5530_v34, %v5530_v34 }
  0xda   : > { %v930_v38 = vpop.permute.xlu0 %929  ;;  %1121 = vmatprep.subr.bf16.mxu0 %v943_v37 }
  0xdb   : > { %v936_v39 = vpop.permute.xlu1 %935  ;;  %v942_v40 = vsel %vm941_vm14, %v930_v38, %v932_v32  ;;  %3857 = vmatprep.mubr.msk.bf16.mxu1 %vm548_vm5, %v3856_v36 }
  0xdc   : > { %v944_v45 = vsel %vm941_vm14, %v936_v39, %v938_v33 }
  0xdd   : > { %1122 = vmatpush1.bf16.msra.mxu0 %v942_v40 }
  0xde   : > { %v940_v41 = vpop.permute.xlu0 %939 }
  0xdf   : > { %v4397_v29 = vpop.permute.xlu1 %4396  ;;  %v945_v35 = vsel %vm941_vm14, %v938_v33, %v940_v41  ;;  %v1500_v33 = vld [vmem:[%s6684_s4] sm:$0xff] }
  0xe0   : > { %v4399_v43 = vunpack.i.h.bf16 %v4397_v29  ;;  %v4398_v44 = vunpack.i.l.bf16 %v4397_v29  ;;  %1123 = vmatprep.subr.bf16.mxu0 %v945_v35 }
  0xe1   : > { %1124 = vmatpush1.bf16.msra.mxu0 %v944_v45 }
  0xe2   : > { %v4392_v47 = vpop.permute.xlu0 %4391  ;;  %v1006_v48 = vsel %vm1002_vm15, %v4398_v44, %v4399_v43 }
  0xe3   : > { %v4394_v13 = vunpack.i.h.bf16 %v4392_v47  ;;  %v4393_v49 = vunpack.i.l.bf16 %v4392_v47  ;;  %v4407_v50 = vpop.permute.xlu1 %4406 }
  0xe4   : > { %1126 = vmatmul.mubr.bf16.vlgmr.msra.gmra.mrb[0].mxu0 %v3851_v46  ;;  %v4409_v57 = vunpack.i.h.bf16 %v4407_v50  ;;  %v4408_v58 = vunpack.i.l.bf16 %v4407_v50 }
  0xe5   : > { %v1004_v52 = vsel %vm1002_vm15, %v4393_v49, %v4394_v13  ;;  %1166 = vmatprep.mubr.bf16.mxu0 %v5142_v26 }
  0xe6   : > { %v4402_v53 = vpop.permute.xlu0 %4401  ;;  %v4043_v54 = vpack.c.bf16 %v1006_v48, %v1004_v52  ;;  %v1008_v17 = vsel %vm1002_vm15, %v4408_v58, %v4409_v57 }
  0xe7   : > { %v4404_v16 = vunpack.i.h.bf16 %v4402_v53  ;;  %v4403_v19 = vunpack.i.l.bf16 %v4402_v53  ;;  %v4417_v56 = vpop.permute.xlu1 %4416 }
  0xe8   : > { %4044 = vmatprep.subr.msk.bf16.mxu0 %vm5386_vm8, %v4043_v54  ;;  %v4419_v60 = vunpack.i.h.bf16 %v4417_v56  ;;  %v4418_v61 = vunpack.i.l.bf16 %v4417_v56 }
  0xe9   : > { %v1005_v24 = vsel %vm1002_vm15, %v4404_v16, %v4398_v44  ;;  %v1003_v59 = vsel %vm1002_vm15, %v4403_v19, %v4393_v49 }
  0xea   : > { %v4046_v62 = vpack.c.bf16 %v1005_v24, %v1003_v59  ;;  %v4412_v63 = vpop.permute.xlu0 %4411  ;;  %v1007_v2 = vsel %vm1002_vm15, %v4418_v61, %v4408_v58 }
  0xeb   : > { %v4414_v1 = vunpack.i.h.bf16 %v4412_v63  ;;  %v4413_v26 = vunpack.i.l.bf16 %v4412_v63  ;;  %v4423_v37 = vpop.permute.xlu1 %4422 }
  0xec   : > { %4047 = vmatpush1.bf16.msk.msra.mxu0 %vm5396_vm10, %v4046_v62  ;;  %v4425_v29 = vunpack.i.h.bf16 %v4423_v37  ;;  %v4424_v35 = vunpack.i.l.bf16 %v4423_v37 }
  0xed   : > { %v1009_v3 = vsel %vm1002_vm15, %v4419_v60, %v4413_v26  ;;  %v1010_v4 = vsel %vm1002_vm15, %v4413_v26, %v4414_v1 }
  0xee   : > { %v4052_v5 = vpack.c.bf16 %v1009_v3, %v1007_v2  ;;  %v4049_v6 = vpack.c.bf16 %v1010_v4, %v1008_v17  ;;  %v1212_v13 = vsel %vm479_vm0, %v4424_v35, %v4425_v29 }
  0xef   : > { %v1238_v38 = vpop.permute.xlu1 %1237 }
  0xf0   : > { %4050 = vmatprep.subr.msk.bf16.mxu0 %vm5386_vm8, %v4049_v6 }
  0xf1   : > { %4053 = vmatpush1.bf16.msk.msra.mxu0 %vm5396_vm10, %v4052_v5 }
  0xf3   : > { %v4433_v40 = vpop.permute.xlu1 %4432 }
  0xf4   : > { %3854 = vmatmul.mubr.msk.bf16.vlgmr.msra.gmra.mrb[0].mxu0 %vm1089_vm1, %v4694_v7  ;;  %v4435_v16 = vunpack.i.h.bf16 %v4433_v40  ;;  %v4434_v19 = vunpack.i.l.bf16 %v4433_v40 }
  0xf6   : > { %v1276_v61 = vsel %vm613_vm6, %v4434_v19, %v4435_v16 }
  0xfb   : > { %v1077_v8 = vpop.permute.xlu0 %1076 }
  0xff   : > { %v4428_v39 = vpop.permute.xlu0 %4427 }
 0x100   : > { %v4430_v43 = vunpack.i.h.bf16 %v4428_v39  ;;  %v4429_v46 = vunpack.i.l.bf16 %v4428_v39 }
 0x102   : > { %v1211_v49 = vsel %vm479_vm0, %v4430_v43, %v4424_v35 }
 0x103   : > { %v4438_v41 = vpop.permute.xlu0 %4437 }
 0x104   : > { %v4439_v59 = vunpack.i.l.bf16 %v4438_v41  ;;  %v4440_v62 = vunpack.i.h.bf16 %v4438_v41 }
 0x1c7   : > { %v1168_v9 = vpop.f32.mrb[0].mxu0 }
 0x1c8   : > { %v4180_v10 = vadd.f32 %v1168_v9, %v1077_v8  ;;  %v1170_v11 = vpop.f32.mrb[1].mxu0  ;;  %v1275_v9 = vsel %vm613_vm6, %v4440_v62, %v4434_v19 }
 0x1c9   : > { %v4181_v12 = vadd.f32 %v1170_v11, %v1077_v8  ;;  %v1172_v14 = vpop.f32.mrb[2].mxu0 }
 0x1ca   : > { %vm1175_vm2 = vcmp.ge.f32.partialorder %v4180_v10, 0.0  ;;  %v1177_v15 = vmul.f32 0.1, %v4180_v10  ;;  %v1173_v20 = vpop.f32.mrb[3].mxu0 }
 0x1cb   : > { %vm1176_vm7 = vcmp.ge.f32.partialorder %v4181_v12, 0.0  ;;  %v1178_v21 = vmul.f32 0.1, %v4181_v12 }
 0x1cc   : > { %v1179_v22 = vsel %vm1175_vm2, %v4180_v10, %v1177_v15 }
 0x1cd   : > { %v1180_v23 = vsel %vm1176_vm7, %v4181_v12, %v1178_v21  ;;  %v5503_v30 = vpack.c.bf16 %v5132_v0, %v1179_v22  ;;  %v4476_v32 = vpack.i.bf16 %v5132_v0, %v1179_v22 }
 0x1ce   : > { %v4446_v25 = vpack.i.bf16 %v1180_v23, %v1179_v22  ;;  %v5497_v27 = vpack.c.bf16 %v5132_v0, %v1180_v23  ;;  %v4466_v31 = vpack.i.bf16 %v5132_v0, %v1180_v23 }
 0x1d0   : > { %4447 = vrot.lane.b32.xlu0 %v4446_v25, %s6697_s12  ;;  %4442 = vrot.lane.b32.xlu1 %v4446_v25, %s5133_s26 }
 0x1d4   : > { %1241 = vrot.lane.b32.xlu0 %v5497_v27, %s6699_s11  ;;  %4452 = vrot.lane.b32.xlu1 %v4446_v25, %s6695_s18 }
 0x1d8   : > { %4457 = vrot.lane.b32.xlu0 %v5132_v0, %s6695_s18  ;;  %1239 = vrot.lane.b32.xlu1 %v5503_v30, %s6699_s11 }
 0x1dc   : > { %4467 = vrot.lane.b32.xlu0 %v4466_v31, %s6693_s20  ;;  %4462 = vrot.lane.b32.xlu1 %v5132_v0, %s6695_s18 }
 0x1e0   : > { %4477 = vrot.lane.b32.xlu0 %v4476_v32, %s6693_s20  ;;  %4472 = vrot.lane.b32.xlu1 %v5132_v0, %s6693_s20  ;;  %s6710_s20 = smov 127  }
 0x1e4   : > { %4487 = vrot.lane.b32.xlu0 %v5132_v0, %s6691_s21  ;;  %4482 = vrot.lane.b32.xlu1 %v4466_v31, %s6691_s21 }
 0x1e8   : > { %1429 = vrot.lane.b32.xlu0 %v5503_v30, %s5140_s27  ;;  %4492 = vrot.lane.b32.xlu1 %v4476_v32, %s6691_s21  ;;  %s6711_s21 = smov 113  }
 0x1ec   : > { %1431 = vrot.lane.b32.xlu0 %v5497_v27, %s5140_s27  ;;  %1433 = vrot.lane.b32.xlu1 %v5135_v18, %s5140_s27 }
 0x1f0   : > { %4502 = vrot.lane.b32.xlu0 %v5132_v0, %s5141_s30  ;;  %4497 = vrot.lane.b32.xlu1 %v4466_v31, %s5141_s30 }
 0x1f4   : > { %1503 = vperm.xlu0 %4420, %v1500_v33   ;;  %4507 = vrot.lane.b32.xlu1 %v4476_v32, %s5141_s30 }
 0x1f8   : > { %4512 = vrot.lane.b32.xlu0 %v5132_v0, %s5133_s26  ;;  %4517 = vrot.lane.b32.xlu1 %v5132_v0, %s5133_s26 }
 0x1fc   : > { %1619 = vrot.lane.b32.xlu0 %v5135_v18, %s6699_s11  ;;  %4527 = vrot.lane.b32.xlu1 %v5132_v0, %s6697_s12 }
 0x200   : > { %4522 = vrot.lane.b32.xlu0 %v5132_v0, %s6697_s12 }
 0x242   : > { %v4448_v44 = vpop.permute.xlu0 %4447  ;;  %v4443_v45 = vpop.permute.xlu1 %4442 }
 0x243   : > { %v4445_v47 = vunpack.i.h.bf16 %v4443_v45  ;;  %v4444_v48 = vunpack.i.l.bf16 %v4443_v45  ;;  %v4450_v50 = vunpack.i.h.bf16 %v4448_v44  ;;  %v4449_v52 = vunpack.i.l.bf16 %v4448_v44 }
 0x245   : > { %v1210_v53 = vsel %vm479_vm0, %v4444_v48, %v4445_v47  ;;  %v1209_v54 = vsel %vm479_vm0, %v4429_v46, %v4444_v48  ;;  %v1274_v60 = vsel %vm613_vm6, %v4449_v52, %v4450_v50  ;;  %v1273_v6 = vsel %vm613_vm6, %v4439_v59, %v4449_v52 }
 0x246   : > { %v1242_v56 = vpop.permute.xlu0 %1241  ;;  %v4453_v57 = vpop.permute.xlu1 %4452  ;;  %v4055_v58 = vpack.c.bf16 %v1212_v13, %v1210_v53  ;;  %v4058_v24 = vpack.c.bf16 %v1211_v49, %v1209_v54  ;;  %v4061_v7 = vpack.c.bf16 %v1276_v61, %v1274_v60  ;;  %v4064_v20 = vpack.c.bf16 %v1275_v9, %v1273_v6 }
 0x247   : > { %v4455_v63 = vunpack.i.h.bf16 %v4453_v57  ;;  %v4454_v1 = vunpack.i.l.bf16 %v4453_v57 }
 0x248   : > { %4056 = vmatprep.subr.msk.bf16.mxu1 %vm5359_vm3, %v4055_v58 }
 0x249   : > { %4059 = vmatpush1.bf16.msk.msra.mxu1 %vm5364_vm4, %v4058_v24  ;;  %v1314_v12 = vsel %vm694_vm11, %v4454_v1, %v4455_v63 }
 0x24a   : > { %v4458_v26 = vpop.permute.xlu0 %4457  ;;  %v1240_v17 = vpop.permute.xlu1 %1239 }
 0x24b   : > { %v4460_v2 = vunpack.i.h.bf16 %v4458_v26  ;;  %v4459_v3 = vunpack.i.l.bf16 %v4458_v26  ;;  %v1244_v4 = vsel %vm548_vm5, %v1240_v17, %v1242_v56  ;;  %v1243_v5 = vsel %vm548_vm5, %v1238_v38, %v1240_v17 }
 0x24c   : > { %1518 = vmatprep.subr.bf16.mxu1 %v1244_v4 }
 0x24d   : > { %v1316_v8 = vsel %vm694_vm11, %v4459_v3, %v4460_v2  ;;  %1519 = vmatpush1.bf16.msra.mxu1 %v1243_v5 }
 0x24e   : > { %v4468_v10 = vpop.permute.xlu0 %4467  ;;  %4062 = vmatprep.subr.msk.bf16.mxu1 %vm5386_vm8, %v4061_v7  ;;  %v4463_v11 = vpop.permute.xlu1 %4462  ;;  %v4067_v21 = vpack.c.bf16 %v1316_v8, %v1314_v12  ;;  %v3855_v12 = vcombine.low %v5530_v34, %v5530_v34 }
 0x24f   : > { %v4465_v14 = vunpack.i.h.bf16 %v4463_v11  ;;  %v4464_v15 = vunpack.i.l.bf16 %v4463_v11  ;;  %v4470_v25 = vunpack.i.h.bf16 %v4468_v10  ;;  %v4469_v31 = vunpack.i.l.bf16 %v4468_v10 }
 0x251   : > { %v1315_v22 = vsel %vm694_vm11, %v4465_v14, %v4459_v3  ;;  %v1313_v23 = vsel %vm694_vm11, %v4464_v15, %v4454_v1  ;;  %4065 = vmatpush1.bf16.msk.msra.mxu1 %vm5396_vm10, %v4064_v20  ;;  %v1362_v29 = vsel %vm791_vm12, %v4469_v31, %v4470_v25 }
 0x252   : > { %v4478_v32 = vpop.permute.xlu0 %4477  ;;  %4068 = vmatprep.subr.msk.bf16.mxu1 %vm5359_vm3, %v4067_v21  ;;  %v4473_v36 = vpop.permute.xlu1 %4472  ;;  %v4070_v33 = vpack.c.bf16 %v1315_v22, %v1313_v23 }
 0x253   : > { %v4475_v37 = vunpack.i.h.bf16 %v4473_v36  ;;  %v4474_v38 = vunpack.i.l.bf16 %v4473_v36  ;;  %v4480_v39 = vunpack.i.h.bf16 %v4478_v32  ;;  %v4479_v40 = vunpack.i.l.bf16 %v4478_v32 }
 0x255   : > { %v1364_v41 = vsel %vm791_vm12, %v4474_v38, %v4475_v37  ;;  %4071 = vmatpush1.bf16.msk.msra.mxu1 %vm5364_vm4, %v4070_v33  ;;  %v1361_v48 = vsel %vm791_vm12, %v4479_v40, %v4469_v31  ;;  %v1363_v13 = vsel %vm791_vm12, %v4480_v39, %v4474_v38 }
 0x256   : > { %v4488_v35 = vpop.permute.xlu0 %4487  ;;  %v4483_v43 = vpop.permute.xlu1 %4482  ;;  %1524 = vmatprep.subr.bf16.mxu1 %v5497_v27  ;;  %v4073_v49 = vpack.c.bf16 %v1364_v41, %v1362_v29  ;;  %v4076_v19 = vpack.c.bf16 %v1363_v13, %v1361_v48  ;;  %v5643_v41 = vld [vmem:[%s6685_s5] sm:$0xff] }
 0x257   : > { %v4490_v44 = vunpack.i.h.bf16 %v4488_v35  ;;  %v4489_v45 = vunpack.i.l.bf16 %v4488_v35  ;;  %v4485_v46 = vunpack.i.h.bf16 %v4483_v43  ;;  %v4484_v47 = vunpack.i.l.bf16 %v4483_v43  ;;  %v1882_v35 = vld [vmem:[%s6686_s6] sm:$0xff] }
 0x258   : > { %v3859_v29 = vcombine.high %v5643_v41, %v5643_v41 }
 0x259   : > { %v1404_v50 = vsel %vm872_vm13, %v4489_v45, %v4490_v44  ;;  %v1402_v52 = vsel %vm872_vm13, %v4484_v47, %v4485_v46  ;;  %1525 = vmatpush1.bf16.msra.mxu1 %v5503_v30 }
 0x25a   : > { %v1430_v53 = vpop.permute.xlu0 %1429  ;;  %v4493_v54 = vpop.permute.xlu1 %4492  ;;  %4074 = vmatprep.subr.msk.bf16.mxu1 %vm5386_vm8, %v4073_v49  ;;  %v4079_v56 = vpack.c.bf16 %v1404_v50, %v1402_v52 }
 0x25b   : > { %v4495_v27 = vunpack.i.h.bf16 %v4493_v54  ;;  %v4494_v16 = vunpack.i.l.bf16 %v4493_v54 }
 0x25d   : > { %v1403_v57 = vsel %vm872_vm13, %v4495_v27, %v4489_v45  ;;  %v1401_v58 = vsel %vm872_vm13, %v4494_v16, %v4484_v47  ;;  %4077 = vmatpush1.bf16.msk.msra.mxu1 %vm5396_vm10, %v4076_v19 }
 0x25e   : > { %v1432_v24 = vpop.permute.xlu0 %1431  ;;  %v1434_v59 = vpop.permute.xlu1 %1433  ;;  %4080 = vmatprep.subr.msk.bf16.mxu1 %vm5359_vm3, %v4079_v56  ;;  %v4082_v30 = vpack.c.bf16 %v1403_v57, %v1401_v58 }
 0x25f   : > { %v1436_v60 = vsel %vm941_vm14, %v1432_v24, %v1434_v59  ;;  %v1435_v2 = vsel %vm941_vm14, %v1430_v53, %v1432_v24 }
 0x261   : > { %4083 = vmatpush1.bf16.msk.msra.mxu1 %vm5364_vm4, %v4082_v30 }
 0x262   : > { %v4503_v61 = vpop.permute.xlu0 %4502  ;;  %v4498_v62 = vpop.permute.xlu1 %4497  ;;  %1530 = vmatprep.subr.bf16.mxu1 %v1436_v60 }
 0x263   : > { %v4505_v63 = vunpack.i.h.bf16 %v4503_v61  ;;  %v4504_v1 = vunpack.i.l.bf16 %v4503_v61  ;;  %v4500_v26 = vunpack.i.h.bf16 %v4498_v62  ;;  %v4499_v17 = vunpack.i.l.bf16 %v4498_v62 }
 0x265   : > { %v1468_v3 = vsel %vm1002_vm15, %v4504_v1, %v4505_v63  ;;  %v1466_v4 = vsel %vm1002_vm15, %v4499_v17, %v4500_v26  ;;  %1531 = vmatpush1.bf16.msra.mxu1 %v1435_v2 }
 0x266   : > { %v4508_v5 = vpop.permute.xlu1 %4507  ;;  %v4085_v6 = vpack.c.bf16 %v1468_v3, %v1466_v4 }
 0x267   : > { %v4510_v7 = vunpack.i.h.bf16 %v4508_v5  ;;  %v4509_v8 = vunpack.i.l.bf16 %v4508_v5 }
 0x268   : > { %4086 = vmatprep.subr.msk.bf16.mxu1 %vm5386_vm8, %v4085_v6 }
 0x269   : > { %v1467_v9 = vsel %vm1002_vm15, %v4510_v7, %v4504_v1  ;;  %v1465_v10 = vsel %vm1002_vm15, %v4509_v8, %v4499_v17 }
 0x26a   : > { %v4088_v11 = vpack.c.bf16 %v1467_v9, %v1465_v10  ;;  %v4518_v45 = vpop.permute.xlu1 %4517 }
 0x26b   : > { %v4520_v49 = vunpack.i.h.bf16 %v4518_v45  ;;  %v4519_v53 = vunpack.i.l.bf16 %v4518_v45 }
 0x26c   : > { %4089 = vmatpush1.bf16.msk.msra.mxu1 %vm5396_vm10, %v4088_v11 }
 0x26e   : > { %v4528_v47 = vpop.permute.xlu1 %4527 }
 0x26f   : > { %1549 = vmatmul.mubr.bf16.vlgmr.msra.gmra.mrb[0].mxu1 %v3855_v12  ;;  %v4530_v26 = vunpack.i.h.bf16 %v4528_v47  ;;  %v4529_v17 = vunpack.i.l.bf16 %v4528_v47 }
 0x270   : > { %3860 = vmatprep.mubr.msk.bf16.mxu1 %vm548_vm5, %v3859_v29 }
 0x273   : > { %v1504_v14 = vpop.permute.xlu0 %1503 }
 0x277   : > { %v4513_v43 = vpop.permute.xlu0 %4512 }
 0x278   : > { %v4515_v48 = vunpack.i.h.bf16 %v4513_v43  ;;  %v4514_v13 = vunpack.i.l.bf16 %v4513_v43 }
 0x27a   : > { %v1594_v16 = vsel %vm479_vm0, %v4514_v13, %v4515_v48  ;;  %v1593_v19 = vsel %vm479_vm0, %v4520_v49, %v4514_v13 }
 0x27b   : > { %v1620_v44 = vpop.permute.xlu0 %1619 }
 0x27f   : > { %v4523_v46 = vpop.permute.xlu0 %4522 }
 0x280   : > { %v4525_v60 = vunpack.i.h.bf16 %v4523_v46  ;;  %v4524_v63 = vunpack.i.l.bf16 %v4523_v46 }
 0x282   : > { %v1658_v4 = vsel %vm613_vm6, %v4524_v63, %v4525_v60 }
 0x342   : > { %v1550_v15 = vpop.f32.mrb[0].mxu1 }
 0x343   : > { %v1551_v20 = vadd.f32 %v1550_v15, %v1504_v14  ;;  %v1552_v21 = vpop.f32.mrb[1].mxu1 }
 0x344   : > { %v1553_v22 = vadd.f32 %v1552_v21, %v1504_v14  ;;  %v1554_v23 = vpop.f32.mrb[2].mxu1  ;;  %v1657_v14 = vsel %vm613_vm6, %v4530_v26, %v4524_v63 }
 0x345   : > { %vm1557_vm9 = vcmp.ge.f32.partialorder %v1551_v20, 0.0  ;;  %v1559_v34 = vmul.f32 0.1, %v1551_v20  ;;  %v1555_v25 = vpop.f32.mrb[3].mxu1 }
 0x346   : > { %vm1558_vm1 = vcmp.ge.f32.partialorder %v1553_v22, 0.0  ;;  %v1560_v31 = vmul.f32 0.1, %v1553_v22 }
 0x347   : > { %v1561_v32 = vsel %vm1557_vm9, %v1551_v20, %v1559_v34 }
 0x348   : > { %v1562_v36 = vsel %vm1558_vm1, %v1553_v22, %v1560_v31  ;;  %v5611_v37 = vpack.c.bf16 %v5132_v0, %v1561_v32  ;;  %v4566_v40 = vpack.i.bf16 %v5132_v0, %v1561_v32 }
 0x349   : > { %v4541_v33 = vpack.i.bf16 %v1562_v36, %v1561_v32  ;;  %v5617_v38 = vpack.c.bf16 %v5132_v0, %v1562_v36  ;;  %v4556_v39 = vpack.i.bf16 %v5132_v0, %v1562_v36 }
 0x34b   : > { %4542 = vrot.lane.b32.xlu0 %v4541_v33, %s6695_s18  ;;  %4532 = vrot.lane.b32.xlu1 %v4541_v33, %s5133_s26 }
 0x34f   : > { %4537 = vrot.lane.b32.xlu1 %v4541_v33, %s6697_s12  ;;  %1621 = vrot.lane.b32.xlu0 %v5611_v37, %s6699_s11  ;;  %s6712_s12 = smov 15  }
 0x353   : > { %1623 = vrot.lane.b32.xlu1 %v5617_v38, %s6699_s11  ;;  %4552 = vrot.lane.b32.xlu0 %v5132_v0, %s6695_s18 }
 0x357   : > { %4547 = vrot.lane.b32.xlu1 %v5132_v0, %s6695_s18  ;;  %4562 = vrot.lane.b32.xlu0 %v5132_v0, %s6710_s20  ;;  %s6713_s18 = smov 1  }
 0x35b   : > { %4557 = vrot.lane.b32.xlu1 %v4556_v39, %s6710_s20  ;;  %4572 = vrot.lane.b32.xlu0 %v4556_v39, %s6711_s21 }
 0x35f   : > { %4567 = vrot.lane.b32.xlu1 %v4566_v40, %s6710_s20  ;;  %4582 = vrot.lane.b32.xlu0 %v4566_v40, %s6711_s21 }
 0x363   : > { %4577 = vrot.lane.b32.xlu1 %v5132_v0, %s6711_s21  ;;  %1815 = vrot.lane.b32.xlu0 %v5135_v18, %s5140_s27 }
 0x367   : > { %1811 = vrot.lane.b32.xlu1 %v5611_v37, %s5140_s27  ;;  %4587 = vrot.lane.b32.xlu0 %v4556_v39, %s5141_s30 }
 0x36b   : > { %1813 = vrot.lane.b32.xlu1 %v5617_v38, %s5140_s27  ;;  %4597 = vrot.lane.b32.xlu0 %v4566_v40, %s5141_s30 }
 0x36f   : > { %4592 = vrot.lane.b32.xlu1 %v5132_v0, %s5141_s30  ;;  %4608 = vrot.lane.b32.xlu0 %v5132_v0, %s5133_s26 }
 0x373   : > { %1885 = vperm.xlu1 %4601, %v1882_v35   ;;  %4618 = vrot.lane.b32.xlu0 %v5132_v0, %s6712_s12 }
 0x377   : > { %4603 = vrot.lane.b32.xlu1 %v5132_v0, %s5133_s26 }
 0x37b   : > { %2000 = vrot.lane.b32.xlu1 %v5135_v18, %s6699_s11 }
 0x37f   : > { %4613 = vrot.lane.b32.xlu1 %v5132_v0, %s6712_s12 }
 0x3bd   : > { %v4543_v50 = vpop.permute.xlu0 %4542  ;;  %v4533_v52 = vpop.permute.xlu1 %4532 }
 0x3be   : > { %v4535_v54 = vunpack.i.h.bf16 %v4533_v52  ;;  %v4534_v27 = vunpack.i.l.bf16 %v4533_v52  ;;  %v4545_v5 = vunpack.i.h.bf16 %v4543_v50  ;;  %v4544_v6 = vunpack.i.l.bf16 %v4543_v50 }
 0x3c0   : > { %v1591_v56 = vsel %vm479_vm0, %v4519_v53, %v4534_v27  ;;  %v1592_v57 = vsel %vm479_vm0, %v4534_v27, %v4535_v54  ;;  %v1696_v34 = vsel %vm694_vm11, %v4544_v6, %v4545_v5 }
 0x3c1   : > { %v4094_v58 = vpack.c.bf16 %v1593_v19, %v1591_v56  ;;  %v4538_v24 = vpop.permute.xlu1 %4537  ;;  %v1622_v59 = vpop.permute.xlu0 %1621  ;;  %v4091_v30 = vpack.c.bf16 %v1594_v16, %v1592_v57 }
 0x3c2   : > { %v4540_v61 = vunpack.i.h.bf16 %v4538_v24  ;;  %v4539_v62 = vunpack.i.l.bf16 %v4538_v24  ;;  %v1625_v10 = vsel %vm548_vm5, %v1620_v44, %v1622_v59 }
 0x3c3   : > { %4092 = vmatprep.subr.msk.bf16.mxu1 %vm5359_vm3, %v4091_v30 }
 0x3c4   : > { %v1656_v1 = vsel %vm613_vm6, %v4539_v62, %v4540_v61  ;;  %4095 = vmatpush1.bf16.msk.msra.mxu1 %vm5364_vm4, %v4094_v58  ;;  %v1655_v8 = vsel %vm613_vm6, %v4529_v17, %v4539_v62 }
 0x3c5   : > { %v1624_v2 = vpop.permute.xlu1 %1623  ;;  %v4553_v3 = vpop.permute.xlu0 %4552  ;;  %v4097_v9 = vpack.c.bf16 %v1658_v4, %v1656_v1  ;;  %v4100_v21 = vpack.c.bf16 %v1657_v14, %v1655_v8 }
 0x3c6   : > { %v1626_v7 = vsel %vm548_vm5, %v1622_v59, %v1624_v2  ;;  %v4554_v11 = vunpack.i.l.bf16 %v4553_v3  ;;  %v4555_v12 = vunpack.i.h.bf16 %v4553_v3 }
 0x3c7   : > { %1899 = vmatprep.subr.bf16.mxu1 %v1626_v7 }
 0x3c8   : > { %1900 = vmatpush1.bf16.msra.mxu1 %v1625_v10  ;;  %v1695_v25 = vsel %vm694_vm11, %v4554_v11, %v4544_v6 }
 0x3c9   : > { %v4548_v15 = vpop.permute.xlu1 %4547  ;;  %4098 = vmatprep.subr.msk.bf16.mxu1 %vm5386_vm8, %v4097_v9  ;;  %v4563_v20 = vpop.permute.xlu0 %4562 }
 0x3ca   : > { %v4550_v22 = vunpack.i.h.bf16 %v4548_v15  ;;  %v4549_v23 = vunpack.i.l.bf16 %v4548_v15  ;;  %v4565_v36 = vunpack.i.h.bf16 %v4563_v20  ;;  %v4564_v33 = vunpack.i.l.bf16 %v4563_v20 }
 0x3cc   : > { %v1697_v31 = vsel %vm694_vm11, %v4555_v12, %v4549_v23  ;;  %v1698_v32 = vsel %vm694_vm11, %v4549_v23, %v4550_v22  ;;  %4101 = vmatpush1.bf16.msk.msra.mxu1 %vm5396_vm10, %v4100_v21  ;;  %v1746_v45 = vsel %vm791_vm12, %v4564_v33, %v4565_v36  ;;  %v3858_v22 = vcombine.low %v5643_v41, %v5643_v41 }
 0x3cd   : > { %v4103_v39 = vpack.c.bf16 %v1698_v32, %v1696_v34  ;;  %v4106_v40 = vpack.c.bf16 %v1697_v31, %v1695_v25  ;;  %v4558_v29 = vpop.permute.xlu1 %4557  ;;  %v4573_v35 = vpop.permute.xlu0 %4572 }
 0x3ce   : > { %v4560_v43 = vunpack.i.h.bf16 %v4558_v29  ;;  %v4559_v44 = vunpack.i.l.bf16 %v4558_v29  ;;  %v4575_v52 = vunpack.i.h.bf16 %v4573_v35  ;;  %v4574_v53 = vunpack.i.l.bf16 %v4573_v35 }
 0x3cf   : > { %4104 = vmatprep.subr.msk.bf16.mxu1 %vm5359_vm3, %v4103_v39 }
 0x3d0   : > { %v1744_v46 = vsel %vm791_vm12, %v4559_v44, %v4560_v43  ;;  %4107 = vmatpush1.bf16.msk.msra.mxu1 %vm5364_vm4, %v4106_v40  ;;  %v1784_v59 = vsel %vm872_vm13, %v4574_v53, %v4575_v52  ;;  %v2321_v52 = vld [vmem:[%s6688_s8 + $0x28] sm:$0xff] }
 0x3d1   : > { %v4568_v47 = vpop.permute.xlu1 %4567  ;;  %v4583_v48 = vpop.permute.xlu0 %4582  ;;  %1905 = vmatprep.subr.bf16.mxu1 %v5617_v38  ;;  %v4109_v50 = vpack.c.bf16 %v1746_v45, %v1744_v46 }
 0x3d2   : > { %v4570_v13 = vunpack.i.h.bf16 %v4568_v47  ;;  %v4569_v49 = vunpack.i.l.bf16 %v4568_v47  ;;  %v4584_v16 = vunpack.i.l.bf16 %v4583_v48  ;;  %v4585_v58 = vunpack.i.h.bf16 %v4583_v48  ;;  %v4699_v47 = vld [vmem:[%s6687_s7 + $0x4] ss:$8 sps:$4 sm:$0xff]  }
 0x3d3   : > { %v4701_v48 = vld [vmem:[%s6687_s7 + $0xe4] ss:$8 sps:$4 sm:$0xff]   ;;  %3915 = vmatprep.mubr.msk.bf16.mxu0 %vm548_vm5, %v4699_v47 }
 0x3d4   : > { %v1743_v54 = vsel %vm791_vm12, %v4569_v49, %v4559_v44  ;;  %v1745_v27 = vsel %vm791_vm12, %v4570_v13, %v4564_v33  ;;  %1906 = vmatpush1.bf16.msra.mxu1 %v5611_v37  ;;  %v1783_v30 = vsel %vm872_vm13, %v4584_v16, %v4574_v53  ;;  %v2316_v13 = vld [vmem:[%s6688_s8] sm:$0xff]  ;;  %v2319_v49 = vld [vmem:[%s6688_s8 + $0x18] sm:$0xff] }
 0x3d5   : > { %v4112_v19 = vpack.c.bf16 %v1745_v27, %v1743_v54  ;;  %v4578_v56 = vpop.permute.xlu1 %4577  ;;  %v1816_v57 = vpop.permute.xlu0 %1815  ;;  %4110 = vmatprep.subr.msk.bf16.mxu1 %vm5386_vm8, %v4109_v50  ;;  %v2318_v50 = vld [vmem:[%s6688_s8 + $0x10] sm:$0xff]  ;;  %v2323_v53 = vld [vmem:[%s6688_s8 + $0x38] sm:$0xff]  ;;  %v2325_v27 = vld [vmem:[%s6688_s8 + $0x48] sm:$0xff] }
 0x3d6   : > { %v4580_v38 = vunpack.i.h.bf16 %v4578_v56  ;;  %v4579_v24 = vunpack.i.l.bf16 %v4578_v56  ;;  %v2322_v54 = vld [vmem:[%s6688_s8 + $0x30] sm:$0xff]  ;;  %v2324_v16 = vld [vmem:[%s6688_s8 + $0x40] sm:$0xff] }
 0x3d7   : > { %v2326_v56 = vld [vmem:[%s6688_s8 + $0x50] sm:$0xff] }
 0x3d8   : > { %v1785_v60 = vsel %vm872_vm13, %v4585_v58, %v4579_v24  ;;  %v1786_v61 = vsel %vm872_vm13, %v4579_v24, %v4580_v38  ;;  %4113 = vmatpush1.bf16.msk.msra.mxu1 %vm5396_vm10, %v4112_v19  ;;  %v2327_v19 = vld [vmem:[%s6688_s8 + $0x58] sm:$0xff]  ;;  %v2328_v58 = vld [vmem:[%s6688_s8 + $0x60] sm:$0xff]  ;;  %v2330_v24 = vld [vmem:[%s6688_s8 + $0x70] sm:$0xff] }
 0x3d9   : > { %v4115_v37 = vpack.c.bf16 %v1786_v61, %v1784_v59  ;;  %v4118_v62 = vpack.c.bf16 %v1785_v60, %v1783_v30  ;;  %v1812_v63 = vpop.permute.xlu1 %1811  ;;  %v4588_v1 = vpop.permute.xlu0 %4587  ;;  %v2331_v38 = vld [vmem:[%s6688_s8 + $0x78] sm:$0xff]  ;;  %v2333_v59 = vld [vmem:[%s6688_s8 + $0x88] sm:$0xff]  ;;  %v2332_v30 = vld [vmem:[%s6688_s8 + $0x80] sm:$0xff] }
 0x3da   : > { %v4590_v4 = vunpack.i.h.bf16 %v4588_v1  ;;  %v4589_v5 = vunpack.i.l.bf16 %v4588_v1  ;;  %v2335_v60 = vld [vmem:[%s6688_s8 + $0x98] sm:$0xff]  ;;  %v2334_v61 = vld [vmem:[%s6688_s8 + $0x90] sm:$0xff] }
 0x3db   : > { %4116 = vmatprep.subr.msk.bf16.mxu1 %vm5359_vm3, %v4115_v37  ;;  %v2337_v37 = vld [vmem:[%s6688_s8 + $0xa8] sm:$0xff]  ;;  %v2338_v1 = vld [vmem:[%s6688_s8 + $0xb0] sm:$0xff] }
 0x3dc   : > { %4119 = vmatpush1.bf16.msk.msra.mxu1 %vm5364_vm4, %v4118_v62  ;;  %v1848_v11 = vsel %vm1002_vm15, %v4589_v5, %v4590_v4  ;;  %v2336_v62 = vld [vmem:[%s6688_s8 + $0xa0] sm:$0xff]  ;;  %v2345_v4 = vld [vmem:[%s6688_s8 + $0xe8] sm:$0xff] }
 0x3dd   : > { %v1814_v26 = vpop.permute.xlu1 %1813  ;;  %v4598_v17 = vpop.permute.xlu0 %4597 }
 0x3de   : > { %v1817_v2 = vsel %vm941_vm14, %v1812_v63, %v1814_v26  ;;  %v1818_v3 = vsel %vm941_vm14, %v1814_v26, %v1816_v57  ;;  %v4599_v6 = vunpack.i.l.bf16 %v4598_v17  ;;  %v4600_v8 = vunpack.i.h.bf16 %v4598_v17  ;;  %v2329_v57 = vld [vmem:[%s6688_s8 + $0x68] sm:$0xff]  ;;  %v2339_v63 = vld [vmem:[%s6688_s8 + $0xb8] sm:$0xff]  ;;  %v2340_v17 = vld [vmem:[%s6688_s8 + $0xc0] sm:$0xff] }
 0x3df   : > { %1911 = vmatprep.subr.bf16.mxu1 %v1818_v3  ;;  %v2341_v26 = vld [vmem:[%s6688_s8 + $0xc8] sm:$0xff]  ;;  %v2342_v3 = vld [vmem:[%s6688_s8 + $0xd0] sm:$0xff] }
 0x3e0   : > { %1912 = vmatpush1.bf16.msra.mxu1 %v1817_v2  ;;  %v1847_v12 = vsel %vm1002_vm15, %v4599_v6, %v4589_v5  ;;  %v2343_v2 = vld [vmem:[%s6688_s8 + $0xd8] sm:$0xff]  ;;  %v2344_v5 = vld [vmem:[%s6688_s8 + $0xe0] sm:$0xff] }
 0x3e1   : > { %v4593_v7 = vpop.permute.xlu1 %4592  ;;  %v2352_v6 = vld [vmem:[%s6688_s8 + $0x120] sm:$0xff] }
 0x3e2   : > { %v4595_v9 = vunpack.i.h.bf16 %v4593_v7  ;;  %v4594_v10 = vunpack.i.l.bf16 %v4593_v7 }
 0x3e4   : > { %v1849_v14 = vsel %vm1002_vm15, %v4600_v8, %v4594_v10  ;;  %v1850_v15 = vsel %vm1002_vm15, %v4594_v10, %v4595_v9  ;;  %v2346_v8 = vld [vmem:[%s6688_s8 + $0xf0] sm:$0xff]  ;;  %v2353_v10 = vld [vmem:[%s6688_s8 + $0x128] sm:$0xff] }
 0x3e5   : > { %v4121_v20 = vpack.c.bf16 %v1850_v15, %v1848_v11  ;;  %v4124_v21 = vpack.c.bf16 %v1849_v14, %v1847_v12  ;;  %v2354_v9 = vld [vmem:[%s6688_s8 + $0x130] sm:$0xff]  ;;  %v2356_v11 = vld [vmem:[%s6688_s8 + $0x140] sm:$0xff]  ;;  %v4609_v14 = vpop.permute.xlu0 %4608  ;;  %v2355_v15 = vld [vmem:[%s6688_s8 + $0x138] sm:$0xff] }
 0x3e7   : > { %4122 = vmatprep.subr.msk.bf16.mxu1 %vm5386_vm8, %v4121_v20  ;;  %v2358_v20 = vld [vmem:[%s6688_s8 + $0x150] sm:$0xff] }
 0x3e8   : > { %4125 = vmatpush1.bf16.msk.msra.mxu1 %vm5396_vm10, %v4124_v21 }
 0x3eb   : > { %1930 = vmatmul.mubr.bf16.vlgmr.msra.gmra.mrb[4].mxu1 %v3858_v22  ;;  %v5880_v22 = vpop.permute.xlu0 %4618 }
 0x3ec   : > { %3929 = vmatprep.mubr.msk.bf16.mxu1 %vm548_vm5, %v4701_v48 }
 0x3f2   : > { %v1886_v23 = vpop.permute.xlu1 %1885 }
 0x3f6   : > { %v4604_v7 = vpop.permute.xlu1 %4603 }
 0x3fa   : > { %v2001_v12 = vpop.permute.xlu1 %2000 }
 0x3fe   : > { %v5878_v21 = vpop.permute.xlu1 %4613 }
 0x4be   : > { %v1931_v34 = vpop.f32.mrb[4].mxu1 }
 0x4bf   : > { %v1932_v25 = vadd.f32 %v1931_v34, %v1886_v23  ;;  %v1933_v31 = vpop.f32.mrb[5].mxu1  ;;  %v2360_v34 = vld [vmem:[%s6688_s8 + $0x160] sm:$0xff] }
 0x4c0   : > { %v1934_v32 = vadd.f32 %v1933_v31, %v1886_v23  ;;  %v1935_v36 = vpop.f32.mrb[6].mxu1  ;;  %v2357_v23 = vld [vmem:[%s6688_s8 + $0x148] sm:$0xff]  ;;  %v4605_v31 = vunpack.i.l.bf16 %v4604_v7 }
 0x4c1   : > { %vm1938_vm2 = vcmp.ge.f32.partialorder %v1932_v25, 0.0  ;;  %v1940_v41 = vmul.f32 0.1, %v1932_v25  ;;  %v1936_v33 = vpop.f32.mrb[7].mxu1  ;;  %v2359_v36 = vld [vmem:[%s6688_s8 + $0x158] sm:$0xff] }
 0x4c2   : > { %vm1939_vm7 = vcmp.ge.f32.partialorder %v1934_v32, 0.0  ;;  %v1941_v39 = vmul.f32 0.1, %v1934_v32 }
 0x4c3   : > { %v1942_v40 = vsel %vm1938_vm2, %v1932_v25, %v1940_v41  ;;  %v4606_v25 = vunpack.i.h.bf16 %v4604_v7  ;;  %v2362_v41 = vld [vmem:[%s6688_s8 + $0x170] sm:$0xff] }
 0x4c4   : > { %v1943_v29 = vsel %vm1939_vm7, %v1934_v32, %v1941_v39  ;;  %v5725_v43 = vpack.c.bf16 %v5132_v0, %v1942_v40  ;;  %v4657_v46 = vpack.i.bf16 %v5132_v0, %v1942_v40  ;;  %v4611_v32 = vunpack.i.h.bf16 %v4609_v14 }
 0x4c5   : > { %v4632_v35 = vpack.i.bf16 %v1943_v29, %v1942_v40  ;;  %v5731_v44 = vpack.c.bf16 %v5132_v0, %v1943_v29  ;;  %v4647_v45 = vpack.i.bf16 %v5132_v0, %v1943_v29  ;;  %v4610_v40 = vunpack.i.l.bf16 %v4609_v14 }
 0x4c7   : > { %4633 = vrot.lane.b32.xlu1 %v4632_v35, %s6713_s18  ;;  %4623 = vrot.lane.b32.xlu0 %v4632_v35, %s5133_s26  ;;  %s5143_s26 = smov [#allocation4]  }
 0x4cb   : > { %4628 = vrot.lane.b32.xlu0 %v4632_v35, %s6712_s12  ;;  %2002 = vrot.lane.b32.xlu1 %v5725_v43, %s6699_s11 }
 0x4cf   : > { %2004 = vrot.lane.b32.xlu0 %v5731_v44, %s6699_s11  ;;  %4643 = vrot.lane.b32.xlu1 %v5132_v0, %s6713_s18 }
 0x4d3   : > { %4638 = vrot.lane.b32.xlu0 %v5132_v0, %s6713_s18  ;;  %4653 = vrot.lane.b32.xlu1 %v5132_v0, %s6710_s20  ;;  %s4187_s18 = smul.u32 576, %s5250_s25 }
 0x4d5   : > { %s6301_s28 = scalar_lea.vmem %s6689_s9, %s4187_s18 }
 0x4d7   : > { %4648 = vrot.lane.b32.xlu0 %v4647_v45, %s6710_s20  ;;  %4663 = vrot.lane.b32.xlu1 %v4647_v45, %s6711_s21 }
 0x4db   : > { %4658 = vrot.lane.b32.xlu0 %v4657_v46, %s6710_s20  ;;  %4673 = vrot.lane.b32.xlu1 %v4657_v46, %s6711_s21  ;;  %s4188_s20 = smul.u32 4608, %s5221_s17  ;;  %s6638_s17 = scalar_lea.sflag [#allocation5], %s358_s29 }
 0x4dd   : > { %s6631_s18 = scalar_lea.hbm %s6690_s10, %s4188_s20 }
 0x4df   : > { %4668 = vrot.lane.b32.xlu0 %v5132_v0, %s6711_s21  ;;  %2196 = vrot.lane.b32.xlu1 %v5135_v18, %s5140_s27  ;;  %v2317_v18 = vld [vmem:[%s6688_s8 + $0x8] sm:$0xff] }
 0x4e3   : > { %2192 = vrot.lane.b32.xlu0 %v5725_v43, %s5140_s27  ;;  %4678 = vrot.lane.b32.xlu1 %v4647_v45, %s5141_s30  ;;  %v1975_v45 = vsel %vm479_vm0, %v4605_v31, %v4606_v25  ;;  %v2367_v25 = vld [vmem:[%s6688_s8 + $0x198] sm:$0xff] }
 0x4e7   : > { %2194 = vrot.lane.b32.xlu0 %v5731_v44, %s5140_s27  ;;  %4688 = vrot.lane.b32.xlu1 %v4657_v46, %s5141_s30  ;;  %v1974_v46 = vsel %vm479_vm0, %v4611_v32, %v4605_v31  ;;  %v2347_v31 = vld [vmem:[%s6688_s8 + $0xf8] sm:$0xff]  ;;  %s6370_s27 = smul.u32 288, %s358_s29 }
 0x4e9   : > { %s6384_s12 = scalar_lea.vmem [#allocation4], %s6370_s27 }
 0x4ea   : > { %s3757_s21 = sshll.u32 %s6384_s12, 4  ;;  %s6633_s21 = int_to_ptr.vmem [resolvable:$true] %s3757_s21 }
 0x4eb   : > { %4683 = vrot.lane.b32.xlu0 %v5132_v0, %s5141_s30  ;;  %2377 = vperm.xlu1 %4601, %v2317_v18   ;;  %v2320_v0 = vld [vmem:[%s6688_s8 + $0x20] sm:$0xff]  ;;  %s5068_s25 = scalar_lea.vmem %s6633_s21, 4608 }
 0x4ec   : > { %p5069_p11 = scmp.ne.s32.totalorder %s6633_s21, %s5068_s25 }
 0x4ee   : > { %p5070_p12 = pnand %p5069_p11, %p5238_p5 }
 0x4ef   : > { %2372 = vperm.xlu0 %4420, %v2316_v13   ;;  %2387 = vperm.xlu1 %4601, %v2319_v49  }
 0x4f0   : > { %p5071_p13 = pneg %p5070_p12 }
 0x4f3   : > { %2382 = vperm.xlu0 %4420, %v2318_v50   ;;  %2397 = vperm.xlu1 %4601, %v2321_v52   ;;  %v2361_v52 = vld [vmem:[%s6688_s8 + $0x168] sm:$0xff] }
 0x4f7   : > { %2392 = vperm.xlu0 %4420, %v2320_v0   ;;  %2407 = vperm.xlu1 %4601, %v2323_v53   ;;  %v2364_v0 = vld [vmem:[%s6688_s8 + $0x180] sm:$0xff] }
 0x4fb   : > { %2402 = vperm.xlu0 %4420, %v2322_v54   ;;  %2417 = vperm.xlu1 %4601, %v2325_v27   ;;  %v4616_v27 = vunpack.i.h.bf16 %v5878_v21 }
 0x4ff   : > { %2412 = vperm.xlu0 %4420, %v2324_v16   ;;  %2427 = vperm.xlu1 %4601, %v2327_v19   ;;  %v4615_v16 = vunpack.i.l.bf16 %v5878_v21 }
 0x503   : > { %2422 = vperm.xlu0 %4420, %v2326_v56   ;;  %2437 = vperm.xlu1 %4601, %v2329_v57  }
 0x507   : > { %2432 = vperm.xlu0 %4420, %v2328_v58   ;;  %2447 = vperm.xlu1 %4601, %v2331_v38   ;;  %v2363_v58 = vld [vmem:[%s6688_s8 + $0x178] sm:$0xff]  ;;  %v2366_v38 = vld [vmem:[%s6688_s8 + $0x190] sm:$0xff] }
 0x50b   : > { %2442 = vperm.xlu0 %4420, %v2330_v24   ;;  %2457 = vperm.xlu1 %4601, %v2333_v59   ;;  %v4621_v24 = vunpack.i.h.bf16 %v5880_v22  ;;  %v4620_v59 = vunpack.i.l.bf16 %v5880_v22 }
 0x50f   : > { %2452 = vperm.xlu0 %4420, %v2332_v30   ;;  %2467 = vperm.xlu1 %4601, %v2335_v60   ;;  %v2039_v60 = vsel %vm613_vm6, %v4615_v16, %v4616_v27 }
 0x513   : > { %2462 = vperm.xlu0 %4420, %v2334_v61   ;;  %2477 = vperm.xlu1 %4601, %v2337_v37  }
 0x517   : > { %2472 = vperm.xlu0 %4420, %v2336_v62   ;;  %2487 = vperm.xlu1 %4601, %v2339_v63  }
 0x51b   : > { %2482 = vperm.xlu0 %4420, %v2338_v1   ;;  %2497 = vperm.xlu1 %4601, %v2341_v26  }
 0x51f   : > { %2492 = vperm.xlu0 %4420, %v2340_v17   ;;  %2507 = vperm.xlu1 %4601, %v2343_v2  }
 0x523   : > { %2502 = vperm.xlu0 %4420, %v2342_v3   ;;  %2517 = vperm.xlu1 %4601, %v2345_v4   ;;  %v2365_v4 = vld [vmem:[%s6688_s8 + $0x188] sm:$0xff] }
 0x527   : > { %2512 = vperm.xlu0 %4420, %v2344_v5   ;;  %2552 = vperm.xlu1 %4601, %v2352_v6   ;;  %v2368_v5 = vld [vmem:[%s6688_s8 + $0x1a0] sm:$0xff]  ;;  %v2038_v6 = vsel %vm613_vm6, %v4621_v24, %v4615_v16 }
 0x52b   : > { %2522 = vperm.xlu0 %4420, %v2346_v8   ;;  %2562 = vperm.xlu1 %4601, %v2354_v9  }
 0x52f   : > { %2557 = vperm.xlu0 %4420, %v2353_v10   ;;  %2572 = vperm.xlu1 %4601, %v2356_v11  }
 0x533   : > { %2567 = vperm.xlu0 %4420, %v2355_v15   ;;  %2582 = vperm.xlu1 %4601, %v2358_v20  }
 0x537   : > { %2577 = vperm.xlu0 %4420, %v2357_v23   ;;  %2592 = vperm.xlu1 %4601, %v2360_v34  }
 0x539   : > { %v4634_v33 = vpop.permute.xlu1 %4633  ;;  %v4624_v39 = vpop.permute.xlu0 %4623 }
 0x53a   : > { %v4626_v29 = vunpack.i.h.bf16 %v4624_v39  ;;  %v4625_v35 = vunpack.i.l.bf16 %v4624_v39  ;;  %v4636_v61 = vunpack.i.h.bf16 %v4634_v33  ;;  %v4635_v37 = vunpack.i.l.bf16 %v4634_v33 }
 0x53b   : > { %2587 = vperm.xlu0 %4420, %v2359_v36   ;;  %2602 = vperm.xlu1 %4601, %v2362_v41  }
 0x53c   : > { %v1972_v47 = vsel %vm479_vm0, %v4610_v40, %v4625_v35  ;;  %v1973_v48 = vsel %vm479_vm0, %v4625_v35, %v4626_v29  ;;  %v2077_v9 = vsel %vm694_vm11, %v4635_v37, %v4636_v61  ;;  %v2369_v29 = vld [vmem:[%s6688_s8 + $0x1a8] sm:$0xff] }
 0x53d   : > { %v4127_v18 = vpack.c.bf16 %v1975_v45, %v1973_v48  ;;  %v4130_v13 = vpack.c.bf16 %v1974_v46, %v1972_v47  ;;  %v4629_v49 = vpop.permute.xlu0 %4628  ;;  %v2003_v50 = vpop.permute.xlu1 %2002  ;;  %v2349_v35 = vld [vmem:[%s6688_s8 + $0x108] sm:$0xff] }
 0x53e   : > { %v4631_v53 = vunpack.i.h.bf16 %v4629_v49  ;;  %v4630_v54 = vunpack.i.l.bf16 %v4629_v49  ;;  %v2006_v62 = vsel %vm548_vm5, %v2001_v12, %v2003_v50 }
 0x53f   : > { %4128 = vmatprep.subr.msk.bf16.mxu0 %vm5359_vm3, %v4127_v18  ;;  %4162 = vmatprep.subr.msk.bf16.mxu1 %vm5359_vm3, %v4127_v18 }
 0x540   : > { %2597 = vperm.xlu0 %4420, %v2361_v52   ;;  %2612 = vperm.xlu1 %4601, %v2364_v0   ;;  %v2037_v19 = vsel %vm613_vm6, %v4630_v54, %v4631_v53  ;;  %v2036_v63 = vsel %vm613_vm6, %v4620_v59, %v4630_v54  ;;  %v2351_v54 = vld [vmem:[%s6688_s8 + $0x118] sm:$0xff] }
 0x541   : > { %4131 = vmatpush1.bf16.msk.msra.mxu0 %vm5364_vm4, %v4130_v13  ;;  %4171 = vmatpush1.bf16.msk.msra.mxu1 %vm5364_vm4, %v4130_v13  ;;  %v2005_v56 = vpop.permute.xlu0 %2004  ;;  %v4644_v57 = vpop.permute.xlu1 %4643  ;;  %v4133_v1 = vpack.c.bf16 %v2039_v60, %v2037_v19  ;;  %v4136_v10 = vpack.c.bf16 %v2038_v6, %v2036_v63  ;;  %v2350_v60 = vld [vmem:[%s6688_s8 + $0x110] sm:$0xff] }
 0x542   : > { %v2007_v30 = vsel %vm548_vm5, %v2003_v50, %v2005_v56  ;;  %v4646_v26 = vunpack.i.h.bf16 %v4644_v57  ;;  %v4645_v17 = vunpack.i.l.bf16 %v4644_v57 }
 0x543   : > { %2966 = vmatprep.subr.bf16.mxu0 %v2007_v30  ;;  %4163 = vmatprep.subr.bf16.mxu1 %v2007_v30 }
 0x544   : > { %2607 = vperm.xlu0 %4420, %v2363_v58   ;;  %2622 = vperm.xlu1 %4601, %v2366_v38   ;;  %v2076_v11 = vsel %vm694_vm11, %v4645_v17, %v4635_v37 }
 0x545   : > { %2967 = vmatpush1.bf16.msra.mxu0 %v2006_v62  ;;  %4172 = vmatpush1.bf16.msra.mxu1 %v2006_v62  ;;  %v4639_v2 = vpop.permute.xlu0 %4638  ;;  %v4654_v3 = vpop.permute.xlu1 %4653 }
 0x546   : > { %v4641_v7 = vunpack.i.h.bf16 %v4639_v2  ;;  %v4640_v8 = vunpack.i.l.bf16 %v4639_v2  ;;  %4134 = vmatprep.subr.msk.bf16.mxu0 %vm5386_vm8, %v4133_v1  ;;  %4164 = vmatprep.subr.msk.bf16.mxu1 %vm5386_vm8, %v4133_v1  ;;  %v4656_v21 = vunpack.i.h.bf16 %v4654_v3  ;;  %v4655_v22 = vunpack.i.l.bf16 %v4654_v3 }
 0x548   : > { %v2078_v12 = vsel %vm694_vm11, %v4646_v26, %v4640_v8  ;;  %v2079_v14 = vsel %vm694_vm11, %v4640_v8, %v4641_v7  ;;  %2617 = vperm.xlu0 %4420, %v2365_v4   ;;  %2632 = vperm.xlu1 %4601, %v2368_v5   ;;  %v2127_v41 = vsel %vm791_vm12, %v4655_v22, %v4656_v21  ;;  %v4715_v21 = vld [vmem:[%s6687_s7 + $0x20] ss:$8 sps:$4 sm:$0xff]  }
 0x549   : > { %v4139_v15 = vpack.c.bf16 %v2079_v14, %v2077_v9  ;;  %v4142_v20 = vpack.c.bf16 %v2078_v12, %v2076_v11  ;;  %4137 = vmatpush1.bf16.msk.msra.mxu0 %vm5396_vm10, %v4136_v10  ;;  %4173 = vmatpush1.bf16.msk.msra.mxu1 %vm5396_vm10, %v4136_v10  ;;  %v4649_v23 = vpop.permute.xlu0 %4648  ;;  %v4664_v34 = vpop.permute.xlu1 %4663  ;;  %v4703_v10 = vld [vmem:[%s6687_s7] ss:$8 sps:$4 sm:$0xff]   ;;  %v4705_v12 = vld [vmem:[%s6687_s7 + $0x14] ss:$8 sps:$4 sm:$0xff]   ;;  %v4709_v14 = vld [vmem:[%s6687_s7 + $0x10] ss:$8 sps:$4 sm:$0xff]  }
 0x54a   : > { %v4651_v32 = vunpack.i.h.bf16 %v4649_v23  ;;  %v4650_v36 = vunpack.i.l.bf16 %v4649_v23  ;;  %v4666_v47 = vunpack.i.h.bf16 %v4664_v34  ;;  %v4665_v48 = vunpack.i.l.bf16 %v4664_v34  ;;  %v4704_v11 = vld [vmem:[%s6687_s7 + $0xe0] ss:$8 sps:$4 sm:$0xff]   ;;  %v4717_v23 = vld [vmem:[%s6687_s7 + $0x34] ss:$8 sps:$4 sm:$0xff]  }
 0x54b   : > { %4140 = vmatprep.subr.msk.bf16.mxu0 %vm5359_vm3, %v4139_v15  ;;  %4165 = vmatprep.subr.msk.bf16.mxu1 %vm5359_vm3, %v4139_v15  ;;  %v4711_v15 = vld [vmem:[%s6687_s7 + $0x24] ss:$8 sps:$4 sm:$0xff]   ;;  %v4719_v34 = vld [vmem:[%s6687_s7 + $0x114] ss:$8 sps:$4 sm:$0xff]  }
 0x54c   : > { %2627 = vperm.xlu0 %4420, %v2367_v25   ;;  %2527 = vperm.xlu1 %4601, %v2347_v31   ;;  %v2125_v33 = vsel %vm791_vm12, %v4650_v36, %v4651_v32  ;;  %v4721_v25 = vld [vmem:[%s6687_s7 + $0x30] ss:$8 sps:$4 sm:$0xff]   ;;  %v4723_v32 = vld [vmem:[%s6687_s7 + $0x44] ss:$8 sps:$4 sm:$0xff]  }
 0x54d   : > { %4143 = vmatpush1.bf16.msk.msra.mxu0 %vm5364_vm4, %v4142_v20  ;;  %4174 = vmatpush1.bf16.msk.msra.mxu1 %vm5364_vm4, %v4142_v20  ;;  %v4659_v39 = vpop.permute.xlu0 %4658  ;;  %v4674_v40 = vpop.permute.xlu1 %4673  ;;  %v4145_v18 = vpack.c.bf16 %v2127_v41, %v2125_v33  ;;  %v4713_v20 = vld [vmem:[%s6687_s7 + $0x104] ss:$8 sps:$4 sm:$0xff]   ;;  %v4722_v31 = vld [vmem:[%s6687_s7 + $0x110] ss:$8 sps:$4 sm:$0xff]   ;;  %v4727_v41 = vld [vmem:[%s6687_s7 + $0x40] ss:$8 sps:$4 sm:$0xff]  }
 0x54e   : > { %v4661_v45 = vunpack.i.h.bf16 %v4659_v39  ;;  %v4660_v46 = vunpack.i.l.bf16 %v4659_v39  ;;  %2972 = vmatprep.subr.bf16.mxu0 %v5731_v44  ;;  %4166 = vmatprep.subr.bf16.mxu1 %v5731_v44  ;;  %v4675_v50 = vunpack.i.l.bf16 %v4674_v40  ;;  %v2348_v44 = vld [vmem:[%s6688_s8 + $0x100] sm:$0xff]  ;;  %v4676_v27 = vunpack.i.h.bf16 %v4674_v40  ;;  %v4729_v39 = vld [vmem:[%s6687_s7 + $0x54] ss:$8 sps:$4 sm:$0xff]  }
 0x54f   : > { %v4728_v33 = vld [vmem:[%s6687_s7 + $0x120] ss:$8 sps:$4 sm:$0xff]   ;;  %v4731_v40 = vld [vmem:[%s6687_s7 + $0x134] ss:$8 sps:$4 sm:$0xff]  }
 0x550   : > { %v2124_v13 = vsel %vm791_vm12, %v4660_v46, %v4650_v36  ;;  %v2126_v49 = vsel %vm791_vm12, %v4661_v45, %v4655_v22  ;;  %2637 = vperm.xlu0 %4420, %v2369_v29   ;;  %2537 = vperm.xlu1 %4601, %v2349_v35   ;;  %v2164_v56 = vsel %vm872_vm13, %v4675_v50, %v4665_v48  ;;  %v4716_v22 = vld [vmem:[%s6687_s7 + $0x100] ss:$8 sps:$4 sm:$0xff]   ;;  %v4725_v36 = vld [vmem:[%s6687_s7 + $0x124] ss:$8 sps:$4 sm:$0xff]   ;;  %v4733_v29 = vld [vmem:[%s6687_s7 + $0x50] ss:$8 sps:$4 sm:$0xff]  }
 0x551   : > { %v4148_v52 = vpack.c.bf16 %v2126_v49, %v2124_v13  ;;  %2973 = vmatpush1.bf16.msra.mxu0 %v5725_v43  ;;  %4175 = vmatpush1.bf16.msra.mxu1 %v5725_v43  ;;  %v4669_v0 = vpop.permute.xlu0 %4668  ;;  %v2197_v53 = vpop.permute.xlu1 %2196  ;;  %v2165_v43 = vsel %vm872_vm13, %v4665_v48, %v4666_v47  ;;  %v4734_v35 = vld [vmem:[%s6687_s7 + $0x130] ss:$8 sps:$4 sm:$0xff]   ;;  %v4735_v45 = vld [vmem:[%s6687_s7 + $0x64] ss:$8 sps:$4 sm:$0xff]   ;;  %v4739_v47 = vld [vmem:[%s6687_s7 + $0x60] ss:$8 sps:$4 sm:$0xff]  }
 0x552   : > { %v4671_v16 = vunpack.i.h.bf16 %v4669_v0  ;;  %v4670_v19 = vunpack.i.l.bf16 %v4669_v0  ;;  %4146 = vmatprep.subr.msk.bf16.mxu0 %vm5386_vm8, %v4145_v18  ;;  %4167 = vmatprep.subr.msk.bf16.mxu1 %vm5386_vm8, %v4145_v18  ;;  %v4737_v46 = vld [vmem:[%s6687_s7 + $0x144] ss:$8 sps:$4 sm:$0xff]   ;;  %v4740_v48 = vld [vmem:[%s6687_s7 + $0x140] ss:$8 sps:$4 sm:$0xff]   ;;  %v4741_v18 = vld [vmem:[%s6687_s7 + $0x74] ss:$8 sps:$4 sm:$0xff]  }
 0x553   : > { %v4743_v13 = vld [vmem:[%s6687_s7 + $0x154] ss:$8 sps:$4 sm:$0xff]   ;;  %v4745_v49 = vld [vmem:[%s6687_s7 + $0x70] ss:$8 sps:$4 sm:$0xff]   ;;  %v4749_v0 = vld [vmem:[%s6687_s7 + $0x164] ss:$8 sps:$4 sm:$0xff]  }
 0x554   : > { %v2166_v57 = vsel %vm872_vm13, %v4676_v27, %v4670_v19  ;;  %v2167_v58 = vsel %vm872_vm13, %v4670_v19, %v4671_v16  ;;  %2532 = vperm.xlu0 %4420, %v2348_v44   ;;  %2547 = vperm.xlu1 %4601, %v2351_v54   ;;  %v4746_v50 = vld [vmem:[%s6687_s7 + $0x150] ss:$8 sps:$4 sm:$0xff]   ;;  %v4752_v44 = vld [vmem:[%s6687_s7 + $0x160] ss:$8 sps:$4 sm:$0xff]   ;;  %v4753_v54 = vld [vmem:[%s6687_s7 + $0x94] ss:$8 sps:$4 sm:$0xff]  }
 0x555   : > { %v4151_v38 = vpack.c.bf16 %v2167_v58, %v2165_v43  ;;  %v4154_v24 = vpack.c.bf16 %v2166_v57, %v2164_v56  ;;  %4149 = vmatpush1.bf16.msk.msra.mxu0 %vm5396_vm10, %v4148_v52  ;;  %4176 = vmatpush1.bf16.msk.msra.mxu1 %vm5396_vm10, %v4148_v52  ;;  %v2193_v59 = vpop.permute.xlu0 %2192  ;;  %v4679_v30 = vpop.permute.xlu1 %4678  ;;  %v4747_v52 = vld [vmem:[%s6687_s7 + $0x84] ss:$8 sps:$4 sm:$0xff]   ;;  %v4755_v27 = vld [vmem:[%s6687_s7 + $0x174] ss:$8 sps:$4 sm:$0xff]   ;;  %v4757_v16 = vld [vmem:[%s6687_s7 + $0x90] ss:$8 sps:$4 sm:$0xff]  }
 0x556   : > { %v4681_v1 = vunpack.i.h.bf16 %v4679_v30  ;;  %v4680_v26 = vunpack.i.l.bf16 %v4679_v30  ;;  %v4758_v19 = vld [vmem:[%s6687_s7 + $0x170] ss:$8 sps:$4 sm:$0xff]   ;;  %v4759_v43 = vld [vmem:[%s6687_s7 + $0xa4] ss:$8 sps:$4 sm:$0xff]   ;;  %v4767_v30 = vld [vmem:[%s6687_s7 + $0x194] ss:$8 sps:$4 sm:$0xff]  }
 0x557   : > { %4152 = vmatprep.subr.msk.bf16.mxu0 %vm5359_vm3, %v4151_v38  ;;  %4168 = vmatprep.subr.msk.bf16.mxu1 %vm5359_vm3, %v4151_v38  ;;  %v4761_v56 = vld [vmem:[%s6687_s7 + $0x184] ss:$8 sps:$4 sm:$0xff]   ;;  %v4763_v38 = vld [vmem:[%s6687_s7 + $0xa0] ss:$8 sps:$4 sm:$0xff]  }
 0x558   : > { %2542 = vperm.xlu0 %4420, %v2350_v60   ;;  %v2229_v55 = vsel %vm1002_vm15, %v4680_v26, %v4681_v1  ;;  %v4770_v1 = vld [vmem:[%s6687_s7 + $0x190] ss:$8 sps:$4 sm:$0xff]  }
 0x559   : > { %4155 = vmatpush1.bf16.msk.msra.mxu0 %vm5364_vm4, %v4154_v24  ;;  %4177 = vmatpush1.bf16.msk.msra.mxu1 %vm5364_vm4, %v4154_v24  ;;  %v2195_v61 = vpop.permute.xlu0 %2194  ;;  %v4689_v37 = vpop.permute.xlu1 %4688  ;;  %v4764_v24 = vld [vmem:[%s6687_s7 + $0x180] ss:$8 sps:$4 sm:$0xff]  }
 0x55a   : > { %v2198_v62 = vsel %vm941_vm14, %v2193_v59, %v2195_v61  ;;  %v2199_v63 = vsel %vm941_vm14, %v2195_v61, %v2197_v53  ;;  %v4690_v17 = vunpack.i.l.bf16 %v4689_v37  ;;  %v4691_v2 = vunpack.i.h.bf16 %v4689_v37  ;;  %v4751_v53 = vld [vmem:[%s6687_s7 + $0x80] ss:$8 sps:$4 sm:$0xff]   ;;  %v4765_v59 = vld [vmem:[%s6687_s7 + $0xb4] ss:$8 sps:$4 sm:$0xff]  }
 0x55b   : > { %2978 = vmatprep.subr.bf16.mxu0 %v2199_v63  ;;  %4169 = vmatprep.subr.bf16.mxu1 %v2199_v63  ;;  %v4769_v63 = vld [vmem:[%s6687_s7 + $0xb0] ss:$8 sps:$4 sm:$0xff]  }
 0x55c   : > { %v2228_v5 = vsel %vm1002_vm15, %v4690_v17, %v4680_v26  ;;  %v4771_v26 = vld [vmem:[%s6687_s7 + $0xc4] ss:$8 sps:$4 sm:$0xff]  }
 0x55d   : > { %2979 = vmatpush1.bf16.msra.mxu0 %v2198_v62  ;;  %4178 = vmatpush1.bf16.msra.mxu1 %v2198_v62  ;;  %v4684_v51 = vpop.permute.xlu0 %4683  ;;  %v4773_v17 = vld [vmem:[%s6687_s7 + $0x1a4] ss:$8 sps:$4 sm:$0xff]  }
 0x55e   : > { %v4686_v3 = vunpack.i.h.bf16 %v4684_v51  ;;  %v4685_v4 = vunpack.i.l.bf16 %v4684_v51 }
 0x560   : > { %v2230_v6 = vsel %vm1002_vm15, %v4691_v2, %v4685_v4  ;;  %v2231_v7 = vsel %vm1002_vm15, %v4685_v4, %v4686_v3  ;;  %v4775_v3 = vld [vmem:[%s6687_s7 + $0xc0] ss:$8 sps:$4 sm:$0xff]  }
 0x561   : > { %v4157_v8 = vpack.c.bf16 %v2231_v7, %v2229_v55  ;;  %v4160_v9 = vpack.c.bf16 %v2230_v6, %v2228_v5  ;;  %v4776_v4 = vld [vmem:[%s6687_s7 + $0x1a0] ss:$8 sps:$4 sm:$0xff]   ;;  %v4777_v55 = vld [vmem:[%s6687_s7 + $0xd4] ss:$8 sps:$4 sm:$0xff]   ;;  %v4779_v7 = vld [vmem:[%s6687_s7 + $0xd0] ss:$8 sps:$4 sm:$0xff]  }
 0x563   : > { %4158 = vmatprep.subr.msk.bf16.mxu0 %vm5386_vm8, %v4157_v8  ;;  %4170 = vmatprep.subr.msk.bf16.mxu1 %vm5386_vm8, %v4157_v8 }
 0x564   : > { %4161 = vmatpush1.bf16.msk.msra.mxu0 %vm5396_vm10, %v4160_v9  ;;  %4179 = vmatpush1.bf16.msk.msra.mxu1 %vm5396_vm10, %v4160_v9 }
 0x567   : > { %2997 = vmatmul.mubr.bf16.vlgmr.msra.gmra.mrb[4].mxu0 %v4703_v10  ;;  %3137 = vmatmul.mubr.bf16.vlgmr.msra.gmra.mrb[8].mxu1 %v4704_v11 }
 0x568   : > { %3916 = vmatprep.mubr.msk.bf16.mxu0 %vm548_vm5, %v4705_v12  ;;  %3930 = vmatprep.mubr.msk.bf16.mxu1 %vm548_vm5, %v4707_v28 }
 0x56a   : > { %v6155_v57 = vpop.permute.xlu1 %2377 }
 0x56e   : > { %v6157_v58 = vpop.permute.xlu0 %2372  ;;  %v6173_v60 = vpop.permute.xlu1 %2387 }
 0x56f   : > { %3007 = vmatmul.mubr.bf16.gmra.mrb[8].mxu0 %v4709_v14  ;;  %3147 = vmatmul.mubr.bf16.gmra.mrb[12].mxu1 %v4710_v42 }
 0x570   : > { %3917 = vmatprep.mubr.msk.bf16.mxu0 %vm548_vm5, %v4711_v15  ;;  %3931 = vmatprep.mubr.msk.bf16.mxu1 %vm548_vm5, %v4713_v20 }
 0x572   : > { %v6175_v61 = vpop.permute.xlu0 %2382  ;;  %v6179_v37 = vpop.permute.xlu1 %2397 }
 0x576   : > { %v6181_v62 = vpop.permute.xlu0 %2392  ;;  %v6197_v51 = vpop.permute.xlu1 %2407 }
 0x577   : > { %3017 = vmatmul.mubr.bf16.gmra.mrb[12].mxu0 %v4715_v21  ;;  %3157 = vmatmul.mubr.bf16.gmra.mrb[16].mxu1 %v4716_v22 }
 0x578   : > { %3918 = vmatprep.mubr.msk.bf16.mxu0 %vm548_vm5, %v4717_v23  ;;  %3932 = vmatprep.mubr.msk.bf16.mxu1 %vm548_vm5, %v4719_v34 }
 0x57a   : > { %v6199_v2 = vpop.permute.xlu0 %2402  ;;  %v6210_v5 = vpop.permute.xlu1 %2417 }
 0x57e   : > { %v6212_v6 = vpop.permute.xlu0 %2412  ;;  %v6218_v8 = vpop.permute.xlu1 %2427 }
 0x57f   : > { %3027 = vmatmul.mubr.bf16.gmra.mrb[16].mxu0 %v4721_v25  ;;  %3167 = vmatmul.mubr.bf16.gmra.mrb[20].mxu1 %v4722_v31 }
 0x580   : > { %3919 = vmatprep.mubr.msk.bf16.mxu0 %vm548_vm5, %v4723_v32  ;;  %3933 = vmatprep.mubr.msk.bf16.mxu1 %vm548_vm5, %v4725_v36 }
 0x582   : > { %v6220_v9 = vpop.permute.xlu0 %2422  ;;  %v6222_v10 = vpop.permute.xlu1 %2437 }
 0x586   : > { %v6224_v11 = vpop.permute.xlu0 %2432  ;;  %v6226_v12 = vpop.permute.xlu1 %2447 }
 0x587   : > { %3037 = vmatmul.mubr.bf16.gmra.mrb[20].mxu0 %v4727_v41  ;;  %3177 = vmatmul.mubr.bf16.gmra.mrb[24].mxu1 %v4728_v33 }
 0x588   : > { %3920 = vmatprep.mubr.msk.bf16.mxu0 %vm548_vm5, %v4729_v39  ;;  %3934 = vmatprep.mubr.msk.bf16.mxu1 %vm548_vm5, %v4731_v40 }
 0x58a   : > { %v6228_v28 = vpop.permute.xlu0 %2442  ;;  %v6230_v14 = vpop.permute.xlu1 %2457 }
 0x58e   : > { %v6232_v42 = vpop.permute.xlu0 %2452  ;;  %v6234_v15 = vpop.permute.xlu1 %2467 }
 0x58f   : > { %3047 = vmatmul.mubr.bf16.gmra.mrb[24].mxu0 %v4733_v29  ;;  %3187 = vmatmul.mubr.bf16.gmra.mrb[28].mxu1 %v4734_v35 }
 0x590   : > { %3921 = vmatprep.mubr.msk.bf16.mxu0 %vm548_vm5, %v4735_v45  ;;  %3935 = vmatprep.mubr.msk.bf16.mxu1 %vm548_vm5, %v4737_v46 }
 0x592   : > { %v6236_v20 = vpop.permute.xlu0 %2462  ;;  %v6238_v21 = vpop.permute.xlu1 %2477 }
 0x596   : > { %v6240_v22 = vpop.permute.xlu0 %2472  ;;  %v6242_v23 = vpop.permute.xlu1 %2487 }
 0x597   : > { %3057 = vmatmul.mubr.bf16.gmra.mrb[28].mxu0 %v4739_v47  ;;  %3197 = vmatmul.mubr.bf16.gmra.mrb[32].mxu1 %v4740_v48 }
 0x598   : > { %3922 = vmatprep.mubr.msk.bf16.mxu0 %vm548_vm5, %v4741_v18  ;;  %3936 = vmatprep.mubr.msk.bf16.mxu1 %vm548_vm5, %v4743_v13 }
 0x59a   : > { %v6244_v34 = vpop.permute.xlu0 %2482  ;;  %v6246_v25 = vpop.permute.xlu1 %2497 }
 0x59e   : > { %v6248_v31 = vpop.permute.xlu0 %2492  ;;  %v6250_v32 = vpop.permute.xlu1 %2507 }
 0x59f   : > { %3067 = vmatmul.mubr.bf16.gmra.mrb[32].mxu0 %v4745_v49  ;;  %3207 = vmatmul.mubr.bf16.gmra.mrb[36].mxu1 %v4746_v50 }
 0x5a0   : > { %3923 = vmatprep.mubr.msk.bf16.mxu0 %vm548_vm5, %v4747_v52  ;;  %3937 = vmatprep.mubr.msk.bf16.mxu1 %vm548_vm5, %v4749_v0 }
 0x5a2   : > { %v6252_v36 = vpop.permute.xlu0 %2502  ;;  %v2518_v41 = vpop.permute.xlu1 %2517 }
 0x5a6   : > { %v2513_v33 = vpop.permute.xlu0 %2512  ;;  %v6254_v39 = vpop.permute.xlu1 %2552 }
 0x5a7   : > { %3077 = vmatmul.mubr.bf16.gmra.mrb[36].mxu0 %v4751_v53  ;;  %3217 = vmatmul.mubr.bf16.gmra.mrb[40].mxu1 %v4752_v44 }
 0x5a8   : > { %3924 = vmatprep.mubr.msk.bf16.mxu0 %vm548_vm5, %v4753_v54  ;;  %3938 = vmatprep.mubr.msk.bf16.mxu1 %vm548_vm5, %v4755_v27 }
 0x5aa   : > { %v2523_v40 = vpop.permute.xlu0 %2522  ;;  %v6256_v29 = vpop.permute.xlu1 %2562 }
 0x5ae   : > { %v6258_v35 = vpop.permute.xlu0 %2557  ;;  %v6260_v45 = vpop.permute.xlu1 %2572 }
 0x5af   : > { %3087 = vmatmul.mubr.bf16.gmra.mrb[40].mxu0 %v4757_v16  ;;  %3227 = vmatmul.mubr.bf16.gmra.mrb[44].mxu1 %v4758_v19 }
 0x5b0   : > { %3925 = vmatprep.mubr.msk.bf16.mxu0 %vm548_vm5, %v4759_v43  ;;  %3939 = vmatprep.mubr.msk.bf16.mxu1 %vm548_vm5, %v4761_v56 }
 0x5b2   : > { %v6262_v46 = vpop.permute.xlu0 %2567  ;;  %v6264_v47 = vpop.permute.xlu1 %2582 }
 0x5b6   : > { %v6266_v48 = vpop.permute.xlu0 %2577  ;;  %v6268_v18 = vpop.permute.xlu1 %2592 }
 0x5b7   : > { %3097 = vmatmul.mubr.bf16.gmra.mrb[44].mxu0 %v4763_v38  ;;  %3237 = vmatmul.mubr.bf16.gmra.mrb[48].mxu1 %v4764_v24 }
 0x5b8   : > { %3926 = vmatprep.mubr.msk.bf16.mxu0 %vm548_vm5, %v4765_v59  ;;  %3940 = vmatprep.mubr.msk.bf16.mxu1 %vm548_vm5, %v4767_v30 }
 0x5ba   : > { %v6270_v13 = vpop.permute.xlu0 %2587  ;;  %v6272_v49 = vpop.permute.xlu1 %2602 }
 0x5bf   : > { %3107 = vmatmul.mubr.bf16.gmra.mrb[48].mxu0 %v4769_v63  ;;  %3247 = vmatmul.mubr.bf16.gmra.mrb[52].mxu1 %v4770_v1  ;;  %v6274_v50 = vpop.permute.xlu0 %2597  ;;  %v6276_v52 = vpop.permute.xlu1 %2612 }
 0x5c0   : > { %3927 = vmatprep.mubr.msk.bf16.mxu0 %vm548_vm5, %v4771_v26  ;;  %3941 = vmatprep.mubr.msk.bf16.mxu1 %vm548_vm5, %v4773_v17 }
 0x5c3   : > { %v6278_v0 = vpop.permute.xlu0 %2607  ;;  %v6280_v53 = vpop.permute.xlu1 %2622 }
 0x5c7   : > { %3117 = vmatmul.mubr.bf16.gmra.mrb[52].mxu0 %v4775_v3  ;;  %3257 = vmatmul.mubr.bf16.gmra.mrb[56].mxu1 %v4776_v4  ;;  %v6282_v44 = vpop.permute.xlu0 %2617  ;;  %v6284_v54 = vpop.permute.xlu1 %2632 }
 0x5c8   : > { %3928 = vmatprep.mubr.msk.bf16.mxu0 %vm548_vm5, %v4777_v55 }
 0x5cb   : > { %v6286_v27 = vpop.permute.xlu0 %2627 }
 0x5cf   : > { %3127 = vmatmul.mubr.bf16.gmra.mrb[56].mxu0 %v4779_v7 }
 0x63a   : > { %v2998_v16 = vpop.f32.mrb[4].mxu0  ;;  %v3138_v19 = vpop.f32.mrb[8].mxu1 }
 0x63b   : > { %v2999_v43 = vadd.f32 %v2998_v16, %v6157_v58  ;;  %v3139_v56 = vadd.f32 %v3138_v19, %v2513_v33  ;;  %v3000_v38 = vpop.f32.mrb[5].mxu0  ;;  %v3140_v24 = vpop.f32.mrb[9].mxu1 }
 0x63c   : > { %v3001_v59 = vadd.f32 %v3000_v38, %v6157_v58  ;;  %v3141_v30 = vadd.f32 %v3140_v24, %v2513_v33  ;;  %v3002_v63 = vpop.f32.mrb[6].mxu0  ;;  %v3142_v1 = vpop.f32.mrb[10].mxu1 }
 0x63d   : > { %4780 = vtanh.f32 %v2999_v43  ;;  %v3003_v26 = vadd.f32 %v3002_v63, %v6155_v57  ;;  %v3004_v17 = vpop.f32.mrb[7].mxu0  ;;  %v3144_v3 = vpop.f32.mrb[11].mxu1  ;;  %v3143_v4 = vadd.f32 %v3142_v1, %v2518_v41 }
 0x63e   : > { %4782 = vtanh.f32 %v3139_v56  ;;  %v3005_v55 = vadd.f32 %v3004_v17, %v6155_v57  ;;  %v3145_v7 = vadd.f32 %v3144_v3, %v2518_v41  ;;  %v2528_v16 = vpop.permute.xlu1 %2527  ;;  %v6292_v19 = vpop.permute.xlu0 %2637 }
 0x63f   : > { %4784 = vtanh.f32 %v3001_v59 }
 0x640   : > { %4786 = vtanh.f32 %v3141_v30 }
 0x641   : > { %4788 = vtanh.f32 %v3003_v26 }
 0x642   : > { %4790 = vtanh.f32 %v3143_v4  ;;  %v3008_v58 = vpop.f32.mrb[8].mxu0  ;;  %v3148_v33 = vpop.f32.mrb[12].mxu1 }
 0x643   : > { %4792 = vtanh.f32 %v3005_v55  ;;  %v3009_v43 = vadd.f32 %v3008_v58, %v6175_v61  ;;  %v3149_v38 = vadd.f32 %v3148_v33, %v2523_v40  ;;  %v3010_v24 = vpop.f32.mrb[9].mxu0  ;;  %v3150_v56 = vpop.f32.mrb[13].mxu1 }
 0x644   : > { %4794 = vtanh.f32 %v3145_v7  ;;  %v3011_v59 = vadd.f32 %v3010_v24, %v6175_v61  ;;  %v3151_v57 = vadd.f32 %v3150_v56, %v2523_v40  ;;  %v3012_v30 = vpop.f32.mrb[10].mxu0  ;;  %v3152_v41 = vpop.f32.mrb[14].mxu1 }
 0x645   : > { %4796 = vtanh.f32 %v3009_v43  ;;  %v3013_v63 = vadd.f32 %v3012_v30, %v6173_v60  ;;  %v3014_v1 = vpop.f32.mrb[11].mxu0  ;;  %v3154_v26 = vpop.f32.mrb[15].mxu1  ;;  %v3153_v17 = vadd.f32 %v3152_v41, %v2528_v16 }
 0x646   : > { %4798 = vtanh.f32 %v3149_v38  ;;  %v3015_v61 = vadd.f32 %v3014_v1, %v6173_v60  ;;  %v3155_v55 = vadd.f32 %v3154_v26, %v2528_v16  ;;  %v2538_v58 = vpop.permute.xlu1 %2537  ;;  %v2533_v33 = vpop.permute.xlu0 %2532 }
 0x647   : > { %v4781_v3 = vpop.eup %4780  ;;  %4800 = vtanh.f32 %v3011_v59 }
 0x648   : > { %v4783_v40 = vpop.eup %4782  ;;  %v3339_v4 = vmul.f32 10.0, %v4781_v3  ;;  %4802 = vtanh.f32 %v3151_v57 }
 0x649   : > { %v4785_v7 = vpop.eup %4784  ;;  %v3395_v43 = vmul.f32 10.0, %v4783_v40  ;;  %4804 = vtanh.f32 %v3013_v63 }
 0x64a   : > { %v4787_v38 = vpop.eup %4786  ;;  %3411 = vst [vmem:[%s6301_s28] sm:$0xff] %v3339_v4  ;;  %v3340_v24 = vmul.f32 10.0, %v4785_v7  ;;  %4806 = vtanh.f32 %v3153_v17  ;;  %v3018_v56 = vpop.f32.mrb[12].mxu0 }
 0x64b   : > { %v3158_v30 = vpop.f32.mrb[16].mxu1  ;;  %v4789_v59 = vpop.eup %4788  ;;  %3467 = vst [vmem:[%s6301_s28 + $0x1c0] sm:$0xff] %v3395_v43  ;;  %v3396_v60 = vmul.f32 10.0, %v4787_v38  ;;  %4808 = vtanh.f32 %v3015_v61  ;;  %v3019_v57 = vadd.f32 %v3018_v56, %v6181_v62 }
 0x64c   : > { %v3159_v16 = vadd.f32 %v3158_v30, %v2533_v33  ;;  %v3020_v41 = vpop.f32.mrb[13].mxu0  ;;  %v3160_v1 = vpop.f32.mrb[17].mxu1  ;;  %3412 = vst [vmem:[%s6301_s28 + $0x8] sm:$0xff] %v3340_v24  ;;  %v3341_v63 = vmul.f32 10.0, %v4789_v59  ;;  %4810 = vtanh.f32 %v3155_v55 }
 0x64d   : > { %v4791_v26 = vpop.eup %4790  ;;  %v3021_v3 = vadd.f32 %v3020_v41, %v6181_v62  ;;  %v3161_v17 = vadd.f32 %v3160_v1, %v2533_v33  ;;  %v3022_v40 = vpop.f32.mrb[14].mxu0  ;;  %3468 = vst [vmem:[%s6301_s28 + $0x1c8] sm:$0xff] %v3396_v60  ;;  %4812 = vtanh.f32 %v3019_v57 }
 0x64e   : > { %v3162_v4 = vpop.f32.mrb[18].mxu1  ;;  %v4793_v7 = vpop.eup %4792  ;;  %v3397_v43 = vmul.f32 10.0, %v4791_v26  ;;  %v3023_v61 = vadd.f32 %v3022_v40, %v6179_v37  ;;  %3413 = vst [vmem:[%s6301_s28 + $0x10] sm:$0xff] %v3341_v63  ;;  %4814 = vtanh.f32 %v3159_v16 }
 0x64f   : > { %v3024_v38 = vpop.f32.mrb[15].mxu0  ;;  %v3164_v56 = vpop.f32.mrb[19].mxu1  ;;  %v3342_v24 = vmul.f32 10.0, %v4793_v7  ;;  %v3163_v55 = vadd.f32 %v3162_v4, %v2538_v58  ;;  %4816 = vtanh.f32 %v3021_v3 }
 0x650   : > { %v4795_v30 = vpop.eup %4794  ;;  %3469 = vst [vmem:[%s6301_s28 + $0x1d0] sm:$0xff] %v3397_v43  ;;  %v3025_v59 = vadd.f32 %v3024_v38, %v6179_v37  ;;  %4818 = vtanh.f32 %v3161_v17  ;;  %v3165_v41 = vadd.f32 %v3164_v56, %v2538_v58  ;;  %v2548_v26 = vpop.permute.xlu1 %2547 }
 0x651   : > { %v4797_v62 = vpop.eup %4796  ;;  %v3398_v33 = vmul.f32 10.0, %v4795_v30  ;;  %3414 = vst [vmem:[%s6301_s28 + $0x18] sm:$0xff] %v3342_v24  ;;  %v2543_v63 = vpop.permute.xlu0 %2542  ;;  %4820 = vtanh.f32 %v3023_v61 }
 0x652   : > { %v4799_v60 = vpop.eup %4798  ;;  %v3343_v57 = vmul.f32 10.0, %v4797_v62  ;;  %4822 = vtanh.f32 %v3163_v55  ;;  %v3028_v3 = vpop.f32.mrb[16].mxu0 }
 0x653   : > { %v4801_v1 = vpop.eup %4800  ;;  %3470 = vst [vmem:[%s6301_s28 + $0x1d8] sm:$0xff] %v3398_v33  ;;  %v3399_v40 = vmul.f32 10.0, %v4799_v60  ;;  %v3168_v7 = vpop.f32.mrb[20].mxu1  ;;  %4824 = vtanh.f32 %v3025_v59  ;;  %v3029_v58 = vadd.f32 %v3028_v3, %v6199_v2 }
 0x654   : > { %v4803_v16 = vpop.eup %4802  ;;  %3415 = vst [vmem:[%s6301_s28 + $0x20] sm:$0xff] %v3343_v57  ;;  %v3344_v4 = vmul.f32 10.0, %v4801_v1  ;;  %v3169_v17 = vadd.f32 %v3168_v7, %v2543_v63  ;;  %v3030_v38 = vpop.f32.mrb[17].mxu0  ;;  %4826 = vtanh.f32 %v3165_v41 }
 0x655   : > { %v4805_v37 = vpop.eup %4804  ;;  %3471 = vst [vmem:[%s6301_s28 + $0x1e0] sm:$0xff] %v3399_v40  ;;  %v3400_v43 = vmul.f32 10.0, %v4803_v16  ;;  %v3170_v56 = vpop.f32.mrb[21].mxu1  ;;  %v3031_v24 = vadd.f32 %v3030_v38, %v6199_v2  ;;  %4828 = vtanh.f32 %v3029_v58 }
 0x656   : > { %v4807_v30 = vpop.eup %4806  ;;  %3416 = vst [vmem:[%s6301_s28 + $0x28] sm:$0xff] %v3344_v4  ;;  %v3345_v61 = vmul.f32 10.0, %v4805_v37  ;;  %v3171_v55 = vadd.f32 %v3170_v56, %v2543_v63  ;;  %v3032_v62 = vpop.f32.mrb[18].mxu0  ;;  %4830 = vtanh.f32 %v3169_v17 }
 0x657   : > { %v3172_v33 = vpop.f32.mrb[22].mxu1  ;;  %v4809_v60 = vpop.eup %4808  ;;  %3472 = vst [vmem:[%s6301_s28 + $0x1e8] sm:$0xff] %v3400_v43  ;;  %v3401_v57 = vmul.f32 10.0, %v4807_v30  ;;  %v3033_v59 = vadd.f32 %v3032_v62, %v6197_v51  ;;  %4832 = vtanh.f32 %v3031_v24 }
 0x658   : > { %v3034_v1 = vpop.f32.mrb[19].mxu0  ;;  %v3174_v40 = vpop.f32.mrb[23].mxu1  ;;  %3417 = vst [vmem:[%s6301_s28 + $0x30] sm:$0xff] %v3345_v61  ;;  %v3346_v4 = vmul.f32 10.0, %v4809_v60  ;;  %v3173_v41 = vadd.f32 %v3172_v33, %v2548_v26  ;;  %4834 = vtanh.f32 %v3171_v55 }
 0x659   : > { %v4811_v16 = vpop.eup %4810  ;;  %3473 = vst [vmem:[%s6301_s28 + $0x1f0] sm:$0xff] %v3401_v57  ;;  %v3035_v3 = vadd.f32 %v3034_v1, %v6197_v51  ;;  %v3175_v43 = vadd.f32 %v3174_v40, %v2548_v26  ;;  %4836 = vtanh.f32 %v3033_v59 }
 0x65a   : > { %v4813_v2 = vpop.eup %4812  ;;  %v3402_v63 = vmul.f32 10.0, %v4811_v16  ;;  %3418 = vst [vmem:[%s6301_s28 + $0x38] sm:$0xff] %v3346_v4  ;;  %4838 = vtanh.f32 %v3173_v41  ;;  %v3038_v30 = vpop.f32.mrb[20].mxu0 }
 0x65b   : > { %v4815_v7 = vpop.eup %4814  ;;  %v3347_v37 = vmul.f32 10.0, %v4813_v2  ;;  %v3178_v61 = vpop.f32.mrb[24].mxu1  ;;  %4840 = vtanh.f32 %v3035_v3  ;;  %v3039_v62 = vadd.f32 %v3038_v30, %v6212_v6 }
 0x65c   : > { %v4817_v58 = vpop.eup %4816  ;;  %3474 = vst [vmem:[%s6301_s28 + $0x1f8] sm:$0xff] %v3402_v63  ;;  %v3403_v38 = vmul.f32 10.0, %v4815_v7  ;;  %v3179_v26 = vadd.f32 %v3178_v61, %v6254_v39  ;;  %v3040_v55 = vpop.f32.mrb[21].mxu0  ;;  %4842 = vtanh.f32 %v3175_v43 }
 0x65d   : > { %v4819_v17 = vpop.eup %4818  ;;  %3419 = vst [vmem:[%s6301_s28 + $0x40] sm:$0xff] %v3347_v37  ;;  %v3348_v56 = vmul.f32 10.0, %v4817_v58  ;;  %v3180_v33 = vpop.f32.mrb[25].mxu1  ;;  %v3041_v59 = vadd.f32 %v3040_v55, %v6212_v6  ;;  %4844 = vtanh.f32 %v3039_v62 }
 0x65e   : > { %v4821_v24 = vpop.eup %4820  ;;  %3475 = vst [vmem:[%s6301_s28 + $0x200] sm:$0xff] %v3403_v38  ;;  %v3404_v51 = vmul.f32 10.0, %v4819_v17  ;;  %v3181_v1 = vadd.f32 %v3180_v33, %v6254_v39  ;;  %v3042_v40 = vpop.f32.mrb[22].mxu0  ;;  %v3942_v2 = vmul.f32 -1.442695, %v3179_v26 }
 0x65f   : > { %v4823_v60 = vpop.eup %4822  ;;  %3420 = vst [vmem:[%s6301_s28 + $0x48] sm:$0xff] %v3348_v56  ;;  %v3349_v57 = vmul.f32 10.0, %v4821_v24  ;;  %v3182_v16 = vpop.f32.mrb[26].mxu1  ;;  %v3043_v63 = vadd.f32 %v3042_v40, %v6210_v5  ;;  %4846 = vtanh.f32 %v3041_v59 }
 0x660   : > { %v4825_v4 = vpop.eup %4824  ;;  %3476 = vst [vmem:[%s6301_s28 + $0x208] sm:$0xff] %v3404_v51  ;;  %v3405_v41 = vmul.f32 10.0, %v4823_v60  ;;  %v3044_v3 = vpop.f32.mrb[23].mxu0  ;;  %v3943_v6 = vmul.f32 -1.442695, %v3181_v1  ;;  %v3183_v39 = vadd.f32 %v3182_v16, %v6258_v35  ;;  %4848 = vpow2.f32 %v3942_v2 }
 0x661   : > { %v3184_v7 = vpop.f32.mrb[27].mxu1  ;;  %v4827_v37 = vpop.eup %4826  ;;  %3421 = vst [vmem:[%s6301_s28 + $0x50] sm:$0xff] %v3349_v57  ;;  %v3350_v43 = vmul.f32 10.0, %v4825_v4  ;;  %v3045_v17 = vadd.f32 %v3044_v3, %v6210_v5 }
 0x662   : > { %v4829_v58 = vpop.eup %4828  ;;  %3477 = vst [vmem:[%s6301_s28 + $0x210] sm:$0xff] %v3405_v41  ;;  %v3406_v38 = vmul.f32 10.0, %v4827_v37  ;;  %v3185_v56 = vadd.f32 %v3184_v7, %v6258_v35  ;;  %4850 = vpow2.f32 %v3943_v6  ;;  %v3944_v24 = vmul.f32 -1.442695, %v3183_v39  ;;  %v3048_v60 = vpop.f32.mrb[24].mxu0 }
 0x663   : > { %v4831_v30 = vpop.eup %4830  ;;  %3422 = vst [vmem:[%s6301_s28 + $0x58] sm:$0xff] %v3350_v43  ;;  %v3351_v61 = vmul.f32 10.0, %v4829_v58  ;;  %4852 = vtanh.f32 %v3043_v63  ;;  %v3188_v5 = vpop.f32.mrb[28].mxu1  ;;  %v3049_v59 = vadd.f32 %v3048_v60, %v6220_v9 }
 0x664   : > { %v4833_v51 = vpop.eup %4832  ;;  %3478 = vst [vmem:[%s6301_s28 + $0x218] sm:$0xff] %v3406_v38  ;;  %v3407_v62 = vmul.f32 10.0, %v4831_v30  ;;  %v3945_v26 = vmul.f32 -1.442695, %v3185_v56  ;;  %4854 = vpow2.f32 %v3944_v24  ;;  %v3189_v1 = vadd.f32 %v3188_v5, %v6256_v29  ;;  %v3050_v40 = vpop.f32.mrb[25].mxu0 }
 0x665   : > { %v4835_v55 = vpop.eup %4834  ;;  %3423 = vst [vmem:[%s6301_s28 + $0x60] sm:$0xff] %v3351_v61  ;;  %v3352_v33 = vmul.f32 10.0, %v4833_v51  ;;  %4856 = vtanh.f32 %v3045_v17  ;;  %v3190_v16 = vpop.f32.mrb[29].mxu1  ;;  %v3051_v2 = vadd.f32 %v3050_v40, %v6220_v9 }
 0x666   : > { %v4837_v57 = vpop.eup %4836  ;;  %3479 = vst [vmem:[%s6301_s28 + $0x220] sm:$0xff] %v3407_v62  ;;  %v3408_v35 = vmul.f32 10.0, %v4835_v55  ;;  %4858 = vpow2.f32 %v3945_v26  ;;  %v3191_v63 = vadd.f32 %v3190_v16, %v6256_v29  ;;  %v3052_v3 = vpop.f32.mrb[26].mxu0  ;;  %v3946_v6 = vmul.f32 -1.442695, %v3189_v1 }
 0x667   : > { %v4839_v4 = vpop.eup %4838  ;;  %3424 = vst [vmem:[%s6301_s28 + $0x68] sm:$0xff] %v3352_v33  ;;  %v3353_v41 = vmul.f32 10.0, %v4837_v57  ;;  %v3192_v7 = vpop.f32.mrb[30].mxu1  ;;  %4860 = vtanh.f32 %v3049_v59  ;;  %v3053_v39 = vadd.f32 %v3052_v3, %v6218_v8 }
 0x668   : > { %v4841_v37 = vpop.eup %4840  ;;  %3480 = vst [vmem:[%s6301_s28 + $0x228] sm:$0xff] %v3408_v35  ;;  %v3409_v43 = vmul.f32 10.0, %v4839_v4  ;;  %v3054_v58 = vpop.f32.mrb[27].mxu0  ;;  %4862 = vtanh.f32 %v3051_v2  ;;  %v3947_v9 = vmul.f32 -1.442695, %v3191_v63  ;;  %v3193_v29 = vadd.f32 %v3192_v7, %v6262_v46 }
 0x669   : > { %v3194_v38 = vpop.f32.mrb[31].mxu1  ;;  %v4843_v17 = vpop.eup %4842  ;;  %3425 = vst [vmem:[%s6301_s28 + $0x70] sm:$0xff] %v3353_v41  ;;  %v3354_v56 = vmul.f32 10.0, %v4841_v37  ;;  %4864 = vpow2.f32 %v3946_v6  ;;  %v3055_v24 = vadd.f32 %v3054_v58, %v6218_v8 }
 0x66a   : > { %v4845_v30 = vpop.eup %4844  ;;  %3481 = vst [vmem:[%s6301_s28 + $0x230] sm:$0xff] %v3409_v43  ;;  %v3410_v61 = vmul.f32 10.0, %v4843_v17  ;;  %v3195_v51 = vadd.f32 %v3194_v38, %v6262_v46  ;;  %4866 = vpow2.f32 %v3947_v9  ;;  %v3948_v55 = vmul.f32 -1.442695, %v3193_v29  ;;  %v3058_v59 = vpop.f32.mrb[28].mxu0 }
 0x66b   : > { %v4847_v62 = vpop.eup %4846  ;;  %3426 = vst [vmem:[%s6301_s28 + $0x78] sm:$0xff] %v3354_v56  ;;  %v3355_v26 = vmul.f32 10.0, %v4845_v30  ;;  %4868 = vtanh.f32 %v3053_v39  ;;  %v3198_v8 = vpop.f32.mrb[32].mxu1  ;;  %v3059_v63 = vadd.f32 %v3058_v59, %v6224_v11 }
 0x66c   : > { %v4849_v33 = vpop.eup %4848  ;;  %3482 = vst [vmem:[%s6301_s28 + $0x238] sm:$0xff] %v3410_v61  ;;  %v3356_v60 = vmul.f32 10.0, %v4847_v62  ;;  %4870 = vpow2.f32 %v3948_v55  ;;  %v3949_v35 = vmul.f32 -1.442695, %v3195_v51  ;;  %v3199_v40 = vadd.f32 %v3198_v8, %v6260_v45  ;;  %v3060_v16 = vpop.f32.mrb[29].mxu0 }
 0x66d   : > { %v4851_v5 = vpop.eup %4850  ;;  %3427 = vst [vmem:[%s6301_s28 + $0x80] sm:$0xff] %v3355_v26  ;;  %v3591_v57 = vadd.f32 1.0, %v4849_v33  ;;  %4872 = vtanh.f32 %v3055_v24  ;;  %v3200_v4 = vpop.f32.mrb[33].mxu1  ;;  %v3061_v30 = vadd.f32 %v3060_v16, %v6224_v11 }
 0x66e   : > { %v4853_v1 = vpop.eup %4852  ;;  %3428 = vst [vmem:[%s6301_s28 + $0x88] sm:$0xff] %v3356_v60  ;;  %v3592_v46 = vadd.f32 1.0, %v4851_v5  ;;  %v3062_v3 = vpop.f32.mrb[30].mxu0  ;;  %v3950_v17 = vmul.f32 -1.442695, %v3199_v40  ;;  %v3201_v56 = vadd.f32 %v3200_v4, %v6260_v45 }
 0x66f   : > { %v4855_v41 = vpop.eup %4854  ;;  %4874 = vrcp.f32 %v3591_v57  ;;  %v3357_v2 = vmul.f32 10.0, %v4853_v1  ;;  %v3202_v7 = vpop.f32.mrb[34].mxu1 }
 0x670   : > { %v4857_v37 = vpop.eup %4856  ;;  %4876 = vrcp.f32 %v3592_v46  ;;  %v3593_v43 = vadd.f32 1.0, %v4855_v41  ;;  %v3064_v6 = vpop.f32.mrb[31].mxu0  ;;  %v3203_v26 = vadd.f32 %v3202_v7, %v6266_v48  ;;  %v3951_v33 = vmul.f32 -1.442695, %v3201_v56 }
 0x671   : > { %v3204_v39 = vpop.f32.mrb[35].mxu1  ;;  %v4859_v58 = vpop.eup %4858  ;;  %3429 = vst [vmem:[%s6301_s28 + $0x90] sm:$0xff] %v3357_v2  ;;  %v3358_v38 = vmul.f32 10.0, %v4857_v37  ;;  %4878 = vpow2.f32 %v3949_v35  ;;  %v3063_v46 = vadd.f32 %v3062_v3, %v6222_v10 }
 0x672   : > { %v4861_v9 = vpop.eup %4860  ;;  %4880 = vrcp.f32 %v3593_v43  ;;  %v3594_v29 = vadd.f32 1.0, %v4859_v58  ;;  %v3068_v60 = vpop.f32.mrb[32].mxu0  ;;  %v3205_v40 = vadd.f32 %v3204_v39, %v6266_v48 }
 0x673   : > { %v4863_v61 = vpop.eup %4862  ;;  %3430 = vst [vmem:[%s6301_s28 + $0x98] sm:$0xff] %v3358_v38  ;;  %v3359_v24 = vmul.f32 10.0, %v4861_v9  ;;  %4882 = vtanh.f32 %v3059_v63  ;;  %v3208_v11 = vpop.f32.mrb[36].mxu1  ;;  %v3952_v63 = vmul.f32 -1.442695, %v3203_v26  ;;  %v3065_v38 = vadd.f32 %v3064_v6, %v6222_v10 }
 0x674   : > { %v4865_v51 = vpop.eup %4864  ;;  %4884 = vrcp.f32 %v3594_v29  ;;  %v3360_v62 = vmul.f32 10.0, %v4863_v61  ;;  %v3070_v35 = vpop.f32.mrb[33].mxu0  ;;  %v3209_v3 = vadd.f32 %v3208_v11, %v6264_v47  ;;  %v3069_v10 = vadd.f32 %v3068_v60, %v6228_v28 }
 0x675   : > { %v4867_v55 = vpop.eup %4866  ;;  %3431 = vst [vmem:[%s6301_s28 + $0xa0] sm:$0xff] %v3359_v24  ;;  %v3595_v45 = vadd.f32 1.0, %v4865_v51  ;;  %4886 = vpow2.f32 %v3950_v17  ;;  %v3210_v59 = vpop.f32.mrb[37].mxu1  ;;  %v3953_v17 = vmul.f32 -1.442695, %v3205_v40 }
 0x676   : > { %v4869_v5 = vpop.eup %4868  ;;  %3432 = vst [vmem:[%s6301_s28 + $0xa8] sm:$0xff] %v3360_v62  ;;  %v3596_v57 = vadd.f32 1.0, %v4867_v55  ;;  %4888 = vtanh.f32 %v3061_v30  ;;  %v3072_v16 = vpop.f32.mrb[34].mxu0  ;;  %v3211_v6 = vadd.f32 %v3210_v59, %v6264_v47  ;;  %v3954_v30 = vmul.f32 -1.442695, %v3209_v3 }
 0x677   : > { %v4871_v8 = vpop.eup %4870  ;;  %4890 = vrcp.f32 %v3595_v45  ;;  %v3361_v1 = vmul.f32 10.0, %v4869_v5  ;;  %v3212_v4 = vpop.f32.mrb[38].mxu1 }
 0x678   : > { %v4873_v41 = vpop.eup %4872  ;;  %4892 = vrcp.f32 %v3596_v57  ;;  %v3597_v2 = vadd.f32 1.0, %v4871_v8  ;;  %v6378_v7 = vpop.f32.mrb[35].mxu0  ;;  %v3213_v47 = vadd.f32 %v3212_v4, %v6270_v13  ;;  %v3955_v59 = vmul.f32 -1.442695, %v3211_v6 }
 0x679   : > { %v3214_v37 = vpop.f32.mrb[39].mxu1  ;;  %v4875_v43 = vpop.eup %4874  ;;  %3433 = vst [vmem:[%s6301_s28 + $0xb0] sm:$0xff] %v3361_v1  ;;  %v3362_v58 = vmul.f32 10.0, %v4873_v41  ;;  %4894 = vpow2.f32 %v3951_v33  ;;  %v3071_v33 = vadd.f32 %v3070_v35, %v6228_v28  ;;  %v3073_v28 = vadd.f32 %v3072_v16, %v6226_v12 }
 0x67a   : > { %v4877_v48 = vpop.eup %4876  ;;  %3699 = vst [vmem:[%s6384_s12] sm:$0xff] %v4875_v43  ;;  %4896 = vrcp.f32 %v3597_v2  ;;  %v3078_v61 = vpop.f32.mrb[36].mxu0  ;;  %v3215_v4 = vadd.f32 %v3214_v37, %v6270_v13  ;;  %v3956_v2 = vmul.f32 -1.442695, %v3213_v47 }
 0x67b   : > { %v4879_v39 = vpop.eup %4878  ;;  %3700 = vst [vmem:[%s6384_s12 + $0x8] sm:$0xff] %v4877_v48  ;;  %3434 = vst [vmem:[%s6301_s28 + $0xb8] sm:$0xff] %v3362_v58  ;;  %4898 = vtanh.f32 %v3063_v46  ;;  %v3218_v24 = vpop.f32.mrb[40].mxu1  ;;  %v3075_v58 = vadd.f32 %v6378_v7, %v6226_v12 }
 0x67c   : > { %v4881_v56 = vpop.eup %4880  ;;  %v3598_v9 = vadd.f32 1.0, %v4879_v39  ;;  %4900 = vpow2.f32 %v3952_v63  ;;  %v6392_v26 = vpop.f32.mrb[37].mxu0  ;;  %v3219_v16 = vadd.f32 %v3218_v24, %v6268_v18  ;;  %v3957_v39 = vmul.f32 -1.442695, %v3215_v4 }
 0x67d   : > { %v4883_v29 = vpop.eup %4882  ;;  %3701 = vst [vmem:[%s6384_s12 + $0x10] sm:$0xff] %v4881_v56  ;;  %4902 = vtanh.f32 %v3065_v38  ;;  %v3220_v55 = vpop.f32.mrb[41].mxu1 }
 0x67e   : > { %v4885_v51 = vpop.eup %4884  ;;  %4904 = vrcp.f32 %v3598_v9  ;;  %v3363_v62 = vmul.f32 10.0, %v4883_v29  ;;  %v6397_v60 = vpop.f32.mrb[38].mxu0  ;;  %v3079_v9 = vadd.f32 %v3078_v61, %v6232_v42  ;;  %v3221_v24 = vadd.f32 %v3220_v55, %v6268_v18 }
 0x67f   : > { %v4887_v45 = vpop.eup %4886  ;;  %3702 = vst [vmem:[%s6384_s12 + $0x18] sm:$0xff] %v4885_v51  ;;  %4906 = vpow2.f32 %v3953_v17  ;;  %v3222_v11 = vpop.f32.mrb[42].mxu1  ;;  %v3081_v18 = vadd.f32 %v6392_v26, %v6232_v42  ;;  %v3083_v42 = vadd.f32 %v6397_v60, %v6230_v14 }
 0x680   : > { %v4889_v5 = vpop.eup %4888  ;;  %3435 = vst [vmem:[%s6301_s28 + $0xc0] sm:$0xff] %v3363_v62  ;;  %v3599_v57 = vadd.f32 1.0, %v4887_v45  ;;  %4908 = vtanh.f32 %v3069_v10  ;;  %v6400_v8 = vpop.f32.mrb[39].mxu0  ;;  %v3223_v55 = vadd.f32 %v3222_v11, %v6274_v50 }
 0x681   : > { %v6402_v1 = vpop.f32.mrb[43].mxu1  ;;  %v4891_v46 = vpop.eup %4890  ;;  %v3364_v40 = vmul.f32 10.0, %v4889_v5  ;;  %4910 = vpow2.f32 %v3954_v30 }
 0x682   : > { %v4893_v35 = vpop.eup %4892  ;;  %3703 = vst [vmem:[%s6384_s12 + $0x20] sm:$0xff] %v4891_v46  ;;  %4912 = vrcp.f32 %v3599_v57  ;;  %v6413_v3 = vpop.f32.mrb[40].mxu0  ;;  %v3225_v26 = vadd.f32 %v6402_v1, %v6274_v50 }
 0x683   : > { %v4895_v41 = vpop.eup %4894  ;;  %3704 = vst [vmem:[%s6384_s12 + $0x28] sm:$0xff] %v4893_v35  ;;  %3436 = vst [vmem:[%s6301_s28 + $0xc8] sm:$0xff] %v3364_v40  ;;  %4914 = vtanh.f32 %v3071_v33  ;;  %v6415_v13 = vpop.f32.mrb[44].mxu1  ;;  %v3958_v33 = vmul.f32 -1.442695, %v3219_v16 }
 0x684   : > { %v4897_v63 = vpop.eup %4896  ;;  %v3600_v43 = vadd.f32 1.0, %v4895_v41  ;;  %4916 = vpow2.f32 %v3955_v59  ;;  %v6417_v17 = vpop.f32.mrb[41].mxu0  ;;  %v3959_v40 = vmul.f32 -1.442695, %v3221_v24 }
 0x685   : > { %v4899_v38 = vpop.eup %4898  ;;  %3705 = vst [vmem:[%s6384_s12 + $0x30] sm:$0xff] %v4897_v63  ;;  %4918 = vtanh.f32 %v3073_v28  ;;  %v6419_v56 = vpop.f32.mrb[45].mxu1 }
 0x686   : > { %v4901_v37 = vpop.eup %4900  ;;  %4920 = vrcp.f32 %v3600_v43  ;;  %v3365_v48 = vmul.f32 10.0, %v4899_v38  ;;  %v6422_v10 = vpop.f32.mrb[42].mxu0  ;;  %v3960_v38 = vmul.f32 -1.442695, %v3223_v55 }
 0x687   : > { %v4903_v12 = vpop.eup %4902  ;;  %v3601_v7 = vadd.f32 1.0, %v4901_v37  ;;  %4922 = vpow2.f32 %v3956_v2  ;;  %v6424_v6 = vpop.f32.mrb[46].mxu1 }
 0x688   : > { %v4905_v29 = vpop.eup %4904  ;;  %3437 = vst [vmem:[%s6301_s28 + $0xd0] sm:$0xff] %v3365_v48  ;;  %v3366_v30 = vmul.f32 10.0, %v4903_v12  ;;  %4924 = vtanh.f32 %v3075_v58  ;;  %v6428_v51 = vpop.f32.mrb[43].mxu0  ;;  %v3085_v12 = vadd.f32 %v6400_v8, %v6230_v14  ;;  %v3231_v14 = vadd.f32 %v6419_v56, %v6272_v49 }
 0x689   : > { %v6430_v62 = vpop.f32.mrb[47].mxu1  ;;  %v4907_v45 = vpop.eup %4906  ;;  %3706 = vst [vmem:[%s6384_s12 + $0x38] sm:$0xff] %v4905_v29  ;;  %4926 = vrcp.f32 %v3601_v7  ;;  %v3229_v7 = vadd.f32 %v6415_v13, %v6272_v49  ;;  %v3091_v49 = vadd.f32 %v6417_v17, %v6236_v20  ;;  %v3233_v56 = vadd.f32 %v6424_v6, %v6278_v0 }
 0x68a   : > { %v4909_v61 = vpop.eup %4908  ;;  %3438 = vst [vmem:[%s6301_s28 + $0xd8] sm:$0xff] %v3366_v30  ;;  %v3602_v47 = vadd.f32 1.0, %v4907_v45  ;;  %4928 = vpow2.f32 %v3957_v39  ;;  %v6439_v35 = vpop.f32.mrb[44].mxu0  ;;  %v3961_v30 = vmul.f32 -1.442695, %v3225_v26  ;;  %v3093_v6 = vadd.f32 %v6422_v10, %v6234_v15 }
 0x68b   : > { %v4911_v5 = vpop.eup %4910  ;;  %v3367_v57 = vmul.f32 10.0, %v4909_v61  ;;  %4930 = vtanh.f32 %v3079_v9  ;;  %v6441_v4 = vpop.f32.mrb[48].mxu1  ;;  %v3089_v61 = vadd.f32 %v6413_v3, %v6236_v20 }
 0x68c   : > { %v4913_v59 = vpop.eup %4912  ;;  %4932 = vrcp.f32 %v3602_v47  ;;  %v3603_v46 = vadd.f32 1.0, %v4911_v5  ;;  %v6447_v11 = vpop.f32.mrb[45].mxu0  ;;  %v3962_v47 = vmul.f32 -1.442695, %v3229_v7  ;;  %v3239_v10 = vadd.f32 %v6441_v4, %v6276_v52 }
 0x68d   : > { %v4915_v28 = vpop.eup %4914  ;;  %3707 = vst [vmem:[%s6384_s12 + $0x40] sm:$0xff] %v4913_v59  ;;  %3439 = vst [vmem:[%s6301_s28 + $0xe0] sm:$0xff] %v3367_v57  ;;  %4934 = vpow2.f32 %v3958_v33  ;;  %v6449_v63 = vpop.f32.mrb[49].mxu1 }
 0x68e   : > { %v4917_v41 = vpop.eup %4916  ;;  %4936 = vrcp.f32 %v3603_v46  ;;  %v3368_v2 = vmul.f32 10.0, %v4915_v28  ;;  %v6451_v16 = vpop.f32.mrb[46].mxu0 }
 0x68f   : > { %v4919_v43 = vpop.eup %4918  ;;  %v3604_v58 = vadd.f32 1.0, %v4917_v41  ;;  %4938 = vtanh.f32 %v3081_v18  ;;  %v6453_v37 = vpop.f32.mrb[50].mxu1 }
 0x690   : > { %v4921_v48 = vpop.eup %4920  ;;  %3440 = vst [vmem:[%s6301_s28 + $0xe8] sm:$0xff] %v3368_v2  ;;  %v3369_v60 = vmul.f32 10.0, %v4919_v43  ;;  %4940 = vpow2.f32 %v3959_v40  ;;  %v6456_v39 = vpop.f32.mrb[47].mxu0 }
 0x691   : > { %v6458_v50 = vpop.f32.mrb[51].mxu1  ;;  %v4923_v1 = vpop.eup %4922  ;;  %3708 = vst [vmem:[%s6384_s12 + $0x48] sm:$0xff] %v4921_v48  ;;  %4942 = vrcp.f32 %v3604_v58 }
 0x692   : > { %v4925_v9 = vpop.eup %4924  ;;  %3441 = vst [vmem:[%s6301_s28 + $0xf0] sm:$0xff] %v3369_v60  ;;  %v3605_v29 = vadd.f32 1.0, %v4923_v1  ;;  %4944 = vtanh.f32 %v3083_v42  ;;  %v6472_v5 = vpop.f32.mrb[48].mxu0  ;;  %v3963_v42 = vmul.f32 -1.442695, %v3231_v14 }
 0x693   : > { %v4927_v24 = vpop.eup %4926  ;;  %v3370_v45 = vmul.f32 10.0, %v4925_v9  ;;  %4946 = vpow2.f32 %v3960_v38  ;;  %v6474_v57 = vpop.f32.mrb[52].mxu1  ;;  %v3235_v38 = vadd.f32 %v6430_v62, %v6278_v0  ;;  %v3964_v1 = vmul.f32 -1.442695, %v3233_v56 }
 0x694   : > { %v4929_v33 = vpop.eup %4928  ;;  %3709 = vst [vmem:[%s6384_s12 + $0x50] sm:$0xff] %v4927_v24  ;;  %4948 = vrcp.f32 %v3605_v29  ;;  %v6476_v59 = vpop.f32.mrb[49].mxu0  ;;  %v3095_v29 = vadd.f32 %v6428_v51, %v6234_v15  ;;  %v3966_v56 = vmul.f32 -1.442695, %v3239_v10 }
 0x695   : > { %v4931_v8 = vpop.eup %4930  ;;  %3442 = vst [vmem:[%s6301_s28 + $0xf8] sm:$0xff] %v3370_v45  ;;  %v3606_v13 = vadd.f32 1.0, %v4929_v33  ;;  %4950 = vtanh.f32 %v3085_v12  ;;  %v6478_v46 = vpop.f32.mrb[53].mxu1  ;;  %v3965_v45 = vmul.f32 -1.442695, %v3235_v38 }
 0x696   : > { %v4933_v18 = vpop.eup %4932  ;;  %v3371_v55 = vmul.f32 10.0, %v4931_v8  ;;  %4952 = vpow2.f32 %v3961_v30  ;;  %v6485_v40 = vpop.f32.mrb[50].mxu0 }
 0x697   : > { %v4935_v3 = vpop.eup %4934  ;;  %3710 = vst [vmem:[%s6384_s12 + $0x58] sm:$0xff] %v4933_v18  ;;  %4954 = vrcp.f32 %v3606_v13  ;;  %v6487_v28 = vpop.f32.mrb[54].mxu1  ;;  %v3099_v13 = vadd.f32 %v6439_v35, %v6240_v22 }
 0x698   : > { %v4937_v41 = vpop.eup %4936  ;;  %3443 = vst [vmem:[%s6301_s28 + $0x100] sm:$0xff] %v3371_v55  ;;  %v3607_v2 = vadd.f32 1.0, %v4935_v3  ;;  %4956 = vtanh.f32 %v3089_v61  ;;  %v6490_v26 = vpop.f32.mrb[51].mxu0 }
 0x699   : > { %v6492_v43 = vpop.f32.mrb[55].mxu1  ;;  %v4939_v58 = vpop.eup %4938  ;;  %3711 = vst [vmem:[%s6384_s12 + $0x60] sm:$0xff] %v4937_v41  ;;  %4958 = vpow2.f32 %v3962_v47  ;;  %v3241_v47 = vadd.f32 %v6449_v63, %v6276_v52  ;;  %v3101_v52 = vadd.f32 %v6447_v11, %v6240_v22  ;;  %v3243_v63 = vadd.f32 %v6453_v37, %v6282_v44 }
 0x69a   : > { %v4941_v20 = vpop.eup %4940  ;;  %4960 = vrcp.f32 %v3607_v2  ;;  %v3372_v17 = vmul.f32 10.0, %v4939_v58  ;;  %v6505_v0 = vpop.f32.mrb[52].mxu0  ;;  %v3103_v22 = vadd.f32 %v6451_v16, %v6238_v21  ;;  %v3245_v11 = vadd.f32 %v6458_v50, %v6282_v44 }
 0x69b   : > { %v4943_v48 = vpop.eup %4942  ;;  %v3608_v60 = vadd.f32 1.0, %v4941_v20  ;;  %4962 = vtanh.f32 %v3091_v49  ;;  %v6507_v62 = vpop.f32.mrb[56].mxu1  ;;  %v3967_v20 = vmul.f32 -1.442695, %v3241_v47  ;;  %v3105_v44 = vadd.f32 %v6456_v39, %v6238_v21 }
 0x69c   : > { %v4945_v12 = vpop.eup %4944  ;;  %3712 = vst [vmem:[%s6384_s12 + $0x68] sm:$0xff] %v4943_v48  ;;  %3444 = vst [vmem:[%s6301_s28 + $0x108] sm:$0xff] %v3372_v17  ;;  %4964 = vpow2.f32 %v3963_v42  ;;  %v6509_v33 = vpop.f32.mrb[53].mxu0  ;;  %v3249_v50 = vadd.f32 %v6474_v57, %v6280_v53  ;;  %v3251_v21 = vadd.f32 %v6478_v46, %v6280_v53 }
 0x69d   : > { %v4947_v7 = vpop.eup %4946  ;;  %4966 = vrcp.f32 %v3608_v60  ;;  %v3373_v9 = vmul.f32 10.0, %v4945_v12  ;;  %v6511_v61 = vpop.f32.mrb[57].mxu1  ;;  %v3968_v12 = vmul.f32 -1.442695, %v3243_v63 }
 0x69e   : > { %v4949_v30 = vpop.eup %4948  ;;  %v3609_v24 = vadd.f32 1.0, %v4947_v7  ;;  %4968 = vtanh.f32 %v3093_v6  ;;  %v6515_v15 = vpop.f32.mrb[54].mxu0  ;;  %v3970_v47 = vmul.f32 -1.442695, %v3249_v50  ;;  %v3121_v50 = vadd.f32 %v6509_v33, %v6248_v31 }
 0x69f   : > { %v4951_v14 = vpop.eup %4950  ;;  %3713 = vst [vmem:[%s6384_s12 + $0x70] sm:$0xff] %v4949_v30  ;;  %3445 = vst [vmem:[%s6301_s28 + $0x110] sm:$0xff] %v3373_v9  ;;  %4970 = vpow2.f32 %v3964_v1  ;;  %v6517_v51 = vpop.f32.mrb[58].mxu1 }
 0x6a0   : > { %v4953_v4 = vpop.eup %4952  ;;  %4972 = vrcp.f32 %v3609_v24  ;;  %v3374_v8 = vmul.f32 10.0, %v4951_v14  ;;  %v6523_v18 = vpop.f32.mrb[55].mxu0 }
 0x6a1   : > { %v6525_v55 = vpop.f32.mrb[59].mxu1  ;;  %v4955_v3 = vpop.eup %4954  ;;  %v3610_v49 = vadd.f32 1.0, %v4953_v4  ;;  %4974 = vtanh.f32 %v3095_v29 }
 0x6a2   : > { %v4957_v41 = vpop.eup %4956  ;;  %3714 = vst [vmem:[%s6384_s12 + $0x78] sm:$0xff] %v4955_v3  ;;  %3446 = vst [vmem:[%s6301_s28 + $0x118] sm:$0xff] %v3374_v8  ;;  %4976 = vpow2.f32 %v3965_v45  ;;  %v6535_v6 = vpop.f32.mrb[56].mxu0  ;;  %v3969_v45 = vmul.f32 -1.442695, %v3245_v11 }
 0x6a3   : > { %v4959_v2 = vpop.eup %4958  ;;  %4978 = vrcp.f32 %v3610_v49  ;;  %v3375_v35 = vmul.f32 10.0, %v4957_v41  ;;  %v6541_v37 = vpop.f32.mrb[57].mxu0  ;;  %v3111_v41 = vadd.f32 %v6476_v59, %v6244_v34 }
 0x6a4   : > { %v4961_v42 = vpop.eup %4960  ;;  %v3611_v58 = vadd.f32 1.0, %v4959_v2  ;;  %4980 = vtanh.f32 %v3099_v13  ;;  %v6543_v7 = vpop.f32.mrb[58].mxu0  ;;  %v3109_v13 = vadd.f32 %v6472_v5, %v6244_v34  ;;  %v3253_v5 = vadd.f32 %v6487_v28, %v6286_v27 }
 0x6a5   : > { %v4963_v17 = vpop.eup %4962  ;;  %3715 = vst [vmem:[%s6384_s12 + $0x80] sm:$0xff] %v4961_v42  ;;  %3447 = vst [vmem:[%s6301_s28 + $0x120] sm:$0xff] %v3375_v35  ;;  %4982 = vpow2.f32 %v3966_v56  ;;  %v6547_v29 = vpop.f32.mrb[59].mxu0  ;;  %v3971_v2 = vmul.f32 -1.442695, %v3251_v21  ;;  %v3113_v42 = vadd.f32 %v6485_v40, %v6242_v23  ;;  %v3255_v34 = vadd.f32 %v6492_v43, %v6286_v27 }
 0x6a6   : > { %v4965_v38 = vpop.eup %4964  ;;  %4984 = vrcp.f32 %v3611_v58  ;;  %v3376_v48 = vmul.f32 10.0, %v4963_v17  ;;  %v3972_v58 = vmul.f32 -1.442695, %v3253_v5  ;;  %v3259_v40 = vadd.f32 %v6507_v62, %v6284_v54 }
 0x6a7   : > { %v4967_v60 = vpop.eup %4966  ;;  %v3612_v1 = vadd.f32 1.0, %v4965_v38  ;;  %4986 = vtanh.f32 %v3101_v52 }
 0x6a8   : > { %v4969_v9 = vpop.eup %4968  ;;  %3716 = vst [vmem:[%s6384_s12 + $0x88] sm:$0xff] %v4967_v60  ;;  %3448 = vst [vmem:[%s6301_s28 + $0x128] sm:$0xff] %v3376_v48  ;;  %4988 = vpow2.f32 %v3967_v20  ;;  %v3115_v48 = vadd.f32 %v6490_v26, %v6242_v23  ;;  %v3261_v23 = vadd.f32 %v6511_v61, %v6284_v54 }
 0x6a9   : > { %v4971_v16 = vpop.eup %4970  ;;  %4990 = vrcp.f32 %v3612_v1  ;;  %v3377_v10 = vmul.f32 10.0, %v4969_v9  ;;  %v3974_v9 = vmul.f32 -1.442695, %v3259_v40 }
 0x6aa   : > { %v4973_v30 = vpop.eup %4972  ;;  %v3613_v24 = vadd.f32 1.0, %v4971_v16  ;;  %4992 = vtanh.f32 %v3103_v22  ;;  %v3973_v22 = vmul.f32 -1.442695, %v3255_v34 }
 0x6ab   : > { %v4975_v14 = vpop.eup %4974  ;;  %3717 = vst [vmem:[%s6384_s12 + $0x90] sm:$0xff] %v4973_v30  ;;  %3449 = vst [vmem:[%s6301_s28 + $0x130] sm:$0xff] %v3377_v10  ;;  %4994 = vpow2.f32 %v3968_v12  ;;  %v3119_v12 = vadd.f32 %v6505_v0, %v6248_v31  ;;  %v3263_v0 = vadd.f32 %v6517_v51, %v6292_v19  ;;  %v3975_v30 = vmul.f32 -1.442695, %v3261_v23 }
 0x6ac   : > { %v4977_v4 = vpop.eup %4976  ;;  %4996 = vrcp.f32 %v3613_v24  ;;  %v3378_v8 = vmul.f32 10.0, %v4975_v14  ;;  %v3265_v31 = vadd.f32 %v6525_v55, %v6292_v19 }
 0x6ad   : > { %v4979_v39 = vpop.eup %4978  ;;  %v3614_v57 = vadd.f32 1.0, %v4977_v4  ;;  %4998 = vtanh.f32 %v3105_v44  ;;  %v3123_v4 = vadd.f32 %v6515_v15, %v6246_v25 }
 0x6ae   : > { %v4981_v3 = vpop.eup %4980  ;;  %3718 = vst [vmem:[%s6384_s12 + $0x98] sm:$0xff] %v4979_v39  ;;  %3450 = vst [vmem:[%s6301_s28 + $0x138] sm:$0xff] %v3378_v8  ;;  %5000 = vpow2.f32 %v3969_v45  ;;  %v3976_v8 = vmul.f32 -1.442695, %v3263_v0  ;;  %v3977_v19 = vmul.f32 -1.442695, %v3265_v31 }
 0x6af   : > { %v4983_v49 = vpop.eup %4982  ;;  %5002 = vrcp.f32 %v3614_v57  ;;  %v3379_v56 = vmul.f32 10.0, %v4981_v3  ;;  %v3125_v57 = vadd.f32 %v6523_v18, %v6246_v25  ;;  %v3131_v25 = vadd.f32 %v6541_v37, %v6252_v36 }
 0x6b0   : > { %v4985_v53 = vpop.eup %4984  ;;  %v3615_v46 = vadd.f32 1.0, %v4983_v49  ;;  %5004 = vtanh.f32 %v3109_v13 }
 0x6b1   : > { %v4987_v35 = vpop.eup %4986  ;;  %3719 = vst [vmem:[%s6384_s12 + $0xa0] sm:$0xff] %v4985_v53  ;;  %3451 = vst [vmem:[%s6301_s28 + $0x140] sm:$0xff] %v3379_v56  ;;  %5006 = vpow2.f32 %v3970_v47  ;;  %v3129_v56 = vadd.f32 %v6535_v6, %v6252_v36 }
 0x6b2   : > { %v4989_v52 = vpop.eup %4988  ;;  %5008 = vrcp.f32 %v3615_v46  ;;  %v3380_v63 = vmul.f32 10.0, %v4987_v35 }
 0x6b3   : > { %v4991_v59 = vpop.eup %4990  ;;  %v3616_v28 = vadd.f32 1.0, %v4989_v52  ;;  %5010 = vtanh.f32 %v3111_v41  ;;  %v3135_v52 = vadd.f32 %v6547_v29, %v6250_v32 }
 0x6b4   : > { %v4993_v20 = vpop.eup %4992  ;;  %3720 = vst [vmem:[%s6384_s12 + $0xa8] sm:$0xff] %v4991_v59  ;;  %3452 = vst [vmem:[%s6301_s28 + $0x148] sm:$0xff] %v3380_v63  ;;  %5012 = vpow2.f32 %v3971_v2  ;;  %v3133_v2 = vadd.f32 %v6543_v7, %v6250_v32 }
 0x6b5   : > { %v4995_v17 = vpop.eup %4994  ;;  %5014 = vrcp.f32 %v3616_v28  ;;  %v3381_v38 = vmul.f32 10.0, %v4993_v20 }
 0x6b6   : > { %v4997_v27 = vpop.eup %4996  ;;  %v3617_v43 = vadd.f32 1.0, %v4995_v17  ;;  %5016 = vtanh.f32 %v3113_v42 }
 0x6b7   : > { %v4999_v11 = vpop.eup %4998  ;;  %3721 = vst [vmem:[%s6384_s12 + $0xb0] sm:$0xff] %v4997_v27  ;;  %3453 = vst [vmem:[%s6301_s28 + $0x150] sm:$0xff] %v3381_v38  ;;  %5018 = vpow2.f32 %v3972_v58 }
 0x6b8   : > { %v5001_v60 = vpop.eup %5000  ;;  %5020 = vrcp.f32 %v3617_v43  ;;  %v3382_v1 = vmul.f32 10.0, %v4999_v11 }
 0x6b9   : > { %v5003_v26 = vpop.eup %5002  ;;  %v3618_v62 = vadd.f32 1.0, %v5001_v60  ;;  %5022 = vtanh.f32 %v3115_v48 }
 0x6ba   : > { %v5005_v16 = vpop.eup %5004  ;;  %3722 = vst [vmem:[%s6384_s12 + $0xb8] sm:$0xff] %v5003_v26  ;;  %3454 = vst [vmem:[%s6301_s28 + $0x158] sm:$0xff] %v3382_v1  ;;  %5024 = vpow2.f32 %v3973_v22 }
 0x6bb   : > { %v5007_v10 = vpop.eup %5006  ;;  %5026 = vrcp.f32 %v3618_v62  ;;  %v3383_v44 = vmul.f32 10.0, %v5005_v16 }
 0x6bc   : > { %v5009_v54 = vpop.eup %5008  ;;  %v3619_v61 = vadd.f32 1.0, %v5007_v10  ;;  %5028 = vtanh.f32 %v3119_v12 }
 0x6bd   : > { %v5011_v24 = vpop.eup %5010  ;;  %3723 = vst [vmem:[%s6384_s12 + $0xc0] sm:$0xff] %v5009_v54  ;;  %3455 = vst [vmem:[%s6301_s28 + $0x160] sm:$0xff] %v3383_v44  ;;  %5030 = vpow2.f32 %v3974_v9 }
 0x6be   : > { %v5013_v45 = vpop.eup %5012  ;;  %5032 = vrcp.f32 %v3619_v61  ;;  %v3384_v14 = vmul.f32 10.0, %v5011_v24 }
 0x6bf   : > { %v5015_v33 = vpop.eup %5014  ;;  %v3620_v51 = vadd.f32 1.0, %v5013_v45  ;;  %5034 = vtanh.f32 %v3121_v50 }
 0x6c0   : > { %v5017_v13 = vpop.eup %5016  ;;  %3724 = vst [vmem:[%s6384_s12 + $0xc8] sm:$0xff] %v5015_v33  ;;  %3456 = vst [vmem:[%s6301_s28 + $0x168] sm:$0xff] %v3384_v14  ;;  %5036 = vpow2.f32 %v3975_v30 }
 0x6c1   : > { %v5019_v21 = vpop.eup %5018  ;;  %5038 = vrcp.f32 %v3620_v51  ;;  %v3385_v39 = vmul.f32 10.0, %v5017_v13 }
 0x6c2   : > { %v5021_v15 = vpop.eup %5020  ;;  %v3621_v47 = vadd.f32 1.0, %v5019_v21  ;;  %5040 = vtanh.f32 %v3123_v4 }
 0x6c3   : > { %v5023_v55 = vpop.eup %5022  ;;  %3725 = vst [vmem:[%s6384_s12 + $0xd0] sm:$0xff] %v5021_v15  ;;  %3457 = vst [vmem:[%s6301_s28 + $0x170] sm:$0xff] %v3385_v39  ;;  %5042 = vpow2.f32 %v3976_v8 }
 0x6c4   : > { %v5025_v3 = vpop.eup %5024  ;;  %5044 = vrcp.f32 %v3621_v47  ;;  %v3386_v49 = vmul.f32 10.0, %v5023_v55 }
 0x6c5   : > { %v5027_v41 = vpop.eup %5026  ;;  %v3622_v5 = vadd.f32 1.0, %v5025_v3  ;;  %5046 = vtanh.f32 %v3125_v57 }
 0x6c6   : > { %v5029_v18 = vpop.eup %5028  ;;  %3726 = vst [vmem:[%s6384_s12 + $0xd8] sm:$0xff] %v5027_v41  ;;  %3458 = vst [vmem:[%s6301_s28 + $0x178] sm:$0xff] %v3386_v49  ;;  %5048 = vpow2.f32 %v3977_v19 }
 0x6c7   : > { %v5031_v53 = vpop.eup %5030  ;;  %5050 = vrcp.f32 %v3622_v5  ;;  %v3387_v46 = vmul.f32 10.0, %v5029_v18 }
 0x6c8   : > { %v5033_v6 = vpop.eup %5032  ;;  %v3623_v35 = vadd.f32 1.0, %v5031_v53  ;;  %5052 = vtanh.f32 %v3129_v56 }
 0x6c9   : > { %v5035_v63 = vpop.eup %5034  ;;  %3727 = vst [vmem:[%s6384_s12 + $0xe0] sm:$0xff] %v5033_v6  ;;  %3459 = vst [vmem:[%s6301_s28 + $0x180] sm:$0xff] %v3387_v46  ;;  %5054 = vtanh.f32 %v3131_v25 }
 0x6ca   : > { %v5037_v36 = vpop.eup %5036  ;;  %5056 = vrcp.f32 %v3623_v35  ;;  %v3388_v37 = vmul.f32 10.0, %v5035_v63 }
 0x6cb   : > { %v5039_v42 = vpop.eup %5038  ;;  %v3624_v34 = vadd.f32 1.0, %v5037_v36  ;;  %5058 = vtanh.f32 %v3133_v2 }
 0x6cc   : > { %v5041_v7 = vpop.eup %5040  ;;  %3728 = vst [vmem:[%s6384_s12 + $0xe8] sm:$0xff] %v5039_v42  ;;  %3460 = vst [vmem:[%s6301_s28 + $0x188] sm:$0xff] %v3388_v37  ;;  %5060 = vtanh.f32 %v3135_v52 }
 0x6cd   : > { %v5043_v59 = vpop.eup %5042  ;;  %5062 = vrcp.f32 %v3624_v34  ;;  %v3389_v32 = vmul.f32 10.0, %v5041_v7 }
 0x6ce   : > { %v5045_v29 = vpop.eup %5044  ;;  %v3625_v28 = vadd.f32 1.0, %v5043_v59 }
 0x6cf   : > { %v5047_v58 = vpop.eup %5046  ;;  %3729 = vst [vmem:[%s6384_s12 + $0xf0] sm:$0xff] %v5045_v29  ;;  %3461 = vst [vmem:[%s6301_s28 + $0x190] sm:$0xff] %v3389_v32 }
 0x6d0   : > { %v5049_v20 = vpop.eup %5048  ;;  %5064 = vrcp.f32 %v3625_v28  ;;  %v3390_v17 = vmul.f32 10.0, %v5047_v58 }
 0x6d1   : > { %v5051_v38 = vpop.eup %5050  ;;  %v3626_v48 = vadd.f32 1.0, %v5049_v20 }
 0x6d2   : > { %v5053_v40 = vpop.eup %5052  ;;  %3730 = vst [vmem:[%s6384_s12 + $0xf8] sm:$0xff] %v5051_v38  ;;  %3462 = vst [vmem:[%s6301_s28 + $0x198] sm:$0xff] %v3390_v17 }
 0x6d3   : > { %v5055_v27 = vpop.eup %5054  ;;  %5066 = vrcp.f32 %v3626_v48  ;;  %v3391_v43 = vmul.f32 10.0, %v5053_v40 }
 0x6d4   : > { %v5057_v22 = vpop.eup %5056  ;;  %v3392_v11 = vmul.f32 10.0, %v5055_v27 }
 0x6d5   : > { %v5059_v60 = vpop.eup %5058  ;;  %3731 = vst [vmem:[%s6384_s12 + $0x100] sm:$0xff] %v5057_v22  ;;  %3463 = vst [vmem:[%s6301_s28 + $0x1a0] sm:$0xff] %v3391_v43 }
 0x6d6   : > { %v5061_v1 = vpop.eup %5060  ;;  %3464 = vst [vmem:[%s6301_s28 + $0x1a8] sm:$0xff] %v3392_v11  ;;  %v3393_v12 = vmul.f32 10.0, %v5059_v60 }
 0x6d7   : > { %v5063_v23 = vpop.eup %5062  ;;  %v3394_v26 = vmul.f32 10.0, %v5061_v1 }
 0x6d8   : > { %3732 = vst [vmem:[%s6384_s12 + $0x108] sm:$0xff] %v5063_v23  ;;  %3465 = vst [vmem:[%s6301_s28 + $0x1b0] sm:$0xff] %v3393_v12 }
 0x6d9   : > { %3466 = vst [vmem:[%s6301_s28 + $0x1b8] sm:$0xff] %v3394_v26  ;;  %s5072_s28 = sshll.u32 %s5143_s26, 4  ;;  %s5073_s28 = int_to_ptr.vmem [resolvable:$false] %s5072_s28 }
 0x6da   : > { %v5065_v62 = vpop.eup %5064  ;;  %s5074_s27 = scalar_lea.vmem %s5073_s28, 9216  ;;  %p5075_p0 = scmp.lt.s32.totalorder %s6633_s21, %s5073_s28 }
 0x6db   : > { %3733 = vst [vmem:[%s6384_s12 + $0x110] sm:$0xff] %v5065_v62  ;;  %p5076_p1 = scmp.lt.s32.totalorder %s5074_s27, %s5068_s25 }
 0x6dd   : > { %v5067_v9 = vpop.eup %5066  ;;  %p5077_p2 = por %p5076_p1, %p5075_p0 }
 0x6de   : > { %3734 = vst [vmem:[%s6384_s12 + $0x118] sm:$0xff] %v5067_v9 }
 0x6df   : > { %p5078_p3 = pnand %p5077_p2, %p5071_p13 }
 0x6e1   : > { %5081 = shalt.err (!%p5078_p3)
}
 0x6e2   : > { %s5082_s29 = scalar_lea.hbm %s6631_s18, 4608  ;;  %s5086_s11 = scalar_lea.hbm %s6690_s10, 9216 }
 0x6e3   : > { %p5083_p4 = scmp.ne.s32.totalorder %s6631_s18, %s5082_s29  ;;  %p5087_p9 = scmp.lt.u32.totalorder %s6631_s18, %s6690_s10 }
 0x6e4   : > { %p5088_p10 = scmp.lt.u32.totalorder %s5086_s11, %s5082_s29  ;;  %p5090_p12 = scmp.lt.u32.totalorder %s5082_s29, %s6631_s18 }
 0x6e5   : > { %p5084_p7 = pnand %p5083_p4, %p5238_p5 }
 0x6e6   : > { %p5089_p11 = por %p5088_p10, %p5087_p9 }
 0x6e7   : > { %p5085_p8 = pneg %p5084_p7 }
 0x6e8   : > { %p5091_p13 = por %p5090_p12, %p5089_p11 }
 0x6ea   : > { %p5092_p0 = pnand %p5091_p13, %p5085_p8 }
 0x6ec   : > { %5095 = shalt.err (!%p5092_p0)
}
 0x6ed   : > { %s5144_s25 = smov 256   ;;  %s6714_s28 = smov 16  }
 0x6ee   : > { %4189 = dma.vmem_to_hbm [thread:$0]  (%p5238_p5), %s6633_s21, 4608, %s6631_s18, %s6638_s17, %s5144_s25, %s5144_s25, %s6714_s28  }
 0x6ef PF: > { %p4195_p1 = scmp.ge.s32.totalorder %s5130_s16, 2  ;;  %s3780_s27 = sand.u32 1, %s5118_s13  }
 0x6f0   : > { %s3781_s29 = scalar_lea.sflag [#allocation5], %s3780_s27 }
 0x6f1   : > { %p4192_p2 = pnand %p4195_p1, %p5242_p6 }
 0x6f3   : > { %5113 = dma.done.wait (!%p4192_p2), %s3781_s29, 4608  }
 0x6f4   : > { %5115 = vsyncadd (!%p4192_p2), %s3781_s29, 4294962688  ;;  %p21_p3 = scmp.ge.s32.totalorder %s5225_s19, 4   ;;  %s6715_s13 = smov %s5122_s14 }
 0x6f5   : > { %s6716_s14 = smov %s5126_s15  ;;  %s6717_s15 = smov %s5236_s22 }
 0x6f6   : > { %s6718_s16 = smov %s5225_s19  ;;  %23 = sbr.rel (!%p21_p3) target bundleno = 3 (0x3), region = 103 }
 0x6fd   :  { %3786 = vsyncpa [#allocation5], 1 }
 0x6fe   :  { %3788 = vsyncpa [#allocation5 + $0x1], 1 }

// kernel: bidirectional_propagation.23
= control target key start
LH: loop header
LB: loop body
LE: loop exit
PB: predicated region body
PF: predicated region fallthrough
CT: control target
= control target key end

     0   :  { %s599_s12 = smov 0   ;;  %s601_s13 = smov 0   ;;  %s662_s0 = inlined_call_operand.vmem [shape: bf16[2,144,256], index: 0, kind: input, shape index: {}]   ;;  %s663_s1 = inlined_call_operand.vmem [shape: bf16[8,144], index: 1, kind: input, shape index: {}]   ;;  %s664_s2 = inlined_call_operand.vmem [shape: f32[8,1], index: 2, kind: input, shape index: {}]   ;;  %s665_s3 = inlined_call_operand.vmem [shape: f32[2,8,256], index: 3, kind: output, shape index: {}]  }
   0x1   :  { %s603_s14 = smov 0  }
   0x2 LB: > { %s25_s15 = sadd.s32 1, %s572_s13  ;;  %p470_p0 = scmp.ge.s32.totalorder %s576_s14, 1  ;;  %s576_s14 = sphi %s603_s14, %s13_s14   ;;  %s572_s13 = sphi %s601_s13, %s667_s13   ;;  %s568_s12 = sphi %s599_s12, %s666_s12  }
   0x3   : > { %p27_p1 = scmp.ge.s32.totalorder %s25_s15, 2  ;;  %p158_p2 = scmp.lt.s32.totalorder %s576_s14, 3 }
   0x5   : > { %s669_s15 = smov (%p27_p1, %s25_s15), 0  ;;  %p159_p3 = pnand %p470_p0, %p158_p2 }
   0x6   : > { %p191_p4 = scmp.lt.s32.totalorder (!%p159_p3), %s568_s12, 1  ;;  %v211_v0 = vld [vmem:[%s663_s1] sm:$0xff] (!%p159_p3)  ;;  %vm332_vm0 = vcmask (!%p159_p3), 130048   ;;  %v578_v3 = vmov (!%p159_p3), 0  }
   0x7   : > { %162 = sbr.rel (%p159_p3) target bundleno = 271 (0x10f), region = 32  ;;  %v230_v1 = vld [vmem:[%s664_s2] sm:$0xff] (!%p159_p3)  ;;  %v475_v2 = vcombine.high (!%p159_p3), %v211_v0, %v211_v0  ;;  %524 = vset.pattern.permute.xlu0 (!%p159_p3), %v578_v3  ;;  %v474_v22 = vcombine.low (!%p159_p3), %v211_v0, %v211_v0 }
   0x8   : > { %233 = vperm.xlu0 (!%p159_p3), %524, %v230_v1  }
   0x9   : > { %494 = vmatprep.mubr.msk.bf16.mxu0 (!%p159_p3), %vm332_vm0, %v475_v2 }
   0xe   : > { %s671_s12 = smov (!%p191_p4, %s568_s12), 1 }
   0xf   : > { %s498_s20 = smul.u32 144, %s671_s12  ;;  %s497_s24 = sshll.u32 %s671_s12, 4 }
  0x10   : > { %s208_s27 = scalar_lea.vmem %s665_s3, %s497_s24 }
  0x11   : > { %s629_s23 = scalar_lea.vmem %s662_s0, %s498_s20 }
  0x12   : > { %v525_v4 = vld [vmem:[%s629_s23 + $0x4] ss:$8 sps:$4 sm:$0xff]   ;;  %v527_v5 = vld [vmem:[%s629_s23] ss:$8 sps:$4 sm:$0xff]   ;;  %v528_v6 = vld [vmem:[%s629_s23 + $0x14] ss:$8 sps:$4 sm:$0xff]  }
  0x13   : > { %336 = vmatprep.subr.bf16.mxu0 %v525_v4  ;;  %v530_v7 = vld [vmem:[%s629_s23 + $0x10] ss:$8 sps:$4 sm:$0xff]   ;;  %v531_v8 = vld [vmem:[%s629_s23 + $0x24] ss:$8 sps:$4 sm:$0xff]   ;;  %v533_v9 = vld [vmem:[%s629_s23 + $0x20] ss:$8 sps:$4 sm:$0xff]  }
  0x14   : > { %337 = vmatpush1.bf16.msra.mxu0 %v527_v5  ;;  %v534_v10 = vld [vmem:[%s629_s23 + $0x34] ss:$8 sps:$4 sm:$0xff]   ;;  %v536_v11 = vld [vmem:[%s629_s23 + $0x30] ss:$8 sps:$4 sm:$0xff]   ;;  %v537_v12 = vld [vmem:[%s629_s23 + $0x44] ss:$8 sps:$4 sm:$0xff]  }
  0x15   : > { %338 = vmatprep.subr.bf16.mxu0 %v528_v6  ;;  %v539_v13 = vld [vmem:[%s629_s23 + $0x40] ss:$8 sps:$4 sm:$0xff]   ;;  %v540_v14 = vld [vmem:[%s629_s23 + $0x54] ss:$8 sps:$4 sm:$0xff]   ;;  %v542_v15 = vld [vmem:[%s629_s23 + $0x50] ss:$8 sps:$4 sm:$0xff]  }
  0x16   : > { %v543_v16 = vld [vmem:[%s629_s23 + $0x64] ss:$8 sps:$4 sm:$0xff]   ;;  %v545_v17 = vld [vmem:[%s629_s23 + $0x60] ss:$8 sps:$4 sm:$0xff]   ;;  %v546_v18 = vld [vmem:[%s629_s23 + $0x74] ss:$8 sps:$4 sm:$0xff]  }
  0x17   : > { %v548_v19 = vld [vmem:[%s629_s23 + $0x70] ss:$8 sps:$4 sm:$0xff]   ;;  %v549_v20 = vld [vmem:[%s629_s23 + $0x84] ss:$8 sps:$4 sm:$0xff]   ;;  %v551_v21 = vld [vmem:[%s629_s23 + $0x80] ss:$8 sps:$4 sm:$0xff]  }
  0x18   : > { %339 = vmatpush1.bf16.msra.mxu0 %v530_v7 }
  0x19   : > { %340 = vmatprep.subr.bf16.mxu0 %v531_v8 }
  0x1c   : > { %341 = vmatpush1.bf16.msra.mxu0 %v533_v9 }
  0x1d   : > { %342 = vmatprep.subr.bf16.mxu0 %v534_v10 }
  0x20   : > { %343 = vmatpush1.bf16.msra.mxu0 %v536_v11 }
  0x21   : > { %344 = vmatprep.subr.bf16.mxu0 %v537_v12 }
  0x24   : > { %345 = vmatpush1.bf16.msra.mxu0 %v539_v13 }
  0x25   : > { %346 = vmatprep.subr.bf16.mxu0 %v540_v14 }
  0x28   : > { %347 = vmatpush1.bf16.msra.mxu0 %v542_v15 }
  0x29   : > { %348 = vmatprep.subr.bf16.mxu0 %v543_v16 }
  0x2c   : > { %349 = vmatpush1.bf16.msra.mxu0 %v545_v17 }
  0x2d   : > { %350 = vmatprep.subr.bf16.mxu0 %v546_v18 }
  0x30   : > { %351 = vmatpush1.bf16.msra.mxu0 %v548_v19 }
  0x31   : > { %352 = vmatprep.subr.bf16.mxu0 %v549_v20 }
  0x34   : > { %353 = vmatpush1.bf16.msra.mxu0 %v551_v21 }
  0x37   : > { %369 = vmatmul.mubr.bf16.vlgmr.msra.gmra.mrb[0].mxu0 %v474_v22 }
  0x87   : > { %v234_v23 = vpop.permute.xlu0 %233 }
 0x10a   : > { %v370_v24 = vpop.f32.mrb[0].mxu0 }
 0x10b   : > { %v371_v25 = vadd.f32 %v370_v24, %v234_v23  ;;  %v372_v26 = vpop.f32.mrb[1].mxu0 }
 0x10c   : > { %v373_v27 = vadd.f32 %v372_v26, %v234_v23  ;;  %v374_v28 = vpop.f32.mrb[2].mxu0 }
 0x10d   : > { %377 = vst [vmem:[%s208_s27] sm:$0xff] %v371_v25  ;;  %v375_v29 = vpop.f32.mrb[3].mxu0 }
 0x10e   : > { %378 = vst [vmem:[%s208_s27 + $0x8] sm:$0xff] %v373_v27 }
 0x10f PF: > { %s13_s14 = sadd.s32 1, %s576_s14   ;;  %s666_s12 = smov %s572_s13 }
 0x110   : > { %p10_p5 = scmp.ge.s32.totalorder %s13_s14, 4   ;;  %s667_s13 = smov %s669_s15 }
 0x112   :  { %12 = sbr.rel (!%p10_p5) target bundleno = 2 (0x2), region = 62 }

// kernel: bidirectional_propagation.24
= control target key start
LH: loop header
LB: loop body
LE: loop exit
PB: predicated region body
PF: predicated region fallthrough
CT: control target
= control target key end

     0   :  { %s1439_s18 = smov 0   ;;  %s1696_s0 = inlined_call_operand.vmem [shape: f32[2,16,256], index: 0, kind: input, shape index: {}]   ;;  %s1697_s1 = inlined_call_operand.vmem [shape: bf16[8,144], index: 1, kind: input, shape index: {}]   ;;  %s1698_s2 = inlined_call_operand.vmem [shape: f32[8,1], index: 2, kind: input, shape index: {}]   ;;  %s1699_s3 = inlined_call_operand.vmem [shape: bf16[8,144], index: 3, kind: input, shape index: {}]   ;;  %s1700_s4 = inlined_call_operand.vmem [shape: f32[8,1], index: 4, kind: input, shape index: {}]   ;;  %s1701_s5 = inlined_call_operand.vmem [shape: f32[2,8,256], index: 5, kind: output, shape index: {}]  }
   0x1 LB: > { %s1095_s19 = sadd.s32 4294967295, %s1396_s18   ;;  %p1099_p0 = scmp.ge.s32.totalorder %s1396_s18, 1  ;;  %s1396_s18 = sphi %s1439_s18, %s15_s18  }
   0x2   : > { %p187_p1 = scmp.lt.s32.totalorder %s1396_s18, 3 }
   0x4   : > { %p188_p2 = pnand %p1099_p0, %p187_p1 }
   0x5   : > { %p215_p3 = scmp.lt.s32.totalorder (!%p188_p2), %s1095_s19, 1  ;;  %v1398_v0 = vmov (!%p188_p2), 0.0   ;;  %s1399_s20 = smov (!%p188_p2), 17   ;;  %v1400_v5 = vmov (!%p188_p2), 0.0|0.0   ;;  %v1491_v13 = vld [vmem:[%s1697_s1] sm:$0xff] (!%p188_p2)  ;;  %vm332_vm0 = vcmask (!%p188_p2), 130048   ;;  %v226_v17 = vlaneseq (!%p188_p2) }
   0x6   : > { %191 = sbr.rel (%p188_p2) target bundleno = 782 (0x30e), region = 40  ;;  %1206 = vrot.lane.b32.xlu1 (!%p188_p2), %v1398_v0, %s1399_s20  ;;  %s1401_s25 = smov (!%p188_p2), 16   ;;  %v1105_v14 = vcombine.high (!%p188_p2), %v1491_v13, %v1491_v13  ;;  %v1408_v15 = vmov (!%p188_p2), 0   ;;  %v600_v16 = vld [vmem:[%s1698_s2] sm:$0xff] (!%p188_p2)  ;;  %vm297_vm2 = vcmask (!%p188_p2), 138240   ;;  %vm367_vm6 = vcmask (!%p188_p2), 121856  }
   0x7   : > { %s1402_s26 = smov (!%p188_p2), 15   ;;  %s1403_s27 = smov (!%p188_p2), 1   ;;  %1295 = vset.pattern.permute.xlu0 (!%p188_p2), %v1408_v15  ;;  %v227_v18 = vand.u32 (!%p188_p2), 127, %v226_v17  ;;  %vm408_vm10 = vcmask (!%p188_p2), 7168   ;;  %vm457_vm12 = vcmask (!%p188_p2), 1039360   ;;  %vm498_vm13 = vcmask (!%p188_p2), 924672  }
   0x8   : > { %s1404_s28 = smov (!%p188_p2), 127   ;;  %s1405_s29 = smov (!%p188_p2), 113   ;;  %1106 = vmatprep.mubr.msk.bf16.mxu0 (!%p188_p2), %vm332_vm0, %v1105_v14  ;;  %vm533_vm14 = vcmask (!%p188_p2), 916480   ;;  %vm564_vm15 = vcmask (!%p188_p2), 908288  }
   0x9   : > { %s1406_s30 = smov (!%p188_p2), 112   ;;  %s1407_s6 = smov (!%p188_p2), 111   ;;  %v228_v20 = vadd.s32 (!%p188_p2), 128, %v227_v18  ;;  %v233_v24 = vand.u32 (!%p188_p2), 15, %v227_v18 }
   0xa   : > { %326 = vrot.lane.b32.xlu1 (!%p188_p2), %v1400_v5, %s1401_s25 }
   0xb   : > { %v240_v23 = vand.u32 (!%p188_p2), 15, %v228_v20  ;;  %vm253_vm3 = vcmp.ge.s32.totalorder (!%p188_p2), %v233_v24, 1  ;;  %vm255_vm9 = vcmp.le.s32.totalorder (!%p188_p2), %v233_v24, 14 }
   0xc   : > { %vm1517_vm5 = vmpackc.low (!%p188_p2), %vm253_vm3, %vm253_vm3 }
   0xd   : > { %s1711_s19 = smov (!%p215_p3, %s1095_s19), 1  ;;  %vm254_vm1 = vcmp.ge.s32.totalorder %v240_v23, 1  ;;  %vm256_vm7 = vcmp.le.s32.totalorder %v240_v23, 14  ;;  %vm1537_vm11 = vmpackc.low %vm255_vm9, %vm255_vm9 }
   0xe   : > { %s1112_s21 = sshll.u32 %s1711_s19, 5  ;;  %vm1511_vm4 = vmpackc.low %vm254_vm1, %vm254_vm1  ;;  %s1113_s15 = sshll.u32 %s1711_s19, 4 }
   0xf   : > { %s219_s24 = scalar_lea.vmem %s1696_s0, %s1112_s21  ;;  %vm1529_vm8 = vmpackc.low %vm256_vm7, %vm256_vm7 }
  0x10   : > { %v261_v1 = vld [vmem:[%s219_s24] sm:$0xff]  ;;  %v262_v2 = vld [vmem:[%s219_s24 + $0x8] sm:$0xff]  ;;  %v263_v3 = vld [vmem:[%s219_s24 + $0x10] sm:$0xff] }
  0x11   : > { %v1210_v4 = vpack.i.bf16 %v262_v2, %v261_v1  ;;  %v264_v6 = vld [vmem:[%s219_s24 + $0x18] sm:$0xff]  ;;  %v1457_v7 = vpack.c.bf16 %v263_v3, %v261_v1  ;;  %v1265_v11 = vpack.i.bf16 %v1398_v0, %v262_v2  ;;  %v1275_v12 = vpack.i.bf16 %v263_v3, %v261_v1 }
  0x12   : > { %v1215_v8 = vpack.i.bf16 %v264_v6, %v263_v3  ;;  %v1463_v9 = vpack.c.bf16 %v264_v6, %v262_v2  ;;  %v1255_v10 = vpack.i.bf16 %v1398_v0, %v264_v6 }
  0x13   : > { %1211 = vrot.lane.b32.xlu0 %v1210_v4, %s1399_s20  ;;  %328 = vrot.lane.b32.xlu1 %v1457_v7, %s1401_s25 }
  0x17   : > { %1216 = vrot.lane.b32.xlu0 %v1215_v8, %s1399_s20  ;;  %1226 = vrot.lane.b32.xlu1 %v1215_v8, %s1402_s26 }
  0x1b   : > { %330 = vrot.lane.b32.xlu0 %v1463_v9, %s1401_s25  ;;  %1236 = vrot.lane.b32.xlu1 %v1210_v4, %s1403_s27 }
  0x1f   : > { %1221 = vrot.lane.b32.xlu0 %v1210_v4, %s1402_s26  ;;  %1246 = vrot.lane.b32.xlu1 %v1398_v0, %s1403_s27 }
  0x23   : > { %1231 = vrot.lane.b32.xlu0 %v1398_v0, %s1402_s26  ;;  %1256 = vrot.lane.b32.xlu1 %v1255_v10, %s1404_s28 }
  0x27   : > { %1241 = vrot.lane.b32.xlu0 %v1215_v8, %s1403_s27  ;;  %1266 = vrot.lane.b32.xlu1 %v1265_v11, %s1405_s29 }
  0x2b   : > { %1251 = vrot.lane.b32.xlu0 %v1265_v11, %s1404_s28  ;;  %1276 = vrot.lane.b32.xlu1 %v1275_v12, %s1405_s29 }
  0x2f   : > { %1261 = vrot.lane.b32.xlu0 %v1275_v12, %s1404_s28  ;;  %531 = vrot.lane.b32.xlu1 %v1400_v5, %s1406_s30 }
  0x33   : > { %1271 = vrot.lane.b32.xlu0 %v1255_v10, %s1405_s29  ;;  %1281 = vrot.lane.b32.xlu1 %v1265_v11, %s1407_s6 }
  0x37   : > { %529 = vrot.lane.b32.xlu0 %v1463_v9, %s1406_s30  ;;  %1291 = vrot.lane.b32.xlu1 %v1275_v12, %s1407_s6 }
  0x3b   : > { %527 = vrot.lane.b32.xlu0 %v1457_v7, %s1406_s30  ;;  %1297 = vrot.lane.b32.xlu1 %v1398_v0, %s1399_s20 }
  0x3f   : > { %1286 = vrot.lane.b32.xlu0 %v1255_v10, %s1407_s6  ;;  %719 = vrot.lane.b32.xlu1 %v1400_v5, %s1401_s25 }
  0x43   : > { %603 = vperm.xlu0 %1295, %v600_v16   ;;  %1307 = vrot.lane.b32.xlu1 %v1398_v0, %s1402_s26 }
  0x47   : > { %1302 = vrot.lane.b32.xlu0 %v1398_v0, %s1399_s20 }
  0x4b   : > { %1312 = vrot.lane.b32.xlu0 %v1398_v0, %s1402_s26 }
  0x78   : > { %v1207_v19 = vpop.permute.xlu1 %1206 }
  0x79   : > { %v1208_v26 = vunpack.i.l.bf16 %v1207_v19  ;;  %v1209_v30 = vunpack.i.h.bf16 %v1207_v19 }
  0x7c   : > { %v327_v21 = vpop.permute.xlu1 %326 }
  0x85   : > { %v1212_v22 = vpop.permute.xlu0 %1211  ;;  %v329_v25 = vpop.permute.xlu1 %328 }
  0x86   : > { %v1214_v27 = vunpack.i.h.bf16 %v1212_v22  ;;  %v1213_v28 = vunpack.i.l.bf16 %v1212_v22  ;;  %v333_v51 = vsel %vm332_vm0, %v327_v21, %v329_v25 }
  0x88   : > { %v299_v34 = vsel %vm297_vm2, %v1213_v28, %v1214_v27  ;;  %v298_v37 = vsel %vm297_vm2, %v1208_v26, %v1213_v28 }
  0x89   : > { %v1217_v29 = vpop.permute.xlu0 %1216  ;;  %v1227_v33 = vpop.permute.xlu1 %1226 }
  0x8a   : > { %v1219_v31 = vunpack.i.h.bf16 %v1217_v29  ;;  %v1218_v32 = vunpack.i.l.bf16 %v1217_v29  ;;  %v1229_v43 = vunpack.i.h.bf16 %v1227_v33  ;;  %v1228_v44 = vunpack.i.l.bf16 %v1227_v33 }
  0x8c   : > { %v301_v35 = vsel %vm297_vm2, %v1218_v32, %v1219_v31  ;;  %v300_v38 = vsel %vm297_vm2, %v1209_v30, %v1218_v32  ;;  %v371_v48 = vsel %vm367_vm6, %v1228_v44, %v1229_v43 }
  0x8d   : > { %v331_v39 = vpop.permute.xlu0 %330  ;;  %v1115_v40 = vpack.c.bf16 %v301_v35, %v299_v34  ;;  %v1118_v42 = vpack.c.bf16 %v300_v38, %v298_v37  ;;  %v1237_v45 = vpop.permute.xlu1 %1236 }
  0x8e   : > { %v334_v46 = vsel %vm332_vm0, %v329_v25, %v331_v39  ;;  %v1239_v59 = vunpack.i.h.bf16 %v1237_v45  ;;  %v1238_v60 = vunpack.i.l.bf16 %v1237_v45 }
  0x8f   : > { %1116 = vmatprep.subr.msk.bf16.mxu0 %vm1511_vm4, %v1115_v40 }
  0x90   : > { %1119 = vmatpush1.bf16.msk.msra.mxu0 %vm1517_vm5, %v1118_v42  ;;  %v410_v11 = vsel %vm408_vm10, %v1238_v60, %v1239_v59 }
  0x91   : > { %v1222_v47 = vpop.permute.xlu0 %1221  ;;  %618 = vmatprep.subr.bf16.mxu0 %v334_v46  ;;  %v1247_v52 = vpop.permute.xlu1 %1246 }
  0x92   : > { %v1224_v49 = vunpack.i.h.bf16 %v1222_v47  ;;  %v1223_v50 = vunpack.i.l.bf16 %v1222_v47  ;;  %v1248_v61 = vunpack.i.l.bf16 %v1247_v52  ;;  %v1249_v2 = vunpack.i.h.bf16 %v1247_v52 }
  0x94   : > { %v369_v53 = vsel %vm367_vm6, %v1223_v50, %v1224_v49  ;;  %619 = vmatpush1.bf16.msra.mxu0 %v333_v51  ;;  %v409_v12 = vsel %vm408_vm10, %v1248_v61, %v1238_v60 }
  0x95   : > { %v1121_v55 = vpack.c.bf16 %v371_v48, %v369_v53  ;;  %v1232_v56 = vpop.permute.xlu0 %1231  ;;  %v1257_v62 = vpop.permute.xlu1 %1256 }
  0x96   : > { %v1234_v57 = vunpack.i.h.bf16 %v1232_v56  ;;  %v1233_v58 = vunpack.i.l.bf16 %v1232_v56  ;;  %v1259_v17 = vunpack.i.h.bf16 %v1257_v62  ;;  %v1258_v18 = vunpack.i.l.bf16 %v1257_v62 }
  0x97   : > { %1122 = vmatprep.subr.msk.bf16.mxu0 %vm1529_vm8, %v1121_v55 }
  0x98   : > { %v368_v63 = vsel %vm367_vm6, %v1233_v58, %v1223_v50  ;;  %v370_v1 = vsel %vm367_vm6, %v1234_v57, %v1228_v44  ;;  %v461_v25 = vsel %vm457_vm12, %v1258_v18, %v1259_v17 }
  0x99   : > { %v1124_v4 = vpack.c.bf16 %v370_v1, %v368_v63  ;;  %v1242_v6 = vpop.permute.xlu0 %1241  ;;  %v1267_v14 = vpop.permute.xlu1 %1266 }
  0x9a   : > { %v1244_v8 = vunpack.i.h.bf16 %v1242_v6  ;;  %v1243_v10 = vunpack.i.l.bf16 %v1242_v6  ;;  %v1269_v31 = vunpack.i.h.bf16 %v1267_v14  ;;  %v1268_v32 = vunpack.i.l.bf16 %v1267_v14 }
  0x9b   : > { %1125 = vmatpush1.bf16.msk.msra.mxu0 %vm1537_vm11, %v1124_v4 }
  0x9c   : > { %v411_v15 = vsel %vm408_vm10, %v1249_v2, %v1243_v10  ;;  %v412_v16 = vsel %vm408_vm10, %v1243_v10, %v1244_v8  ;;  %v500_v44 = vsel %vm498_vm13, %v1268_v32, %v1269_v31  ;;  %v1104_v8 = vcombine.low %v1491_v13, %v1491_v13 }
  0x9d   : > { %v1127_v19 = vpack.c.bf16 %v412_v16, %v410_v11  ;;  %v1130_v20 = vpack.c.bf16 %v411_v15, %v409_v12  ;;  %v1252_v21 = vpop.permute.xlu0 %1251  ;;  %v1277_v24 = vpop.permute.xlu1 %1276 }
  0x9e   : > { %v1254_v22 = vunpack.i.h.bf16 %v1252_v21  ;;  %v1253_v23 = vunpack.i.l.bf16 %v1252_v21  ;;  %v1279_v37 = vunpack.i.h.bf16 %v1277_v24  ;;  %v1278_v38 = vunpack.i.l.bf16 %v1277_v24 }
  0x9f   : > { %1128 = vmatprep.subr.msk.bf16.mxu0 %vm1511_vm4, %v1127_v19 }
  0xa0   : > { %v459_v26 = vsel %vm457_vm12, %v1253_v23, %v1254_v22  ;;  %1131 = vmatpush1.bf16.msk.msra.mxu0 %vm1517_vm5, %v1130_v20  ;;  %v499_v45 = vsel %vm498_vm13, %v1278_v38, %v1268_v32 }
  0xa1   : > { %v1262_v27 = vpop.permute.xlu0 %1261  ;;  %624 = vmatprep.subr.bf16.mxu0 %v1463_v9  ;;  %v1133_v30 = vpack.c.bf16 %v461_v25, %v459_v26  ;;  %v532_v33 = vpop.permute.xlu1 %531  ;;  %v1621_v26 = vld [vmem:[%s1699_s3] sm:$0xff] }
  0xa2   : > { %v1264_v28 = vunpack.i.h.bf16 %v1262_v27  ;;  %v1263_v29 = vunpack.i.l.bf16 %v1262_v27  ;;  %v1108_v27 = vcombine.high %v1621_v26, %v1621_v26 }
  0xa4   : > { %v458_v34 = vsel %vm457_vm12, %v1263_v29, %v1253_v23  ;;  %v460_v35 = vsel %vm457_vm12, %v1264_v28, %v1258_v18  ;;  %625 = vmatpush1.bf16.msra.mxu0 %v1457_v7  ;;  %1109 = vmatprep.mubr.msk.bf16.mxu1 %vm332_vm0, %v1108_v27  ;;  %v982_v28 = vld [vmem:[%s1700_s4] sm:$0xff] }
  0xa5   : > { %v1136_v39 = vpack.c.bf16 %v460_v35, %v458_v34  ;;  %v1272_v40 = vpop.permute.xlu0 %1271  ;;  %1134 = vmatprep.subr.msk.bf16.mxu0 %vm1529_vm8, %v1133_v30  ;;  %v1282_v43 = vpop.permute.xlu1 %1281 }
  0xa6   : > { %v1274_v9 = vunpack.i.h.bf16 %v1272_v40  ;;  %v1273_v42 = vunpack.i.l.bf16 %v1272_v40  ;;  %v1284_v55 = vunpack.i.h.bf16 %v1282_v43  ;;  %v1283_v56 = vunpack.i.l.bf16 %v1282_v43 }
  0xa8   : > { %v501_v46 = vsel %vm498_vm13, %v1279_v37, %v1273_v42  ;;  %v502_v47 = vsel %vm498_vm13, %v1273_v42, %v1274_v9  ;;  %1137 = vmatpush1.bf16.msk.msra.mxu0 %vm1537_vm11, %v1136_v39  ;;  %v566_v62 = vsel %vm564_vm15, %v1283_v56, %v1284_v55 }
  0xa9   : > { %v1139_v7 = vpack.c.bf16 %v502_v47, %v500_v44  ;;  %v1142_v48 = vpack.c.bf16 %v501_v46, %v499_v45  ;;  %v530_v49 = vpop.permute.xlu0 %529  ;;  %v1292_v52 = vpop.permute.xlu1 %1291 }
  0xaa   : > { %v535_v50 = vsel %vm533_vm14, %v530_v49, %v532_v33  ;;  %v1294_v57 = vunpack.i.h.bf16 %v1292_v52  ;;  %v1293_v58 = vunpack.i.l.bf16 %v1292_v52 }
  0xab   : > { %1140 = vmatprep.subr.msk.bf16.mxu0 %vm1511_vm4, %v1139_v7 }
  0xac   : > { %1143 = vmatpush1.bf16.msk.msra.mxu0 %vm1517_vm5, %v1142_v48  ;;  %v565_v63 = vsel %vm564_vm15, %v1293_v58, %v1283_v56 }
  0xad   : > { %v528_v51 = vpop.permute.xlu0 %527  ;;  %630 = vmatprep.subr.bf16.mxu0 %v535_v50 }
  0xae   : > { %v534_v53 = vsel %vm533_vm14, %v528_v51, %v530_v49 }
  0xb0   : > { %631 = vmatpush1.bf16.msra.mxu0 %v534_v53 }
  0xb1   : > { %v1287_v59 = vpop.permute.xlu0 %1286 }
  0xb2   : > { %v1289_v60 = vunpack.i.h.bf16 %v1287_v59  ;;  %v1288_v61 = vunpack.i.l.bf16 %v1287_v59 }
  0xb4   : > { %v567_v1 = vsel %vm564_vm15, %v1294_v57, %v1288_v61  ;;  %v568_v2 = vsel %vm564_vm15, %v1288_v61, %v1289_v60 }
  0xb5   : > { %v1145_v4 = vpack.c.bf16 %v568_v2, %v566_v62  ;;  %v1148_v6 = vpack.c.bf16 %v567_v1, %v565_v63 }
  0xb7   : > { %1146 = vmatprep.subr.msk.bf16.mxu0 %vm1529_vm8, %v1145_v4 }
  0xb8   : > { %1149 = vmatpush1.bf16.msk.msra.mxu0 %vm1537_vm11, %v1148_v6 }
  0xbb   : > { %649 = vmatmul.mubr.bf16.vlgmr.msra.gmra.mrb[0].mxu0 %v1104_v8 }
  0xc2   : > { %v604_v10 = vpop.permute.xlu0 %603 }
  0xc6   : > { %v1303_v30 = vpop.permute.xlu0 %1302 }
  0xc7   : > { %v1305_v33 = vunpack.i.h.bf16 %v1303_v30 }
  0xca   : > { %v1313_v31 = vpop.permute.xlu0 %1312 }
  0xcb   : > { %v1314_v52 = vunpack.i.l.bf16 %v1313_v31  ;;  %v1315_v55 = vunpack.i.h.bf16 %v1313_v31 }
 0x18e   : > { %v650_v11 = vpop.f32.mrb[0].mxu0 }
 0x18f   : > { %v651_v12 = vadd.f32 %v650_v11, %v604_v10  ;;  %v652_v14 = vpop.f32.mrb[1].mxu0 }
 0x190   : > { %v653_v15 = vadd.f32 %v652_v14, %v604_v10  ;;  %v654_v16 = vpop.f32.mrb[2].mxu0 }
 0x191   : > { %vm657_vm1 = vcmp.ge.f32.partialorder %v651_v12, 0.0  ;;  %v659_v17 = vmul.f32 0.1, %v651_v12  ;;  %v655_v18 = vpop.f32.mrb[3].mxu0 }
 0x192   : > { %vm658_vm3 = vcmp.ge.f32.partialorder %v653_v15, 0.0  ;;  %v660_v13 = vmul.f32 0.1, %v653_v15 }
 0x193   : > { %v661_v19 = vsel %vm657_vm1, %v651_v12, %v659_v17 }
 0x194   : > { %v662_v20 = vsel %vm658_vm3, %v653_v15, %v660_v13  ;;  %v1594_v23 = vpack.c.bf16 %v1398_v0, %v661_v19  ;;  %v1351_v25 = vpack.i.bf16 %v1398_v0, %v661_v19 }
 0x195   : > { %v1321_v21 = vpack.i.bf16 %v662_v20, %v661_v19  ;;  %v1588_v22 = vpack.c.bf16 %v1398_v0, %v662_v20  ;;  %v1341_v24 = vpack.i.bf16 %v1398_v0, %v662_v20 }
 0x197   : > { %1322 = vrot.lane.b32.xlu0 %v1321_v21, %s1402_s26  ;;  %1317 = vrot.lane.b32.xlu1 %v1321_v21, %s1399_s20  ;;  %s224_s20 = scalar_lea.vmem %s1701_s5, %s1113_s15 }
 0x19b   : > { %723 = vrot.lane.b32.xlu0 %v1588_v22, %s1401_s25  ;;  %1327 = vrot.lane.b32.xlu1 %v1321_v21, %s1403_s27 }
 0x19f   : > { %1332 = vrot.lane.b32.xlu0 %v1398_v0, %s1403_s27  ;;  %721 = vrot.lane.b32.xlu1 %v1594_v23, %s1401_s25 }
 0x1a3   : > { %1342 = vrot.lane.b32.xlu0 %v1341_v24, %s1404_s28  ;;  %1337 = vrot.lane.b32.xlu1 %v1398_v0, %s1403_s27 }
 0x1a7   : > { %1352 = vrot.lane.b32.xlu0 %v1351_v25, %s1404_s28  ;;  %1347 = vrot.lane.b32.xlu1 %v1398_v0, %s1404_s28 }
 0x1ab   : > { %1362 = vrot.lane.b32.xlu0 %v1398_v0, %s1405_s29  ;;  %1357 = vrot.lane.b32.xlu1 %v1341_v24, %s1405_s29 }
 0x1af   : > { %911 = vrot.lane.b32.xlu0 %v1594_v23, %s1406_s30  ;;  %1367 = vrot.lane.b32.xlu1 %v1351_v25, %s1405_s29 }
 0x1b3   : > { %913 = vrot.lane.b32.xlu0 %v1588_v22, %s1406_s30  ;;  %915 = vrot.lane.b32.xlu1 %v1400_v5, %s1406_s30  ;;  %v1298_v5 = vpop.permute.xlu1 %1297 }
 0x1b4   : > { %v1300_v34 = vunpack.i.h.bf16 %v1298_v5  ;;  %v1299_v35 = vunpack.i.l.bf16 %v1298_v5 }
 0x1b6   : > { %v694_v9 = vsel %vm297_vm2, %v1299_v35, %v1300_v34  ;;  %v693_v42 = vsel %vm297_vm2, %v1305_v33, %v1299_v35 }
 0x1b7   : > { %1377 = vrot.lane.b32.xlu0 %v1398_v0, %s1407_s6  ;;  %1372 = vrot.lane.b32.xlu1 %v1341_v24, %s1407_s6  ;;  %v720_v29 = vpop.permute.xlu1 %719  ;;  %v1304_v0 = vunpack.i.l.bf16 %v1303_v30 }
 0x1bb   : > { %985 = vperm.xlu0 %1295, %v982_v28   ;;  %1382 = vrot.lane.b32.xlu1 %v1351_v25, %s1407_s6  ;;  %v1308_v32 = vpop.permute.xlu1 %1307 }
 0x1bc   : > { %v1310_v47 = vunpack.i.h.bf16 %v1308_v32  ;;  %v1309_v7 = vunpack.i.l.bf16 %v1308_v32 }
 0x1be   : > { %v758_v56 = vsel %vm367_vm6, %v1309_v7, %v1310_v47  ;;  %v757_v8 = vsel %vm367_vm6, %v1315_v55, %v1309_v7 }
 0x209   : > { %v1323_v37 = vpop.permute.xlu0 %1322  ;;  %v1318_v38 = vpop.permute.xlu1 %1317 }
 0x20a   : > { %v1320_v39 = vunpack.i.h.bf16 %v1318_v38  ;;  %v1319_v40 = vunpack.i.l.bf16 %v1318_v38  ;;  %v1325_v43 = vunpack.i.h.bf16 %v1323_v37  ;;  %v1324_v44 = vunpack.i.l.bf16 %v1323_v37 }
 0x20c   : > { %v692_v45 = vsel %vm297_vm2, %v1319_v40, %v1320_v39  ;;  %v691_v46 = vsel %vm297_vm2, %v1304_v0, %v1319_v40  ;;  %v756_v53 = vsel %vm367_vm6, %v1324_v44, %v1325_v43  ;;  %v755_v2 = vsel %vm367_vm6, %v1314_v52, %v1324_v44 }
 0x20d   : > { %v724_v48 = vpop.permute.xlu0 %723  ;;  %v1328_v49 = vpop.permute.xlu1 %1327  ;;  %v1151_v50 = vpack.c.bf16 %v694_v9, %v692_v45  ;;  %v1154_v51 = vpack.c.bf16 %v693_v42, %v691_v46  ;;  %v1157_v4 = vpack.c.bf16 %v758_v56, %v756_v53  ;;  %v1160_v12 = vpack.c.bf16 %v757_v8, %v755_v2 }
 0x20e   : > { %v1330_v57 = vunpack.i.h.bf16 %v1328_v49  ;;  %v1329_v58 = vunpack.i.l.bf16 %v1328_v49 }
 0x20f   : > { %1152 = vmatprep.subr.msk.bf16.mxu1 %vm1511_vm4, %v1151_v50 }
 0x210   : > { %1155 = vmatpush1.bf16.msk.msra.mxu1 %vm1517_vm5, %v1154_v51  ;;  %v796_v14 = vsel %vm408_vm10, %v1329_v58, %v1330_v57 }
 0x211   : > { %v1333_v59 = vpop.permute.xlu0 %1332  ;;  %v722_v60 = vpop.permute.xlu1 %721 }
 0x212   : > { %v1335_v61 = vunpack.i.h.bf16 %v1333_v59  ;;  %v1334_v62 = vunpack.i.l.bf16 %v1333_v59  ;;  %v726_v63 = vsel %vm332_vm0, %v722_v60, %v724_v48  ;;  %v725_v1 = vsel %vm332_vm0, %v720_v29, %v722_v60 }
 0x213   : > { %999 = vmatprep.subr.bf16.mxu1 %v726_v63 }
 0x214   : > { %v798_v6 = vsel %vm408_vm10, %v1334_v62, %v1335_v61  ;;  %1000 = vmatpush1.bf16.msra.mxu1 %v725_v1 }
 0x215   : > { %v1343_v10 = vpop.permute.xlu0 %1342  ;;  %1158 = vmatprep.subr.msk.bf16.mxu1 %vm1529_vm8, %v1157_v4  ;;  %v1338_v11 = vpop.permute.xlu1 %1337  ;;  %v1163_v17 = vpack.c.bf16 %v798_v6, %v796_v14  ;;  %v1107_v6 = vcombine.low %v1621_v26, %v1621_v26 }
 0x216   : > { %v1340_v15 = vunpack.i.h.bf16 %v1338_v11  ;;  %v1339_v16 = vunpack.i.l.bf16 %v1338_v11  ;;  %v1345_v19 = vunpack.i.h.bf16 %v1343_v10  ;;  %v1344_v20 = vunpack.i.l.bf16 %v1343_v10 }
 0x218   : > { %v797_v18 = vsel %vm408_vm10, %v1340_v15, %v1334_v62  ;;  %v795_v13 = vsel %vm408_vm10, %v1339_v16, %v1329_v58  ;;  %1161 = vmatpush1.bf16.msk.msra.mxu1 %vm1537_vm11, %v1160_v12  ;;  %v844_v31 = vsel %vm457_vm12, %v1344_v20, %v1345_v19 }
 0x219   : > { %v1166_v21 = vpack.c.bf16 %v797_v18, %v795_v13  ;;  %v1353_v24 = vpop.permute.xlu0 %1352  ;;  %1164 = vmatprep.subr.msk.bf16.mxu1 %vm1511_vm4, %v1163_v17  ;;  %v1348_v25 = vpop.permute.xlu1 %1347 }
 0x21a   : > { %v1350_v27 = vunpack.i.h.bf16 %v1348_v25  ;;  %v1349_v28 = vunpack.i.l.bf16 %v1348_v25  ;;  %v1355_v5 = vunpack.i.h.bf16 %v1353_v24  ;;  %v1354_v29 = vunpack.i.l.bf16 %v1353_v24 }
 0x21c   : > { %v846_v30 = vsel %vm457_vm12, %v1349_v28, %v1350_v27  ;;  %1167 = vmatpush1.bf16.msk.msra.mxu1 %vm1517_vm5, %v1166_v21  ;;  %v843_v0 = vsel %vm457_vm12, %v1354_v29, %v1344_v20  ;;  %v845_v39 = vsel %vm457_vm12, %v1355_v5, %v1349_v28 }
 0x21d   : > { %v1363_v32 = vpop.permute.xlu0 %1362  ;;  %v1358_v33 = vpop.permute.xlu1 %1357  ;;  %1005 = vmatprep.subr.bf16.mxu1 %v1588_v22  ;;  %v1169_v40 = vpack.c.bf16 %v846_v30, %v844_v31  ;;  %v1172_v22 = vpack.c.bf16 %v845_v39, %v843_v0 }
 0x21e   : > { %v1365_v34 = vunpack.i.h.bf16 %v1363_v32  ;;  %v1364_v35 = vunpack.i.l.bf16 %v1363_v32  ;;  %v1360_v37 = vunpack.i.h.bf16 %v1358_v33  ;;  %v1359_v38 = vunpack.i.l.bf16 %v1358_v33 }
 0x220   : > { %v886_v9 = vsel %vm498_vm13, %v1364_v35, %v1365_v34  ;;  %v884_v42 = vsel %vm498_vm13, %v1359_v38, %v1360_v37  ;;  %1006 = vmatpush1.bf16.msra.mxu1 %v1594_v23 }
 0x221   : > { %v912_v43 = vpop.permute.xlu0 %911  ;;  %v1368_v44 = vpop.permute.xlu1 %1367  ;;  %1170 = vmatprep.subr.msk.bf16.mxu1 %vm1529_vm8, %v1169_v40  ;;  %v1175_v47 = vpack.c.bf16 %v886_v9, %v884_v42 }
 0x222   : > { %v1370_v45 = vunpack.i.h.bf16 %v1368_v44  ;;  %v1369_v46 = vunpack.i.l.bf16 %v1368_v44 }
 0x224   : > { %v885_v7 = vsel %vm498_vm13, %v1370_v45, %v1364_v35  ;;  %v883_v48 = vsel %vm498_vm13, %v1369_v46, %v1359_v38  ;;  %1173 = vmatpush1.bf16.msk.msra.mxu1 %vm1537_vm11, %v1172_v22 }
 0x225   : > { %v1178_v49 = vpack.c.bf16 %v885_v7, %v883_v48  ;;  %v914_v50 = vpop.permute.xlu0 %913  ;;  %v916_v51 = vpop.permute.xlu1 %915  ;;  %1176 = vmatprep.subr.msk.bf16.mxu1 %vm1511_vm4, %v1175_v47 }
 0x226   : > { %v918_v23 = vsel %vm533_vm14, %v914_v50, %v916_v51  ;;  %v917_v59 = vsel %vm533_vm14, %v912_v43, %v914_v50 }
 0x228   : > { %1179 = vmatpush1.bf16.msk.msra.mxu1 %vm1517_vm5, %v1178_v49 }
 0x229   : > { %v1378_v52 = vpop.permute.xlu0 %1377  ;;  %v1373_v53 = vpop.permute.xlu1 %1372  ;;  %1011 = vmatprep.subr.bf16.mxu1 %v918_v23 }
 0x22a   : > { %v1380_v55 = vunpack.i.h.bf16 %v1378_v52  ;;  %v1379_v56 = vunpack.i.l.bf16 %v1378_v52  ;;  %v1375_v57 = vunpack.i.h.bf16 %v1373_v53  ;;  %v1374_v58 = vunpack.i.l.bf16 %v1373_v53 }
 0x22c   : > { %v950_v60 = vsel %vm564_vm15, %v1379_v56, %v1380_v55  ;;  %v948_v36 = vsel %vm564_vm15, %v1374_v58, %v1375_v57  ;;  %1012 = vmatpush1.bf16.msra.mxu1 %v917_v59 }
 0x22d   : > { %v1181_v61 = vpack.c.bf16 %v950_v60, %v948_v36  ;;  %v1383_v41 = vpop.permute.xlu1 %1382 }
 0x22e   : > { %v1385_v62 = vunpack.i.h.bf16 %v1383_v41  ;;  %v1384_v63 = vunpack.i.l.bf16 %v1383_v41 }
 0x22f   : > { %1182 = vmatprep.subr.msk.bf16.mxu1 %vm1529_vm8, %v1181_v61 }
 0x230   : > { %v949_v1 = vsel %vm564_vm15, %v1385_v62, %v1379_v56  ;;  %v947_v2 = vsel %vm564_vm15, %v1384_v63, %v1374_v58 }
 0x231   : > { %v1184_v4 = vpack.c.bf16 %v949_v1, %v947_v2 }
 0x233   : > { %1185 = vmatpush1.bf16.msk.msra.mxu1 %vm1537_vm11, %v1184_v4 }
 0x236   : > { %1030 = vmatmul.mubr.bf16.vlgmr.msra.gmra.mrb[0].mxu1 %v1107_v6 }
 0x23a   : > { %v986_v8 = vpop.permute.xlu0 %985 }
 0x309   : > { %v1031_v54 = vpop.f32.mrb[0].mxu1 }
 0x30a   : > { %v1032_v10 = vadd.f32 %v1031_v54, %v986_v8  ;;  %v1033_v11 = vpop.f32.mrb[1].mxu1 }
 0x30b   : > { %v1034_v12 = vadd.f32 %v1033_v11, %v986_v8  ;;  %v1035_v14 = vpop.f32.mrb[2].mxu1 }
 0x30c   : > { %1038 = vst [vmem:[%s224_s20] sm:$0xff] %v1032_v10  ;;  %v1036_v15 = vpop.f32.mrb[3].mxu1 }
 0x30d   : > { %1039 = vst [vmem:[%s224_s20 + $0x8] sm:$0xff] %v1034_v12 }
 0x30e PF: > { %s15_s18 = sadd.s32 1, %s1396_s18  }
 0x30f   : > { %p12_p4 = scmp.ge.s32.totalorder %s15_s18, 4  }
 0x311   :  { %14 = sbr.rel (!%p12_p4) target bundleno = 1 (0x1), region = 70 }

// kernel: bidirectional_propagation.41
= control target key start
LH: loop header
LB: loop body
LE: loop exit
PB: predicated region body
PF: predicated region fallthrough
CT: control target
= control target key end

     0   :  { %s454_s12 = smov 0   ;;  %s456_s13 = smov 0   ;;  %s493_s0 = inlined_call_operand.vmem [shape: bf16[8,16,256], index: 0, kind: input, shape index: {}]   ;;  %s494_s1 = inlined_call_operand.vmem [shape: bf16[8,16], index: 1, kind: input, shape index: {}]   ;;  %s495_s2 = inlined_call_operand.vmem [shape: f32[8,1], index: 2, kind: input, shape index: {}]   ;;  %s496_s3 = inlined_call_operand.vmem [shape: f32[8,8,256], index: 3, kind: output, shape index: {}]  }
   0x1   :  { %s458_s14 = smov 0  }
   0x2 LB: > { %s25_s15 = sadd.s32 1, %s427_s13  ;;  %p368_p0 = scmp.ge.s32.totalorder %s431_s14, 1  ;;  %s431_s14 = sphi %s458_s14, %s13_s14   ;;  %s427_s13 = sphi %s456_s13, %s498_s13   ;;  %s423_s12 = sphi %s454_s12, %s497_s12  }
   0x3   : > { %p27_p1 = scmp.ge.s32.totalorder %s25_s15, 8  ;;  %p158_p2 = scmp.lt.s32.totalorder %s431_s14, 9 }
   0x5   : > { %s500_s15 = smov (%p27_p1, %s25_s15), 0  ;;  %p159_p3 = pnand %p368_p0, %p158_p2 }
   0x6   : > { %p191_p4 = scmp.lt.s32.totalorder (!%p159_p3), %s423_s12, 7  ;;  %v214_v0 = vld [vmem:[%s495_s2] sm:$0xff] (!%p159_p3)  ;;  %v433_v1 = vmov (!%p159_p3), 0   ;;  %vm230_vm0 = vcmask (!%p159_p3), 130048  }
   0x7   : > { %162 = sbr.rel (%p159_p3) target bundleno = 238 (0xee), region = 32  ;;  %266 = vmatprep.mubr.bf16.mxu0 (!%p159_p3), %v433_v1  ;;  %405 = vset.pattern.permute.xlu0 (!%p159_p3), %v433_v1  ;;  %v211_v4 = vld [vmem:[%s494_s1] sm:$0xf] (!%p159_p3) }
   0x8   : > { %217 = vperm.xlu0 (!%p159_p3), %405, %v214_v0  }
   0xe   : > { %s502_s12 = smov (!%p191_p4, %s423_s12), 7 }
   0xf   : > { %s378_s18 = sshll.u32 %s502_s12, 4 }
  0x10   : > { %s198_s21 = scalar_lea.vmem %s493_s0, %s378_s18  ;;  %s208_s26 = scalar_lea.vmem %s496_s3, %s378_s18 }
  0x11   : > { %v406_v2 = vld [vmem:[%s198_s21 + $0x4] ss:$8 sps:$4 sm:$0xff]   ;;  %v408_v3 = vld [vmem:[%s198_s21] ss:$8 sps:$4 sm:$0xff]  }
  0x12   : > { %234 = vmatprep.subr.bf16.mxu0 %v406_v2 }
  0x13   : > { %235 = vmatpush1.bf16.msra.mxu0 %v408_v3 }
  0x16   : > { %375 = vmatmul.mubr.msk.bf16.vlgmr.msra.gmra.mrb[0].mxu0 %vm230_vm0, %v211_v4 }
  0x87   : > { %v218_v5 = vpop.permute.xlu0 %217 }
  0xe9   : > { %v268_v6 = vpop.f32.mrb[0].mxu0 }
  0xea   : > { %v269_v7 = vadd.f32 %v268_v6, %v218_v5  ;;  %v270_v8 = vpop.f32.mrb[1].mxu0 }
  0xeb   : > { %v271_v9 = vadd.f32 %v270_v8, %v218_v5  ;;  %v272_v10 = vpop.f32.mrb[2].mxu0 }
  0xec   : > { %275 = vst [vmem:[%s208_s26] sm:$0xff] %v269_v7  ;;  %v273_v11 = vpop.f32.mrb[3].mxu0 }
  0xed   : > { %276 = vst [vmem:[%s208_s26 + $0x8] sm:$0xff] %v271_v9 }
  0xee PF: > { %s13_s14 = sadd.s32 1, %s431_s14   ;;  %s497_s12 = smov %s427_s13 }
  0xef   : > { %p10_p5 = scmp.ge.s32.totalorder %s13_s14, 10   ;;  %s498_s13 = smov %s500_s15 }
  0xf1   :  { %12 = sbr.rel (!%p10_p5) target bundleno = 2 (0x2), region = 62 }

// kernel: bidirectional_propagation.31
= control target key start
LH: loop header
LB: loop body
LE: loop exit
PB: predicated region body
PF: predicated region fallthrough
CT: control target
= control target key end

     0   :  { %s1944_s18 = smov 0   ;;  %s2311_s0 = inlined_call_operand.vmem [shape: f32[2,32,256], index: 0, kind: input, shape index: {}]   ;;  %s2312_s1 = inlined_call_operand.vmem [shape: bf16[8,288], index: 1, kind: input, shape index: {}]   ;;  %s2313_s2 = inlined_call_operand.vmem [shape: f32[8,1], index: 2, kind: input, shape index: {}]   ;;  %s2314_s3 = inlined_call_operand.vmem [shape: bf16[8,144], index: 3, kind: input, shape index: {}]   ;;  %s2315_s4 = inlined_call_operand.vmem [shape: f32[8,1], index: 4, kind: input, shape index: {}]   ;;  %s2316_s5 = inlined_call_operand.vmem [shape: f32[2,8,256], index: 5, kind: output, shape index: {}]  }
   0x1 LB: > { %s1468_s19 = sadd.s32 4294967295, %s1901_s18   ;;  %p1472_p0 = scmp.ge.s32.totalorder %s1901_s18, 1  ;;  %s1901_s18 = sphi %s1944_s18, %s15_s18  }
   0x2   : > { %p187_p1 = scmp.lt.s32.totalorder %s1901_s18, 3 }
   0x4   : > { %p188_p2 = pnand %p1472_p0, %p187_p1 }
   0x5   : > { %p215_p3 = scmp.lt.s32.totalorder (!%p188_p2), %s1468_s19, 1  ;;  %v1903_v0 = vmov (!%p188_p2), 0.0   ;;  %s1904_s20 = smov (!%p188_p2), 17   ;;  %v1906_v18 = vmov (!%p188_p2), 0.0|0.0   ;;  %v2030_v24 = vld [vmem:[%s2312_s1] sm:$0xff] (!%p188_p2)  ;;  %v1913_v26 = vmov (!%p188_p2), 0   ;;  %v226_v28 = vlaneseq (!%p188_p2) }
   0x6   : > { %191 = sbr.rel (%p188_p2) target bundleno = 828 (0x33c), region = 40  ;;  %1620 = vrot.lane.b32.xlu1 (!%p188_p2), %v1903_v0, %s1904_s20  ;;  %s1905_s25 = smov (!%p188_p2), 16   ;;  %v1478_v25 = vcombine.high (!%p188_p2), %v2030_v24, %v2030_v24  ;;  %1020 = vmatprep.mubr.bf16.mxu1 (!%p188_p2), %v1913_v26  ;;  %v927_v27 = vld [vmem:[%s2313_s2] sm:$0xff] (!%p188_p2)  ;;  %vm333_vm0 = vcmask (!%p188_p2), 138240   ;;  %vm402_vm5 = vcmask (!%p188_p2), 130048   ;;  %vm467_vm6 = vcmask (!%p188_p2), 121856  }
   0x7   : > { %s1907_s26 = smov (!%p188_p2), 15   ;;  %s1908_s27 = smov (!%p188_p2), 1   ;;  %1799 = vset.pattern.permute.xlu0 (!%p188_p2), %v1913_v26  ;;  %v2052_v29 = vand.u32 (!%p188_p2), 127, %v226_v28  ;;  %vm548_vm11 = vcmask (!%p188_p2), 7168   ;;  %vm645_vm12 = vcmask (!%p188_p2), 1039360   ;;  %vm726_vm13 = vcmask (!%p188_p2), 924672  }
   0x8   : > { %s1909_s28 = smov (!%p188_p2), 127   ;;  %s1910_s29 = smov (!%p188_p2), 113   ;;  %979 = vmatprep.mubr.bf16.mxu0 (!%p188_p2), %v1478_v25  ;;  %vm795_vm14 = vcmask (!%p188_p2), 916480   ;;  %vm856_vm15 = vcmask (!%p188_p2), 908288  }
   0x9   : > { %s1911_s30 = smov (!%p188_p2), 112   ;;  %s1912_s6 = smov (!%p188_p2), 111   ;;  %v228_v31 = vadd.s32 (!%p188_p2), 128, %v2052_v29  ;;  %v233_v35 = vand.u32 (!%p188_p2), 15, %v2052_v29 }
   0xb   : > { %v240_v34 = vand.u32 (!%p188_p2), 15, %v228_v31  ;;  %vm2058_vm2 = vcmp.ge.s32.totalorder (!%p188_p2), %v233_v35, 1  ;;  %vm255_vm9 = vcmp.le.s32.totalorder (!%p188_p2), %v233_v35, 14 }
   0xc   : > { %vm2073_vm4 = vmpackc.low (!%p188_p2), %vm2058_vm2, %vm2058_vm2 }
   0xd   : > { %s2328_s19 = smov (!%p215_p3, %s1468_s19), 1  ;;  %vm254_vm1 = vcmp.ge.s32.totalorder %v240_v34, 1  ;;  %vm256_vm7 = vcmp.le.s32.totalorder %v240_v34, 14  ;;  %vm2105_vm10 = vmpackc.low %vm255_vm9, %vm255_vm9 }
   0xe   : > { %s1486_s21 = sshll.u32 %s2328_s19, 6  ;;  %vm2064_vm3 = vmpackc.low %vm254_vm1, %vm254_vm1  ;;  %vm943_vm1 = vcmask 261120   ;;  %s1487_s17 = sshll.u32 %s2328_s19, 4 }
   0xf   : > { %s219_s24 = scalar_lea.vmem %s2311_s0, %s1486_s21  ;;  %vm2095_vm8 = vmpackc.low %vm256_vm7, %vm256_vm7  ;;  %s224_s22 = scalar_lea.vmem %s2316_s5, %s1487_s17 }
  0x10   : > { %v269_v1 = vld [vmem:[%s219_s24 + $0x20] sm:$0xff]  ;;  %v270_v2 = vld [vmem:[%s219_s24 + $0x28] sm:$0xff]  ;;  %v267_v6 = vld [vmem:[%s219_s24 + $0x10] sm:$0xff] }
  0x11   : > { %v265_v3 = vld [vmem:[%s219_s24] sm:$0xff]  ;;  %v1634_v4 = vpack.i.bf16 %v270_v2, %v269_v1  ;;  %v266_v5 = vld [vmem:[%s219_s24 + $0x8] sm:$0xff]  ;;  %v268_v7 = vld [vmem:[%s219_s24 + $0x18] sm:$0xff]  ;;  %v1724_v21 = vpack.i.bf16 %v1903_v0, %v270_v2 }
  0x12   : > { %v1624_v8 = vpack.i.bf16 %v266_v5, %v265_v3  ;;  %v1629_v9 = vpack.i.bf16 %v268_v7, %v267_v6  ;;  %v271_v10 = vld [vmem:[%s219_s24 + $0x30] sm:$0xff]  ;;  %v272_v11 = vld [vmem:[%s219_s24 + $0x38] sm:$0xff]  ;;  %v1964_v12 = vpack.c.bf16 %v268_v7, %v266_v5  ;;  %v1779_v14 = vpack.i.bf16 %v267_v6, %v265_v3 }
  0x13   : > { %1635 = vrot.lane.b32.xlu1 %v1634_v4, %s1904_s20  ;;  %v1639_v13 = vpack.i.bf16 %v272_v11, %v271_v10  ;;  %v1794_v15 = vpack.i.bf16 %v271_v10, %v269_v1  ;;  %v1969_v16 = vpack.c.bf16 %v271_v10, %v269_v1  ;;  %v1972_v17 = vpack.c.bf16 %v267_v6, %v265_v3 }
  0x14   : > { %1625 = vrot.lane.b32.xlu0 %v1624_v8, %s1904_s20  ;;  %v1982_v19 = vpack.c.bf16 %v272_v11, %v270_v2  ;;  %v1714_v20 = vpack.i.bf16 %v1903_v0, %v268_v7  ;;  %v1709_v22 = vpack.i.bf16 %v1903_v0, %v266_v5  ;;  %v1729_v23 = vpack.i.bf16 %v1903_v0, %v272_v11 }
  0x17   : > { %1645 = vrot.lane.b32.xlu1 %v1903_v0, %s1904_s20 }
  0x18   : > { %1630 = vrot.lane.b32.xlu0 %v1629_v9, %s1904_s20 }
  0x1b   : > { %394 = vrot.lane.b32.xlu1 %v1964_v12, %s1905_s25 }
  0x1c   : > { %1640 = vrot.lane.b32.xlu0 %v1639_v13, %s1904_s20 }
  0x1f   : > { %398 = vrot.lane.b32.xlu1 %v1969_v16, %s1905_s25 }
  0x20   : > { %392 = vrot.lane.b32.xlu0 %v1972_v17, %s1905_s25 }
  0x23   : > { %396 = vrot.lane.b32.xlu1 %v1906_v18, %s1905_s25 }
  0x24   : > { %390 = vrot.lane.b32.xlu0 %v1906_v18, %s1905_s25 }
  0x27   : > { %1655 = vrot.lane.b32.xlu1 %v1629_v9, %s1907_s26 }
  0x28   : > { %400 = vrot.lane.b32.xlu0 %v1982_v19, %s1905_s25 }
  0x2b   : > { %1665 = vrot.lane.b32.xlu1 %v1634_v4, %s1907_s26 }
  0x2c   : > { %1650 = vrot.lane.b32.xlu0 %v1624_v8, %s1907_s26 }
  0x2f   : > { %1675 = vrot.lane.b32.xlu1 %v1903_v0, %s1907_s26 }
  0x30   : > { %1660 = vrot.lane.b32.xlu0 %v1903_v0, %s1907_s26 }
  0x33   : > { %1685 = vrot.lane.b32.xlu1 %v1629_v9, %s1908_s27 }
  0x34   : > { %1670 = vrot.lane.b32.xlu0 %v1639_v13, %s1907_s26 }
  0x37   : > { %1695 = vrot.lane.b32.xlu1 %v1634_v4, %s1908_s27 }
  0x38   : > { %1680 = vrot.lane.b32.xlu0 %v1624_v8, %s1908_s27 }
  0x3b   : > { %1705 = vrot.lane.b32.xlu1 %v1903_v0, %s1908_s27 }
  0x3c   : > { %1690 = vrot.lane.b32.xlu0 %v1903_v0, %s1908_s27 }
  0x3f   : > { %1715 = vrot.lane.b32.xlu1 %v1714_v20, %s1909_s28 }
  0x40   : > { %1700 = vrot.lane.b32.xlu0 %v1639_v13, %s1908_s27 }
  0x43   : > { %1725 = vrot.lane.b32.xlu1 %v1724_v21, %s1909_s28 }
  0x44   : > { %1710 = vrot.lane.b32.xlu0 %v1709_v22, %s1909_s28 }
  0x47   : > { %1735 = vrot.lane.b32.xlu1 %v1794_v15, %s1909_s28 }
  0x48   : > { %1720 = vrot.lane.b32.xlu0 %v1779_v14, %s1909_s28 }
  0x4b   : > { %1745 = vrot.lane.b32.xlu1 %v1714_v20, %s1910_s29 }
  0x4c   : > { %1730 = vrot.lane.b32.xlu0 %v1729_v23, %s1909_s28 }
  0x4f   : > { %1755 = vrot.lane.b32.xlu1 %v1724_v21, %s1910_s29 }
  0x50   : > { %1740 = vrot.lane.b32.xlu0 %v1709_v22, %s1910_s29 }
  0x53   : > { %1765 = vrot.lane.b32.xlu1 %v1794_v15, %s1910_s29 }
  0x54   : > { %1750 = vrot.lane.b32.xlu0 %v1779_v14, %s1910_s29 }
  0x57   : > { %787 = vrot.lane.b32.xlu1 %v1906_v18, %s1911_s30 }
  0x58   : > { %1760 = vrot.lane.b32.xlu0 %v1729_v23, %s1910_s29 }
  0x5b   : > { %1775 = vrot.lane.b32.xlu1 %v1714_v20, %s1912_s6 }
  0x5c   : > { %785 = vrot.lane.b32.xlu0 %v1964_v12, %s1911_s30 }
  0x5f   : > { %1780 = vrot.lane.b32.xlu1 %v1779_v14, %s1912_s6 }
  0x60   : > { %1770 = vrot.lane.b32.xlu0 %v1709_v22, %s1912_s6 }
  0x63   : > { %793 = vrot.lane.b32.xlu1 %v1906_v18, %s1911_s30 }
  0x64   : > { %783 = vrot.lane.b32.xlu0 %v1972_v17, %s1911_s30 }
  0x67   : > { %1790 = vrot.lane.b32.xlu1 %v1729_v23, %s1912_s6 }
  0x68   : > { %791 = vrot.lane.b32.xlu0 %v1982_v19, %s1911_s30 }
  0x6b   : > { %1795 = vrot.lane.b32.xlu1 %v1794_v15, %s1912_s6 }
  0x6c   : > { %1785 = vrot.lane.b32.xlu0 %v1724_v21, %s1912_s6 }
  0x6f   : > { %1801 = vrot.lane.b32.xlu1 %v1903_v0, %s1904_s20 }
  0x70   : > { %789 = vrot.lane.b32.xlu0 %v1969_v16, %s1911_s30 }
  0x73   : > { %1091 = vrot.lane.b32.xlu1 %v1906_v18, %s1905_s25 }
  0x74   : > { %930 = vperm.xlu0 %1799, %v927_v27  }
  0x77   : > { %1811 = vrot.lane.b32.xlu1 %v1903_v0, %s1907_s26 }
  0x78   : > { %1806 = vrot.lane.b32.xlu0 %v1903_v0, %s1904_s20  ;;  %v1621_v30 = vpop.permute.xlu1 %1620 }
  0x79   : > { %v1623_v41 = vunpack.i.h.bf16 %v1621_v30  ;;  %v1622_v42 = vunpack.i.l.bf16 %v1621_v30 }
  0x7c   : > { %1816 = vrot.lane.b32.xlu0 %v1903_v0, %s1907_s26 }
  0x85   : > { %v1636_v32 = vpop.permute.xlu1 %1635 }
  0x86   : > { %v1626_v33 = vpop.permute.xlu0 %1625  ;;  %v1638_v45 = vunpack.i.h.bf16 %v1636_v32  ;;  %v1637_v46 = vunpack.i.l.bf16 %v1636_v32 }
  0x87   : > { %v1628_v36 = vunpack.i.h.bf16 %v1626_v33  ;;  %v1627_v37 = vunpack.i.l.bf16 %v1626_v33 }
  0x88   : > { %v339_v61 = vsel %vm333_vm0, %v1637_v46, %v1638_v45 }
  0x89   : > { %v1646_v38 = vpop.permute.xlu1 %1645  ;;  %v335_v47 = vsel %vm333_vm0, %v1627_v37, %v1628_v36  ;;  %v334_v52 = vsel %vm333_vm0, %v1622_v42, %v1627_v37 }
  0x8a   : > { %v1631_v39 = vpop.permute.xlu0 %1630  ;;  %v1647_v48 = vunpack.i.l.bf16 %v1646_v38  ;;  %v1648_v58 = vunpack.i.h.bf16 %v1646_v38 }
  0x8b   : > { %v1633_v43 = vunpack.i.h.bf16 %v1631_v39  ;;  %v1632_v44 = vunpack.i.l.bf16 %v1631_v39 }
  0x8c   : > { %v338_v62 = vsel %vm333_vm0, %v1647_v48, %v1637_v46 }
  0x8d   : > { %v395_v49 = vpop.permute.xlu1 %394  ;;  %v337_v50 = vsel %vm333_vm0, %v1632_v44, %v1633_v43  ;;  %v336_v53 = vsel %vm333_vm0, %v1623_v41, %v1632_v44 }
  0x8e   : > { %v1641_v54 = vpop.permute.xlu0 %1640  ;;  %v1489_v55 = vpack.c.bf16 %v337_v50, %v335_v47  ;;  %v1492_v57 = vpack.c.bf16 %v336_v53, %v334_v52 }
  0x8f   : > { %v1643_v59 = vunpack.i.h.bf16 %v1641_v54  ;;  %v1642_v60 = vunpack.i.l.bf16 %v1641_v54 }
  0x90   : > { %1490 = vmatprep.subr.msk.bf16.mxu0 %vm2064_vm3, %v1489_v55 }
  0x91   : > { %v340_v63 = vsel %vm333_vm0, %v1648_v58, %v1642_v60  ;;  %v341_v1 = vsel %vm333_vm0, %v1642_v60, %v1643_v59  ;;  %1493 = vmatpush1.bf16.msk.msra.mxu0 %vm2073_vm4, %v1492_v57  ;;  %v399_v2 = vpop.permute.xlu1 %398 }
  0x92   : > { %v1495_v3 = vpack.c.bf16 %v341_v1, %v339_v61  ;;  %v1498_v4 = vpack.c.bf16 %v340_v63, %v338_v62  ;;  %v393_v5 = vpop.permute.xlu0 %392 }
  0x93   : > { %v404_v7 = vsel %vm402_vm5, %v393_v5, %v395_v49 }
  0x94   : > { %1496 = vmatprep.subr.msk.bf16.mxu0 %vm2064_vm3, %v1495_v3 }
  0x95   : > { %1499 = vmatpush1.bf16.msk.msra.mxu0 %vm2073_vm4, %v1498_v4  ;;  %v397_v6 = vpop.permute.xlu1 %396 }
  0x96   : > { %951 = vmatprep.subr.bf16.mxu0 %v404_v7  ;;  %v391_v8 = vpop.permute.xlu0 %390  ;;  %v405_v14 = vsel %vm402_vm5, %v397_v6, %v399_v2 }
  0x97   : > { %v403_v9 = vsel %vm402_vm5, %v391_v8, %v393_v5 }
  0x99   : > { %952 = vmatpush1.bf16.msra.mxu0 %v403_v9  ;;  %v1656_v10 = vpop.permute.xlu1 %1655 }
  0x9a   : > { %v401_v11 = vpop.permute.xlu0 %400  ;;  %v1658_v15 = vunpack.i.h.bf16 %v1656_v10  ;;  %v1657_v20 = vunpack.i.l.bf16 %v1656_v10 }
  0x9b   : > { %v406_v13 = vsel %vm402_vm5, %v399_v2, %v401_v11 }
  0x9c   : > { %953 = vmatprep.subr.bf16.mxu0 %v406_v13  ;;  %v471_v26 = vsel %vm467_vm6, %v1657_v20, %v1658_v15 }
  0x9d   : > { %954 = vmatpush1.bf16.msra.mxu0 %v405_v14  ;;  %v1666_v21 = vpop.permute.xlu1 %1665 }
  0x9e   : > { %v1651_v22 = vpop.permute.xlu0 %1650  ;;  %v1668_v37 = vunpack.i.h.bf16 %v1666_v21  ;;  %v1667_v34 = vunpack.i.l.bf16 %v1666_v21 }
  0x9f   : > { %v1653_v23 = vunpack.i.h.bf16 %v1651_v22  ;;  %v1652_v25 = vunpack.i.l.bf16 %v1651_v22 }
  0xa0   : > { %v473_v46 = vsel %vm467_vm6, %v1667_v34, %v1668_v37 }
  0xa1   : > { %v469_v27 = vsel %vm467_vm6, %v1652_v25, %v1653_v23  ;;  %v1676_v28 = vpop.permute.xlu1 %1675 }
  0xa2   : > { %v1501_v31 = vpack.c.bf16 %v471_v26, %v469_v27  ;;  %v1661_v32 = vpop.permute.xlu0 %1660  ;;  %v1677_v38 = vunpack.i.l.bf16 %v1676_v28  ;;  %v1678_v35 = vunpack.i.h.bf16 %v1676_v28 }
  0xa3   : > { %v1663_v33 = vunpack.i.h.bf16 %v1661_v32  ;;  %v1662_v36 = vunpack.i.l.bf16 %v1661_v32 }
  0xa4   : > { %1502 = vmatprep.subr.msk.bf16.mxu0 %vm2095_vm8, %v1501_v31  ;;  %v472_v47 = vsel %vm467_vm6, %v1677_v38, %v1667_v34 }
  0xa5   : > { %v470_v39 = vsel %vm467_vm6, %v1663_v33, %v1657_v20  ;;  %v468_v40 = vsel %vm467_vm6, %v1662_v36, %v1652_v25  ;;  %v1686_v41 = vpop.permute.xlu1 %1685 }
  0xa6   : > { %v1504_v43 = vpack.c.bf16 %v470_v39, %v468_v40  ;;  %v1671_v29 = vpop.permute.xlu0 %1670  ;;  %v1688_v48 = vunpack.i.h.bf16 %v1686_v41  ;;  %v1687_v49 = vunpack.i.l.bf16 %v1686_v41 }
  0xa7   : > { %v1673_v44 = vunpack.i.h.bf16 %v1671_v29  ;;  %v1672_v45 = vunpack.i.l.bf16 %v1671_v29 }
  0xa8   : > { %1505 = vmatpush1.bf16.msk.msra.mxu0 %vm2105_vm10, %v1504_v43  ;;  %v552_v60 = vsel %vm548_vm11, %v1687_v49, %v1688_v48 }
  0xa9   : > { %v474_v50 = vsel %vm467_vm6, %v1678_v35, %v1672_v45  ;;  %v475_v52 = vsel %vm467_vm6, %v1672_v45, %v1673_v44  ;;  %v1696_v53 = vpop.permute.xlu1 %1695 }
  0xaa   : > { %v1507_v54 = vpack.c.bf16 %v475_v52, %v473_v46  ;;  %v1510_v55 = vpack.c.bf16 %v474_v50, %v472_v47  ;;  %v1681_v57 = vpop.permute.xlu0 %1680  ;;  %v1698_v4 = vunpack.i.h.bf16 %v1696_v53  ;;  %v1697_v5 = vunpack.i.l.bf16 %v1696_v53 }
  0xab   : > { %v1683_v58 = vunpack.i.h.bf16 %v1681_v57  ;;  %v1682_v59 = vunpack.i.l.bf16 %v1681_v57 }
  0xac   : > { %1508 = vmatprep.subr.msk.bf16.mxu0 %vm2095_vm8, %v1507_v54  ;;  %v554_v20 = vsel %vm548_vm11, %v1697_v5, %v1698_v4 }
  0xad   : > { %v550_v61 = vsel %vm548_vm11, %v1682_v59, %v1683_v58  ;;  %1511 = vmatpush1.bf16.msk.msra.mxu0 %vm2105_vm10, %v1510_v55  ;;  %v1706_v62 = vpop.permute.xlu1 %1705 }
  0xae   : > { %v1513_v63 = vpack.c.bf16 %v552_v60, %v550_v61  ;;  %v1691_v1 = vpop.permute.xlu0 %1690  ;;  %v1707_v6 = vunpack.i.l.bf16 %v1706_v62  ;;  %v1708_v13 = vunpack.i.h.bf16 %v1706_v62 }
  0xaf   : > { %v1693_v2 = vunpack.i.h.bf16 %v1691_v1  ;;  %v1692_v3 = vunpack.i.l.bf16 %v1691_v1 }
  0xb0   : > { %1514 = vmatprep.subr.msk.bf16.mxu0 %vm2064_vm3, %v1513_v63  ;;  %v553_v21 = vsel %vm548_vm11, %v1707_v6, %v1697_v5 }
  0xb1   : > { %v551_v7 = vsel %vm548_vm11, %v1693_v2, %v1687_v49  ;;  %v549_v8 = vsel %vm548_vm11, %v1692_v3, %v1682_v59  ;;  %v1716_v9 = vpop.permute.xlu1 %1715 }
  0xb2   : > { %v1516_v10 = vpack.c.bf16 %v551_v7, %v549_v8  ;;  %v1701_v11 = vpop.permute.xlu0 %1700  ;;  %v1718_v36 = vunpack.i.h.bf16 %v1716_v9  ;;  %v1717_v37 = vunpack.i.l.bf16 %v1716_v9 }
  0xb3   : > { %v1703_v14 = vunpack.i.h.bf16 %v1701_v11  ;;  %v1702_v15 = vunpack.i.l.bf16 %v1701_v11 }
  0xb4   : > { %1517 = vmatpush1.bf16.msk.msra.mxu0 %vm2073_vm4, %v1516_v10  ;;  %v649_v43 = vsel %vm645_vm12, %v1717_v37, %v1718_v36 }
  0xb5   : > { %v555_v22 = vsel %vm548_vm11, %v1708_v13, %v1702_v15  ;;  %v556_v23 = vsel %vm548_vm11, %v1702_v15, %v1703_v14  ;;  %v1726_v25 = vpop.permute.xlu1 %1725 }
  0xb6   : > { %v1519_v26 = vpack.c.bf16 %v556_v23, %v554_v20  ;;  %v1522_v27 = vpack.c.bf16 %v555_v22, %v553_v21  ;;  %v1711_v28 = vpop.permute.xlu0 %1710  ;;  %v1728_v29 = vunpack.i.h.bf16 %v1726_v25  ;;  %v1727_v35 = vunpack.i.l.bf16 %v1726_v25 }
  0xb7   : > { %v1713_v31 = vunpack.i.h.bf16 %v1711_v28  ;;  %v1712_v32 = vunpack.i.l.bf16 %v1711_v28 }
  0xb8   : > { %1520 = vmatprep.subr.msk.bf16.mxu0 %vm2064_vm3, %v1519_v26  ;;  %v651_v50 = vsel %vm645_vm12, %v1727_v35, %v1728_v29 }
  0xb9   : > { %1523 = vmatpush1.bf16.msk.msra.mxu0 %vm2073_vm4, %v1522_v27  ;;  %v1736_v33 = vpop.permute.xlu1 %1735  ;;  %v647_v40 = vsel %vm645_vm12, %v1712_v32, %v1713_v31 }
  0xba   : > { %v1721_v34 = vpop.permute.xlu0 %1720  ;;  %963 = vmatprep.subr.bf16.mxu0 %v1964_v12  ;;  %v1525_v48 = vpack.c.bf16 %v649_v43, %v647_v40  ;;  %v1738_v52 = vunpack.i.h.bf16 %v1736_v33  ;;  %v1737_v53 = vunpack.i.l.bf16 %v1736_v33 }
  0xbb   : > { %v1723_v38 = vunpack.i.h.bf16 %v1721_v34  ;;  %v1722_v39 = vunpack.i.l.bf16 %v1721_v34 }
  0xbc   : > { %v650_v63 = vsel %vm645_vm12, %v1737_v53, %v1727_v35 }
  0xbd   : > { %964 = vmatpush1.bf16.msra.mxu0 %v1972_v17  ;;  %v1746_v41 = vpop.permute.xlu1 %1745  ;;  %v648_v45 = vsel %vm645_vm12, %v1723_v38, %v1717_v37  ;;  %v646_v46 = vsel %vm645_vm12, %v1722_v39, %v1712_v32 }
  0xbe   : > { %v1731_v44 = vpop.permute.xlu0 %1730  ;;  %965 = vmatprep.subr.bf16.mxu0 %v1982_v19  ;;  %v1528_v54 = vpack.c.bf16 %v648_v45, %v646_v46  ;;  %v1748_v19 = vunpack.i.h.bf16 %v1746_v41  ;;  %v1747_v57 = vunpack.i.l.bf16 %v1746_v41 }
  0xbf   : > { %v1733_v12 = vunpack.i.h.bf16 %v1731_v44  ;;  %v1732_v47 = vunpack.i.l.bf16 %v1731_v44 }
  0xc0   : > { %v730_v2 = vsel %vm726_vm13, %v1747_v57, %v1748_v19 }
  0xc1   : > { %v653_v49 = vsel %vm645_vm12, %v1732_v47, %v1733_v12  ;;  %966 = vmatpush1.bf16.msra.mxu0 %v1969_v16  ;;  %v1756_v17 = vpop.permute.xlu1 %1755  ;;  %v652_v60 = vsel %vm645_vm12, %v1738_v52, %v1732_v47 }
  0xc2   : > { %v1741_v55 = vpop.permute.xlu0 %1740  ;;  %1526 = vmatprep.subr.msk.bf16.mxu0 %vm2095_vm8, %v1525_v48  ;;  %v1531_v61 = vpack.c.bf16 %v653_v49, %v651_v50  ;;  %v1534_v3 = vpack.c.bf16 %v652_v60, %v650_v63  ;;  %v1758_v6 = vunpack.i.h.bf16 %v1756_v17  ;;  %v1757_v8 = vunpack.i.l.bf16 %v1756_v17 }
  0xc3   : > { %v1743_v58 = vunpack.i.h.bf16 %v1741_v55  ;;  %v1742_v59 = vunpack.i.l.bf16 %v1741_v55 }
  0xc4   : > { %v732_v23 = vsel %vm726_vm13, %v1757_v8, %v1758_v6  ;;  %v1477_v6 = vcombine.low %v2030_v24, %v2030_v24 }
  0xc5   : > { %v728_v16 = vsel %vm726_vm13, %v1742_v59, %v1743_v58  ;;  %1529 = vmatpush1.bf16.msk.msra.mxu0 %vm2105_vm10, %v1528_v54  ;;  %v1766_v62 = vpop.permute.xlu1 %1765 }
  0xc6   : > { %v1751_v1 = vpop.permute.xlu0 %1750  ;;  %1532 = vmatprep.subr.msk.bf16.mxu0 %vm2095_vm8, %v1531_v61  ;;  %v1537_v7 = vpack.c.bf16 %v730_v2, %v728_v16  ;;  %v1767_v9 = vunpack.i.l.bf16 %v1766_v62  ;;  %v1768_v20 = vunpack.i.h.bf16 %v1766_v62 }
  0xc7   : > { %v1753_v4 = vunpack.i.h.bf16 %v1751_v1  ;;  %v1752_v5 = vunpack.i.l.bf16 %v1751_v1 }
  0xc8   : > { %v731_v25 = vsel %vm726_vm13, %v1767_v9, %v1757_v8 }
  0xc9   : > { %v729_v10 = vsel %vm726_vm13, %v1753_v4, %v1747_v57  ;;  %v727_v11 = vsel %vm726_vm13, %v1752_v5, %v1742_v59  ;;  %1535 = vmatpush1.bf16.msk.msra.mxu0 %vm2105_vm10, %v1534_v3  ;;  %v788_v13 = vpop.permute.xlu1 %787 }
  0xca   : > { %v1540_v14 = vpack.c.bf16 %v729_v10, %v727_v11  ;;  %v1761_v15 = vpop.permute.xlu0 %1760  ;;  %1538 = vmatprep.subr.msk.bf16.mxu0 %vm2064_vm3, %v1537_v7  ;;  %v1892_v7 = vld [vmem:[%s2312_s1 + $0x8] ss:$0 sps:$4 sm:$0xff]  }
  0xcb   : > { %v1763_v21 = vunpack.i.h.bf16 %v1761_v15  ;;  %v1762_v22 = vunpack.i.l.bf16 %v1761_v15 }
  0xcd   : > { %v733_v26 = vsel %vm726_vm13, %v1768_v20, %v1762_v22  ;;  %v734_v27 = vsel %vm726_vm13, %v1762_v22, %v1763_v21  ;;  %1541 = vmatpush1.bf16.msk.msra.mxu0 %vm2073_vm4, %v1540_v14  ;;  %v1776_v28 = vpop.permute.xlu1 %1775 }
  0xce   : > { %v1543_v31 = vpack.c.bf16 %v734_v27, %v732_v23  ;;  %v1546_v32 = vpack.c.bf16 %v733_v26, %v731_v25  ;;  %v786_v33 = vpop.permute.xlu0 %785  ;;  %v1778_v36 = vunpack.i.h.bf16 %v1776_v28  ;;  %v1777_v37 = vunpack.i.l.bf16 %v1776_v28 }
  0xcf   : > { %v797_v38 = vsel %vm795_vm14, %v786_v33, %v788_v13 }
  0xd0   : > { %1544 = vmatprep.subr.msk.bf16.mxu0 %vm2064_vm3, %v1543_v31  ;;  %v860_v46 = vsel %vm856_vm15, %v1777_v37, %v1778_v36 }
  0xd1   : > { %1547 = vmatpush1.bf16.msk.msra.mxu0 %vm2073_vm4, %v1546_v32  ;;  %v1781_v34 = vpop.permute.xlu1 %1780 }
  0xd2   : > { %v1783_v39 = vunpack.i.h.bf16 %v1781_v34  ;;  %v1782_v40 = vunpack.i.l.bf16 %v1781_v34  ;;  %v1771_v41 = vpop.permute.xlu0 %1770  ;;  %975 = vmatprep.subr.bf16.mxu0 %v797_v38  ;;  %v2236_v38 = vld [vmem:[%s2314_s3] sm:$0xff] }
  0xd3   : > { %v1773_v43 = vunpack.i.h.bf16 %v1771_v41  ;;  %v1772_v29 = vunpack.i.l.bf16 %v1771_v41 }
  0xd4   : > { %v859_v35 = vsel %vm856_vm15, %v1783_v39, %v1777_v37  ;;  %v1482_v39 = vcombine.high %v2236_v38, %v2236_v38 }
  0xd5   : > { %v794_v44 = vpop.permute.xlu1 %793  ;;  %v858_v45 = vsel %vm856_vm15, %v1772_v29, %v1773_v43  ;;  %v857_v12 = vsel %vm856_vm15, %v1782_v40, %v1772_v29  ;;  %v1354_v40 = vld [vmem:[%s2315_s4] sm:$0xff] }
  0xd6   : > { %v784_v47 = vpop.permute.xlu0 %783  ;;  %v1549_v48 = vpack.c.bf16 %v860_v46, %v858_v45  ;;  %v1552_v49 = vpack.c.bf16 %v859_v35, %v857_v12 }
  0xd7   : > { %v796_v17 = vsel %vm795_vm14, %v784_v47, %v786_v33 }
  0xd8   : > { %976 = vmatpush1.bf16.msra.mxu0 %v796_v17  ;;  %1550 = vmatprep.subr.msk.bf16.mxu1 %vm2095_vm8, %v1549_v48 }
  0xd9   : > { %1553 = vmatpush1.bf16.msk.msra.mxu1 %vm2105_vm10, %v1552_v49  ;;  %v1791_v50 = vpop.permute.xlu1 %1790 }
  0xda   : > { %v792_v52 = vpop.permute.xlu0 %791  ;;  %v1793_v54 = vunpack.i.h.bf16 %v1791_v50  ;;  %v1792_v55 = vunpack.i.l.bf16 %v1791_v50 }
  0xdb   : > { %v799_v53 = vsel %vm795_vm14, %v792_v52, %v794_v44 }
  0xdc   : > { %977 = vmatprep.subr.bf16.mxu0 %v799_v53  ;;  %v864_v62 = vsel %vm856_vm15, %v1792_v55, %v1793_v54 }
  0xdd   : > { %v1796_v19 = vpop.permute.xlu1 %1795 }
  0xde   : > { %v1798_v57 = vunpack.i.h.bf16 %v1796_v19  ;;  %v1797_v58 = vunpack.i.l.bf16 %v1796_v19  ;;  %v1786_v59 = vpop.permute.xlu0 %1785 }
  0xdf   : > { %v1788_v60 = vunpack.i.h.bf16 %v1786_v59  ;;  %v1787_v61 = vunpack.i.l.bf16 %v1786_v59 }
  0xe0   : > { %v863_v16 = vsel %vm856_vm15, %v1798_v57, %v1792_v55 }
  0xe1   : > { %v861_v63 = vsel %vm856_vm15, %v1797_v58, %v1787_v61  ;;  %v862_v1 = vsel %vm856_vm15, %v1787_v61, %v1788_v60 }
  0xe2   : > { %v1555_v2 = vpack.c.bf16 %v864_v62, %v862_v1  ;;  %v1558_v3 = vpack.c.bf16 %v863_v16, %v861_v63  ;;  %v790_v4 = vpop.permute.xlu0 %789 }
  0xe3   : > { %v798_v5 = vsel %vm795_vm14, %v790_v4, %v792_v52 }
  0xe4   : > { %978 = vmatpush1.bf16.msra.mxu0 %v798_v5  ;;  %1556 = vmatprep.subr.msk.bf16.mxu1 %vm2095_vm8, %v1555_v2 }
  0xe5   : > { %1559 = vmatpush1.bf16.msk.msra.mxu1 %vm2105_vm10, %v1558_v3 }
  0xe7   : > { %980 = vmatmul.mubr.bf16.vlgmr.msra.gmra.mrb[0].mxu0 %v1477_v6 }
  0xe8   : > { %1480 = vmatmul.mubr.msk.bf16.vlgmr.msra.gmra.mrb[0].mxu1 %vm943_vm1, %v1892_v7 }
  0xe9   : > { %1483 = vmatprep.mubr.msk.bf16.mxu1 %vm402_vm5, %v1482_v39 }
  0xf3   : > { %v931_v24 = vpop.permute.xlu0 %930 }
  0xf7   : > { %v1807_v43 = vpop.permute.xlu0 %1806 }
  0xf8   : > { %v1809_v46 = vunpack.i.h.bf16 %v1807_v43 }
  0xfb   : > { %v1817_v35 = vpop.permute.xlu0 %1816 }
  0xfc   : > { %v1818_v16 = vunpack.i.l.bf16 %v1817_v35  ;;  %v1819_v1 = vunpack.i.h.bf16 %v1817_v35 }
 0x1ba   : > { %v981_v8 = vpop.f32.mrb[0].mxu0 }
 0x1bb   : > { %v982_v9 = vadd.f32 %v981_v8, %v931_v24  ;;  %v983_v10 = vpop.f32.mrb[1].mxu0  ;;  %v1022_v11 = vpop.f32.mrb[0].mxu1 }
 0x1bc   : > { %v984_v13 = vadd.f32 %v983_v10, %v931_v24  ;;  %v985_v14 = vpop.f32.mrb[2].mxu0  ;;  %v1024_v15 = vpop.f32.mrb[1].mxu1 }
 0x1bd   : > { %v1023_v20 = vadd.f32 %v1022_v11, %v982_v9  ;;  %v986_v21 = vpop.f32.mrb[3].mxu0  ;;  %v1026_v22 = vpop.f32.mrb[2].mxu1 }
 0x1be   : > { %v1025_v23 = vadd.f32 %v1024_v15, %v984_v13  ;;  %v1027_v25 = vpop.f32.mrb[3].mxu1 }
 0x1bf   : > { %vm1029_vm2 = vcmp.ge.f32.partialorder %v1023_v20, 0.0  ;;  %v1031_v26 = vmul.f32 0.1, %v1023_v20 }
 0x1c0   : > { %vm1030_vm7 = vcmp.ge.f32.partialorder %v1025_v23, 0.0  ;;  %v1032_v27 = vmul.f32 0.1, %v1025_v23 }
 0x1c1   : > { %v1033_v28 = vsel %vm1029_vm2, %v1023_v20, %v1031_v26 }
 0x1c2   : > { %v1034_v31 = vsel %vm1030_vm7, %v1025_v23, %v1032_v27  ;;  %v2209_v36 = vpack.c.bf16 %v1903_v0, %v1033_v28  ;;  %v1855_v34 = vpack.i.bf16 %v1903_v0, %v1033_v28 }
 0x1c3   : > { %v1825_v32 = vpack.i.bf16 %v1034_v31, %v1033_v28  ;;  %v2203_v33 = vpack.c.bf16 %v1903_v0, %v1034_v31  ;;  %v1845_v37 = vpack.i.bf16 %v1903_v0, %v1034_v31 }
 0x1c5   : > { %1826 = vrot.lane.b32.xlu0 %v1825_v32, %s1907_s26  ;;  %1821 = vrot.lane.b32.xlu1 %v1825_v32, %s1904_s20 }
 0x1c9   : > { %1095 = vrot.lane.b32.xlu0 %v2203_v33, %s1905_s25  ;;  %1831 = vrot.lane.b32.xlu1 %v1825_v32, %s1908_s27 }
 0x1cd   : > { %1836 = vrot.lane.b32.xlu0 %v1903_v0, %s1908_s27  ;;  %1093 = vrot.lane.b32.xlu1 %v2209_v36, %s1905_s25 }
 0x1d1   : > { %1846 = vrot.lane.b32.xlu0 %v1845_v37, %s1909_s28  ;;  %1841 = vrot.lane.b32.xlu1 %v1903_v0, %s1908_s27 }
 0x1d5   : > { %1856 = vrot.lane.b32.xlu0 %v1855_v34, %s1909_s28  ;;  %1851 = vrot.lane.b32.xlu1 %v1903_v0, %s1909_s28 }
 0x1d9   : > { %1866 = vrot.lane.b32.xlu0 %v1903_v0, %s1910_s29  ;;  %1861 = vrot.lane.b32.xlu1 %v1845_v37, %s1910_s29 }
 0x1dd   : > { %1283 = vrot.lane.b32.xlu0 %v2209_v36, %s1911_s30  ;;  %1871 = vrot.lane.b32.xlu1 %v1855_v34, %s1910_s29 }
 0x1e1   : > { %1285 = vrot.lane.b32.xlu0 %v2203_v33, %s1911_s30  ;;  %1287 = vrot.lane.b32.xlu1 %v1906_v18, %s1911_s30  ;;  %v1802_v18 = vpop.permute.xlu1 %1801 }
 0x1e2   : > { %v1804_v44 = vunpack.i.h.bf16 %v1802_v18  ;;  %v1803_v45 = vunpack.i.l.bf16 %v1802_v18 }
 0x1e4   : > { %v1066_v17 = vsel %vm333_vm0, %v1803_v45, %v1804_v44  ;;  %v1065_v50 = vsel %vm333_vm0, %v1809_v46, %v1803_v45 }
 0x1e5   : > { %1881 = vrot.lane.b32.xlu0 %v1903_v0, %s1912_s6  ;;  %1876 = vrot.lane.b32.xlu1 %v1845_v37, %s1912_s6  ;;  %v1092_v41 = vpop.permute.xlu1 %1091  ;;  %v1808_v0 = vunpack.i.l.bf16 %v1807_v43 }
 0x1e9   : > { %1357 = vperm.xlu0 %1799, %v1354_v40   ;;  %1886 = vrot.lane.b32.xlu1 %v1855_v34, %s1912_s6  ;;  %v1812_v29 = vpop.permute.xlu1 %1811 }
 0x1ea   : > { %v1814_v19 = vunpack.i.h.bf16 %v1812_v29  ;;  %v1813_v57 = vunpack.i.l.bf16 %v1812_v29 }
 0x1ec   : > { %v1130_v63 = vsel %vm467_vm6, %v1813_v57, %v1814_v19  ;;  %v1129_v13 = vsel %vm467_vm6, %v1819_v1, %v1813_v57 }
 0x237   : > { %v1827_v12 = vpop.permute.xlu0 %1826  ;;  %v1822_v47 = vpop.permute.xlu1 %1821 }
 0x238   : > { %v1824_v48 = vunpack.i.h.bf16 %v1822_v47  ;;  %v1823_v49 = vunpack.i.l.bf16 %v1822_v47  ;;  %v1829_v52 = vunpack.i.h.bf16 %v1827_v12  ;;  %v1828_v53 = vunpack.i.l.bf16 %v1827_v12 }
 0x23a   : > { %v1063_v54 = vsel %vm333_vm0, %v1808_v0, %v1823_v49  ;;  %v1064_v55 = vsel %vm333_vm0, %v1823_v49, %v1824_v48  ;;  %v1128_v62 = vsel %vm467_vm6, %v1828_v53, %v1829_v52  ;;  %v1127_v9 = vsel %vm467_vm6, %v1818_v16, %v1828_v53 }
 0x23b   : > { %v1561_v58 = vpack.c.bf16 %v1066_v17, %v1064_v55  ;;  %v1564_v59 = vpack.c.bf16 %v1065_v50, %v1063_v54  ;;  %v1096_v60 = vpop.permute.xlu0 %1095  ;;  %v1832_v61 = vpop.permute.xlu1 %1831  ;;  %v1567_v10 = vpack.c.bf16 %v1130_v63, %v1128_v62  ;;  %v1570_v20 = vpack.c.bf16 %v1129_v13, %v1127_v9 }
 0x23c   : > { %v1834_v2 = vunpack.i.h.bf16 %v1832_v61  ;;  %v1833_v3 = vunpack.i.l.bf16 %v1832_v61 }
 0x23d   : > { %1562 = vmatprep.subr.msk.bf16.mxu1 %vm2064_vm3, %v1561_v58 }
 0x23e   : > { %1565 = vmatpush1.bf16.msk.msra.mxu1 %vm2073_vm4, %v1564_v59  ;;  %v1168_v21 = vsel %vm548_vm11, %v1833_v3, %v1834_v2 }
 0x23f   : > { %v1837_v4 = vpop.permute.xlu0 %1836  ;;  %v1094_v5 = vpop.permute.xlu1 %1093 }
 0x240   : > { %v1839_v6 = vunpack.i.h.bf16 %v1837_v4  ;;  %v1838_v7 = vunpack.i.l.bf16 %v1837_v4  ;;  %v1097_v24 = vsel %vm402_vm5, %v1092_v41, %v1094_v5  ;;  %v1098_v8 = vsel %vm402_vm5, %v1094_v5, %v1096_v60 }
 0x241   : > { %1372 = vmatprep.subr.bf16.mxu1 %v1098_v8 }
 0x242   : > { %v1170_v11 = vsel %vm548_vm11, %v1838_v7, %v1839_v6  ;;  %1373 = vmatpush1.bf16.msra.mxu1 %v1097_v24 }
 0x243   : > { %v1847_v14 = vpop.permute.xlu0 %1846  ;;  %1568 = vmatprep.subr.msk.bf16.mxu1 %vm2095_vm8, %v1567_v10  ;;  %v1842_v15 = vpop.permute.xlu1 %1841  ;;  %v1573_v25 = vpack.c.bf16 %v1170_v11, %v1168_v21  ;;  %v1481_v11 = vcombine.low %v2236_v38, %v2236_v38 }
 0x244   : > { %v1844_v22 = vunpack.i.h.bf16 %v1842_v15  ;;  %v1843_v23 = vunpack.i.l.bf16 %v1842_v15  ;;  %v1849_v28 = vunpack.i.h.bf16 %v1847_v14  ;;  %v1848_v31 = vunpack.i.l.bf16 %v1847_v14 }
 0x246   : > { %v1169_v26 = vsel %vm548_vm11, %v1844_v22, %v1838_v7  ;;  %v1167_v27 = vsel %vm548_vm11, %v1843_v23, %v1833_v3  ;;  %1571 = vmatpush1.bf16.msk.msra.mxu1 %vm2105_vm10, %v1570_v20  ;;  %v1216_v29 = vsel %vm645_vm12, %v1848_v31, %v1849_v28 }
 0x247   : > { %v1576_v32 = vpack.c.bf16 %v1169_v26, %v1167_v27  ;;  %v1857_v37 = vpop.permute.xlu0 %1856  ;;  %1574 = vmatprep.subr.msk.bf16.mxu1 %vm2064_vm3, %v1573_v25  ;;  %v1852_v34 = vpop.permute.xlu1 %1851 }
 0x248   : > { %v1854_v39 = vunpack.i.h.bf16 %v1852_v34  ;;  %v1853_v40 = vunpack.i.l.bf16 %v1852_v34  ;;  %v1859_v18 = vunpack.i.h.bf16 %v1857_v37  ;;  %v1858_v41 = vunpack.i.l.bf16 %v1857_v37 }
 0x24a   : > { %v1218_v43 = vsel %vm645_vm12, %v1853_v40, %v1854_v39  ;;  %1577 = vmatpush1.bf16.msk.msra.mxu1 %vm2073_vm4, %v1576_v32  ;;  %v1215_v0 = vsel %vm645_vm12, %v1858_v41, %v1848_v31  ;;  %v1217_v48 = vsel %vm645_vm12, %v1859_v18, %v1853_v40 }
 0x24b   : > { %v1867_v35 = vpop.permute.xlu0 %1866  ;;  %v1862_v44 = vpop.permute.xlu1 %1861  ;;  %1378 = vmatprep.subr.bf16.mxu1 %v2203_v33  ;;  %v1579_v49 = vpack.c.bf16 %v1218_v43, %v1216_v29  ;;  %v1582_v33 = vpack.c.bf16 %v1217_v48, %v1215_v0 }
 0x24c   : > { %v1869_v45 = vunpack.i.h.bf16 %v1867_v35  ;;  %v1868_v46 = vunpack.i.l.bf16 %v1867_v35  ;;  %v1864_v12 = vunpack.i.h.bf16 %v1862_v44  ;;  %v1863_v47 = vunpack.i.l.bf16 %v1862_v44 }
 0x24e   : > { %v1258_v17 = vsel %vm726_vm13, %v1868_v46, %v1869_v45  ;;  %v1256_v50 = vsel %vm726_vm13, %v1863_v47, %v1864_v12  ;;  %1379 = vmatpush1.bf16.msra.mxu1 %v2209_v36 }
 0x24f   : > { %v1284_v52 = vpop.permute.xlu0 %1283  ;;  %v1872_v53 = vpop.permute.xlu1 %1871  ;;  %1580 = vmatprep.subr.msk.bf16.mxu1 %vm2095_vm8, %v1579_v49  ;;  %v1585_v19 = vpack.c.bf16 %v1258_v17, %v1256_v50 }
 0x250   : > { %v1874_v54 = vunpack.i.h.bf16 %v1872_v53  ;;  %v1873_v55 = vunpack.i.l.bf16 %v1872_v53 }
 0x252   : > { %v1257_v57 = vsel %vm726_vm13, %v1874_v54, %v1868_v46  ;;  %v1255_v58 = vsel %vm726_vm13, %v1873_v55, %v1863_v47  ;;  %1583 = vmatpush1.bf16.msk.msra.mxu1 %vm2105_vm10, %v1582_v33 }
 0x253   : > { %v1588_v59 = vpack.c.bf16 %v1257_v57, %v1255_v58  ;;  %v1286_v60 = vpop.permute.xlu0 %1285  ;;  %v1288_v61 = vpop.permute.xlu1 %1287  ;;  %1586 = vmatprep.subr.msk.bf16.mxu1 %vm2064_vm3, %v1585_v19 }
 0x254   : > { %v1290_v36 = vsel %vm795_vm14, %v1286_v60, %v1288_v61  ;;  %v1289_v4 = vsel %vm795_vm14, %v1284_v52, %v1286_v60 }
 0x256   : > { %1589 = vmatpush1.bf16.msk.msra.mxu1 %vm2073_vm4, %v1588_v59 }
 0x257   : > { %v1882_v16 = vpop.permute.xlu0 %1881  ;;  %v1877_v62 = vpop.permute.xlu1 %1876  ;;  %1384 = vmatprep.subr.bf16.mxu1 %v1290_v36 }
 0x258   : > { %v1884_v63 = vunpack.i.h.bf16 %v1882_v16  ;;  %v1883_v1 = vunpack.i.l.bf16 %v1882_v16  ;;  %v1879_v2 = vunpack.i.h.bf16 %v1877_v62  ;;  %v1878_v3 = vunpack.i.l.bf16 %v1877_v62 }
 0x25a   : > { %v1322_v5 = vsel %vm856_vm15, %v1883_v1, %v1884_v63  ;;  %v1320_v51 = vsel %vm856_vm15, %v1878_v3, %v1879_v2  ;;  %1385 = vmatpush1.bf16.msra.mxu1 %v1289_v4 }
 0x25b   : > { %v1591_v6 = vpack.c.bf16 %v1322_v5, %v1320_v51  ;;  %v1887_v56 = vpop.permute.xlu1 %1886 }
 0x25c   : > { %v1889_v7 = vunpack.i.h.bf16 %v1887_v56  ;;  %v1888_v24 = vunpack.i.l.bf16 %v1887_v56 }
 0x25d   : > { %1592 = vmatprep.subr.msk.bf16.mxu1 %vm2095_vm8, %v1591_v6 }
 0x25e   : > { %v1321_v8 = vsel %vm856_vm15, %v1889_v7, %v1883_v1  ;;  %v1319_v9 = vsel %vm856_vm15, %v1888_v24, %v1878_v3 }
 0x25f   : > { %v1594_v10 = vpack.c.bf16 %v1321_v8, %v1319_v9 }
 0x261   : > { %1595 = vmatpush1.bf16.msk.msra.mxu1 %vm2105_vm10, %v1594_v10 }
 0x264   : > { %1403 = vmatmul.mubr.bf16.vlgmr.msra.gmra.mrb[4].mxu1 %v1481_v11 }
 0x268   : > { %v1358_v13 = vpop.permute.xlu0 %1357 }
 0x337   : > { %v1404_v30 = vpop.f32.mrb[4].mxu1 }
 0x338   : > { %v1405_v14 = vadd.f32 %v1404_v30, %v1358_v13  ;;  %v1406_v15 = vpop.f32.mrb[5].mxu1 }
 0x339   : > { %v1407_v20 = vadd.f32 %v1406_v15, %v1358_v13  ;;  %v1408_v21 = vpop.f32.mrb[6].mxu1 }
 0x33a   : > { %1411 = vst [vmem:[%s224_s22] sm:$0xff] %v1405_v14  ;;  %v1409_v22 = vpop.f32.mrb[7].mxu1 }
 0x33b   : > { %1412 = vst [vmem:[%s224_s22 + $0x8] sm:$0xff] %v1407_v20 }
 0x33c PF: > { %s15_s18 = sadd.s32 1, %s1901_s18  }
 0x33d   : > { %p12_p4 = scmp.ge.s32.totalorder %s15_s18, 4  }
 0x33f   :  { %14 = sbr.rel (!%p12_p4) target bundleno = 1 (0x1), region = 70 }

</bundles_post_ra>
